<compile_context>
chip_gen: v7x
topology: tpu7x:2x2x1
jax: 0.10.0
libtpu: 0.0.40
codegen_flags: <defaults>
</compile_context>

<pallas_src>
import functools

import jax
import jax.numpy as jnp
from jax.experimental import pallas as pl
from jax.experimental.pallas import tpu as pltpu

_LANE = 128


def _round_up(n, m):
    return (n + m - 1) // m * m


# ----------------------------------------------------------------------------
# Pallas kernel: fused matmul(s) (+ bias) + per-sample InstanceNorm + act
# ----------------------------------------------------------------------------
def _layer_kernel(*args, n_inputs, has_bias, apply_norm, act):
    # Grid is (N,): each step handles one sample, so InstanceNorm stats are
    # plain reductions over every non-channel axis of the block (no masks).
    #   conv  layers: p (S, K) bf16,    w (K, Cp) bf16
    #   convT layers: p (4, S, K) bf16, w (4, K, Cp) bf16   (4 sub-pixel phases)
    out_ref = args[-1]
    pos = 0
    acc = None
    for _ in range(n_inputs):
        p = args[pos][...]
        w = args[pos + 1][...]
        pos += 2
        if p.ndim == 3:      # batched over the 4 phases
            part = jax.lax.dot_general(
                p, w, dimension_numbers=(((2,), (1,)), ((0,), (0,))),
                preferred_element_type=jnp.float32)
        else:
            part = jnp.dot(p, w, preferred_element_type=jnp.float32)
        acc = part if acc is None else acc + part
    y = acc

    if has_bias:
        y = y + args[pos][...]          # (1, Cp) f32, broadcasts
        pos += 1

    if apply_norm:
        # InstanceNorm2d(affine=False, eps=1e-5); padded channels stay 0.
        red = tuple(range(y.ndim - 1))
        mean = jnp.mean(y, axis=red, keepdims=True)
        cen = y - mean
        var = jnp.mean(cen * cen, axis=red, keepdims=True)
        y = cen * jax.lax.rsqrt(var + 1e-5)

    if act == "leaky":
        y = jnp.where(y >= 0.0, y, 0.2 * y)
    elif act == "relu":
        y = jnp.maximum(y, 0.0)
    elif act == "tanh":
        y = jnp.tanh(y)

    out_ref[...] = y.astype(out_ref.dtype)


def _fused_layer(pairs, *, apply_norm, act, bias=None, out_dtype=jnp.bfloat16):
    """pairs: list of (patches, weight); patches (N,S,K) or (N,4,S,K) bf16."""
    N = pairs[0][0].shape[0]
    conv_t = pairs[0][0].ndim == 4
    S = pairs[0][0].shape[-2]
    Cp = pairs[0][1].shape[-1]

    operands, in_specs = [], []
    for p, w in pairs:
        k = p.shape[-1]
        if conv_t:
            in_specs.append(pl.BlockSpec((None, 4, S, k),
                                         lambda n: (n, 0, 0, 0)))
            in_specs.append(pl.BlockSpec((4, k, Cp), lambda n: (0, 0, 0)))
        else:
            in_specs.append(pl.BlockSpec((None, S, k), lambda n: (n, 0, 0)))
            in_specs.append(pl.BlockSpec((k, Cp), lambda n: (0, 0)))
        operands.append(p)
        operands.append(w)
    if bias is not None:
        in_specs.append(pl.BlockSpec((1, Cp), lambda n: (0, 0)))
        operands.append(bias)

    if conv_t:
        out_shape = jax.ShapeDtypeStruct((N, 4, S, Cp), out_dtype)
        out_spec = pl.BlockSpec((None, 4, S, Cp), lambda n: (n, 0, 0, 0))
    else:
        out_shape = jax.ShapeDtypeStruct((N, S, Cp), out_dtype)
        out_spec = pl.BlockSpec((None, S, Cp), lambda n: (n, 0, 0))

    kernel = functools.partial(_layer_kernel, n_inputs=len(pairs),
                               has_bias=bias is not None,
                               apply_norm=apply_norm, act=act)
    return pl.pallas_call(
        kernel,
        out_shape=out_shape,
        grid=(N,),
        in_specs=in_specs,
        out_specs=out_spec,
        compiler_params=pltpu.CompilerParams(
            dimension_semantics=("parallel",),
            vmem_limit_bytes=32 * 1024 * 1024),
    )(*operands)


# ----------------------------------------------------------------------------
# Glue: patch extraction (kept bf16, per-sample leading dim for the grid)
# ----------------------------------------------------------------------------
def _im2col_conv(x, k=4, stride=2, pad=1):
    # Stride-2 k=4 conv patches: (N, OH*OW, 16*C)
    N, H, W, C = x.shape
    xp = jnp.pad(x, ((0, 0), (pad, pad), (pad, pad), (0, 0)))
    OH = (H + 2 * pad - k) // stride + 1
    OW = (W + 2 * pad - k) // stride + 1
    cols = []
    for dy in range(k):
        for dx in range(k):
            cols.append(xp[:, dy:dy + stride * (OH - 1) + 1:stride,
                           dx:dx + stride * (OW - 1) + 1:stride, :])
    p = jnp.stack(cols, axis=3)                     # (N, OH, OW, 16, C)
    return p.reshape(N, OH * OW, k * k * C), OH, OW


def _phase_patches(x):
    # 2x2-tap patches for the 4 sub-pixel phases of ConvTranspose2d(4,2,1):
    # output(2m+py, 2q+px) = sum_{a,b} x[m+py-1+a, q+px-1+b] * w[.., 3-py-2a, 3-px-2b]
    N, H, W, C = x.shape
    phases = []
    for py in range(2):
        for px in range(2):
            xp = jnp.pad(x, ((0, 0), (1 - py, py), (1 - px, px), (0, 0)))
            taps = []
            for a in range(2):
                for b in range(2):
                    taps.append(xp[:, a:a + H, b:b + W, :])
            t = jnp.stack(taps, axis=3)             # (N, H, W, 4, C)
            phases.append(t.reshape(N, H * W, 4 * C))
    return jnp.stack(phases, axis=1)                # (N, 4, H*W, 4*C)


def _conv_layer(x, w_mat, c_out, norm, act):
    N = x.shape[0]
    patches, OH, OW = _im2col_conv(x)
    y = _fused_layer([(patches, w_mat)], apply_norm=norm, act=act)
    return y[:, :, :c_out].reshape(N, OH, OW, c_out)


def _convT_layer(inputs, c_out, norm, act, bias=None, out_dtype=jnp.bfloat16):
    # inputs: list of (activation NHWC, prepped phase weight); summed in-kernel
    N, H, W, _ = inputs[0][0].shape
    pairs = [(_phase_patches(xa), w) for xa, w in inputs]
    y = _fused_layer(pairs, apply_norm=norm, act=act, bias=bias,
                     out_dtype=out_dtype)
    y = y[:, :, :, :c_out]                          # (N, 4, H*W, c_out)
    y = y.reshape(N, 2, 2, H, W, c_out)             # (N, py, px, H, W, C)
    y = jnp.transpose(y, (0, 3, 1, 4, 2, 5))        # (N, H, py, W, px, C)
    return y.reshape(N, 2 * H, 2 * W, c_out)


# ----------------------------------------------------------------------------
# Weight preparation (done once, outside jit)
# ----------------------------------------------------------------------------
def _prep_conv_weight(w):
    # w: (Cout, Cin, 4, 4) Conv2d -> (16*Cin_pad, Cp) bf16, tap-major ci-fast
    c_out, c_in = int(w.shape[0]), int(w.shape[1])
    ci_pad = _round_up(c_in, 8)
    if ci_pad > c_in:
        w = jnp.pad(w, ((0, 0), (0, ci_pad - c_in), (0, 0), (0, 0)))
    m = jnp.transpose(w, (2, 3, 1, 0)).reshape(16 * ci_pad, c_out)
    cp = _round_up(c_out, _LANE)
    m = jnp.pad(m, ((0, 0), (0, cp - c_out)))
    return m.astype(jnp.bfloat16)


def _prep_convT_weight(w):
    # w: (Cin, Cout, 4, 4) ConvTranspose2d -> (4 phases, 4*Cin, Cp) bf16
    c_in, c_out = int(w.shape[0]), int(w.shape[1])
    cp = _round_up(c_out, _LANE)
    mats = []
    for py in range(2):
        for px in range(2):
            taps = []
            for a in range(2):
                for b in range(2):
                    taps.append(w[:, :, 3 - py - 2 * a, 3 - px - 2 * b])
            mats.append(jnp.stack(taps, axis=0).reshape(4 * c_in, c_out))
    m = jnp.stack(mats, axis=0)
    m = jnp.pad(m, ((0, 0), (0, 0), (0, cp - c_out)))
    return m.astype(jnp.bfloat16)


def prepare_params(params):
    """Flatten / phase-decompose / split / pad / cast all weights once."""
    def split(w):
        h = w.shape[0] // 2          # d-part and e-part always have equal Cin
        return w[:h], w[h:]

    d3d, d3e = split(params["dec3"])
    d2d, d2e = split(params["dec2"])
    d1d, d1e = split(params["dec1"])
    od, oe = split(params["out_w"])
    out_c = int(params["out_b"].shape[0])
    cp = _round_up(out_c, _LANE)
    return {
        "enc1": _prep_conv_weight(params["enc1"]),
        "enc2": _prep_conv_weight(params["enc2"]),
        "enc3": _prep_conv_weight(params["enc3"]),
        "enc4": _prep_conv_weight(params["enc4"]),
        "bottleneck": _prep_conv_weight(params["bottleneck"]),
        "dec4": _prep_convT_weight(params["dec4"]),
        "dec3_d": _prep_convT_weight(d3d), "dec3_e": _prep_convT_weight(d3e),
        "dec2_d": _prep_convT_weight(d2d), "dec2_e": _prep_convT_weight(d2e),
        "dec1_d": _prep_convT_weight(d1d), "dec1_e": _prep_convT_weight(d1e),
        "out_d": _prep_convT_weight(od), "out_e": _prep_convT_weight(oe),
        "out_b": jnp.pad(params["out_b"],
                         (0, cp - out_c)).reshape(1, cp).astype(jnp.float32),
    }


# ----------------------------------------------------------------------------
# UNetGenerator forward
# ----------------------------------------------------------------------------
def init_params(key, in_c=1, out_c=3, feat=8):
    ks = jax.random.split(key, 11)
    s = 0.05
    return {
        "enc1": jax.random.normal(ks[0], (feat, in_c, 4, 4), jnp.float32) * s,
        "enc2": jax.random.normal(ks[1], (feat * 2, feat, 4, 4), jnp.float32) * s,
        "enc3": jax.random.normal(ks[2], (feat * 4, feat * 2, 4, 4), jnp.float32) * s,
        "enc4": jax.random.normal(ks[3], (feat * 8, feat * 4, 4, 4), jnp.float32) * s,
        "bottleneck": jax.random.normal(ks[4], (feat * 8, feat * 8, 4, 4), jnp.float32) * s,
        "dec4": jax.random.normal(ks[5], (feat * 8, feat * 8, 4, 4), jnp.float32) * s,
        "dec3": jax.random.normal(ks[6], (feat * 16, feat * 4, 4, 4), jnp.float32) * s,
        "dec2": jax.random.normal(ks[7], (feat * 8, feat * 2, 4, 4), jnp.float32) * s,
        "dec1": jax.random.normal(ks[8], (feat * 4, feat, 4, 4), jnp.float32) * s,
        "out_w": jax.random.normal(ks[9], (feat * 2, out_c, 4, 4), jnp.float32) * s,
        "out_b": jax.random.normal(ks[10], (out_c,), jnp.float32) * s,
    }


def unet_forward(x_nchw, prep, *, feat=8, out_c=3):
    x = jnp.transpose(x_nchw, (0, 2, 3, 1)).astype(jnp.bfloat16)  # NCHW->NHWC
    in_c = x.shape[-1]
    ci_pad = _round_up(in_c, 8)
    if ci_pad > in_c:                     # pre-pad channels so enc1 K == 128
        x = jnp.pad(x, ((0, 0), (0, 0), (0, 0), (0, ci_pad - in_c)))

    e1 = _conv_layer(x, prep["enc1"], feat, norm=False, act="leaky")
    e2 = _conv_layer(e1, prep["enc2"], feat * 2, norm=True, act="leaky")
    e3 = _conv_layer(e2, prep["enc3"], feat * 4, norm=True, act="leaky")
    e4 = _conv_layer(e3, prep["enc4"], feat * 8, norm=True, act="leaky")
    b = _conv_layer(e4, prep["bottleneck"], feat * 8, norm=False, act="relu")

    # TODO(synk): Dropout(0.5) in dec4/dec3 is identity (eval-mode semantics).
    d4 = _convT_layer([(b, prep["dec4"])], feat * 8, norm=True, act="relu")
    d3 = _convT_layer([(d4, prep["dec3_d"]), (e4, prep["dec3_e"])],
                      feat * 4, norm=True, act="relu")
    d2 = _convT_layer([(d3, prep["dec2_d"]), (e3, prep["dec2_e"])],
                      feat * 2, norm=True, act="relu")
    d1 = _convT_layer([(d2, prep["dec1_d"]), (e2, prep["dec1_e"])],
                      feat, norm=True, act="relu")
    out = _convT_layer([(d1, prep["out_d"]), (e1, prep["out_e"])],
                       out_c, norm=False, act="tanh",
                       bias=prep["out_b"], out_dtype=jnp.float32)
    return jnp.transpose(out, (0, 3, 1, 2))                       # NHWC->NCHW


# ----------------------------------------------------------------------------
# Pure-JAX reference (lax.conv) that mimics the kernel's bf16 storage
# ----------------------------------------------------------------------------
def _ref_conv(x, w):
    return jax.lax.conv_general_dilated(
        x.astype(jnp.bfloat16),
        jnp.transpose(w, (2, 3, 1, 0)).astype(jnp.bfloat16),
        window_strides=(2, 2), padding=((1, 1), (1, 1)),
        dimension_numbers=("NHWC", "HWIO", "NHWC"),
        preferred_element_type=jnp.float32)


def _ref_convT(x, w):
    wf = w[:, :, ::-1, ::-1]
    return jax.lax.conv_general_dilated(
        x.astype(jnp.bfloat16),
        jnp.transpose(wf, (2, 3, 0, 1)).astype(jnp.bfloat16),
        window_strides=(1, 1), padding=((2, 2), (2, 2)), lhs_dilation=(2, 2),
        dimension_numbers=("NHWC", "HWIO", "NHWC"),
        preferred_element_type=jnp.float32)


def _ref_in(y):
    m = jnp.mean(y, axis=(1, 2), keepdims=True)
    v = jnp.mean((y - m) ** 2, axis=(1, 2), keepdims=True)
    return (y - m) * jax.lax.rsqrt(v + 1e-5)


def _leaky(y):
    return jnp.where(y >= 0.0, y, 0.2 * y)


def reference_forward(x_nchw, params):
    q = lambda t: t.astype(jnp.bfloat16).astype(jnp.float32)
    x = jnp.transpose(x_nchw, (0, 2, 3, 1))
    e1 = q(_leaky(_ref_conv(x, params["enc1"])))
    e2 = q(_leaky(_ref_in(_ref_conv(e1, params["enc2"]))))
    e3 = q(_leaky(_ref_in(_ref_conv(e2, params["enc3"]))))
    e4 = q(_leaky(_ref_in(_ref_conv(e3, params["enc4"]))))
    b = q(jnp.maximum(_ref_conv(e4, params["bottleneck"]), 0.0))
    d4 = q(jnp.maximum(_ref_in(_ref_convT(b, params["dec4"])), 0.0))
    d3 = q(jnp.maximum(_ref_in(_ref_convT(
        jnp.concatenate([d4, e4], -1), params["dec3"])), 0.0))
    d2 = q(jnp.maximum(_ref_in(_ref_convT(
        jnp.concatenate([d3, e3], -1), params["dec2"])), 0.0))
    d1 = q(jnp.maximum(_ref_in(_ref_convT(
        jnp.concatenate([d2, e2], -1), params["dec1"])), 0.0))
    o = jnp.tanh(_ref_convT(jnp.concatenate([d1, e1], -1), params["out_w"])
                 + params["out_b"])
    return jnp.transpose(o, (0, 3, 1, 2))


if __name__ == "__main__":
    in_c, out_c, feat = 1, 3, 8
    N, H, W = 2, 32, 32   # 32 -> 16 -> 8 -> 4 -> 2 -> 1 through the 5 encoders

    key = jax.random.PRNGKey(0)
    k_x, k_p = jax.random.split(key)
    x = jax.random.normal(k_x, (N, in_c, H, W), jnp.float32)
    params = init_params(k_p, in_c=in_c, out_c=out_c, feat=feat)
    prep = prepare_params(params)          # weight prep, done once

    fwd = jax.jit(lambda xx, pp: unet_forward(xx, pp, feat=feat, out_c=out_c))
    y = jax.block_until_ready(fwd(x, prep))

    assert y.shape == (N, out_c, H, W), y.shape
    assert bool(jnp.all(jnp.isfinite(y)))
    assert bool(jnp.all(jnp.abs(y) <= 1.0 + 1e-6))           # tanh output range

    # Cross-check against the lax.conv reference (bf16 storage mimicked, so the
    # only remaining difference is f32 accumulation-order noise).
    y_ref = reference_forward(x, params)
    mae = float(jnp.mean(jnp.abs(y - y_ref)))
    assert mae < 3e-2, f"MAE vs reference too large: {mae}"

    print("KERNEL_OK")
</pallas_src>

<mosaic_0001>
module attributes {stable_mosaic.version = 11 : i64} {
  func.func @_layer_kernel(%arg0: i32, %arg1: memref<1x256x128xbf16, #tpu.memory_space<vmem>>, %arg2: memref<128x128xbf16, #tpu.memory_space<vmem>>, %arg3: memref<1x256x128xbf16, #tpu.memory_space<vmem>>) attributes {dimension_semantics = [#tpu.dimension_semantics<parallel>], iteration_bounds = array<i64: 2>, scalar_prefetch = 0 : i64, scratch_operands = 0 : i64, tpu.core_type = #tpu.core_type<tc>, window_params = [{transform_indices = @transform_0, window_bounds = array<i64: 1, 256, 128>}, {pipeline_mode = #tpu.pipeline_mode<synchronous>, transform_indices = @transform_1, window_bounds = array<i64: 128, 128>}, {transform_indices = @transform_2, window_bounds = array<i64: 1, 256, 128>}]} {
    %c0 = arith.constant 0 : index
    %c0_0 = arith.constant 0 : index
    %c0_1 = arith.constant 0 : index
    %0 = vector.load %arg1[%c0, %c0_0, %c0_1] : memref<1x256x128xbf16, #tpu.memory_space<vmem>>, vector<1x256x128xbf16>
    %1 = vector.shape_cast %0 : vector<1x256x128xbf16> to vector<256x128xbf16>
    %c0_2 = arith.constant 0 : index
    %c0_3 = arith.constant 0 : index
    %2 = vector.load %arg2[%c0_2, %c0_3] : memref<128x128xbf16, #tpu.memory_space<vmem>>, vector<128x128xbf16>
    %cst = arith.constant dense<0.000000e+00> : vector<256x128xf32>
    %3 = tpu.matmul %1, %2, %cst {dimension_numbers = #tpu.dot_dimension_numbers<[1], [0], [0], [1], [0, 0, 1, 1], [], []>} : vector<256x128xbf16>, vector<128x128xbf16>, vector<256x128xf32> -> vector<256x128xf32>
    %cst_4 = arith.constant 0.000000e+00 : f32
    %4 = vector.broadcast %cst_4 : f32 to vector<256x128xf32>
    %5 = arith.cmpf oge, %3, %4 : vector<256x128xf32>
    %cst_5 = arith.constant 2.000000e-01 : f32
    %6 = vector.broadcast %cst_5 : f32 to vector<256x128xf32>
    %7 = arith.mulf %6, %3 : vector<256x128xf32>
    %8 = arith.select %5, %3, %7 : vector<256x128xi1>, vector<256x128xf32>
    %9 = arith.truncf %8 : vector<256x128xf32> to vector<256x128xbf16>
    %c0_6 = arith.constant 0 : index
    %c0_7 = arith.constant 0 : index
    %c0_8 = arith.constant 0 : index
    %10 = vector.load %arg3[%c0_6, %c0_7, %c0_8] : memref<1x256x128xbf16, #tpu.memory_space<vmem>>, vector<1x256x128xbf16>
    %11 = vector.shape_cast %10 : vector<1x256x128xbf16> to vector<256x128xbf16>
    %12 = vector.shape_cast %9 : vector<256x128xbf16> to vector<1x256x128xbf16>
    tpu.vector_store %arg3[%c0_6, %c0_7, %c0_8], %12 {strides = array<i32>} : memref<1x256x128xbf16, #tpu.memory_space<vmem>>, vector<1x256x128xbf16>,
    return
  }
  func.func @transform_0(%arg0: i32) -> (i32, i32, i32) {
    %c0_i32 = arith.constant 0 : i32
    %c0_i32_0 = arith.constant 0 : i32
    %c0_i32_1 = arith.constant 0 : i32
    return %arg0, %c0_i32, %c0_i32_0 : i32, i32, i32
  }
  func.func @transform_1(%arg0: i32) -> (i32, i32) {
    %c0_i32 = arith.constant 0 : i32
    %c0_i32_0 = arith.constant 0 : i32
    %c0_i32_1 = arith.constant 0 : i32
    return %c0_i32, %c0_i32_0 : i32, i32
  }
  func.func @transform_2(%arg0: i32) -> (i32, i32, i32) {
    %c0_i32 = arith.constant 0 : i32
    %c0_i32_0 = arith.constant 0 : i32
    %c0_i32_1 = arith.constant 0 : i32
    return %arg0, %c0_i32, %c0_i32_0 : i32, i32, i32
  }
}

module attributes {stable_mosaic.version = 11 : i64} {
  func.func @_layer_kernel(%arg0: i32, %arg1: memref<1x64x128xbf16, #tpu.memory_space<vmem>>, %arg2: memref<128x128xbf16, #tpu.memory_space<vmem>>, %arg3: memref<1x64x128xbf16, #tpu.memory_space<vmem>>) attributes {dimension_semantics = [#tpu.dimension_semantics<parallel>], iteration_bounds = array<i64: 2>, scalar_prefetch = 0 : i64, scratch_operands = 0 : i64, tpu.core_type = #tpu.core_type<tc>, window_params = [{transform_indices = @transform_0, window_bounds = array<i64: 1, 64, 128>}, {pipeline_mode = #tpu.pipeline_mode<synchronous>, transform_indices = @transform_1, window_bounds = array<i64: 128, 128>}, {transform_indices = @transform_2, window_bounds = array<i64: 1, 64, 128>}]} {
    %c0 = arith.constant 0 : index
    %c0_0 = arith.constant 0 : index
    %c0_1 = arith.constant 0 : index
    %0 = vector.load %arg1[%c0, %c0_0, %c0_1] : memref<1x64x128xbf16, #tpu.memory_space<vmem>>, vector<1x64x128xbf16>
    %1 = vector.shape_cast %0 : vector<1x64x128xbf16> to vector<64x128xbf16>
    %c0_2 = arith.constant 0 : index
    %c0_3 = arith.constant 0 : index
    %2 = vector.load %arg2[%c0_2, %c0_3] : memref<128x128xbf16, #tpu.memory_space<vmem>>, vector<128x128xbf16>
    %cst = arith.constant dense<0.000000e+00> : vector<64x128xf32>
    %3 = tpu.matmul %1, %2, %cst {dimension_numbers = #tpu.dot_dimension_numbers<[1], [0], [0], [1], [0, 0, 1, 1], [], []>} : vector<64x128xbf16>, vector<128x128xbf16>, vector<64x128xf32> -> vector<64x128xf32>
    %cst_4 = arith.constant dense<0.000000e+00> : vector<128xf32>
    %4 = vector.multi_reduction <add>, %3, %cst_4 [0] : vector<64x128xf32> to vector<128xf32>
    %5 = vector.shape_cast %4 : vector<128xf32> to vector<1x128xf32>
    %cst_5 = arith.constant 6.400000e+01 : f32
    %6 = vector.broadcast %cst_5 : f32 to vector<1x128xf32>
    %7 = arith.divf %5, %6 : vector<1x128xf32>
    %8 = vector.broadcast %7 : vector<1x128xf32> to vector<64x128xf32>
    %9 = arith.subf %3, %8 : vector<64x128xf32>
    %10 = arith.mulf %9, %9 : vector<64x128xf32>
    %cst_6 = arith.constant dense<0.000000e+00> : vector<128xf32>
    %11 = vector.multi_reduction <add>, %10, %cst_6 [0] : vector<64x128xf32> to vector<128xf32>
    %12 = vector.shape_cast %11 : vector<128xf32> to vector<1x128xf32>
    %cst_7 = arith.constant 6.400000e+01 : f32
    %13 = vector.broadcast %cst_7 : f32 to vector<1x128xf32>
    %14 = arith.divf %12, %13 : vector<1x128xf32>
    %cst_8 = arith.constant 9.99999974E-6 : f32
    %15 = vector.broadcast %cst_8 : f32 to vector<1x128xf32>
    %16 = arith.addf %14, %15 : vector<1x128xf32>
    %17 = math.rsqrt %16 : vector<1x128xf32>
    %18 = vector.broadcast %17 : vector<1x128xf32> to vector<64x128xf32>
    %19 = arith.mulf %9, %18 : vector<64x128xf32>
    %cst_9 = arith.constant 0.000000e+00 : f32
    %20 = vector.broadcast %cst_9 : f32 to vector<64x128xf32>
    %21 = arith.cmpf oge, %19, %20 : vector<64x128xf32>
    %cst_10 = arith.constant 2.000000e-01 : f32
    %22 = vector.broadcast %cst_10 : f32 to vector<64x128xf32>
    %23 = arith.mulf %22, %19 : vector<64x128xf32>
    %24 = arith.select %21, %19, %23 : vector<64x128xi1>, vector<64x128xf32>
    %25 = arith.truncf %24 : vector<64x128xf32> to vector<64x128xbf16>
    %c0_11 = arith.constant 0 : index
    %c0_12 = arith.constant 0 : index
    %c0_13 = arith.constant 0 : index
    %26 = vector.load %arg3[%c0_11, %c0_12, %c0_13] : memref<1x64x128xbf16, #tpu.memory_space<vmem>>, vector<1x64x128xbf16>
    %27 = vector.shape_cast %26 : vector<1x64x128xbf16> to vector<64x128xbf16>
    %28 = vector.shape_cast %25 : vector<64x128xbf16> to vector<1x64x128xbf16>
    tpu.vector_store %arg3[%c0_11, %c0_12, %c0_13], %28 {strides = array<i32>} : memref<1x64x128xbf16, #tpu.memory_space<vmem>>, vector<1x64x128xbf16>,
    return
  }
  func.func @transform_0(%arg0: i32) -> (i32, i32, i32) {
    %c0_i32 = arith.constant 0 : i32
    %c0_i32_0 = arith.constant 0 : i32
    %c0_i32_1 = arith.constant 0 : i32
    return %arg0, %c0_i32, %c0_i32_0 : i32, i32, i32
  }
  func.func @transform_1(%arg0: i32) -> (i32, i32) {
    %c0_i32 = arith.constant 0 : i32
    %c0_i32_0 = arith.constant 0 : i32
    %c0_i32_1 = arith.constant 0 : i32
    return %c0_i32, %c0_i32_0 : i32, i32
  }
  func.func @transform_2(%arg0: i32) -> (i32, i32, i32) {
    %c0_i32 = arith.constant 0 : i32
    %c0_i32_0 = arith.constant 0 : i32
    %c0_i32_1 = arith.constant 0 : i32
    return %arg0, %c0_i32, %c0_i32_0 : i32, i32, i32
  }
}

module attributes {stable_mosaic.version = 11 : i64} {
  func.func @_layer_kernel(%arg0: i32, %arg1: memref<1x16x256xbf16, #tpu.memory_space<vmem>>, %arg2: memref<256x128xbf16, #tpu.memory_space<vmem>>, %arg3: memref<1x16x128xbf16, #tpu.memory_space<vmem>>) attributes {dimension_semantics = [#tpu.dimension_semantics<parallel>], iteration_bounds = array<i64: 2>, scalar_prefetch = 0 : i64, scratch_operands = 0 : i64, tpu.core_type = #tpu.core_type<tc>, window_params = [{transform_indices = @transform_0, window_bounds = array<i64: 1, 16, 256>}, {pipeline_mode = #tpu.pipeline_mode<synchronous>, transform_indices = @transform_1, window_bounds = array<i64: 256, 128>}, {transform_indices = @transform_2, window_bounds = array<i64: 1, 16, 128>}]} {
    %c0 = arith.constant 0 : index
    %c0_0 = arith.constant 0 : index
    %c0_1 = arith.constant 0 : index
    %0 = vector.load %arg1[%c0, %c0_0, %c0_1] : memref<1x16x256xbf16, #tpu.memory_space<vmem>>, vector<1x16x256xbf16>
    %1 = vector.shape_cast %0 : vector<1x16x256xbf16> to vector<16x256xbf16>
    %c0_2 = arith.constant 0 : index
    %c0_3 = arith.constant 0 : index
    %2 = vector.load %arg2[%c0_2, %c0_3] : memref<256x128xbf16, #tpu.memory_space<vmem>>, vector<256x128xbf16>
    %cst = arith.constant dense<0.000000e+00> : vector<16x128xf32>
    %3 = tpu.matmul %1, %2, %cst {dimension_numbers = #tpu.dot_dimension_numbers<[1], [0], [0], [1], [0, 0, 1, 1], [], []>} : vector<16x256xbf16>, vector<256x128xbf16>, vector<16x128xf32> -> vector<16x128xf32>
    %cst_4 = arith.constant dense<0.000000e+00> : vector<128xf32>
    %4 = vector.multi_reduction <add>, %3, %cst_4 [0] : vector<16x128xf32> to vector<128xf32>
    %5 = vector.shape_cast %4 : vector<128xf32> to vector<1x128xf32>
    %cst_5 = arith.constant 1.600000e+01 : f32
    %6 = vector.broadcast %cst_5 : f32 to vector<1x128xf32>
    %7 = arith.divf %5, %6 : vector<1x128xf32>
    %8 = vector.broadcast %7 : vector<1x128xf32> to vector<16x128xf32>
    %9 = arith.subf %3, %8 : vector<16x128xf32>
    %10 = arith.mulf %9, %9 : vector<16x128xf32>
    %cst_6 = arith.constant dense<0.000000e+00> : vector<128xf32>
    %11 = vector.multi_reduction <add>, %10, %cst_6 [0] : vector<16x128xf32> to vector<128xf32>
    %12 = vector.shape_cast %11 : vector<128xf32> to vector<1x128xf32>
    %cst_7 = arith.constant 1.600000e+01 : f32
    %13 = vector.broadcast %cst_7 : f32 to vector<1x128xf32>
    %14 = arith.divf %12, %13 : vector<1x128xf32>
    %cst_8 = arith.constant 9.99999974E-6 : f32
    %15 = vector.broadcast %cst_8 : f32 to vector<1x128xf32>
    %16 = arith.addf %14, %15 : vector<1x128xf32>
    %17 = math.rsqrt %16 : vector<1x128xf32>
    %18 = vector.broadcast %17 : vector<1x128xf32> to vector<16x128xf32>
    %19 = arith.mulf %9, %18 : vector<16x128xf32>
    %cst_9 = arith.constant 0.000000e+00 : f32
    %20 = vector.broadcast %cst_9 : f32 to vector<16x128xf32>
    %21 = arith.cmpf oge, %19, %20 : vector<16x128xf32>
    %cst_10 = arith.constant 2.000000e-01 : f32
    %22 = vector.broadcast %cst_10 : f32 to vector<16x128xf32>
    %23 = arith.mulf %22, %19 : vector<16x128xf32>
    %24 = arith.select %21, %19, %23 : vector<16x128xi1>, vector<16x128xf32>
    %25 = arith.truncf %24 : vector<16x128xf32> to vector<16x128xbf16>
    %c0_11 = arith.constant 0 : index
    %c0_12 = arith.constant 0 : index
    %c0_13 = arith.constant 0 : index
    %26 = vector.load %arg3[%c0_11, %c0_12, %c0_13] : memref<1x16x128xbf16, #tpu.memory_space<vmem>>, vector<1x16x128xbf16>
    %27 = vector.shape_cast %26 : vector<1x16x128xbf16> to vector<16x128xbf16>
    %28 = vector.shape_cast %25 : vector<16x128xbf16> to vector<1x16x128xbf16>
    tpu.vector_store %arg3[%c0_11, %c0_12, %c0_13], %28 {strides = array<i32>} : memref<1x16x128xbf16, #tpu.memory_space<vmem>>, vector<1x16x128xbf16>,
    return
  }
  func.func @transform_0(%arg0: i32) -> (i32, i32, i32) {
    %c0_i32 = arith.constant 0 : i32
    %c0_i32_0 = arith.constant 0 : i32
    %c0_i32_1 = arith.constant 0 : i32
    return %arg0, %c0_i32, %c0_i32_0 : i32, i32, i32
  }
  func.func @transform_1(%arg0: i32) -> (i32, i32) {
    %c0_i32 = arith.constant 0 : i32
    %c0_i32_0 = arith.constant 0 : i32
    %c0_i32_1 = arith.constant 0 : i32
    return %c0_i32, %c0_i32_0 : i32, i32
  }
  func.func @transform_2(%arg0: i32) -> (i32, i32, i32) {
    %c0_i32 = arith.constant 0 : i32
    %c0_i32_0 = arith.constant 0 : i32
    %c0_i32_1 = arith.constant 0 : i32
    return %arg0, %c0_i32, %c0_i32_0 : i32, i32, i32
  }
}

module attributes {stable_mosaic.version = 11 : i64} {
  func.func @_layer_kernel(%arg0: i32, %arg1: memref<1x4x512xbf16, #tpu.memory_space<vmem>>, %arg2: memref<512x128xbf16, #tpu.memory_space<vmem>>, %arg3: memref<1x4x128xbf16, #tpu.memory_space<vmem>>) attributes {dimension_semantics = [#tpu.dimension_semantics<parallel>], iteration_bounds = array<i64: 2>, scalar_prefetch = 0 : i64, scratch_operands = 0 : i64, tpu.core_type = #tpu.core_type<tc>, window_params = [{transform_indices = @transform_0, window_bounds = array<i64: 1, 4, 512>}, {pipeline_mode = #tpu.pipeline_mode<synchronous>, transform_indices = @transform_1, window_bounds = array<i64: 512, 128>}, {transform_indices = @transform_2, window_bounds = array<i64: 1, 4, 128>}]} {
    %c0 = arith.constant 0 : index
    %c0_0 = arith.constant 0 : index
    %c0_1 = arith.constant 0 : index
    %0 = vector.load %arg1[%c0, %c0_0, %c0_1] : memref<1x4x512xbf16, #tpu.memory_space<vmem>>, vector<1x4x512xbf16>
    %1 = vector.shape_cast %0 : vector<1x4x512xbf16> to vector<4x512xbf16>
    %c0_2 = arith.constant 0 : index
    %c0_3 = arith.constant 0 : index
    %2 = vector.load %arg2[%c0_2, %c0_3] : memref<512x128xbf16, #tpu.memory_space<vmem>>, vector<512x128xbf16>
    %cst = arith.constant dense<0.000000e+00> : vector<4x128xf32>
    %3 = tpu.matmul %1, %2, %cst {dimension_numbers = #tpu.dot_dimension_numbers<[1], [0], [0], [1], [0, 0, 1, 1], [], []>} : vector<4x512xbf16>, vector<512x128xbf16>, vector<4x128xf32> -> vector<4x128xf32>
    %cst_4 = arith.constant dense<0.000000e+00> : vector<128xf32>
    %4 = vector.multi_reduction <add>, %3, %cst_4 [0] : vector<4x128xf32> to vector<128xf32>
    %5 = vector.shape_cast %4 : vector<128xf32> to vector<1x128xf32>
    %cst_5 = arith.constant 4.000000e+00 : f32
    %6 = vector.broadcast %cst_5 : f32 to vector<1x128xf32>
    %7 = arith.divf %5, %6 : vector<1x128xf32>
    %8 = vector.broadcast %7 : vector<1x128xf32> to vector<4x128xf32>
    %9 = arith.subf %3, %8 : vector<4x128xf32>
    %10 = arith.mulf %9, %9 : vector<4x128xf32>
    %cst_6 = arith.constant dense<0.000000e+00> : vector<128xf32>
    %11 = vector.multi_reduction <add>, %10, %cst_6 [0] : vector<4x128xf32> to vector<128xf32>
    %12 = vector.shape_cast %11 : vector<128xf32> to vector<1x128xf32>
    %cst_7 = arith.constant 4.000000e+00 : f32
    %13 = vector.broadcast %cst_7 : f32 to vector<1x128xf32>
    %14 = arith.divf %12, %13 : vector<1x128xf32>
    %cst_8 = arith.constant 9.99999974E-6 : f32
    %15 = vector.broadcast %cst_8 : f32 to vector<1x128xf32>
    %16 = arith.addf %14, %15 : vector<1x128xf32>
    %17 = math.rsqrt %16 : vector<1x128xf32>
    %18 = vector.broadcast %17 : vector<1x128xf32> to vector<4x128xf32>
    %19 = arith.mulf %9, %18 : vector<4x128xf32>
    %cst_9 = arith.constant 0.000000e+00 : f32
    %20 = vector.broadcast %cst_9 : f32 to vector<4x128xf32>
    %21 = arith.cmpf oge, %19, %20 : vector<4x128xf32>
    %cst_10 = arith.constant 2.000000e-01 : f32
    %22 = vector.broadcast %cst_10 : f32 to vector<4x128xf32>
    %23 = arith.mulf %22, %19 : vector<4x128xf32>
    %24 = arith.select %21, %19, %23 : vector<4x128xi1>, vector<4x128xf32>
    %25 = arith.truncf %24 : vector<4x128xf32> to vector<4x128xbf16>
    %c0_11 = arith.constant 0 : index
    %c0_12 = arith.constant 0 : index
    %c0_13 = arith.constant 0 : index
    %26 = vector.load %arg3[%c0_11, %c0_12, %c0_13] : memref<1x4x128xbf16, #tpu.memory_space<vmem>>, vector<1x4x128xbf16>
    %27 = vector.shape_cast %26 : vector<1x4x128xbf16> to vector<4x128xbf16>
    %28 = vector.shape_cast %25 : vector<4x128xbf16> to vector<1x4x128xbf16>
    tpu.vector_store %arg3[%c0_11, %c0_12, %c0_13], %28 {strides = array<i32>} : memref<1x4x128xbf16, #tpu.memory_space<vmem>>, vector<1x4x128xbf16>,
    return
  }
  func.func @transform_0(%arg0: i32) -> (i32, i32, i32) {
    %c0_i32 = arith.constant 0 : i32
    %c0_i32_0 = arith.constant 0 : i32
    %c0_i32_1 = arith.constant 0 : i32
    return %arg0, %c0_i32, %c0_i32_0 : i32, i32, i32
  }
  func.func @transform_1(%arg0: i32) -> (i32, i32) {
    %c0_i32 = arith.constant 0 : i32
    %c0_i32_0 = arith.constant 0 : i32
    %c0_i32_1 = arith.constant 0 : i32
    return %c0_i32, %c0_i32_0 : i32, i32
  }
  func.func @transform_2(%arg0: i32) -> (i32, i32, i32) {
    %c0_i32 = arith.constant 0 : i32
    %c0_i32_0 = arith.constant 0 : i32
    %c0_i32_1 = arith.constant 0 : i32
    return %arg0, %c0_i32, %c0_i32_0 : i32, i32, i32
  }
}

module attributes {stable_mosaic.version = 11 : i64} {
  func.func @_layer_kernel(%arg0: i32, %arg1: memref<1x4x1x256xbf16, #tpu.memory_space<vmem>>, %arg2: memref<4x256x128xbf16, #tpu.memory_space<vmem>>, %arg3: memref<1x4x1x128xbf16, #tpu.memory_space<vmem>>) attributes {dimension_semantics = [#tpu.dimension_semantics<parallel>], iteration_bounds = array<i64: 2>, scalar_prefetch = 0 : i64, scratch_operands = 0 : i64, tpu.core_type = #tpu.core_type<tc>, window_params = [{transform_indices = @transform_0, window_bounds = array<i64: 1, 4, 1, 256>}, {pipeline_mode = #tpu.pipeline_mode<synchronous>, transform_indices = @transform_1, window_bounds = array<i64: 4, 256, 128>}, {transform_indices = @transform_2, window_bounds = array<i64: 1, 4, 1, 128>}]} {
    %c0 = arith.constant 0 : index
    %c0_0 = arith.constant 0 : index
    %c0_1 = arith.constant 0 : index
    %c0_2 = arith.constant 0 : index
    %0 = vector.load %arg1[%c0, %c0_0, %c0_1, %c0_2] : memref<1x4x1x256xbf16, #tpu.memory_space<vmem>>, vector<1x4x1x256xbf16>
    %1 = vector.shape_cast %0 : vector<1x4x1x256xbf16> to vector<4x1x256xbf16>
    %c0_3 = arith.constant 0 : index
    %c0_4 = arith.constant 0 : index
    %c0_5 = arith.constant 0 : index
    %2 = vector.load %arg2[%c0_3, %c0_4, %c0_5] : memref<4x256x128xbf16, #tpu.memory_space<vmem>>, vector<4x256x128xbf16>
    %cst = arith.constant dense<0.000000e+00> : vector<4x1x128xf32>
    %3 = tpu.matmul %1, %2, %cst {dimension_numbers = #tpu.dot_dimension_numbers<[2], [1], [1], [2], [0, 0, 0, 1, 1, 2], [0], [0]>} : vector<4x1x256xbf16>, vector<4x256x128xbf16>, vector<4x1x128xf32> -> vector<4x1x128xf32>
    %cst_6 = arith.constant dense<0.000000e+00> : vector<128xf32>
    %4 = vector.multi_reduction <add>, %3, %cst_6 [0, 1] : vector<4x1x128xf32> to vector<128xf32>
    %5 = vector.shape_cast %4 : vector<128xf32> to vector<1x1x128xf32>
    %cst_7 = arith.constant 4.000000e+00 : f32
    %6 = vector.broadcast %cst_7 : f32 to vector<1x1x128xf32>
    %7 = arith.divf %5, %6 : vector<1x1x128xf32>
    %8 = vector.broadcast %7 : vector<1x1x128xf32> to vector<4x1x128xf32>
    %9 = arith.subf %3, %8 : vector<4x1x128xf32>
    %10 = arith.mulf %9, %9 : vector<4x1x128xf32>
    %cst_8 = arith.constant dense<0.000000e+00> : vector<128xf32>
    %11 = vector.multi_reduction <add>, %10, %cst_8 [0, 1] : vector<4x1x128xf32> to vector<128xf32>
    %12 = vector.shape_cast %11 : vector<128xf32> to vector<1x1x128xf32>
    %cst_9 = arith.constant 4.000000e+00 : f32
    %13 = vector.broadcast %cst_9 : f32 to vector<1x1x128xf32>
    %14 = arith.divf %12, %13 : vector<1x1x128xf32>
    %cst_10 = arith.constant 9.99999974E-6 : f32
    %15 = vector.broadcast %cst_10 : f32 to vector<1x1x128xf32>
    %16 = arith.addf %14, %15 : vector<1x1x128xf32>
    %17 = math.rsqrt %16 : vector<1x1x128xf32>
    %18 = vector.broadcast %17 : vector<1x1x128xf32> to vector<4x1x128xf32>
    %19 = arith.mulf %9, %18 : vector<4x1x128xf32>
    %cst_11 = arith.constant 0.000000e+00 : f32
    %20 = vector.broadcast %cst_11 : f32 to vector<4x1x128xf32>
    %21 = arith.maximumf %19, %20 : vector<4x1x128xf32>
    %22 = arith.truncf %21 : vector<4x1x128xf32> to vector<4x1x128xbf16>
    %c0_12 = arith.constant 0 : index
    %c0_13 = arith.constant 0 : index
    %c0_14 = arith.constant 0 : index
    %c0_15 = arith.constant 0 : index
    %23 = vector.load %arg3[%c0_12, %c0_13, %c0_14, %c0_15] : memref<1x4x1x128xbf16, #tpu.memory_space<vmem>>, vector<1x4x1x128xbf16>
    %24 = vector.shape_cast %23 : vector<1x4x1x128xbf16> to vector<4x1x128xbf16>
    %25 = vector.shape_cast %22 : vector<4x1x128xbf16> to vector<1x4x1x128xbf16>
    tpu.vector_store %arg3[%c0_12, %c0_13, %c0_14, %c0_15], %25 {strides = array<i32>} : memref<1x4x1x128xbf16, #tpu.memory_space<vmem>>, vector<1x4x1x128xbf16>,
    return
  }
  func.func @transform_0(%arg0: i32) -> (i32, i32, i32, i32) {
    %c0_i32 = arith.constant 0 : i32
    %c0_i32_0 = arith.constant 0 : i32
    %c0_i32_1 = arith.constant 0 : i32
    %c0_i32_2 = arith.constant 0 : i32
    return %arg0, %c0_i32, %c0_i32_0, %c0_i32_1 : i32, i32, i32, i32
  }
  func.func @transform_1(%arg0: i32) -> (i32, i32, i32) {
    %c0_i32 = arith.constant 0 : i32
    %c0_i32_0 = arith.constant 0 : i32
    %c0_i32_1 = arith.constant 0 : i32
    %c0_i32_2 = arith.constant 0 : i32
    return %c0_i32, %c0_i32_0, %c0_i32_1 : i32, i32, i32
  }
  func.func @transform_2(%arg0: i32) -> (i32, i32, i32, i32) {
    %c0_i32 = arith.constant 0 : i32
    %c0_i32_0 = arith.constant 0 : i32
    %c0_i32_1 = arith.constant 0 : i32
    %c0_i32_2 = arith.constant 0 : i32
    return %arg0, %c0_i32, %c0_i32_0, %c0_i32_1 : i32, i32, i32, i32
  }
}

module attributes {stable_mosaic.version = 11 : i64} {
  func.func @_layer_kernel(%arg0: i32, %arg1: memref<1x1x1024xbf16, #tpu.memory_space<vmem>>, %arg2: memref<1024x128xbf16, #tpu.memory_space<vmem>>, %arg3: memref<1x1x128xbf16, #tpu.memory_space<vmem>>) attributes {dimension_semantics = [#tpu.dimension_semantics<parallel>], iteration_bounds = array<i64: 2>, scalar_prefetch = 0 : i64, scratch_operands = 0 : i64, tpu.core_type = #tpu.core_type<tc>, window_params = [{transform_indices = @transform_0, window_bounds = array<i64: 1, 1, 1024>}, {pipeline_mode = #tpu.pipeline_mode<synchronous>, transform_indices = @transform_1, window_bounds = array<i64: 1024, 128>}, {transform_indices = @transform_2, window_bounds = array<i64: 1, 1, 128>}]} {
    %c0 = arith.constant 0 : index
    %c0_0 = arith.constant 0 : index
    %c0_1 = arith.constant 0 : index
    %0 = vector.load %arg1[%c0, %c0_0, %c0_1] : memref<1x1x1024xbf16, #tpu.memory_space<vmem>>, vector<1x1x1024xbf16>
    %1 = vector.shape_cast %0 : vector<1x1x1024xbf16> to vector<1x1024xbf16>
    %c0_2 = arith.constant 0 : index
    %c0_3 = arith.constant 0 : index
    %2 = vector.load %arg2[%c0_2, %c0_3] : memref<1024x128xbf16, #tpu.memory_space<vmem>>, vector<1024x128xbf16>
    %cst = arith.constant dense<0.000000e+00> : vector<1x128xf32>
    %3 = tpu.matmul %1, %2, %cst {dimension_numbers = #tpu.dot_dimension_numbers<[1], [0], [0], [1], [0, 0, 1, 1], [], []>} : vector<1x1024xbf16>, vector<1024x128xbf16>, vector<1x128xf32> -> vector<1x128xf32>
    %cst_4 = arith.constant 0.000000e+00 : f32
    %4 = vector.broadcast %cst_4 : f32 to vector<1x128xf32>
    %5 = arith.maximumf %3, %4 : vector<1x128xf32>
    %6 = arith.truncf %5 : vector<1x128xf32> to vector<1x128xbf16>
    %c0_5 = arith.constant 0 : index
    %c0_6 = arith.constant 0 : index
    %c0_7 = arith.constant 0 : index
    %7 = vector.load %arg3[%c0_5, %c0_6, %c0_7] : memref<1x1x128xbf16, #tpu.memory_space<vmem>>, vector<1x1x128xbf16>
    %8 = vector.shape_cast %7 : vector<1x1x128xbf16> to vector<1x128xbf16>
    %9 = vector.shape_cast %6 : vector<1x128xbf16> to vector<1x1x128xbf16>
    tpu.vector_store %arg3[%c0_5, %c0_6, %c0_7], %9 {strides = array<i32>} : memref<1x1x128xbf16, #tpu.memory_space<vmem>>, vector<1x1x128xbf16>,
    return
  }
  func.func @transform_0(%arg0: i32) -> (i32, i32, i32) {
    %c0_i32 = arith.constant 0 : i32
    %c0_i32_0 = arith.constant 0 : i32
    %c0_i32_1 = arith.constant 0 : i32
    return %arg0, %c0_i32, %c0_i32_0 : i32, i32, i32
  }
  func.func @transform_1(%arg0: i32) -> (i32, i32) {
    %c0_i32 = arith.constant 0 : i32
    %c0_i32_0 = arith.constant 0 : i32
    %c0_i32_1 = arith.constant 0 : i32
    return %c0_i32, %c0_i32_0 : i32, i32
  }
  func.func @transform_2(%arg0: i32) -> (i32, i32, i32) {
    %c0_i32 = arith.constant 0 : i32
    %c0_i32_0 = arith.constant 0 : i32
    %c0_i32_1 = arith.constant 0 : i32
    return %arg0, %c0_i32, %c0_i32_0 : i32, i32, i32
  }
}

module attributes {stable_mosaic.version = 11 : i64} {
  func.func @_layer_kernel(%arg0: i32, %arg1: memref<1x4x4x256xbf16, #tpu.memory_space<vmem>>, %arg2: memref<4x256x128xbf16, #tpu.memory_space<vmem>>, %arg3: memref<1x4x4x256xbf16, #tpu.memory_space<vmem>>, %arg4: memref<4x256x128xbf16, #tpu.memory_space<vmem>>, %arg5: memref<1x4x4x128xbf16, #tpu.memory_space<vmem>>) attributes {dimension_semantics = [#tpu.dimension_semantics<parallel>], iteration_bounds = array<i64: 2>, scalar_prefetch = 0 : i64, scratch_operands = 0 : i64, tpu.core_type = #tpu.core_type<tc>, window_params = [{transform_indices = @transform_0, window_bounds = array<i64: 1, 4, 4, 256>}, {pipeline_mode = #tpu.pipeline_mode<synchronous>, transform_indices = @transform_1, window_bounds = array<i64: 4, 256, 128>}, {transform_indices = @transform_2, window_bounds = array<i64: 1, 4, 4, 256>}, {pipeline_mode = #tpu.pipeline_mode<synchronous>, transform_indices = @transform_3, window_bounds = array<i64: 4, 256, 128>}, {transform_indices = @transform_4, window_bounds = array<i64: 1, 4, 4, 128>}]} {
    %c0 = arith.constant 0 : index
    %c0_0 = arith.constant 0 : index
    %c0_1 = arith.constant 0 : index
    %c0_2 = arith.constant 0 : index
    %0 = vector.load %arg1[%c0, %c0_0, %c0_1, %c0_2] : memref<1x4x4x256xbf16, #tpu.memory_space<vmem>>, vector<1x4x4x256xbf16>
    %1 = vector.shape_cast %0 : vector<1x4x4x256xbf16> to vector<4x4x256xbf16>
    %c0_3 = arith.constant 0 : index
    %c0_4 = arith.constant 0 : index
    %c0_5 = arith.constant 0 : index
    %2 = vector.load %arg2[%c0_3, %c0_4, %c0_5] : memref<4x256x128xbf16, #tpu.memory_space<vmem>>, vector<4x256x128xbf16>
    %cst = arith.constant dense<0.000000e+00> : vector<4x4x128xf32>
    %3 = tpu.matmul %1, %2, %cst {dimension_numbers = #tpu.dot_dimension_numbers<[2], [1], [1], [2], [0, 0, 0, 1, 1, 2], [0], [0]>} : vector<4x4x256xbf16>, vector<4x256x128xbf16>, vector<4x4x128xf32> -> vector<4x4x128xf32>
    %c0_6 = arith.constant 0 : index
    %c0_7 = arith.constant 0 : index
    %c0_8 = arith.constant 0 : index
    %c0_9 = arith.constant 0 : index
    %4 = vector.load %arg3[%c0_6, %c0_7, %c0_8, %c0_9] : memref<1x4x4x256xbf16, #tpu.memory_space<vmem>>, vector<1x4x4x256xbf16>
    %5 = vector.shape_cast %4 : vector<1x4x4x256xbf16> to vector<4x4x256xbf16>
    %c0_10 = arith.constant 0 : index
    %c0_11 = arith.constant 0 : index
    %c0_12 = arith.constant 0 : index
    %6 = vector.load %arg4[%c0_10, %c0_11, %c0_12] : memref<4x256x128xbf16, #tpu.memory_space<vmem>>, vector<4x256x128xbf16>
    %cst_13 = arith.constant dense<0.000000e+00> : vector<4x4x128xf32>
    %7 = tpu.matmul %5, %6, %cst_13 {dimension_numbers = #tpu.dot_dimension_numbers<[2], [1], [1], [2], [0, 0, 0, 1, 1, 2], [0], [0]>} : vector<4x4x256xbf16>, vector<4x256x128xbf16>, vector<4x4x128xf32> -> vector<4x4x128xf32>
    %8 = arith.addf %3, %7 : vector<4x4x128xf32>
    %cst_14 = arith.constant dense<0.000000e+00> : vector<128xf32>
    %9 = vector.multi_reduction <add>, %8, %cst_14 [0, 1] : vector<4x4x128xf32> to vector<128xf32>
    %10 = vector.shape_cast %9 : vector<128xf32> to vector<1x1x128xf32>
    %cst_15 = arith.constant 1.600000e+01 : f32
    %11 = vector.broadcast %cst_15 : f32 to vector<1x1x128xf32>
    %12 = arith.divf %10, %11 : vector<1x1x128xf32>
    %13 = vector.broadcast %12 : vector<1x1x128xf32> to vector<4x4x128xf32>
    %14 = arith.subf %8, %13 : vector<4x4x128xf32>
    %15 = arith.mulf %14, %14 : vector<4x4x128xf32>
    %cst_16 = arith.constant dense<0.000000e+00> : vector<128xf32>
    %16 = vector.multi_reduction <add>, %15, %cst_16 [0, 1] : vector<4x4x128xf32> to vector<128xf32>
    %17 = vector.shape_cast %16 : vector<128xf32> to vector<1x1x128xf32>
    %cst_17 = arith.constant 1.600000e+01 : f32
    %18 = vector.broadcast %cst_17 : f32 to vector<1x1x128xf32>
    %19 = arith.divf %17, %18 : vector<1x1x128xf32>
    %cst_18 = arith.constant 9.99999974E-6 : f32
    %20 = vector.broadcast %cst_18 : f32 to vector<1x1x128xf32>
    %21 = arith.addf %19, %20 : vector<1x1x128xf32>
    %22 = math.rsqrt %21 : vector<1x1x128xf32>
    %23 = vector.broadcast %22 : vector<1x1x128xf32> to vector<4x4x128xf32>
    %24 = arith.mulf %14, %23 : vector<4x4x128xf32>
    %cst_19 = arith.constant 0.000000e+00 : f32
    %25 = vector.broadcast %cst_19 : f32 to vector<4x4x128xf32>
    %26 = arith.maximumf %24, %25 : vector<4x4x128xf32>
    %27 = arith.truncf %26 : vector<4x4x128xf32> to vector<4x4x128xbf16>
    %c0_20 = arith.constant 0 : index
    %c0_21 = arith.constant 0 : index
    %c0_22 = arith.constant 0 : index
    %c0_23 = arith.constant 0 : index
    %28 = vector.load %arg5[%c0_20, %c0_21, %c0_22, %c0_23] : memref<1x4x4x128xbf16, #tpu.memory_space<vmem>>, vector<1x4x4x128xbf16>
    %29 = vector.shape_cast %28 : vector<1x4x4x128xbf16> to vector<4x4x128xbf16>
    %30 = vector.shape_cast %27 : vector<4x4x128xbf16> to vector<1x4x4x128xbf16>
    tpu.vector_store %arg5[%c0_20, %c0_21, %c0_22, %c0_23], %30 {strides = array<i32>} : memref<1x4x4x128xbf16, #tpu.memory_space<vmem>>, vector<1x4x4x128xbf16>,
    return
  }
  func.func @transform_0(%arg0: i32) -> (i32, i32, i32, i32) {
    %c0_i32 = arith.constant 0 : i32
    %c0_i32_0 = arith.constant 0 : i32
    %c0_i32_1 = arith.constant 0 : i32
    %c0_i32_2 = arith.constant 0 : i32
    return %arg0, %c0_i32, %c0_i32_0, %c0_i32_1 : i32, i32, i32, i32
  }
  func.func @transform_1(%arg0: i32) -> (i32, i32, i32) {
    %c0_i32 = arith.constant 0 : i32
    %c0_i32_0 = arith.constant 0 : i32
    %c0_i32_1 = arith.constant 0 : i32
    %c0_i32_2 = arith.constant 0 : i32
    return %c0_i32, %c0_i32_0, %c0_i32_1 : i32, i32, i32
  }
  func.func @transform_2(%arg0: i32) -> (i32, i32, i32, i32) {
    %c0_i32 = arith.constant 0 : i32
    %c0_i32_0 = arith.constant 0 : i32
    %c0_i32_1 = arith.constant 0 : i32
    %c0_i32_2 = arith.constant 0 : i32
    return %arg0, %c0_i32, %c0_i32_0, %c0_i32_1 : i32, i32, i32, i32
  }
  func.func @transform_3(%arg0: i32) -> (i32, i32, i32) {
    %c0_i32 = arith.constant 0 : i32
    %c0_i32_0 = arith.constant 0 : i32
    %c0_i32_1 = arith.constant 0 : i32
    %c0_i32_2 = arith.constant 0 : i32
    return %c0_i32, %c0_i32_0, %c0_i32_1 : i32, i32, i32
  }
  func.func @transform_4(%arg0: i32) -> (i32, i32, i32, i32) {
    %c0_i32 = arith.constant 0 : i32
    %c0_i32_0 = arith.constant 0 : i32
    %c0_i32_1 = arith.constant 0 : i32
    %c0_i32_2 = arith.constant 0 : i32
    return %arg0, %c0_i32, %c0_i32_0, %c0_i32_1 : i32, i32, i32, i32
  }
}

module attributes {stable_mosaic.version = 11 : i64} {
  func.func @_layer_kernel(%arg0: i32, %arg1: memref<1x4x16x128xbf16, #tpu.memory_space<vmem>>, %arg2: memref<4x128x128xbf16, #tpu.memory_space<vmem>>, %arg3: memref<1x4x16x128xbf16, #tpu.memory_space<vmem>>, %arg4: memref<4x128x128xbf16, #tpu.memory_space<vmem>>, %arg5: memref<1x4x16x128xbf16, #tpu.memory_space<vmem>>) attributes {dimension_semantics = [#tpu.dimension_semantics<parallel>], iteration_bounds = array<i64: 2>, scalar_prefetch = 0 : i64, scratch_operands = 0 : i64, tpu.core_type = #tpu.core_type<tc>, window_params = [{transform_indices = @transform_0, window_bounds = array<i64: 1, 4, 16, 128>}, {pipeline_mode = #tpu.pipeline_mode<synchronous>, transform_indices = @transform_1, window_bounds = array<i64: 4, 128, 128>}, {transform_indices = @transform_2, window_bounds = array<i64: 1, 4, 16, 128>}, {pipeline_mode = #tpu.pipeline_mode<synchronous>, transform_indices = @transform_3, window_bounds = array<i64: 4, 128, 128>}, {transform_indices = @transform_4, window_bounds = array<i64: 1, 4, 16, 128>}]} {
    %c0 = arith.constant 0 : index
    %c0_0 = arith.constant 0 : index
    %c0_1 = arith.constant 0 : index
    %c0_2 = arith.constant 0 : index
    %0 = vector.load %arg1[%c0, %c0_0, %c0_1, %c0_2] : memref<1x4x16x128xbf16, #tpu.memory_space<vmem>>, vector<1x4x16x128xbf16>
    %1 = vector.shape_cast %0 : vector<1x4x16x128xbf16> to vector<4x16x128xbf16>
    %c0_3 = arith.constant 0 : index
    %c0_4 = arith.constant 0 : index
    %c0_5 = arith.constant 0 : index
    %2 = vector.load %arg2[%c0_3, %c0_4, %c0_5] : memref<4x128x128xbf16, #tpu.memory_space<vmem>>, vector<4x128x128xbf16>
    %cst = arith.constant dense<0.000000e+00> : vector<4x16x128xf32>
    %3 = tpu.matmul %1, %2, %cst {dimension_numbers = #tpu.dot_dimension_numbers<[2], [1], [1], [2], [0, 0, 0, 1, 1, 2], [0], [0]>} : vector<4x16x128xbf16>, vector<4x128x128xbf16>, vector<4x16x128xf32> -> vector<4x16x128xf32>
    %c0_6 = arith.constant 0 : index
    %c0_7 = arith.constant 0 : index
    %c0_8 = arith.constant 0 : index
    %c0_9 = arith.constant 0 : index
    %4 = vector.load %arg3[%c0_6, %c0_7, %c0_8, %c0_9] : memref<1x4x16x128xbf16, #tpu.memory_space<vmem>>, vector<1x4x16x128xbf16>
    %5 = vector.shape_cast %4 : vector<1x4x16x128xbf16> to vector<4x16x128xbf16>
    %c0_10 = arith.constant 0 : index
    %c0_11 = arith.constant 0 : index
    %c0_12 = arith.constant 0 : index
    %6 = vector.load %arg4[%c0_10, %c0_11, %c0_12] : memref<4x128x128xbf16, #tpu.memory_space<vmem>>, vector<4x128x128xbf16>
    %cst_13 = arith.constant dense<0.000000e+00> : vector<4x16x128xf32>
    %7 = tpu.matmul %5, %6, %cst_13 {dimension_numbers = #tpu.dot_dimension_numbers<[2], [1], [1], [2], [0, 0, 0, 1, 1, 2], [0], [0]>} : vector<4x16x128xbf16>, vector<4x128x128xbf16>, vector<4x16x128xf32> -> vector<4x16x128xf32>
    %8 = arith.addf %3, %7 : vector<4x16x128xf32>
    %cst_14 = arith.constant dense<0.000000e+00> : vector<128xf32>
    %9 = vector.multi_reduction <add>, %8, %cst_14 [0, 1] : vector<4x16x128xf32> to vector<128xf32>
    %10 = vector.shape_cast %9 : vector<128xf32> to vector<1x1x128xf32>
    %cst_15 = arith.constant 6.400000e+01 : f32
    %11 = vector.broadcast %cst_15 : f32 to vector<1x1x128xf32>
    %12 = arith.divf %10, %11 : vector<1x1x128xf32>
    %13 = vector.broadcast %12 : vector<1x1x128xf32> to vector<4x16x128xf32>
    %14 = arith.subf %8, %13 : vector<4x16x128xf32>
    %15 = arith.mulf %14, %14 : vector<4x16x128xf32>
    %cst_16 = arith.constant dense<0.000000e+00> : vector<128xf32>
    %16 = vector.multi_reduction <add>, %15, %cst_16 [0, 1] : vector<4x16x128xf32> to vector<128xf32>
    %17 = vector.shape_cast %16 : vector<128xf32> to vector<1x1x128xf32>
    %cst_17 = arith.constant 6.400000e+01 : f32
    %18 = vector.broadcast %cst_17 : f32 to vector<1x1x128xf32>
    %19 = arith.divf %17, %18 : vector<1x1x128xf32>
    %cst_18 = arith.constant 9.99999974E-6 : f32
    %20 = vector.broadcast %cst_18 : f32 to vector<1x1x128xf32>
    %21 = arith.addf %19, %20 : vector<1x1x128xf32>
    %22 = math.rsqrt %21 : vector<1x1x128xf32>
    %23 = vector.broadcast %22 : vector<1x1x128xf32> to vector<4x16x128xf32>
    %24 = arith.mulf %14, %23 : vector<4x16x128xf32>
    %cst_19 = arith.constant 0.000000e+00 : f32
    %25 = vector.broadcast %cst_19 : f32 to vector<4x16x128xf32>
    %26 = arith.maximumf %24, %25 : vector<4x16x128xf32>
    %27 = arith.truncf %26 : vector<4x16x128xf32> to vector<4x16x128xbf16>
    %c0_20 = arith.constant 0 : index
    %c0_21 = arith.constant 0 : index
    %c0_22 = arith.constant 0 : index
    %c0_23 = arith.constant 0 : index
    %28 = vector.load %arg5[%c0_20, %c0_21, %c0_22, %c0_23] : memref<1x4x16x128xbf16, #tpu.memory_space<vmem>>, vector<1x4x16x128xbf16>
    %29 = vector.shape_cast %28 : vector<1x4x16x128xbf16> to vector<4x16x128xbf16>
    %30 = vector.shape_cast %27 : vector<4x16x128xbf16> to vector<1x4x16x128xbf16>
    tpu.vector_store %arg5[%c0_20, %c0_21, %c0_22, %c0_23], %30 {strides = array<i32>} : memref<1x4x16x128xbf16, #tpu.memory_space<vmem>>, vector<1x4x16x128xbf16>,
    return
  }
  func.func @transform_0(%arg0: i32) -> (i32, i32, i32, i32) {
    %c0_i32 = arith.constant 0 : i32
    %c0_i32_0 = arith.constant 0 : i32
    %c0_i32_1 = arith.constant 0 : i32
    %c0_i32_2 = arith.constant 0 : i32
    return %arg0, %c0_i32, %c0_i32_0, %c0_i32_1 : i32, i32, i32, i32
  }
  func.func @transform_1(%arg0: i32) -> (i32, i32, i32) {
    %c0_i32 = arith.constant 0 : i32
    %c0_i32_0 = arith.constant 0 : i32
    %c0_i32_1 = arith.constant 0 : i32
    %c0_i32_2 = arith.constant 0 : i32
    return %c0_i32, %c0_i32_0, %c0_i32_1 : i32, i32, i32
  }
  func.func @transform_2(%arg0: i32) -> (i32, i32, i32, i32) {
    %c0_i32 = arith.constant 0 : i32
    %c0_i32_0 = arith.constant 0 : i32
    %c0_i32_1 = arith.constant 0 : i32
    %c0_i32_2 = arith.constant 0 : i32
    return %arg0, %c0_i32, %c0_i32_0, %c0_i32_1 : i32, i32, i32, i32
  }
  func.func @transform_3(%arg0: i32) -> (i32, i32, i32) {
    %c0_i32 = arith.constant 0 : i32
    %c0_i32_0 = arith.constant 0 : i32
    %c0_i32_1 = arith.constant 0 : i32
    %c0_i32_2 = arith.constant 0 : i32
    return %c0_i32, %c0_i32_0, %c0_i32_1 : i32, i32, i32
  }
  func.func @transform_4(%arg0: i32) -> (i32, i32, i32, i32) {
    %c0_i32 = arith.constant 0 : i32
    %c0_i32_0 = arith.constant 0 : i32
    %c0_i32_1 = arith.constant 0 : i32
    %c0_i32_2 = arith.constant 0 : i32
    return %arg0, %c0_i32, %c0_i32_0, %c0_i32_1 : i32, i32, i32, i32
  }
}

module attributes {stable_mosaic.version = 11 : i64} {
  func.func @_layer_kernel(%arg0: i32, %arg1: memref<1x4x64x64xbf16, #tpu.memory_space<vmem>>, %arg2: memref<4x64x128xbf16, #tpu.memory_space<vmem>>, %arg3: memref<1x4x64x64xbf16, #tpu.memory_space<vmem>>, %arg4: memref<4x64x128xbf16, #tpu.memory_space<vmem>>, %arg5: memref<1x4x64x128xbf16, #tpu.memory_space<vmem>>) attributes {dimension_semantics = [#tpu.dimension_semantics<parallel>], iteration_bounds = array<i64: 2>, scalar_prefetch = 0 : i64, scratch_operands = 0 : i64, tpu.core_type = #tpu.core_type<tc>, window_params = [{transform_indices = @transform_0, window_bounds = array<i64: 1, 4, 64, 64>}, {pipeline_mode = #tpu.pipeline_mode<synchronous>, transform_indices = @transform_1, window_bounds = array<i64: 4, 64, 128>}, {transform_indices = @transform_2, window_bounds = array<i64: 1, 4, 64, 64>}, {pipeline_mode = #tpu.pipeline_mode<synchronous>, transform_indices = @transform_3, window_bounds = array<i64: 4, 64, 128>}, {transform_indices = @transform_4, window_bounds = array<i64: 1, 4, 64, 128>}]} {
    %c0 = arith.constant 0 : index
    %c0_0 = arith.constant 0 : index
    %c0_1 = arith.constant 0 : index
    %c0_2 = arith.constant 0 : index
    %0 = vector.load %arg1[%c0, %c0_0, %c0_1, %c0_2] : memref<1x4x64x64xbf16, #tpu.memory_space<vmem>>, vector<1x4x64x64xbf16>
    %1 = vector.shape_cast %0 : vector<1x4x64x64xbf16> to vector<4x64x64xbf16>
    %c0_3 = arith.constant 0 : index
    %c0_4 = arith.constant 0 : index
    %c0_5 = arith.constant 0 : index
    %2 = vector.load %arg2[%c0_3, %c0_4, %c0_5] : memref<4x64x128xbf16, #tpu.memory_space<vmem>>, vector<4x64x128xbf16>
    %cst = arith.constant dense<0.000000e+00> : vector<4x64x128xf32>
    %3 = tpu.matmul %1, %2, %cst {dimension_numbers = #tpu.dot_dimension_numbers<[2], [1], [1], [2], [0, 0, 0, 1, 1, 2], [0], [0]>} : vector<4x64x64xbf16>, vector<4x64x128xbf16>, vector<4x64x128xf32> -> vector<4x64x128xf32>
    %c0_6 = arith.constant 0 : index
    %c0_7 = arith.constant 0 : index
    %c0_8 = arith.constant 0 : index
    %c0_9 = arith.constant 0 : index
    %4 = vector.load %arg3[%c0_6, %c0_7, %c0_8, %c0_9] : memref<1x4x64x64xbf16, #tpu.memory_space<vmem>>, vector<1x4x64x64xbf16>
    %5 = vector.shape_cast %4 : vector<1x4x64x64xbf16> to vector<4x64x64xbf16>
    %c0_10 = arith.constant 0 : index
    %c0_11 = arith.constant 0 : index
    %c0_12 = arith.constant 0 : index
    %6 = vector.load %arg4[%c0_10, %c0_11, %c0_12] : memref<4x64x128xbf16, #tpu.memory_space<vmem>>, vector<4x64x128xbf16>
    %cst_13 = arith.constant dense<0.000000e+00> : vector<4x64x128xf32>
    %7 = tpu.matmul %5, %6, %cst_13 {dimension_numbers = #tpu.dot_dimension_numbers<[2], [1], [1], [2], [0, 0, 0, 1, 1, 2], [0], [0]>} : vector<4x64x64xbf16>, vector<4x64x128xbf16>, vector<4x64x128xf32> -> vector<4x64x128xf32>
    %8 = arith.addf %3, %7 : vector<4x64x128xf32>
    %cst_14 = arith.constant dense<0.000000e+00> : vector<128xf32>
    %9 = vector.multi_reduction <add>, %8, %cst_14 [0, 1] : vector<4x64x128xf32> to vector<128xf32>
    %10 = vector.shape_cast %9 : vector<128xf32> to vector<1x1x128xf32>
    %cst_15 = arith.constant 2.560000e+02 : f32
    %11 = vector.broadcast %cst_15 : f32 to vector<1x1x128xf32>
    %12 = arith.divf %10, %11 : vector<1x1x128xf32>
    %13 = vector.broadcast %12 : vector<1x1x128xf32> to vector<4x64x128xf32>
    %14 = arith.subf %8, %13 : vector<4x64x128xf32>
    %15 = arith.mulf %14, %14 : vector<4x64x128xf32>
    %cst_16 = arith.constant dense<0.000000e+00> : vector<128xf32>
    %16 = vector.multi_reduction <add>, %15, %cst_16 [0, 1] : vector<4x64x128xf32> to vector<128xf32>
    %17 = vector.shape_cast %16 : vector<128xf32> to vector<1x1x128xf32>
    %cst_17 = arith.constant 2.560000e+02 : f32
    %18 = vector.broadcast %cst_17 : f32 to vector<1x1x128xf32>
    %19 = arith.divf %17, %18 : vector<1x1x128xf32>
    %cst_18 = arith.constant 9.99999974E-6 : f32
    %20 = vector.broadcast %cst_18 : f32 to vector<1x1x128xf32>
    %21 = arith.addf %19, %20 : vector<1x1x128xf32>
    %22 = math.rsqrt %21 : vector<1x1x128xf32>
    %23 = vector.broadcast %22 : vector<1x1x128xf32> to vector<4x64x128xf32>
    %24 = arith.mulf %14, %23 : vector<4x64x128xf32>
    %cst_19 = arith.constant 0.000000e+00 : f32
    %25 = vector.broadcast %cst_19 : f32 to vector<4x64x128xf32>
    %26 = arith.maximumf %24, %25 : vector<4x64x128xf32>
    %27 = arith.truncf %26 : vector<4x64x128xf32> to vector<4x64x128xbf16>
    %c0_20 = arith.constant 0 : index
    %c0_21 = arith.constant 0 : index
    %c0_22 = arith.constant 0 : index
    %c0_23 = arith.constant 0 : index
    %28 = vector.load %arg5[%c0_20, %c0_21, %c0_22, %c0_23] : memref<1x4x64x128xbf16, #tpu.memory_space<vmem>>, vector<1x4x64x128xbf16>
    %29 = vector.shape_cast %28 : vector<1x4x64x128xbf16> to vector<4x64x128xbf16>
    %30 = vector.shape_cast %27 : vector<4x64x128xbf16> to vector<1x4x64x128xbf16>
    tpu.vector_store %arg5[%c0_20, %c0_21, %c0_22, %c0_23], %30 {strides = array<i32>} : memref<1x4x64x128xbf16, #tpu.memory_space<vmem>>, vector<1x4x64x128xbf16>,
    return
  }
  func.func @transform_0(%arg0: i32) -> (i32, i32, i32, i32) {
    %c0_i32 = arith.constant 0 : i32
    %c0_i32_0 = arith.constant 0 : i32
    %c0_i32_1 = arith.constant 0 : i32
    %c0_i32_2 = arith.constant 0 : i32
    return %arg0, %c0_i32, %c0_i32_0, %c0_i32_1 : i32, i32, i32, i32
  }
  func.func @transform_1(%arg0: i32) -> (i32, i32, i32) {
    %c0_i32 = arith.constant 0 : i32
    %c0_i32_0 = arith.constant 0 : i32
    %c0_i32_1 = arith.constant 0 : i32
    %c0_i32_2 = arith.constant 0 : i32
    return %c0_i32, %c0_i32_0, %c0_i32_1 : i32, i32, i32
  }
  func.func @transform_2(%arg0: i32) -> (i32, i32, i32, i32) {
    %c0_i32 = arith.constant 0 : i32
    %c0_i32_0 = arith.constant 0 : i32
    %c0_i32_1 = arith.constant 0 : i32
    %c0_i32_2 = arith.constant 0 : i32
    return %arg0, %c0_i32, %c0_i32_0, %c0_i32_1 : i32, i32, i32, i32
  }
  func.func @transform_3(%arg0: i32) -> (i32, i32, i32) {
    %c0_i32 = arith.constant 0 : i32
    %c0_i32_0 = arith.constant 0 : i32
    %c0_i32_1 = arith.constant 0 : i32
    %c0_i32_2 = arith.constant 0 : i32
    return %c0_i32, %c0_i32_0, %c0_i32_1 : i32, i32, i32
  }
  func.func @transform_4(%arg0: i32) -> (i32, i32, i32, i32) {
    %c0_i32 = arith.constant 0 : i32
    %c0_i32_0 = arith.constant 0 : i32
    %c0_i32_1 = arith.constant 0 : i32
    %c0_i32_2 = arith.constant 0 : i32
    return %arg0, %c0_i32, %c0_i32_0, %c0_i32_1 : i32, i32, i32, i32
  }
}

module attributes {stable_mosaic.version = 11 : i64} {
  func.func @_layer_kernel(%arg0: i32, %arg1: memref<1x4x256x32xbf16, #tpu.memory_space<vmem>>, %arg2: memref<4x32x128xbf16, #tpu.memory_space<vmem>>, %arg3: memref<1x4x256x32xbf16, #tpu.memory_space<vmem>>, %arg4: memref<4x32x128xbf16, #tpu.memory_space<vmem>>, %arg5: memref<1x128xf32, #tpu.memory_space<vmem>>, %arg6: memref<1x4x256x128xf32, #tpu.memory_space<vmem>>) attributes {dimension_semantics = [#tpu.dimension_semantics<parallel>], iteration_bounds = array<i64: 2>, scalar_prefetch = 0 : i64, scratch_operands = 0 : i64, tpu.core_type = #tpu.core_type<tc>, window_params = [{transform_indices = @transform_0, window_bounds = array<i64: 1, 4, 256, 32>}, {pipeline_mode = #tpu.pipeline_mode<synchronous>, transform_indices = @transform_1, window_bounds = array<i64: 4, 32, 128>}, {transform_indices = @transform_2, window_bounds = array<i64: 1, 4, 256, 32>}, {pipeline_mode = #tpu.pipeline_mode<synchronous>, transform_indices = @transform_3, window_bounds = array<i64: 4, 32, 128>}, {pipeline_mode = #tpu.pipeline_mode<synchronous>, transform_indices = @transform_4, window_bounds = array<i64: 1, 128>}, {transform_indices = @transform_5, window_bounds = array<i64: 1, 4, 256, 128>}]} {
    %c0 = arith.constant 0 : index
    %c0_0 = arith.constant 0 : index
    %c0_1 = arith.constant 0 : index
    %c0_2 = arith.constant 0 : index
    %0 = vector.load %arg1[%c0, %c0_0, %c0_1, %c0_2] : memref<1x4x256x32xbf16, #tpu.memory_space<vmem>>, vector<1x4x256x32xbf16>
    %1 = vector.shape_cast %0 : vector<1x4x256x32xbf16> to vector<4x256x32xbf16>
    %c0_3 = arith.constant 0 : index
    %c0_4 = arith.constant 0 : index
    %c0_5 = arith.constant 0 : index
    %2 = vector.load %arg2[%c0_3, %c0_4, %c0_5] : memref<4x32x128xbf16, #tpu.memory_space<vmem>>, vector<4x32x128xbf16>
    %cst = arith.constant dense<0.000000e+00> : vector<4x256x128xf32>
    %3 = tpu.matmul %1, %2, %cst {dimension_numbers = #tpu.dot_dimension_numbers<[2], [1], [1], [2], [0, 0, 0, 1, 1, 2], [0], [0]>} : vector<4x256x32xbf16>, vector<4x32x128xbf16>, vector<4x256x128xf32> -> vector<4x256x128xf32>
    %c0_6 = arith.constant 0 : index
    %c0_7 = arith.constant 0 : index
    %c0_8 = arith.constant 0 : index
    %c0_9 = arith.constant 0 : index
    %4 = vector.load %arg3[%c0_6, %c0_7, %c0_8, %c0_9] : memref<1x4x256x32xbf16, #tpu.memory_space<vmem>>, vector<1x4x256x32xbf16>
    %5 = vector.shape_cast %4 : vector<1x4x256x32xbf16> to vector<4x256x32xbf16>
    %c0_10 = arith.constant 0 : index
    %c0_11 = arith.constant 0 : index
    %c0_12 = arith.constant 0 : index
    %6 = vector.load %arg4[%c0_10, %c0_11, %c0_12] : memref<4x32x128xbf16, #tpu.memory_space<vmem>>, vector<4x32x128xbf16>
    %cst_13 = arith.constant dense<0.000000e+00> : vector<4x256x128xf32>
    %7 = tpu.matmul %5, %6, %cst_13 {dimension_numbers = #tpu.dot_dimension_numbers<[2], [1], [1], [2], [0, 0, 0, 1, 1, 2], [0], [0]>} : vector<4x256x32xbf16>, vector<4x32x128xbf16>, vector<4x256x128xf32> -> vector<4x256x128xf32>
    %8 = arith.addf %3, %7 : vector<4x256x128xf32>
    %c0_14 = arith.constant 0 : index
    %c0_15 = arith.constant 0 : index
    %9 = vector.load %arg5[%c0_14, %c0_15] : memref<1x128xf32, #tpu.memory_space<vmem>>, vector<1x128xf32>
    %10 = vector.shape_cast %9 : vector<1x128xf32> to vector<1x1x128xf32>
    %11 = vector.broadcast %10 : vector<1x1x128xf32> to vector<4x256x128xf32>
    %12 = arith.addf %8, %11 : vector<4x256x128xf32>
    %13 = math.tanh %12 : vector<4x256x128xf32>
    %c0_16 = arith.constant 0 : index
    %c0_17 = arith.constant 0 : index
    %c0_18 = arith.constant 0 : index
    %c0_19 = arith.constant 0 : index
    %14 = vector.load %arg6[%c0_16, %c0_17, %c0_18, %c0_19] : memref<1x4x256x128xf32, #tpu.memory_space<vmem>>, vector<1x4x256x128xf32>
    %15 = vector.shape_cast %14 : vector<1x4x256x128xf32> to vector<4x256x128xf32>
    %16 = vector.shape_cast %13 : vector<4x256x128xf32> to vector<1x4x256x128xf32>
    tpu.vector_store %arg6[%c0_16, %c0_17, %c0_18, %c0_19], %16 {strides = array<i32>} : memref<1x4x256x128xf32, #tpu.memory_space<vmem>>, vector<1x4x256x128xf32>,
    return
  }
  func.func @transform_0(%arg0: i32) -> (i32, i32, i32, i32) {
    %c0_i32 = arith.constant 0 : i32
    %c0_i32_0 = arith.constant 0 : i32
    %c0_i32_1 = arith.constant 0 : i32
    %c0_i32_2 = arith.constant 0 : i32
    return %arg0, %c0_i32, %c0_i32_0, %c0_i32_1 : i32, i32, i32, i32
  }
  func.func @transform_1(%arg0: i32) -> (i32, i32, i32) {
    %c0_i32 = arith.constant 0 : i32
    %c0_i32_0 = arith.constant 0 : i32
    %c0_i32_1 = arith.constant 0 : i32
    %c0_i32_2 = arith.constant 0 : i32
    return %c0_i32, %c0_i32_0, %c0_i32_1 : i32, i32, i32
  }
  func.func @transform_2(%arg0: i32) -> (i32, i32, i32, i32) {
    %c0_i32 = arith.constant 0 : i32
    %c0_i32_0 = arith.constant 0 : i32
    %c0_i32_1 = arith.constant 0 : i32
    %c0_i32_2 = arith.constant 0 : i32
    return %arg0, %c0_i32, %c0_i32_0, %c0_i32_1 : i32, i32, i32, i32
  }
  func.func @transform_3(%arg0: i32) -> (i32, i32, i32) {
    %c0_i32 = arith.constant 0 : i32
    %c0_i32_0 = arith.constant 0 : i32
    %c0_i32_1 = arith.constant 0 : i32
    %c0_i32_2 = arith.constant 0 : i32
    return %c0_i32, %c0_i32_0, %c0_i32_1 : i32, i32, i32
  }
  func.func @transform_4(%arg0: i32) -> (i32, i32) {
    %c0_i32 = arith.constant 0 : i32
    %c0_i32_0 = arith.constant 0 : i32
    %c0_i32_1 = arith.constant 0 : i32
    return %c0_i32, %c0_i32_0 : i32, i32
  }
  func.func @transform_5(%arg0: i32) -> (i32, i32, i32, i32) {
    %c0_i32 = arith.constant 0 : i32
    %c0_i32_0 = arith.constant 0 : i32
    %c0_i32_1 = arith.constant 0 : i32
    %c0_i32_2 = arith.constant 0 : i32
    return %arg0, %c0_i32, %c0_i32_0, %c0_i32_1 : i32, i32, i32, i32
  }
}

</mosaic_0001>

<bundles_post_ra>
// kernel: _lambda_.10
= control target key start
LH: loop header
LB: loop body
LE: loop exit
PB: predicated region body
PF: predicated region fallthrough
CT: control target
= control target key end

     0   :  { %s1148_s9 = smov 0   ;;  %s1235_s0 = inlined_call_operand.vmem [shape: bf16[2,256,128], index: 0, kind: input, shape index: {}]   ;;  %s1236_s1 = inlined_call_operand.vmem [shape: bf16[128,128], index: 1, kind: input, shape index: {}]   ;;  %s1237_s2 = inlined_call_operand.vmem [shape: bf16[2,256,128], index: 2, kind: output, shape index: {}]  }
   0x1 LB: > { %s809_s10 = sadd.s32 4294967295, %s1131_s9   ;;  %p813_p0 = scmp.ge.s32.totalorder %s1131_s9, 1  ;;  %s1131_s9 = sphi %s1148_s9, %s12_s9  }
   0x2   : > { %p112_p1 = scmp.lt.s32.totalorder %s1131_s9, 3 }
   0x4   : > { %p113_p2 = pnand %p813_p0, %p112_p1 }
   0x5   : > { %v1101_v0 = vld [vmem:[%s1236_s1] sm:$0xff] (!%p113_p2)   ;;  %p134_p3 = scmp.lt.s32.totalorder (!%p113_p2), %s809_s10, 1  ;;  %v1102_v1 = vld [vmem:[%s1236_s1 + $0x8] sm:$0xff] (!%p113_p2)   ;;  %v1103_v2 = vld [vmem:[%s1236_s1 + $0x10] sm:$0xff] (!%p113_p2)  }
   0x6   : > { %116 = sbr.rel (%p113_p2) target bundleno = 285 (0x11d), region = 28  ;;  %1029 = vmatprep.subr.bf16.mxu0 (!%p113_p2), %v1101_v0  ;;  %1077 = vmatprep.subr.bf16.mxu1 (!%p113_p2), %v1101_v0  ;;  %v1104_v3 = vld [vmem:[%s1236_s1 + $0x18] sm:$0xff] (!%p113_p2)   ;;  %v1105_v6 = vld [vmem:[%s1236_s1 + $0x20] sm:$0xff] (!%p113_p2)   ;;  %v1106_v7 = vld [vmem:[%s1236_s1 + $0x28] sm:$0xff] (!%p113_p2)  }
   0x7   : > { %1030 = vmatpush3.bf16.msra.mxu0 (!%p113_p2), %v1101_v0  ;;  %1085 = vmatpush3.bf16.msra.mxu1 (!%p113_p2), %v1101_v0  ;;  %v1107_v8 = vld [vmem:[%s1236_s1 + $0x30] sm:$0xff] (!%p113_p2)   ;;  %v1108_v9 = vld [vmem:[%s1236_s1 + $0x38] sm:$0xff] (!%p113_p2)  }
   0x8   : > { %1031 = vmatprep.subr.bf16.mxu0 (!%p113_p2), %v1102_v1  ;;  %1078 = vmatprep.subr.bf16.mxu1 (!%p113_p2), %v1102_v1 }
   0xb   : > { %1032 = vmatpush3.bf16.msra.mxu0 (!%p113_p2), %v1102_v1  ;;  %1086 = vmatpush3.bf16.msra.mxu1 (!%p113_p2), %v1102_v1 }
   0xc   : > { %1033 = vmatprep.subr.bf16.mxu0 (!%p113_p2), %v1103_v2  ;;  %1079 = vmatprep.subr.bf16.mxu1 (!%p113_p2), %v1103_v2 }
   0xd   : > { %s1239_s10 = smov (!%p134_p3, %s809_s10), 1 }
   0xe   : > { %s876_s17 = sshll.u32 %s1239_s10, 7 }
   0xf   : > { %s1173_s20 = scalar_lea.vmem %s1235_s0, %s876_s17  ;;  %1034 = vmatpush3.bf16.msra.mxu0 %v1103_v2  ;;  %1087 = vmatpush3.bf16.msra.mxu1 %v1103_v2  ;;  %s1211_s5 = scalar_lea.vmem %s1237_s2, %s876_s17 }
  0x10   : > { %v1109_v4 = vld [vmem:[%s1173_s20] sm:$0xff]   ;;  %1035 = vmatprep.subr.bf16.mxu0 %v1104_v3  ;;  %1080 = vmatprep.subr.bf16.mxu1 %v1104_v3  ;;  %v1111_v10 = vld [vmem:[%s1173_s20 + $0x8] sm:$0xff]   ;;  %v1113_v12 = vld [vmem:[%s1173_s20 + $0x10] sm:$0xff]  }
  0x11   : > { %v1110_v5 = vld [vmem:[%s1173_s20 + $0x40] sm:$0xff]   ;;  %1045 = vmatprep.mubr.bf16.mxu0 %v1109_v4  ;;  %v1112_v11 = vld [vmem:[%s1173_s20 + $0x48] sm:$0xff]   ;;  %v1114_v13 = vld [vmem:[%s1173_s20 + $0x50] sm:$0xff]  }
  0x12   : > { %1061 = vmatprep.mubr.bf16.mxu1 %v1110_v5  ;;  %v1115_v14 = vld [vmem:[%s1173_s20 + $0x18] sm:$0xff]   ;;  %v1117_v16 = vld [vmem:[%s1173_s20 + $0x20] sm:$0xff]   ;;  %v1119_v18 = vld [vmem:[%s1173_s20 + $0x28] sm:$0xff]  }
  0x13   : > { %1036 = vmatpush3.bf16.msra.mxu0 %v1104_v3  ;;  %1088 = vmatpush3.bf16.msra.mxu1 %v1104_v3  ;;  %v1116_v15 = vld [vmem:[%s1173_s20 + $0x58] sm:$0xff]   ;;  %v1118_v17 = vld [vmem:[%s1173_s20 + $0x60] sm:$0xff]   ;;  %v1120_v19 = vld [vmem:[%s1173_s20 + $0x68] sm:$0xff]  }
  0x14   : > { %1037 = vmatprep.subr.bf16.mxu0 %v1105_v6  ;;  %1081 = vmatprep.subr.bf16.mxu1 %v1105_v6  ;;  %v1121_v20 = vld [vmem:[%s1173_s20 + $0x30] sm:$0xff]   ;;  %v1123_v22 = vld [vmem:[%s1173_s20 + $0x38] sm:$0xff]  }
  0x15   : > { %v1122_v21 = vld [vmem:[%s1173_s20 + $0x70] sm:$0xff]   ;;  %v1124_v23 = vld [vmem:[%s1173_s20 + $0x78] sm:$0xff]  }
  0x17   : > { %1038 = vmatpush3.bf16.msra.mxu0 %v1105_v6  ;;  %1089 = vmatpush3.bf16.msra.mxu1 %v1105_v6 }
  0x18   : > { %1039 = vmatprep.subr.bf16.mxu0 %v1106_v7  ;;  %1082 = vmatprep.subr.bf16.mxu1 %v1106_v7 }
  0x1b   : > { %1040 = vmatpush3.bf16.msra.mxu0 %v1106_v7  ;;  %1090 = vmatpush3.bf16.msra.mxu1 %v1106_v7 }
  0x1c   : > { %1041 = vmatprep.subr.bf16.mxu0 %v1107_v8  ;;  %1083 = vmatprep.subr.bf16.mxu1 %v1107_v8 }
  0x1f   : > { %1042 = vmatpush3.bf16.msra.mxu0 %v1107_v8  ;;  %1091 = vmatpush3.bf16.msra.mxu1 %v1107_v8 }
  0x20   : > { %1043 = vmatprep.subr.bf16.mxu0 %v1108_v9  ;;  %1084 = vmatprep.subr.bf16.mxu1 %v1108_v9 }
  0x23   : > { %1044 = vmatpush3.bf16.msra.mxu0 %v1108_v9  ;;  %1092 = vmatpush3.bf16.msra.mxu1 %v1108_v9 }
  0x26   : > { %1046 = vmatmul.mubr.bf16.vlgmr.msra.gmra.mrb[0].mxu0 %v1111_v10  ;;  %1062 = vmatmul.mubr.bf16.vlgmr.msra.gmra.mrb[0].mxu1 %v1112_v11 }
  0x27   : > { %1049 = vmatprep.mubr.bf16.mxu0 %v1113_v12  ;;  %1065 = vmatprep.mubr.bf16.mxu1 %v1114_v13 }
  0x2e   : > { %1050 = vmatmul.mubr.bf16.gmra.mrb[4].mxu0 %v1115_v14  ;;  %1066 = vmatmul.mubr.bf16.gmra.mrb[4].mxu1 %v1116_v15 }
  0x2f   : > { %1053 = vmatprep.mubr.bf16.mxu0 %v1117_v16  ;;  %1069 = vmatprep.mubr.bf16.mxu1 %v1118_v17 }
  0x36   : > { %1054 = vmatmul.mubr.bf16.gmra.mrb[8].mxu0 %v1119_v18  ;;  %1070 = vmatmul.mubr.bf16.gmra.mrb[8].mxu1 %v1120_v19 }
  0x37   : > { %1057 = vmatprep.mubr.bf16.mxu0 %v1121_v20  ;;  %1073 = vmatprep.mubr.bf16.mxu1 %v1122_v21 }
  0x3e   : > { %1058 = vmatmul.mubr.bf16.gmra.mrb[12].mxu0 %v1123_v22  ;;  %1074 = vmatmul.mubr.bf16.gmra.mrb[12].mxu1 %v1124_v23 }
  0xf9   : > { %v1047_v24 = vpop.f32.mrb[0].mxu0  ;;  %v1063_v25 = vpop.f32.mrb[0].mxu1 }
  0xfa   : > { %vm500_vm0 = vcmp.ge.f32.partialorder %v1047_v24, 0.0  ;;  %v532_v26 = vmul.f32 0.2, %v1047_v24  ;;  %v548_v27 = vmul.f32 0.2, %v1063_v25  ;;  %vm516_vm1 = vcmp.ge.f32.partialorder %v1063_v25, 0.0 }
  0xfb   : > { %v371_v28 = vpop.f32.mrb[1].mxu0  ;;  %v435_v29 = vpop.f32.mrb[1].mxu1 }
  0xfc   : > { %v530_v30 = vmul.f32 0.2, %v371_v28  ;;  %v1048_v31 = vpop.f32.mrb[2].mxu0  ;;  %v1064_v32 = vpop.f32.mrb[2].mxu1  ;;  %v564_v33 = vsel %vm500_vm0, %v1047_v24, %v532_v26  ;;  %v546_v34 = vmul.f32 0.2, %v435_v29  ;;  %v580_v36 = vsel %vm516_vm1, %v1063_v25, %v548_v27 }
  0xfd   : > { %vm501_vm2 = vcmp.ge.f32.partialorder %v1048_v31, 0.0  ;;  %v533_v35 = vmul.f32 0.2, %v1048_v31  ;;  %vm498_vm3 = vcmp.ge.f32.partialorder %v371_v28, 0.0  ;;  %vm517_vm4 = vcmp.ge.f32.partialorder %v1064_v32, 0.0  ;;  %v374_v38 = vpop.f32.mrb[3].mxu0 }
  0xfe   : > { %v549_v37 = vmul.f32 0.2, %v1064_v32  ;;  %v438_v39 = vpop.f32.mrb[3].mxu1  ;;  %vm514_vm5 = vcmp.ge.f32.partialorder %v435_v29, 0.0  ;;  %vm499_vm6 = vcmp.ge.f32.partialorder %v374_v38, 0.0  ;;  %v562_v45 = vsel %vm498_vm3, %v371_v28, %v530_v30 }
  0xff   : > { %v565_v40 = vsel %vm501_vm2, %v1048_v31, %v533_v35  ;;  %v531_v41 = vmul.f32 0.2, %v374_v38  ;;  %vm515_vm7 = vcmp.ge.f32.partialorder %v438_v39, 0.0  ;;  %v547_v44 = vmul.f32 0.2, %v438_v39 }
 0x100   : > { %v918_v42 = vpack.c.bf16 %v565_v40, %v564_v33  ;;  %v581_v43 = vsel %vm517_vm4, %v1064_v32, %v549_v37  ;;  %v578_v50 = vsel %vm514_vm5, %v435_v29, %v546_v34 }
 0x101   : > { %v958_v46 = vpack.c.bf16 %v581_v43, %v580_v36  ;;  %v563_v47 = vsel %vm499_vm6, %v374_v38, %v531_v41  ;;  %v1051_v48 = vpop.f32.mrb[4].mxu0  ;;  %v1067_v49 = vpop.f32.mrb[4].mxu1  ;;  %v579_v52 = vsel %vm515_vm7, %v438_v39, %v547_v44 }
 0x102   : > { %990 = vst [vmem:[%s1211_s5 + $0x8] sm:$0xff] %v918_v42   ;;  %v913_v51 = vpack.c.bf16 %v563_v47, %v562_v45  ;;  %v536_v53 = vmul.f32 0.2, %v1051_v48  ;;  %v387_v54 = vpop.f32.mrb[5].mxu0  ;;  %v451_v55 = vpop.f32.mrb[5].mxu1  ;;  %v953_v56 = vpack.c.bf16 %v579_v52, %v578_v50  ;;  %vm504_vm8 = vcmp.ge.f32.partialorder %v1051_v48, 0.0 }
 0x103   : > { %998 = vst [vmem:[%s1211_s5 + $0x48] sm:$0xff] %v958_v46   ;;  %v552_v57 = vmul.f32 0.2, %v1067_v49  ;;  %v1052_v58 = vpop.f32.mrb[6].mxu0  ;;  %v1068_v59 = vpop.f32.mrb[6].mxu1  ;;  %vm520_vm9 = vcmp.ge.f32.partialorder %v1067_v49, 0.0 }
 0x104   : > { %914 = vst [vmem:[%s1211_s5] sm:$0xff] %v913_v51   ;;  %v534_v60 = vmul.f32 0.2, %v387_v54  ;;  %v550_v61 = vmul.f32 0.2, %v451_v55  ;;  %v390_v62 = vpop.f32.mrb[7].mxu0  ;;  %997 = vst [vmem:[%s1211_s5 + $0x40] sm:$0xff] %v953_v56   ;;  %v568_v1 = vsel %vm504_vm8, %v1051_v48, %v536_v53 }
 0x105   : > { %vm502_vm10 = vcmp.ge.f32.partialorder %v387_v54, 0.0  ;;  %vm505_vm11 = vcmp.ge.f32.partialorder %v1052_v58, 0.0  ;;  %v537_v63 = vmul.f32 0.2, %v1052_v58  ;;  %vm521_vm12 = vcmp.ge.f32.partialorder %v1068_v59, 0.0  ;;  %v454_v0 = vpop.f32.mrb[7].mxu1 }
 0x106   : > { %vm518_vm13 = vcmp.ge.f32.partialorder %v451_v55, 0.0  ;;  %v553_v2 = vmul.f32 0.2, %v1068_v59  ;;  %vm503_vm14 = vcmp.ge.f32.partialorder %v390_v62, 0.0  ;;  %v535_v4 = vmul.f32 0.2, %v390_v62 }
 0x107   : > { %v569_v3 = vsel %vm505_vm11, %v1052_v58, %v537_v63  ;;  %vm519_vm15 = vcmp.ge.f32.partialorder %v454_v0, 0.0  ;;  %v551_v5 = vmul.f32 0.2, %v454_v0  ;;  %v584_v6 = vsel %vm520_vm9, %v1067_v49, %v552_v57 }
 0x108   : > { %v566_v7 = vsel %vm502_vm10, %v387_v54, %v534_v60  ;;  %v928_v8 = vpack.c.bf16 %v569_v3, %v568_v1  ;;  %v585_v9 = vsel %vm521_vm12, %v1068_v59, %v553_v2  ;;  %v582_v10 = vsel %vm518_vm13, %v451_v55, %v550_v61 }
 0x109   : > { %v968_v11 = vpack.c.bf16 %v585_v9, %v584_v6  ;;  %v567_v12 = vsel %vm503_vm14, %v390_v62, %v535_v4  ;;  %v583_v13 = vsel %vm519_vm15, %v454_v0, %v551_v5  ;;  %v1055_v14 = vpop.f32.mrb[8].mxu0  ;;  %v1071_v15 = vpop.f32.mrb[8].mxu1 }
 0x10a   : > { %992 = vst [vmem:[%s1211_s5 + $0x18] sm:$0xff] %v928_v8   ;;  %v923_v16 = vpack.c.bf16 %v567_v12, %v566_v7  ;;  %v963_v17 = vpack.c.bf16 %v583_v13, %v582_v10  ;;  %vm508_vm0 = vcmp.ge.f32.partialorder %v1055_v14, 0.0  ;;  %v540_v18 = vmul.f32 0.2, %v1055_v14  ;;  %v403_v19 = vpop.f32.mrb[9].mxu0  ;;  %v467_v20 = vpop.f32.mrb[9].mxu1 }
 0x10b   : > { %1000 = vst [vmem:[%s1211_s5 + $0x58] sm:$0xff] %v968_v11   ;;  %vm524_vm1 = vcmp.ge.f32.partialorder %v1071_v15, 0.0  ;;  %v556_v21 = vmul.f32 0.2, %v1071_v15  ;;  %v538_v22 = vmul.f32 0.2, %v403_v19 }
 0x10c   : > { %991 = vst [vmem:[%s1211_s5 + $0x10] sm:$0xff] %v923_v16   ;;  %999 = vst [vmem:[%s1211_s5 + $0x50] sm:$0xff] %v963_v17   ;;  %v554_v23 = vmul.f32 0.2, %v467_v20  ;;  %v1056_v24 = vpop.f32.mrb[10].mxu0  ;;  %v1072_v25 = vpop.f32.mrb[10].mxu1  ;;  %v572_v26 = vsel %vm508_vm0, %v1055_v14, %v540_v18 }
 0x10d   : > { %vm506_vm2 = vcmp.ge.f32.partialorder %v403_v19, 0.0  ;;  %vm509_vm3 = vcmp.ge.f32.partialorder %v1056_v24, 0.0  ;;  %v541_v27 = vmul.f32 0.2, %v1056_v24  ;;  %v406_v28 = vpop.f32.mrb[11].mxu0  ;;  %v470_v29 = vpop.f32.mrb[11].mxu1  ;;  %v588_v34 = vsel %vm524_vm1, %v1071_v15, %v556_v21 }
 0x10e   : > { %vm522_vm4 = vcmp.ge.f32.partialorder %v467_v20, 0.0  ;;  %vm525_vm5 = vcmp.ge.f32.partialorder %v1072_v25, 0.0  ;;  %v557_v30 = vmul.f32 0.2, %v1072_v25  ;;  %vm507_vm6 = vcmp.ge.f32.partialorder %v406_v28, 0.0 }
 0x10f   : > { %v573_v31 = vsel %vm509_vm3, %v1056_v24, %v541_v27  ;;  %v539_v32 = vmul.f32 0.2, %v406_v28  ;;  %vm523_vm7 = vcmp.ge.f32.partialorder %v470_v29, 0.0  ;;  %v555_v33 = vmul.f32 0.2, %v470_v29 }
 0x110   : > { %v570_v35 = vsel %vm506_vm2, %v403_v19, %v538_v22  ;;  %v938_v36 = vpack.c.bf16 %v573_v31, %v572_v26  ;;  %v589_v37 = vsel %vm525_vm5, %v1072_v25, %v557_v30  ;;  %v586_v38 = vsel %vm522_vm4, %v467_v20, %v554_v23 }
 0x111   : > { %v978_v39 = vpack.c.bf16 %v589_v37, %v588_v34  ;;  %v571_v40 = vsel %vm507_vm6, %v406_v28, %v539_v32  ;;  %v587_v41 = vsel %vm523_vm7, %v470_v29, %v555_v33  ;;  %v1059_v42 = vpop.f32.mrb[12].mxu0  ;;  %v1075_v43 = vpop.f32.mrb[12].mxu1 }
 0x112   : > { %994 = vst [vmem:[%s1211_s5 + $0x28] sm:$0xff] %v938_v36   ;;  %v933_v44 = vpack.c.bf16 %v571_v40, %v570_v35  ;;  %v973_v45 = vpack.c.bf16 %v587_v41, %v586_v38  ;;  %vm512_vm8 = vcmp.ge.f32.partialorder %v1059_v42, 0.0  ;;  %v544_v46 = vmul.f32 0.2, %v1059_v42  ;;  %v419_v47 = vpop.f32.mrb[13].mxu0  ;;  %v483_v48 = vpop.f32.mrb[13].mxu1 }
 0x113   : > { %1002 = vst [vmem:[%s1211_s5 + $0x68] sm:$0xff] %v978_v39   ;;  %vm528_vm9 = vcmp.ge.f32.partialorder %v1075_v43, 0.0  ;;  %v560_v49 = vmul.f32 0.2, %v1075_v43  ;;  %v542_v50 = vmul.f32 0.2, %v419_v47 }
 0x114   : > { %993 = vst [vmem:[%s1211_s5 + $0x20] sm:$0xff] %v933_v44   ;;  %1001 = vst [vmem:[%s1211_s5 + $0x60] sm:$0xff] %v973_v45   ;;  %v558_v51 = vmul.f32 0.2, %v483_v48  ;;  %v1060_v52 = vpop.f32.mrb[14].mxu0  ;;  %v1076_v53 = vpop.f32.mrb[14].mxu1  ;;  %v576_v54 = vsel %vm512_vm8, %v1059_v42, %v544_v46 }
 0x115   : > { %vm510_vm10 = vcmp.ge.f32.partialorder %v419_v47, 0.0  ;;  %vm513_vm11 = vcmp.ge.f32.partialorder %v1060_v52, 0.0  ;;  %v545_v55 = vmul.f32 0.2, %v1060_v52  ;;  %v422_v56 = vpop.f32.mrb[15].mxu0  ;;  %v486_v57 = vpop.f32.mrb[15].mxu1  ;;  %v592_v62 = vsel %vm528_vm9, %v1075_v43, %v560_v49 }
 0x116   : > { %vm526_vm12 = vcmp.ge.f32.partialorder %v483_v48, 0.0  ;;  %vm529_vm13 = vcmp.ge.f32.partialorder %v1076_v53, 0.0  ;;  %v561_v58 = vmul.f32 0.2, %v1076_v53  ;;  %vm511_vm14 = vcmp.ge.f32.partialorder %v422_v56, 0.0 }
 0x117   : > { %v577_v59 = vsel %vm513_vm11, %v1060_v52, %v545_v55  ;;  %v543_v60 = vmul.f32 0.2, %v422_v56  ;;  %vm527_vm15 = vcmp.ge.f32.partialorder %v486_v57, 0.0  ;;  %v559_v61 = vmul.f32 0.2, %v486_v57 }
 0x118   : > { %v574_v63 = vsel %vm510_vm10, %v419_v47, %v542_v50  ;;  %v948_v0 = vpack.c.bf16 %v577_v59, %v576_v54  ;;  %v593_v1 = vsel %vm529_vm13, %v1076_v53, %v561_v58  ;;  %v590_v2 = vsel %vm526_vm12, %v483_v48, %v558_v51 }
 0x119   : > { %v988_v3 = vpack.c.bf16 %v593_v1, %v592_v62  ;;  %v575_v4 = vsel %vm511_vm14, %v422_v56, %v543_v60  ;;  %v591_v5 = vsel %vm527_vm15, %v486_v57, %v559_v61 }
 0x11a   : > { %996 = vst [vmem:[%s1211_s5 + $0x38] sm:$0xff] %v948_v0   ;;  %v943_v6 = vpack.c.bf16 %v575_v4, %v574_v63  ;;  %v983_v7 = vpack.c.bf16 %v591_v5, %v590_v2 }
 0x11b   : > { %1004 = vst [vmem:[%s1211_s5 + $0x78] sm:$0xff] %v988_v3  }
 0x11c   : > { %995 = vst [vmem:[%s1211_s5 + $0x30] sm:$0xff] %v943_v6   ;;  %1003 = vst [vmem:[%s1211_s5 + $0x70] sm:$0xff] %v983_v7  }
 0x11d PF: > { %s12_s9 = sadd.s32 1, %s1131_s9  }
 0x11e   : > { %p9_p4 = scmp.ge.s32.totalorder %s12_s9, 4  }
 0x120   :  { %11 = sbr.rel (!%p9_p4) target bundleno = 1 (0x1), region = 58 }

// kernel: _lambda_.11
= control target key start
LH: loop header
LB: loop body
LE: loop exit
PB: predicated region body
PF: predicated region fallthrough
CT: control target
= control target key end

     0   :  { %s641_s9 = smov 0   ;;  %s703_s0 = inlined_call_operand.vmem [shape: bf16[2,64,128], index: 0, kind: input, shape index: {}]   ;;  %s704_s1 = inlined_call_operand.vmem [shape: bf16[128,128], index: 1, kind: input, shape index: {}]   ;;  %s705_s2 = inlined_call_operand.vmem [shape: bf16[2,64,128], index: 2, kind: output, shape index: {}]  }
   0x1 LB: > { %s480_s10 = sadd.s32 4294967295, %s624_s9   ;;  %p484_p0 = scmp.ge.s32.totalorder %s624_s9, 1  ;;  %s624_s9 = sphi %s641_s9, %s12_s9  }
   0x2   : > { %p112_p1 = scmp.lt.s32.totalorder %s624_s9, 3 }
   0x4   : > { %p113_p2 = pnand %p484_p0, %p112_p1 }
   0x5   : > { %v604_v0 = vld [vmem:[%s704_s1] sm:$0xff] (!%p113_p2)   ;;  %p134_p3 = scmp.lt.s32.totalorder (!%p113_p2), %s480_s10, 1  ;;  %v605_v1 = vld [vmem:[%s704_s1 + $0x8] sm:$0xff] (!%p113_p2)   ;;  %v606_v2 = vld [vmem:[%s704_s1 + $0x10] sm:$0xff] (!%p113_p2)  }
   0x6   : > { %116 = sbr.rel (%p113_p2) target bundleno = 338 (0x152), region = 28  ;;  %556 = vmatprep.subr.bf16.mxu0 (!%p113_p2), %v604_v0  ;;  %580 = vmatprep.subr.bf16.mxu1 (!%p113_p2), %v604_v0  ;;  %v607_v3 = vld [vmem:[%s704_s1 + $0x18] sm:$0xff] (!%p113_p2)   ;;  %v608_v6 = vld [vmem:[%s704_s1 + $0x20] sm:$0xff] (!%p113_p2)   ;;  %v609_v7 = vld [vmem:[%s704_s1 + $0x28] sm:$0xff] (!%p113_p2)  }
   0x7   : > { %557 = vmatpush3.bf16.msra.mxu0 (!%p113_p2), %v604_v0  ;;  %588 = vmatpush3.bf16.msra.mxu1 (!%p113_p2), %v604_v0  ;;  %v610_v8 = vld [vmem:[%s704_s1 + $0x30] sm:$0xff] (!%p113_p2)   ;;  %v611_v9 = vld [vmem:[%s704_s1 + $0x38] sm:$0xff] (!%p113_p2)  }
   0x8   : > { %558 = vmatprep.subr.bf16.mxu0 (!%p113_p2), %v605_v1  ;;  %581 = vmatprep.subr.bf16.mxu1 (!%p113_p2), %v605_v1 }
   0xb   : > { %559 = vmatpush3.bf16.msra.mxu0 (!%p113_p2), %v605_v1  ;;  %589 = vmatpush3.bf16.msra.mxu1 (!%p113_p2), %v605_v1 }
   0xc   : > { %560 = vmatprep.subr.bf16.mxu0 (!%p113_p2), %v606_v2  ;;  %582 = vmatprep.subr.bf16.mxu1 (!%p113_p2), %v606_v2 }
   0xd   : > { %s707_s10 = smov (!%p134_p3, %s480_s10), 1 }
   0xe   : > { %s511_s17 = sshll.u32 %s707_s10, 5 }
   0xf   : > { %s666_s20 = scalar_lea.vmem %s703_s0, %s511_s17  ;;  %561 = vmatpush3.bf16.msra.mxu0 %v606_v2  ;;  %590 = vmatpush3.bf16.msra.mxu1 %v606_v2  ;;  %s143_s5 = scalar_lea.vmem %s705_s2, %s511_s17 }
  0x10   : > { %v612_v4 = vld [vmem:[%s666_s20] sm:$0xff]   ;;  %v614_v5 = vld [vmem:[%s666_s20 + $0x10] sm:$0xff]   ;;  %562 = vmatprep.subr.bf16.mxu0 %v607_v3  ;;  %583 = vmatprep.subr.bf16.mxu1 %v607_v3  ;;  %v613_v10 = vld [vmem:[%s666_s20 + $0x8] sm:$0xff]  }
  0x11   : > { %572 = vmatprep.mubr.bf16.mxu0 %v612_v4  ;;  %576 = vmatprep.mubr.bf16.mxu1 %v614_v5  ;;  %v615_v11 = vld [vmem:[%s666_s20 + $0x18] sm:$0xff]  }
  0x13   : > { %563 = vmatpush3.bf16.msra.mxu0 %v607_v3  ;;  %591 = vmatpush3.bf16.msra.mxu1 %v607_v3 }
  0x14   : > { %564 = vmatprep.subr.bf16.mxu0 %v608_v6  ;;  %584 = vmatprep.subr.bf16.mxu1 %v608_v6 }
  0x17   : > { %565 = vmatpush3.bf16.msra.mxu0 %v608_v6  ;;  %592 = vmatpush3.bf16.msra.mxu1 %v608_v6 }
  0x18   : > { %566 = vmatprep.subr.bf16.mxu0 %v609_v7  ;;  %585 = vmatprep.subr.bf16.mxu1 %v609_v7 }
  0x1b   : > { %567 = vmatpush3.bf16.msra.mxu0 %v609_v7  ;;  %593 = vmatpush3.bf16.msra.mxu1 %v609_v7 }
  0x1c   : > { %568 = vmatprep.subr.bf16.mxu0 %v610_v8  ;;  %586 = vmatprep.subr.bf16.mxu1 %v610_v8 }
  0x1f   : > { %569 = vmatpush3.bf16.msra.mxu0 %v610_v8  ;;  %594 = vmatpush3.bf16.msra.mxu1 %v610_v8 }
  0x20   : > { %570 = vmatprep.subr.bf16.mxu0 %v611_v9  ;;  %587 = vmatprep.subr.bf16.mxu1 %v611_v9 }
  0x23   : > { %571 = vmatpush3.bf16.msra.mxu0 %v611_v9  ;;  %595 = vmatpush3.bf16.msra.mxu1 %v611_v9 }
  0x26   : > { %573 = vmatmul.mubr.bf16.vlgmr.msra.gmra.mrb[0].mxu0 %v613_v10  ;;  %577 = vmatmul.mubr.bf16.vlgmr.msra.gmra.mrb[0].mxu1 %v615_v11 }
  0xf9   : > { %v574_v12 = vpop.f32.mrb[0].mxu0  ;;  %v578_v13 = vpop.f32.mrb[0].mxu1 }
  0xfa   : > { %v275_v14 = vpop.f32.mrb[1].mxu0  ;;  %v291_v15 = vpop.f32.mrb[1].mxu1 }
  0xfb   : > { %v575_v16 = vpop.f32.mrb[2].mxu0  ;;  %v579_v17 = vpop.f32.mrb[2].mxu1 }
  0xfc   : > { %v278_v18 = vpop.f32.mrb[3].mxu0  ;;  %v294_v19 = vpop.f32.mrb[3].mxu1 }
  0xfd   : > { %v306_v20 = vadd.f32 %v278_v18, %v275_v14 }
  0xff   : > { %v307_v21 = vadd.f32 %v574_v12, %v306_v20 }
 0x101   : > { %v308_v22 = vadd.f32 %v575_v16, %v307_v21 }
 0x103   : > { %v309_v23 = vadd.f32 %v308_v22, %v291_v15 }
 0x105   : > { %v310_v24 = vadd.f32 %v309_v23, %v294_v19 }
 0x107   : > { %v311_v25 = vadd.f32 %v578_v13, %v310_v24 }
 0x109   : > { %v312_v26 = vadd.f32 %v579_v17, %v311_v25 }
 0x10b   : > { %v313_v27 = vrot.slane %v312_v26, 4 }
 0x10d   : > { %v314_v28 = vadd.f32 %v313_v27, %v312_v26 }
 0x10f   : > { %v315_v29 = vrot.slane %v314_v28, 2 }
 0x111   : > { %v316_v30 = vadd.f32 %v315_v29, %v314_v28 }
 0x113   : > { %v317_v31 = vrot.slane %v316_v30, 1 }
 0x115   : > { %v318_v32 = vadd.f32 %v317_v31, %v316_v30 }
 0x117   : > { %v320_v33 = vmul.f32 0.015625, %v318_v32 }
 0x119   : > { %v321_v34 = vsub.f32 %v275_v14, %v320_v33  ;;  %v322_v35 = vsub.f32 %v278_v18, %v320_v33  ;;  %v323_v36 = vsub.f32 %v574_v12, %v320_v33  ;;  %v324_v37 = vsub.f32 %v575_v16, %v320_v33 }
 0x11a   : > { %v325_v38 = vsub.f32 %v291_v15, %v320_v33  ;;  %v326_v39 = vsub.f32 %v294_v19, %v320_v33  ;;  %v327_v40 = vsub.f32 %v578_v13, %v320_v33  ;;  %v328_v41 = vsub.f32 %v579_v17, %v320_v33 }
 0x11b   : > { %v329_v42 = vmul.f32 %v321_v34, %v321_v34  ;;  %v330_v43 = vmul.f32 %v322_v35, %v322_v35  ;;  %v331_v44 = vmul.f32 %v323_v36, %v323_v36  ;;  %v332_v46 = vmul.f32 %v324_v37, %v324_v37 }
 0x11c   : > { %v333_v48 = vmul.f32 %v325_v38, %v325_v38  ;;  %v334_v50 = vmul.f32 %v326_v39, %v326_v39  ;;  %v335_v52 = vmul.f32 %v327_v40, %v327_v40  ;;  %v336_v54 = vmul.f32 %v328_v41, %v328_v41 }
 0x11d   : > { %v337_v45 = vadd.f32 %v330_v43, %v329_v42 }
 0x11f   : > { %v338_v47 = vadd.f32 %v337_v45, %v331_v44 }
 0x121   : > { %v339_v49 = vadd.f32 %v338_v47, %v332_v46 }
 0x123   : > { %v340_v51 = vadd.f32 %v339_v49, %v333_v48 }
 0x125   : > { %v341_v53 = vadd.f32 %v340_v51, %v334_v50 }
 0x127   : > { %v342_v55 = vadd.f32 %v341_v53, %v335_v52 }
 0x129   : > { %v343_v56 = vadd.f32 %v342_v55, %v336_v54 }
 0x12b   : > { %v344_v57 = vrot.slane %v343_v56, 4 }
 0x12d   : > { %v345_v58 = vadd.f32 %v344_v57, %v343_v56 }
 0x12f   : > { %v346_v59 = vrot.slane %v345_v58, 2 }
 0x131   : > { %v347_v60 = vadd.f32 %v346_v59, %v345_v58 }
 0x133   : > { %v348_v61 = vrot.slane %v347_v60, 1 }
 0x135   : > { %v349_v62 = vadd.f32 %v348_v61, %v347_v60 }
 0x137   : > { %v350_v63 = vmul.f32 0.015625, %v349_v62 }
 0x139   : > { %v351_v0 = vadd.f32 1e-05, %v350_v63 }
 0x13b   : > { %616 = vrsqrt.f32 %v351_v0 }
 0x145   : > { %v617_v1 = vpop.eup %616 }
 0x146   : > { %v353_v2 = vmul.f32 %v617_v1, %v321_v34  ;;  %v354_v3 = vmul.f32 %v617_v1, %v322_v35  ;;  %v355_v4 = vmul.f32 %v617_v1, %v323_v36  ;;  %v356_v5 = vmul.f32 %v617_v1, %v324_v37 }
 0x147   : > { %v357_v6 = vmul.f32 %v617_v1, %v325_v38  ;;  %v358_v7 = vmul.f32 %v617_v1, %v326_v39  ;;  %v359_v8 = vmul.f32 %v617_v1, %v327_v40  ;;  %v360_v9 = vmul.f32 %v617_v1, %v328_v41 }
 0x148   : > { %vm361_vm0 = vcmp.ge.f32.partialorder %v353_v2, 0.0  ;;  %vm362_vm1 = vcmp.ge.f32.partialorder %v354_v3, 0.0  ;;  %vm363_vm2 = vcmp.ge.f32.partialorder %v355_v4, 0.0  ;;  %vm364_vm3 = vcmp.ge.f32.partialorder %v356_v5, 0.0 }
 0x149   : > { %vm365_vm4 = vcmp.ge.f32.partialorder %v357_v6, 0.0  ;;  %vm366_vm5 = vcmp.ge.f32.partialorder %v358_v7, 0.0  ;;  %vm367_vm6 = vcmp.ge.f32.partialorder %v359_v8, 0.0  ;;  %vm368_vm7 = vcmp.ge.f32.partialorder %v360_v9, 0.0 }
 0x14a   : > { %v369_v10 = vmul.f32 0.2, %v353_v2  ;;  %v370_v11 = vmul.f32 0.2, %v354_v3  ;;  %v371_v12 = vmul.f32 0.2, %v355_v4 }
 0x14b   : > { %v372_v13 = vmul.f32 0.2, %v356_v5  ;;  %v373_v14 = vmul.f32 0.2, %v357_v6  ;;  %v374_v15 = vmul.f32 0.2, %v358_v7 }
 0x14c   : > { %v375_v16 = vmul.f32 0.2, %v359_v8  ;;  %v376_v17 = vmul.f32 0.2, %v360_v9  ;;  %v377_v18 = vsel %vm361_vm0, %v353_v2, %v369_v10  ;;  %v378_v19 = vsel %vm362_vm1, %v354_v3, %v370_v11 }
 0x14d   : > { %v379_v20 = vsel %vm363_vm2, %v355_v4, %v371_v12  ;;  %v380_v21 = vsel %vm364_vm3, %v356_v5, %v372_v13  ;;  %v381_v22 = vsel %vm365_vm4, %v357_v6, %v373_v14  ;;  %v382_v23 = vsel %vm366_vm5, %v358_v7, %v374_v15 }
 0x14e   : > { %v383_v24 = vsel %vm367_vm6, %v359_v8, %v375_v16  ;;  %v384_v25 = vsel %vm368_vm7, %v360_v9, %v376_v17  ;;  %v524_v26 = vpack.c.bf16 %v378_v19, %v377_v18  ;;  %v529_v27 = vpack.c.bf16 %v380_v21, %v379_v20 }
 0x14f   : > { %v534_v28 = vpack.c.bf16 %v382_v23, %v381_v22  ;;  %v539_v29 = vpack.c.bf16 %v384_v25, %v383_v24 }
 0x150   : > { %525 = vst [vmem:[%s143_s5] sm:$0xff] %v524_v26   ;;  %541 = vst [vmem:[%s143_s5 + $0x8] sm:$0xff] %v529_v27  }
 0x151   : > { %542 = vst [vmem:[%s143_s5 + $0x10] sm:$0xff] %v534_v28   ;;  %543 = vst [vmem:[%s143_s5 + $0x18] sm:$0xff] %v539_v29  }
 0x152 PF: > { %s12_s9 = sadd.s32 1, %s624_s9  }
 0x153   : > { %p9_p4 = scmp.ge.s32.totalorder %s12_s9, 4  }
 0x155   :  { %11 = sbr.rel (!%p9_p4) target bundleno = 1 (0x1), region = 58 }

// kernel: _lambda_.12
= control target key start
LH: loop header
LB: loop body
LE: loop exit
PB: predicated region body
PF: predicated region fallthrough
CT: control target
= control target key end

     0   :  { %s536_s9 = smov 0   ;;  %s605_s0 = inlined_call_operand.vmem [shape: bf16[2,16,256], index: 0, kind: input, shape index: {}]   ;;  %s606_s1 = inlined_call_operand.vmem [shape: bf16[256,128], index: 1, kind: input, shape index: {}]   ;;  %s607_s2 = inlined_call_operand.vmem [shape: bf16[2,16,128], index: 2, kind: output, shape index: {}]  }
   0x1 LB: > { %s422_s10 = sadd.s32 4294967295, %s519_s9   ;;  %p426_p0 = scmp.ge.s32.totalorder %s519_s9, 1  ;;  %s519_s9 = sphi %s536_s9, %s12_s9  }
   0x2   : > { %p112_p1 = scmp.lt.s32.totalorder %s519_s9, 3 }
   0x4   : > { %p113_p2 = pnand %p426_p0, %p112_p1 }
   0x5   : > { %v492_v0 = vld [vmem:[%s606_s1 + $0x40] sm:$0xff] (!%p113_p2)   ;;  %v494_v2 = vld [vmem:[%s606_s1 + $0x48] sm:$0xff] (!%p113_p2)   ;;  %p134_p3 = scmp.lt.s32.totalorder (!%p113_p2), %s422_s10, 1  ;;  %v496_v4 = vld [vmem:[%s606_s1 + $0x50] sm:$0xff] (!%p113_p2)  }
   0x6   : > { %116 = sbr.rel (%p113_p2) target bundleno = 312 (0x138), region = 28  ;;  %v493_v1 = vld [vmem:[%s606_s1] sm:$0xff] (!%p113_p2)   ;;  %462 = vmatprep.subr.bf16.mxu0 (!%p113_p2), %v492_v0  ;;  %v495_v3 = vld [vmem:[%s606_s1 + $0x8] sm:$0xff] (!%p113_p2)   ;;  %v497_v5 = vld [vmem:[%s606_s1 + $0x10] sm:$0xff] (!%p113_p2)  }
   0x7   : > { %463 = vmatpush3.bf16.msra.mxu0 (!%p113_p2), %v493_v1  ;;  %v498_v6 = vld [vmem:[%s606_s1 + $0x58] sm:$0xff] (!%p113_p2)   ;;  %v500_v8 = vld [vmem:[%s606_s1 + $0x60] sm:$0xff] (!%p113_p2)   ;;  %v502_v10 = vld [vmem:[%s606_s1 + $0x68] sm:$0xff] (!%p113_p2)  }
   0x8   : > { %464 = vmatprep.subr.bf16.mxu0 (!%p113_p2), %v494_v2  ;;  %v499_v7 = vld [vmem:[%s606_s1 + $0x18] sm:$0xff] (!%p113_p2)   ;;  %v501_v9 = vld [vmem:[%s606_s1 + $0x20] sm:$0xff] (!%p113_p2)   ;;  %v503_v12 = vld [vmem:[%s606_s1 + $0x28] sm:$0xff] (!%p113_p2)  }
   0x9   : > { %v504_v13 = vld [vmem:[%s606_s1 + $0x70] sm:$0xff] (!%p113_p2)   ;;  %v506_v15 = vld [vmem:[%s606_s1 + $0x78] sm:$0xff] (!%p113_p2)  }
   0xa   : > { %v505_v14 = vld [vmem:[%s606_s1 + $0x30] sm:$0xff] (!%p113_p2)   ;;  %v507_v16 = vld [vmem:[%s606_s1 + $0x38] sm:$0xff] (!%p113_p2)  }
   0xb   : > { %465 = vmatpush3.bf16.msra.mxu0 (!%p113_p2), %v495_v3 }
   0xc   : > { %466 = vmatprep.subr.bf16.mxu0 (!%p113_p2), %v496_v4 }
   0xd   : > { %s609_s10 = smov (!%p134_p3, %s422_s10), 1 }
   0xe   : > { %s453_s27 = sshll.u32 %s609_s10, 4  ;;  %s454_s21 = sshll.u32 %s609_s10, 3 }
   0xf   : > { %467 = vmatpush3.bf16.msra.mxu0 %v497_v5  ;;  %s138_s4 = scalar_lea.vmem %s605_s0, %s453_s27  ;;  %s143_s24 = scalar_lea.vmem %s607_s2, %s454_s21 }
  0x10   : > { %468 = vmatprep.subr.bf16.mxu0 %v498_v6  ;;  %v510_v11 = vld [vmem:[%s138_s4 + $0x4] ss:$8 sps:$4 sm:$0xff]   ;;  %v508_v17 = vld [vmem:[%s138_s4] ss:$8 sps:$4 sm:$0xff]  }
  0x11   : > { %317 = vmatprep.mubr.bf16.mxu0 %v510_v11 }
  0x13   : > { %469 = vmatpush3.bf16.msra.mxu0 %v499_v7 }
  0x14   : > { %470 = vmatprep.subr.bf16.mxu0 %v500_v8 }
  0x17   : > { %471 = vmatpush3.bf16.msra.mxu0 %v501_v9 }
  0x18   : > { %472 = vmatprep.subr.bf16.mxu0 %v502_v10 }
  0x1b   : > { %473 = vmatpush3.bf16.msra.mxu0 %v503_v12 }
  0x1c   : > { %474 = vmatprep.subr.bf16.mxu0 %v504_v13 }
  0x1f   : > { %475 = vmatpush3.bf16.msra.mxu0 %v505_v14 }
  0x20   : > { %476 = vmatprep.subr.bf16.mxu0 %v506_v15 }
  0x23   : > { %477 = vmatpush3.bf16.msra.mxu0 %v507_v16 }
  0x26   : > { %318 = vmatmul.mubr.bf16.vlgmr.msra.gmra.mrb[0].mxu0 %v508_v17 }
  0xf9   : > { %v478_v18 = vpop.f32.mrb[0].mxu0 }
  0xfa   : > { %v479_v19 = vpop.f32.mrb[1].mxu0 }
  0xfb   : > { %v480_v20 = vadd.f32 %v479_v19, %v478_v18  ;;  %v481_v21 = vpop.f32.mrb[2].mxu0 }
  0xfc   : > { %v482_v22 = vpop.f32.mrb[3].mxu0 }
  0xfd   : > { %v483_v23 = vadd.f32 %v482_v22, %v481_v21 }
  0xff   : > { %v326_v24 = vadd.f32 %v483_v23, %v480_v20 }
 0x101   : > { %v327_v25 = vrot.slane %v326_v24, 4 }
 0x103   : > { %v328_v26 = vadd.f32 %v327_v25, %v326_v24 }
 0x105   : > { %v329_v27 = vrot.slane %v328_v26, 2 }
 0x107   : > { %v330_v28 = vadd.f32 %v329_v27, %v328_v26 }
 0x109   : > { %v331_v29 = vrot.slane %v330_v28, 1 }
 0x10b   : > { %v332_v30 = vadd.f32 %v331_v29, %v330_v28 }
 0x10d   : > { %v334_v31 = vmul.f32 0.0625, %v332_v30 }
 0x10f   : > { %v335_v32 = vsub.f32 %v480_v20, %v334_v31  ;;  %v336_v33 = vsub.f32 %v483_v23, %v334_v31 }
 0x111   : > { %v337_v34 = vmul.f32 %v335_v32, %v335_v32  ;;  %v338_v35 = vmul.f32 %v336_v33, %v336_v33 }
 0x113   : > { %v339_v36 = vadd.f32 %v338_v35, %v337_v34 }
 0x115   : > { %v340_v37 = vrot.slane %v339_v36, 4 }
 0x117   : > { %v341_v38 = vadd.f32 %v340_v37, %v339_v36 }
 0x119   : > { %v342_v39 = vrot.slane %v341_v38, 2 }
 0x11b   : > { %v343_v40 = vadd.f32 %v342_v39, %v341_v38 }
 0x11d   : > { %v344_v41 = vrot.slane %v343_v40, 1 }
 0x11f   : > { %v345_v42 = vadd.f32 %v344_v41, %v343_v40 }
 0x121   : > { %v346_v43 = vmul.f32 0.0625, %v345_v42 }
 0x123   : > { %v347_v44 = vadd.f32 1e-05, %v346_v43 }
 0x125   : > { %511 = vrsqrt.f32 %v347_v44 }
 0x12f   : > { %v512_v45 = vpop.eup %511 }
 0x130   : > { %v349_v46 = vmul.f32 %v512_v45, %v335_v32  ;;  %v350_v47 = vmul.f32 %v512_v45, %v336_v33 }
 0x132   : > { %vm351_vm0 = vcmp.ge.f32.partialorder %v349_v46, 0.0  ;;  %vm352_vm1 = vcmp.ge.f32.partialorder %v350_v47, 0.0  ;;  %v353_v48 = vmul.f32 0.2, %v349_v46  ;;  %v354_v49 = vmul.f32 0.2, %v350_v47 }
 0x134   : > { %v355_v50 = vsel %vm351_vm0, %v349_v46, %v353_v48  ;;  %v356_v51 = vsel %vm352_vm1, %v350_v47, %v354_v49 }
 0x135   : > { %v460_v52 = vpack.c.bf16 %v356_v51, %v355_v50 }
 0x137   : > { %461 = vst [vmem:[%s143_s24] sm:$0xff] %v460_v52  }
 0x138 PF: > { %s12_s9 = sadd.s32 1, %s519_s9  }
 0x139   : > { %p9_p4 = scmp.ge.s32.totalorder %s12_s9, 4  }
 0x13b   :  { %11 = sbr.rel (!%p9_p4) target bundleno = 1 (0x1), region = 58 }

// kernel: _lambda_.13
= control target key start
LH: loop header
LB: loop body
LE: loop exit
PB: predicated region body
PF: predicated region fallthrough
CT: control target
= control target key end

     0   :  { %s738_s9 = smov 0   ;;  %s859_s0 = inlined_call_operand.vmem [shape: bf16[2,4,512], index: 0, kind: input, shape index: {}]   ;;  %s860_s1 = inlined_call_operand.vmem [shape: bf16[512,128], index: 1, kind: input, shape index: {}]   ;;  %s861_s2 = inlined_call_operand.vmem [shape: bf16[2,4,128], index: 2, kind: output, shape index: {}]  }
   0x1 LB: > { %s583_s10 = sadd.s32 4294967295, %s720_s9   ;;  %p587_p0 = scmp.ge.s32.totalorder %s720_s9, 1  ;;  %s720_s9 = sphi %s738_s9, %s12_s9  }
   0x2   : > { %p112_p1 = scmp.lt.s32.totalorder %s720_s9, 3 }
   0x4   : > { %p113_p2 = pnand %p587_p0, %p112_p1 }
   0x5   : > { %v679_v0 = vld [vmem:[%s860_s1 + $0x40] sm:$0xff] (!%p113_p2)   ;;  %v683_v4 = vld [vmem:[%s860_s1 + $0x48] sm:$0xff] (!%p113_p2)   ;;  %v687_v8 = vld [vmem:[%s860_s1 + $0x50] sm:$0xff] (!%p113_p2)   ;;  %p133_p3 = scmp.lt.s32.totalorder (!%p113_p2), %s583_s10, 1  ;;  %v213_v30 = vlaneseq (!%p113_p2)  ;;  %v722_v34 = vmov (!%p113_p2), 1983009808  }
   0x6   : > { %116 = sbr.rel (%p113_p2) target bundleno = 312 (0x138), region = 28  ;;  %v680_v1 = vld [vmem:[%s860_s1 + $0xc0] sm:$0xff] (!%p113_p2)   ;;  %626 = vmatprep.subr.bf16.mxu0 (!%p113_p2), %v679_v0  ;;  %v684_v5 = vld [vmem:[%s860_s1 + $0xc8] sm:$0xff] (!%p113_p2)   ;;  %v688_v9 = vld [vmem:[%s860_s1 + $0xd0] sm:$0xff] (!%p113_p2)   ;;  %v211_v35 = vunpack.c.l.s4 (!%p113_p2), %v722_v34  ;;  %vm502_vm0 = vcmask (!%p113_p2), 1043456  }
   0x7   : > { %v681_v2 = vld [vmem:[%s860_s1] sm:$0xff] (!%p113_p2)   ;;  %648 = vmatprep.subr.bf16.mxu1 (!%p113_p2), %v680_v1  ;;  %v685_v6 = vld [vmem:[%s860_s1 + $0x8] sm:$0xff] (!%p113_p2)   ;;  %v689_v10 = vld [vmem:[%s860_s1 + $0x10] sm:$0xff] (!%p113_p2)   ;;  %v214_v36 = vshrl.u32 (!%p113_p2), %v213_v30, 7 }
   0x8   : > { %v682_v3 = vld [vmem:[%s860_s1 + $0x80] sm:$0xff] (!%p113_p2)   ;;  %627 = vmatpush3.bf16.msra.mxu0 (!%p113_p2), %v681_v2  ;;  %v686_v7 = vld [vmem:[%s860_s1 + $0x88] sm:$0xff] (!%p113_p2)   ;;  %v690_v11 = vld [vmem:[%s860_s1 + $0x90] sm:$0xff] (!%p113_p2)   ;;  %v212_v37 = vunpack.c.0.s8 (!%p113_p2), %v211_v35 }
   0x9   : > { %649 = vmatpush3.bf16.msra.mxu1 (!%p113_p2), %v682_v3  ;;  %628 = vmatprep.subr.bf16.mxu0 (!%p113_p2), %v683_v4  ;;  %v691_v12 = vld [vmem:[%s860_s1 + $0x58] sm:$0xff] (!%p113_p2)   ;;  %v695_v16 = vld [vmem:[%s860_s1 + $0x60] sm:$0xff] (!%p113_p2)   ;;  %v699_v20 = vld [vmem:[%s860_s1 + $0x68] sm:$0xff] (!%p113_p2)  }
   0xa   : > { %650 = vmatprep.subr.bf16.mxu1 (!%p113_p2), %v684_v5  ;;  %v692_v13 = vld [vmem:[%s860_s1 + $0xd8] sm:$0xff] (!%p113_p2)   ;;  %v696_v17 = vld [vmem:[%s860_s1 + $0xe0] sm:$0xff] (!%p113_p2)   ;;  %v700_v21 = vld [vmem:[%s860_s1 + $0xe8] sm:$0xff] (!%p113_p2)   ;;  %v215_v39 = vsub.s32 (!%p113_p2), %v212_v37, %v214_v36 }
   0xb   : > { %v693_v14 = vld [vmem:[%s860_s1 + $0x18] sm:$0xff] (!%p113_p2)   ;;  %v697_v18 = vld [vmem:[%s860_s1 + $0x20] sm:$0xff] (!%p113_p2)   ;;  %v701_v22 = vld [vmem:[%s860_s1 + $0x28] sm:$0xff] (!%p113_p2)  }
   0xc   : > { %629 = vmatpush3.bf16.msra.mxu0 (!%p113_p2), %v685_v6  ;;  %v694_v15 = vld [vmem:[%s860_s1 + $0x98] sm:$0xff] (!%p113_p2)   ;;  %v698_v19 = vld [vmem:[%s860_s1 + $0xa0] sm:$0xff] (!%p113_p2)   ;;  %v702_v23 = vld [vmem:[%s860_s1 + $0xa8] sm:$0xff] (!%p113_p2)  }
   0xd   : > { %651 = vmatpush3.bf16.msra.mxu1 %v686_v7  ;;  %630 = vmatprep.subr.bf16.mxu0 %v687_v8  ;;  %s863_s10 = smov (!%p133_p3, %s583_s10), 1  ;;  %v703_v24 = vld [vmem:[%s860_s1 + $0x70] sm:$0xff]   ;;  %v707_v28 = vld [vmem:[%s860_s1 + $0x78] sm:$0xff]  }
   0xe   : > { %652 = vmatprep.subr.bf16.mxu1 %v688_v9  ;;  %v704_v25 = vld [vmem:[%s860_s1 + $0xf0] sm:$0xff]   ;;  %s625_s13 = sshll.u32 %s863_s10, 3  ;;  %v708_v29 = vld [vmem:[%s860_s1 + $0xf8] sm:$0xff]   ;;  %s590_s27 = sshll.u32 %s863_s10, 1 }
   0xf   : > { %v705_v26 = vld [vmem:[%s860_s1 + $0x30] sm:$0xff]   ;;  %s137_s22 = scalar_lea.vmem %s859_s0, %s625_s13  ;;  %v709_v31 = vld [vmem:[%s860_s1 + $0x38] sm:$0xff]   ;;  %s141_s30 = scalar_lea.vmem %s861_s2, %s590_s27 }
  0x10   : > { %631 = vmatpush3.bf16.msra.mxu0 %v689_v10  ;;  %v706_v27 = vld [vmem:[%s860_s1 + $0xb0] sm:$0xff]   ;;  %v710_v32 = vld [vmem:[%s860_s1 + $0xb8] sm:$0xff]   ;;  %v143_v33 = vld [vmem:[%s137_s22] sm:$0xff] }
  0x11   : > { %653 = vmatpush3.bf16.msra.mxu1 %v690_v11  ;;  %632 = vmatprep.subr.bf16.mxu0 %v691_v12  ;;  %v209_v38 = vcombine.high %v143_v33, %v143_v33  ;;  %v216_v40 = vrot.slane %v143_v33, %v215_v39 }
  0x12   : > { %654 = vmatprep.subr.bf16.mxu1 %v692_v13 }
  0x13   : > { %v223_v41 = vrot.slane %v209_v38, %v215_v39  ;;  %v224_v42 = vcombine.high %v216_v40, %v216_v40 }
  0x14   : > { %633 = vmatpush3.bf16.msra.mxu0 %v693_v14 }
  0x15   : > { %655 = vmatpush3.bf16.msra.mxu1 %v694_v15  ;;  %634 = vmatprep.subr.bf16.mxu0 %v695_v16  ;;  %v225_v43 = vcombine.high %v223_v41, %v223_v41 }
  0x16   : > { %656 = vmatprep.subr.bf16.mxu1 %v696_v17  ;;  %454 = vmatprep.mubr.bf16.mxu0 %v224_v42 }
  0x17   : > { %494 = vmatprep.mubr.bf16.mxu1 %v225_v43 }
  0x18   : > { %635 = vmatpush3.bf16.msra.mxu0 %v697_v18 }
  0x19   : > { %657 = vmatpush3.bf16.msra.mxu1 %v698_v19  ;;  %636 = vmatprep.subr.bf16.mxu0 %v699_v20 }
  0x1a   : > { %658 = vmatprep.subr.bf16.mxu1 %v700_v21 }
  0x1c   : > { %637 = vmatpush3.bf16.msra.mxu0 %v701_v22 }
  0x1d   : > { %659 = vmatpush3.bf16.msra.mxu1 %v702_v23  ;;  %638 = vmatprep.subr.bf16.mxu0 %v703_v24 }
  0x1e   : > { %660 = vmatprep.subr.bf16.mxu1 %v704_v25 }
  0x20   : > { %639 = vmatpush3.bf16.msra.mxu0 %v705_v26 }
  0x21   : > { %661 = vmatpush3.bf16.msra.mxu1 %v706_v27  ;;  %640 = vmatprep.subr.bf16.mxu0 %v707_v28 }
  0x22   : > { %662 = vmatprep.subr.bf16.mxu1 %v708_v29 }
  0x24   : > { %641 = vmatpush3.bf16.msra.mxu0 %v709_v31 }
  0x25   : > { %663 = vmatpush3.bf16.msra.mxu1 %v710_v32 }
  0x27   : > { %455 = vmatmul.mubr.bf16.vlgmr.msra.gmra.mrb[0].mxu0 %v216_v40 }
  0x28   : > { %495 = vmatmul.mubr.bf16.vlgmr.msra.gmra.mrb[0].mxu1 %v223_v41 }
  0xfa   : > { %v642_v44 = vpop.f32.mrb[0].mxu0 }
  0xfb   : > { %v664_v45 = vpop.f32.mrb[0].mxu1  ;;  %v643_v46 = vpop.f32.mrb[1].mxu0 }
  0xfc   : > { %v665_v47 = vpop.f32.mrb[1].mxu1  ;;  %v644_v48 = vadd.f32 %v643_v46, %v642_v44  ;;  %v645_v50 = vpop.f32.mrb[2].mxu0 }
  0xfd   : > { %v666_v49 = vadd.f32 %v665_v47, %v664_v45  ;;  %v667_v51 = vpop.f32.mrb[2].mxu1  ;;  %v646_v52 = vpop.f32.mrb[3].mxu0 }
  0xfe   : > { %v668_v53 = vpop.f32.mrb[3].mxu1 }
  0xff   : > { %v497_v54 = vadd.f32 %v666_v49, %v644_v48 }
 0x101   : > { %v503_v55 = vsel %vm502_vm0, %v497_v54, 0.0 }
 0x102   : > { %v504_v56 = vrot.slane %v503_v55, 4 }
 0x104   : > { %v505_v57 = vadd.f32 %v504_v56, %v503_v55 }
 0x106   : > { %v506_v58 = vrot.slane %v505_v57, 2 }
 0x108   : > { %v507_v59 = vadd.f32 %v506_v58, %v505_v57 }
 0x10a   : > { %v508_v60 = vrot.slane %v507_v59, 1 }
 0x10c   : > { %v509_v61 = vadd.f32 %v508_v60, %v507_v59 }
 0x10e   : > { %v511_v62 = vmul.f32 0.25, %v509_v61 }
 0x110   : > { %v512_v63 = vsub.f32 %v497_v54, %v511_v62 }
 0x112   : > { %v513_v0 = vmul.f32 %v512_v63, %v512_v63 }
 0x114   : > { %v514_v1 = vsel %vm502_vm0, %v513_v0, 0.0 }
 0x115   : > { %v515_v2 = vrot.slane %v514_v1, 4 }
 0x117   : > { %v516_v3 = vadd.f32 %v515_v2, %v514_v1 }
 0x119   : > { %v517_v4 = vrot.slane %v516_v3, 2 }
 0x11b   : > { %v518_v5 = vadd.f32 %v517_v4, %v516_v3 }
 0x11d   : > { %v519_v6 = vrot.slane %v518_v5, 1 }
 0x11f   : > { %v520_v7 = vadd.f32 %v519_v6, %v518_v5 }
 0x121   : > { %v521_v8 = vmul.f32 0.25, %v520_v7 }
 0x123   : > { %v522_v9 = vadd.f32 1e-05, %v521_v8 }
 0x125   : > { %712 = vrsqrt.f32 %v522_v9 }
 0x12f   : > { %v713_v10 = vpop.eup %712 }
 0x130   : > { %v524_v11 = vmul.f32 %v713_v10, %v512_v63 }
 0x132   : > { %vm525_vm1 = vcmp.ge.f32.partialorder %v524_v11, 0.0  ;;  %v526_v12 = vmul.f32 0.2, %v524_v11 }
 0x134   : > { %v527_v13 = vsel %vm525_vm1, %v524_v11, %v526_v12 }
 0x135   : > { %v528_v14 = vpack.c.bf16 %v527_v13, %v527_v13 }
 0x137   : > { %529 = vst [vmem:[%s141_s30] sm:$0x3] %v528_v14 }
 0x138 PF: > { %s12_s9 = sadd.s32 1, %s720_s9  }
 0x139   : > { %p9_p4 = scmp.ge.s32.totalorder %s12_s9, 4  }
 0x13b   :  { %11 = sbr.rel (!%p9_p4) target bundleno = 1 (0x1), region = 58 }

// kernel: _lambda_.15
= control target key start
LH: loop header
LB: loop body
LE: loop exit
PB: predicated region body
PF: predicated region fallthrough
CT: control target
= control target key end

     0   :  { %s1300_s9 = smov 0   ;;  %s1554_s0 = inlined_call_operand.vmem [shape: bf16[2,4,1,256], index: 0, kind: input, shape index: {}]   ;;  %s1555_s1 = inlined_call_operand.vmem [shape: bf16[4,256,128], index: 1, kind: input, shape index: {}]   ;;  %s1556_s2 = inlined_call_operand.vmem [shape: bf16[2,4,1,128], index: 2, kind: output, shape index: {}]  }
   0x1 LB: > { %s1036_s10 = sadd.s32 4294967295, %s1282_s9   ;;  %p1040_p0 = scmp.ge.s32.totalorder %s1282_s9, 1  ;;  %s1282_s9 = sphi %s1300_s9, %s12_s9  }
   0x2   : > { %p111_p1 = scmp.lt.s32.totalorder %s1282_s9, 3 }
   0x4   : > { %p112_p2 = pnand %p1040_p0, %p111_p1 }
   0x5   : > { %v1210_v0 = vld [vmem:[%s1555_s1 + $0x40] sm:$0xff] (!%p112_p2)   ;;  %v1214_v4 = vld [vmem:[%s1555_s1 + $0x48] sm:$0xff] (!%p112_p2)   ;;  %v1218_v8 = vld [vmem:[%s1555_s1 + $0x50] sm:$0xff] (!%p112_p2)   ;;  %p131_p3 = scmp.lt.s32.totalorder (!%p112_p2), %s1036_s10, 1  ;;  %v284_v28 = vlaneseq (!%p112_p2)  ;;  %v1284_v35 = vmov (!%p112_p2), 1966171168  }
   0x6   : > { %115 = sbr.rel (%p112_p2) target bundleno = 352 (0x160), region = 28  ;;  %v1211_v1 = vld [vmem:[%s1555_s1 + $0xc0] sm:$0xff] (!%p112_p2)   ;;  %1113 = vmatprep.subr.bf16.mxu0 (!%p112_p2), %v1210_v0  ;;  %v1215_v5 = vld [vmem:[%s1555_s1 + $0xc8] sm:$0xff] (!%p112_p2)   ;;  %v1219_v9 = vld [vmem:[%s1555_s1 + $0xd0] sm:$0xff] (!%p112_p2)   ;;  %v282_v36 = vunpack.c.l.s4 (!%p112_p2), %v1284_v35  ;;  %vm916_vm0 = vcmask (!%p112_p2), 1040384  }
   0x7   : > { %v1212_v2 = vld [vmem:[%s1555_s1] sm:$0xff] (!%p112_p2)   ;;  %1135 = vmatprep.subr.bf16.mxu1 (!%p112_p2), %v1211_v1  ;;  %v1216_v6 = vld [vmem:[%s1555_s1 + $0x8] sm:$0xff] (!%p112_p2)   ;;  %v1220_v10 = vld [vmem:[%s1555_s1 + $0x10] sm:$0xff] (!%p112_p2)   ;;  %v285_v33 = vshrl.u32 (!%p112_p2), %v284_v28, 7  ;;  %vm969_vm1 = vsmask.f32 (!%p112_p2), 256 }
   0x8   : > { %v1213_v3 = vld [vmem:[%s1555_s1 + $0x80] sm:$0xff] (!%p112_p2)   ;;  %1114 = vmatpush3.bf16.msra.mxu0 (!%p112_p2), %v1212_v2  ;;  %v1217_v7 = vld [vmem:[%s1555_s1 + $0x88] sm:$0xff] (!%p112_p2)   ;;  %v1221_v11 = vld [vmem:[%s1555_s1 + $0x90] sm:$0xff] (!%p112_p2)   ;;  %v283_v40 = vunpack.c.0.s8 (!%p112_p2), %v282_v36 }
   0x9   : > { %1136 = vmatpush3.bf16.msra.mxu1 (!%p112_p2), %v1213_v3  ;;  %1115 = vmatprep.subr.bf16.mxu0 (!%p112_p2), %v1214_v4  ;;  %v1222_v12 = vld [vmem:[%s1555_s1 + $0x58] sm:$0xff] (!%p112_p2)   ;;  %v1226_v16 = vld [vmem:[%s1555_s1 + $0x60] sm:$0xff] (!%p112_p2)   ;;  %v1230_v20 = vld [vmem:[%s1555_s1 + $0x68] sm:$0xff] (!%p112_p2)  }
   0xa   : > { %1137 = vmatprep.subr.bf16.mxu1 (!%p112_p2), %v1215_v5  ;;  %v1223_v13 = vld [vmem:[%s1555_s1 + $0xd8] sm:$0xff] (!%p112_p2)   ;;  %v1227_v17 = vld [vmem:[%s1555_s1 + $0xe0] sm:$0xff] (!%p112_p2)   ;;  %v1231_v21 = vld [vmem:[%s1555_s1 + $0xe8] sm:$0xff] (!%p112_p2)   ;;  %v1424_v43 = vsub.s32 (!%p112_p2), %v283_v40, %v285_v33 }
   0xb   : > { %v1224_v14 = vld [vmem:[%s1555_s1 + $0x18] sm:$0xff] (!%p112_p2)   ;;  %v1228_v18 = vld [vmem:[%s1555_s1 + $0x20] sm:$0xff] (!%p112_p2)   ;;  %v1232_v22 = vld [vmem:[%s1555_s1 + $0x28] sm:$0xff] (!%p112_p2)  }
   0xc   : > { %1116 = vmatpush3.bf16.msra.mxu0 (!%p112_p2), %v1216_v6  ;;  %v1225_v15 = vld [vmem:[%s1555_s1 + $0x98] sm:$0xff] (!%p112_p2)   ;;  %v1229_v19 = vld [vmem:[%s1555_s1 + $0xa0] sm:$0xff] (!%p112_p2)   ;;  %v1233_v23 = vld [vmem:[%s1555_s1 + $0xa8] sm:$0xff] (!%p112_p2)  }
   0xd   : > { %1138 = vmatpush3.bf16.msra.mxu1 %v1217_v7  ;;  %1117 = vmatprep.subr.bf16.mxu0 %v1218_v8  ;;  %s1560_s10 = smov (!%p131_p3, %s1036_s10), 1  ;;  %v1234_v24 = vld [vmem:[%s1555_s1 + $0x70] sm:$0xff]   ;;  %v1238_v29 = vld [vmem:[%s1555_s1 + $0x78] sm:$0xff]   ;;  %v1242_v38 = vld [vmem:[%s1555_s1 + $0x140] sm:$0xff]  }
   0xe   : > { %1139 = vmatprep.subr.bf16.mxu1 %v1219_v9  ;;  %v1235_v25 = vld [vmem:[%s1555_s1 + $0xf0] sm:$0xff]   ;;  %s1041_s13 = sshll.u32 %s1560_s10, 3  ;;  %v1239_v30 = vld [vmem:[%s1555_s1 + $0xf8] sm:$0xff]   ;;  %v1243_v42 = vld [vmem:[%s1555_s1 + $0x1c0] sm:$0xff]  }
   0xf   : > { %v1236_v26 = vld [vmem:[%s1555_s1 + $0x30] sm:$0xff]   ;;  %s1408_s22 = scalar_lea.vmem %s1554_s0, %s1041_s13  ;;  %v1240_v31 = vld [vmem:[%s1555_s1 + $0x38] sm:$0xff]   ;;  %v1244_v44 = vld [vmem:[%s1555_s1 + $0x100] sm:$0xff]  }
  0x10   : > { %1118 = vmatpush3.bf16.msra.mxu0 %v1220_v10  ;;  %v1237_v27 = vld [vmem:[%s1555_s1 + $0xb0] sm:$0xff]   ;;  %v1241_v32 = vld [vmem:[%s1555_s1 + $0xb8] sm:$0xff]   ;;  %v1043_v34 = vld.sshfl [vmem:[%s1408_s22] sm:$0x11 pattern:$0x75316420] }
  0x11   : > { %1140 = vmatpush3.bf16.msra.mxu1 %v1221_v11  ;;  %1119 = vmatprep.subr.bf16.mxu0 %v1222_v12  ;;  %v1060_v37 = vld.sshfl [vmem:[%s1408_s22 + $0x2] sm:$0x11 pattern:$0x75316420]  ;;  %v280_v39 = vcombine.high %v1043_v34, %v1043_v34  ;;  %v287_v48 = vrot.slane %v1043_v34, %v1424_v43  ;;  %v1246_v50 = vld [vmem:[%s1555_s1 + $0x148] sm:$0xff]   ;;  %v1250_v54 = vld [vmem:[%s1555_s1 + $0x150] sm:$0xff]  }
  0x12   : > { %1141 = vmatprep.subr.bf16.mxu1 %v1223_v13  ;;  %v441_v41 = vcombine.high %v1060_v37, %v1060_v37  ;;  %v1245_v45 = vld [vmem:[%s1555_s1 + $0x180] sm:$0xff]   ;;  %v448_v49 = vrot.slane %v1060_v37, %v1424_v43  ;;  %v1247_v51 = vld [vmem:[%s1555_s1 + $0x1c8] sm:$0xff]   ;;  %v1251_v55 = vld [vmem:[%s1555_s1 + $0x1d0] sm:$0xff]  }
  0x13   : > { %v294_v46 = vrot.slane %v280_v39, %v1424_v43  ;;  %v1248_v52 = vld [vmem:[%s1555_s1 + $0x108] sm:$0xff]   ;;  %v1252_v56 = vld [vmem:[%s1555_s1 + $0x110] sm:$0xff]   ;;  %v1254_v58 = vld [vmem:[%s1555_s1 + $0x158] sm:$0xff]  }
  0x14   : > { %1120 = vmatpush3.bf16.msra.mxu0 %v1224_v14  ;;  %v455_v47 = vrot.slane %v441_v41, %v1424_v43  ;;  %v1249_v53 = vld [vmem:[%s1555_s1 + $0x188] sm:$0xff]   ;;  %v1253_v57 = vld [vmem:[%s1555_s1 + $0x190] sm:$0xff]   ;;  %v1255_v59 = vld [vmem:[%s1555_s1 + $0x1d8] sm:$0xff]  }
  0x15   : > { %1142 = vmatpush3.bf16.msra.mxu1 %v1225_v15  ;;  %1121 = vmatprep.subr.bf16.mxu0 %v1226_v16  ;;  %v1256_v60 = vld [vmem:[%s1555_s1 + $0x118] sm:$0xff]   ;;  %v1258_v62 = vld [vmem:[%s1555_s1 + $0x160] sm:$0xff]   ;;  %v1262_v2 = vld [vmem:[%s1555_s1 + $0x168] sm:$0xff]  }
  0x16   : > { %1143 = vmatprep.subr.bf16.mxu1 %v1227_v17  ;;  %425 = vmatprep.mubr.bf16.mxu0 %v294_v46  ;;  %v1257_v61 = vld [vmem:[%s1555_s1 + $0x198] sm:$0xff]   ;;  %v1259_v63 = vld [vmem:[%s1555_s1 + $0x1e0] sm:$0xff]   ;;  %v1263_v3 = vld [vmem:[%s1555_s1 + $0x1e8] sm:$0xff]  }
  0x17   : > { %586 = vmatprep.mubr.bf16.mxu1 %v455_v47  ;;  %v1260_v0 = vld [vmem:[%s1555_s1 + $0x120] sm:$0xff]   ;;  %v1264_v4 = vld [vmem:[%s1555_s1 + $0x128] sm:$0xff]   ;;  %v1266_v6 = vld [vmem:[%s1555_s1 + $0x170] sm:$0xff]  }
  0x18   : > { %1122 = vmatpush3.bf16.msra.mxu0 %v1228_v18  ;;  %v1261_v1 = vld [vmem:[%s1555_s1 + $0x1a0] sm:$0xff]   ;;  %v1265_v5 = vld [vmem:[%s1555_s1 + $0x1a8] sm:$0xff]   ;;  %v1267_v7 = vld [vmem:[%s1555_s1 + $0x1f0] sm:$0xff]  }
  0x19   : > { %1144 = vmatpush3.bf16.msra.mxu1 %v1229_v19  ;;  %1123 = vmatprep.subr.bf16.mxu0 %v1230_v20  ;;  %v1268_v8 = vld [vmem:[%s1555_s1 + $0x130] sm:$0xff]   ;;  %v1270_v10 = vld [vmem:[%s1555_s1 + $0x178] sm:$0xff]   ;;  %v1077_v12 = vld.sshfl [vmem:[%s1408_s22 + $0x4] sm:$0x11 pattern:$0x75316420] }
  0x1a   : > { %1145 = vmatprep.subr.bf16.mxu1 %v1231_v21  ;;  %v1269_v9 = vld [vmem:[%s1555_s1 + $0x1b0] sm:$0xff]   ;;  %v1271_v11 = vld [vmem:[%s1555_s1 + $0x1f8] sm:$0xff]   ;;  %v602_v15 = vcombine.high %v1077_v12, %v1077_v12  ;;  %v1094_v16 = vld.sshfl [vmem:[%s1408_s22 + $0x6] sm:$0x11 pattern:$0x75316420]  ;;  %v609_v20 = vrot.slane %v1077_v12, %v1424_v43 }
  0x1b   : > { %v1272_v13 = vld [vmem:[%s1555_s1 + $0x138] sm:$0xff]   ;;  %v763_v17 = vcombine.high %v1094_v16, %v1094_v16  ;;  %v770_v21 = vrot.slane %v1094_v16, %v1424_v43  ;;  %s1042_s22 = sshll.u32 %s1560_s10, 2  ;;  %vm1539_vm2 = vmand %vm916_vm0, %vm969_vm1 }
  0x1c   : > { %1124 = vmatpush3.bf16.msra.mxu0 %v1232_v22  ;;  %v1273_v14 = vld [vmem:[%s1555_s1 + $0x1b8] sm:$0xff]   ;;  %v616_v18 = vrot.slane %v602_v15, %v1424_v43  ;;  %s138_s17 = scalar_lea.vmem %s1556_s2, %s1042_s22 }
  0x1d   : > { %1146 = vmatpush3.bf16.msra.mxu1 %v1233_v23  ;;  %1125 = vmatprep.subr.bf16.mxu0 %v1234_v24  ;;  %v777_v19 = vrot.slane %v763_v17, %v1424_v43 }
  0x1e   : > { %1147 = vmatprep.subr.bf16.mxu1 %v1235_v25 }
  0x20   : > { %1126 = vmatpush3.bf16.msra.mxu0 %v1236_v26 }
  0x21   : > { %1148 = vmatpush3.bf16.msra.mxu1 %v1237_v27  ;;  %1127 = vmatprep.subr.bf16.mxu0 %v1238_v29 }
  0x22   : > { %1149 = vmatprep.subr.bf16.mxu1 %v1239_v30 }
  0x24   : > { %1128 = vmatpush3.bf16.msra.mxu0 %v1240_v31 }
  0x25   : > { %1150 = vmatpush3.bf16.msra.mxu1 %v1241_v32  ;;  %1157 = vmatprep.subr.bf16.mxu0 %v1242_v38 }
  0x26   : > { %1179 = vmatprep.subr.bf16.mxu1 %v1243_v42 }
  0x27   : > { %426 = vmatmul.mubr.bf16.vlgmr.msra.gmra.mrb[0].mxu0 %v287_v48 }
  0x28   : > { %587 = vmatmul.mubr.bf16.vlgmr.msra.gmra.mrb[0].mxu1 %v448_v49  ;;  %1158 = vmatpush3.bf16.msra.mxu0 %v1244_v44 }
  0x29   : > { %1180 = vmatpush3.bf16.msra.mxu1 %v1245_v45  ;;  %1159 = vmatprep.subr.bf16.mxu0 %v1246_v50 }
  0x2a   : > { %1181 = vmatprep.subr.bf16.mxu1 %v1247_v51  ;;  %747 = vmatprep.mubr.bf16.mxu0 %v616_v18 }
  0x2b   : > { %908 = vmatprep.mubr.bf16.mxu1 %v777_v19 }
  0x2c   : > { %1160 = vmatpush3.bf16.msra.mxu0 %v1248_v52 }
  0x2d   : > { %1182 = vmatpush3.bf16.msra.mxu1 %v1249_v53  ;;  %1161 = vmatprep.subr.bf16.mxu0 %v1250_v54 }
  0x2e   : > { %1183 = vmatprep.subr.bf16.mxu1 %v1251_v55 }
  0x30   : > { %1162 = vmatpush3.bf16.msra.mxu0 %v1252_v56 }
  0x31   : > { %1184 = vmatpush3.bf16.msra.mxu1 %v1253_v57  ;;  %1163 = vmatprep.subr.bf16.mxu0 %v1254_v58 }
  0x32   : > { %1185 = vmatprep.subr.bf16.mxu1 %v1255_v59 }
  0x34   : > { %1164 = vmatpush3.bf16.msra.mxu0 %v1256_v60 }
  0x35   : > { %1186 = vmatpush3.bf16.msra.mxu1 %v1257_v61  ;;  %1165 = vmatprep.subr.bf16.mxu0 %v1258_v62 }
  0x36   : > { %1187 = vmatprep.subr.bf16.mxu1 %v1259_v63 }
  0x38   : > { %1166 = vmatpush3.bf16.msra.mxu0 %v1260_v0 }
  0x39   : > { %1188 = vmatpush3.bf16.msra.mxu1 %v1261_v1  ;;  %1167 = vmatprep.subr.bf16.mxu0 %v1262_v2 }
  0x3a   : > { %1189 = vmatprep.subr.bf16.mxu1 %v1263_v3 }
  0x3c   : > { %1168 = vmatpush3.bf16.msra.mxu0 %v1264_v4 }
  0x3d   : > { %1190 = vmatpush3.bf16.msra.mxu1 %v1265_v5  ;;  %1169 = vmatprep.subr.bf16.mxu0 %v1266_v6 }
  0x3e   : > { %1191 = vmatprep.subr.bf16.mxu1 %v1267_v7 }
  0x40   : > { %1170 = vmatpush3.bf16.msra.mxu0 %v1268_v8 }
  0x41   : > { %1192 = vmatpush3.bf16.msra.mxu1 %v1269_v9  ;;  %1171 = vmatprep.subr.bf16.mxu0 %v1270_v10 }
  0x42   : > { %1193 = vmatprep.subr.bf16.mxu1 %v1271_v11 }
  0x44   : > { %1172 = vmatpush3.bf16.msra.mxu0 %v1272_v13 }
  0x45   : > { %1194 = vmatpush3.bf16.msra.mxu1 %v1273_v14 }
  0x47   : > { %748 = vmatmul.mubr.bf16.vlgmr.msra.gmra.mrb[4].mxu0 %v609_v20 }
  0x48   : > { %909 = vmatmul.mubr.bf16.vlgmr.msra.gmra.mrb[4].mxu1 %v770_v21 }
  0xfa   : > { %v1129_v22 = vpop.f32.mrb[0].mxu0 }
  0xfb   : > { %v1151_v23 = vpop.f32.mrb[0].mxu1  ;;  %v1130_v24 = vpop.f32.mrb[1].mxu0 }
  0xfc   : > { %v1152_v25 = vpop.f32.mrb[1].mxu1  ;;  %v1131_v26 = vadd.f32 %v1130_v24, %v1129_v22  ;;  %v1132_v28 = vpop.f32.mrb[2].mxu0 }
  0xfd   : > { %v1153_v27 = vadd.f32 %v1152_v25, %v1151_v23  ;;  %v1154_v29 = vpop.f32.mrb[2].mxu1  ;;  %v1133_v30 = vpop.f32.mrb[3].mxu0  ;;  %v971_v25 = vld [vmem:[%s138_s17] sm:$0x1]  ;;  %v980_v28 = vld [vmem:[%s138_s17 + $0x3] sm:$0x1] }
  0xfe   : > { %v1155_v31 = vpop.f32.mrb[3].mxu1  ;;  %v917_v32 = vsel %vm916_vm0, %v1131_v26, 0.0 }
  0xff   : > { %v918_v33 = vsel %vm916_vm0, %v1153_v27, 0.0 }
 0x100   : > { %v919_v34 = vadd.f32 %v918_v33, %v917_v32 }
 0x11a   : > { %v1173_v35 = vpop.f32.mrb[4].mxu0 }
 0x11b   : > { %v1195_v36 = vpop.f32.mrb[4].mxu1  ;;  %v1174_v37 = vpop.f32.mrb[5].mxu0 }
 0x11c   : > { %v1196_v38 = vpop.f32.mrb[5].mxu1  ;;  %v1175_v39 = vadd.f32 %v1174_v37, %v1173_v35  ;;  %v1176_v41 = vpop.f32.mrb[6].mxu0 }
 0x11d   : > { %v1197_v40 = vadd.f32 %v1196_v38, %v1195_v36  ;;  %v1198_v42 = vpop.f32.mrb[6].mxu1  ;;  %v1177_v43 = vpop.f32.mrb[7].mxu0 }
 0x11e   : > { %v1199_v44 = vpop.f32.mrb[7].mxu1  ;;  %v920_v45 = vsel %vm916_vm0, %v1175_v39, 0.0 }
 0x11f   : > { %v922_v46 = vsel %vm916_vm0, %v1197_v40, 0.0  ;;  %v921_v47 = vadd.f32 %v920_v45, %v919_v34 }
 0x121   : > { %v923_v48 = vadd.f32 %v922_v46, %v921_v47 }
 0x123   : > { %v924_v49 = vrot.slane %v923_v48, 4 }
 0x125   : > { %v925_v50 = vadd.f32 %v924_v49, %v923_v48 }
 0x127   : > { %v926_v51 = vrot.slane %v925_v50, 2 }
 0x129   : > { %v927_v52 = vadd.f32 %v926_v51, %v925_v50 }
 0x12b   : > { %v928_v53 = vrot.slane %v927_v52, 1 }
 0x12d   : > { %v929_v54 = vadd.f32 %v928_v53, %v927_v52 }
 0x12f   : > { %v931_v55 = vmul.f32 0.25, %v929_v54 }
 0x131   : > { %v932_v56 = vsub.f32 %v1131_v26, %v931_v55  ;;  %v933_v57 = vsub.f32 %v1153_v27, %v931_v55  ;;  %v934_v58 = vsub.f32 %v1175_v39, %v931_v55  ;;  %v935_v59 = vsub.f32 %v1197_v40, %v931_v55  ;;  %v974_v26 = vld [vmem:[%s138_s17 + $0x1] sm:$0x1]  ;;  %v977_v27 = vld [vmem:[%s138_s17 + $0x2] sm:$0x1] }
 0x133   : > { %v936_v60 = vmul.f32 %v932_v56, %v932_v56  ;;  %v937_v61 = vmul.f32 %v933_v57, %v933_v57  ;;  %v938_v62 = vmul.f32 %v934_v58, %v934_v58  ;;  %v939_v63 = vmul.f32 %v935_v59, %v935_v59 }
 0x135   : > { %v940_v0 = vsel %vm916_vm0, %v936_v60, 0.0  ;;  %v941_v1 = vsel %vm916_vm0, %v937_v61, 0.0  ;;  %v943_v3 = vsel %vm916_vm0, %v938_v62, 0.0  ;;  %v945_v5 = vsel %vm916_vm0, %v939_v63, 0.0 }
 0x136   : > { %v942_v2 = vadd.f32 %v941_v1, %v940_v0 }
 0x138   : > { %v944_v4 = vadd.f32 %v943_v3, %v942_v2 }
 0x13a   : > { %v946_v6 = vadd.f32 %v945_v5, %v944_v4 }
 0x13c   : > { %v947_v7 = vrot.slane %v946_v6, 4 }
 0x13e   : > { %v948_v8 = vadd.f32 %v947_v7, %v946_v6 }
 0x140   : > { %v949_v9 = vrot.slane %v948_v8, 2 }
 0x142   : > { %v950_v10 = vadd.f32 %v949_v9, %v948_v8 }
 0x144   : > { %v951_v11 = vrot.slane %v950_v10, 1 }
 0x146   : > { %v952_v12 = vadd.f32 %v951_v11, %v950_v10 }
 0x148   : > { %v953_v13 = vmul.f32 0.25, %v952_v12 }
 0x14a   : > { %v954_v14 = vadd.f32 1e-05, %v953_v13 }
 0x14c   : > { %1274 = vrsqrt.f32 %v954_v14 }
 0x156   : > { %v1275_v15 = vpop.eup %1274 }
 0x157   : > { %v956_v16 = vmul.f32 %v1275_v15, %v932_v56  ;;  %v957_v17 = vmul.f32 %v1275_v15, %v933_v57  ;;  %v958_v18 = vmul.f32 %v1275_v15, %v934_v58  ;;  %v959_v19 = vmul.f32 %v1275_v15, %v935_v59 }
 0x159   : > { %v960_v20 = vmax.f32 %v956_v16, 0.0  ;;  %v961_v21 = vmax.f32 %v957_v17, 0.0  ;;  %v962_v22 = vmax.f32 %v958_v18, 0.0  ;;  %v963_v23 = vmax.f32 %v959_v19, 0.0 }
 0x15b   : > { %v964_v29 = vpack.c.bf16 %v960_v20, %v960_v20  ;;  %v965_v30 = vpack.c.bf16 %v961_v21, %v961_v21  ;;  %v966_v31 = vpack.c.bf16 %v962_v22, %v962_v22  ;;  %v967_v32 = vpack.c.bf16 %v963_v23, %v963_v23 }
 0x15d   : > { %v972_v33 = vsel %vm1539_vm2, %v964_v29, %v971_v25  ;;  %v975_v34 = vsel %vm1539_vm2, %v965_v30, %v974_v26  ;;  %v978_v35 = vsel %vm1539_vm2, %v966_v31, %v977_v27  ;;  %v981_v36 = vsel %vm1539_vm2, %v967_v32, %v980_v28 }
 0x15e   : > { %973 = vst [vmem:[%s138_s17] sm:$0x1] %v972_v33  ;;  %976 = vst [vmem:[%s138_s17 + $0x1] sm:$0x1] %v975_v34 }
 0x15f   : > { %979 = vst [vmem:[%s138_s17 + $0x2] sm:$0x1] %v978_v35  ;;  %982 = vst [vmem:[%s138_s17 + $0x3] sm:$0x1] %v981_v36 }
 0x160 PF: > { %s12_s9 = sadd.s32 1, %s1282_s9  }
 0x161   : > { %p9_p4 = scmp.ge.s32.totalorder %s12_s9, 4  }
 0x163   :  { %11 = sbr.rel (!%p9_p4) target bundleno = 1 (0x1), region = 58 }

// kernel: _lambda_.14
= control target key start
LH: loop header
LB: loop body
LE: loop exit
PB: predicated region body
PF: predicated region fallthrough
CT: control target
= control target key end

     0   :  { %s1182_s9 = smov 0   ;;  %s1412_s0 = inlined_call_operand.vmem [shape: bf16[2,1,1024], index: 0, kind: input, shape index: {}]   ;;  %s1413_s1 = inlined_call_operand.vmem [shape: bf16[1024,128], index: 1, kind: input, shape index: {}]   ;;  %s1414_s2 = inlined_call_operand.vmem [shape: bf16[2,1,128], index: 2, kind: output, shape index: {}]  }
   0x1 LB: > { %s924_s10 = sadd.s32 4294967295, %s1164_s9   ;;  %p928_p0 = scmp.ge.s32.totalorder %s1164_s9, 1  ;;  %s1164_s9 = sphi %s1182_s9, %s12_s9  }
   0x2   : > { %p111_p1 = scmp.lt.s32.totalorder %s1164_s9, 3 }
   0x4   : > { %p112_p2 = pnand %p928_p0, %p111_p1 }
   0x5   : > { %v1093_v0 = vld [vmem:[%s1413_s1 + $0x40] sm:$0xff] (!%p112_p2)   ;;  %v1097_v4 = vld [vmem:[%s1413_s1 + $0x48] sm:$0xff] (!%p112_p2)   ;;  %v1101_v8 = vld [vmem:[%s1413_s1 + $0x50] sm:$0xff] (!%p112_p2)   ;;  %p130_p3 = scmp.lt.s32.totalorder (!%p112_p2), %s924_s10, 1  ;;  %v272_v28 = vlaneseq (!%p112_p2)  ;;  %v1166_v36 = vmov (!%p112_p2), 1966171168  }
   0x6   : > { %115 = sbr.rel (%p112_p2) target bundleno = 296 (0x128), region = 28  ;;  %v1094_v1 = vld [vmem:[%s1413_s1 + $0xc0] sm:$0xff] (!%p112_p2)   ;;  %996 = vmatprep.subr.bf16.mxu0 (!%p112_p2), %v1093_v0  ;;  %v1098_v5 = vld [vmem:[%s1413_s1 + $0xc8] sm:$0xff] (!%p112_p2)   ;;  %v1102_v9 = vld [vmem:[%s1413_s1 + $0xd0] sm:$0xff] (!%p112_p2)   ;;  %v270_v37 = vunpack.c.l.s4 (!%p112_p2), %v1166_v36  ;;  %vm871_vm0 = vcmask (!%p112_p2), 1040384  }
   0x7   : > { %v1095_v2 = vld [vmem:[%s1413_s1] sm:$0xff] (!%p112_p2)   ;;  %1018 = vmatprep.subr.bf16.mxu1 (!%p112_p2), %v1094_v1  ;;  %v1099_v6 = vld [vmem:[%s1413_s1 + $0x8] sm:$0xff] (!%p112_p2)   ;;  %v1103_v10 = vld [vmem:[%s1413_s1 + $0x10] sm:$0xff] (!%p112_p2)   ;;  %v273_v33 = vshrl.u32 (!%p112_p2), %v272_v28, 7  ;;  %vm872_vm1 = vsmask.f32 (!%p112_p2), 256 }
   0x8   : > { %v1096_v3 = vld [vmem:[%s1413_s1 + $0x80] sm:$0xff] (!%p112_p2)   ;;  %997 = vmatpush3.bf16.msra.mxu0 (!%p112_p2), %v1095_v2  ;;  %v1100_v7 = vld [vmem:[%s1413_s1 + $0x88] sm:$0xff] (!%p112_p2)   ;;  %v1104_v11 = vld [vmem:[%s1413_s1 + $0x90] sm:$0xff] (!%p112_p2)   ;;  %v271_v40 = vunpack.c.0.s8 (!%p112_p2), %v270_v37 }
   0x9   : > { %1019 = vmatpush3.bf16.msra.mxu1 (!%p112_p2), %v1096_v3  ;;  %998 = vmatprep.subr.bf16.mxu0 (!%p112_p2), %v1097_v4  ;;  %v1105_v12 = vld [vmem:[%s1413_s1 + $0x58] sm:$0xff] (!%p112_p2)   ;;  %v1109_v16 = vld [vmem:[%s1413_s1 + $0x60] sm:$0xff] (!%p112_p2)   ;;  %v1113_v20 = vld [vmem:[%s1413_s1 + $0x68] sm:$0xff] (!%p112_p2)  }
   0xa   : > { %1020 = vmatprep.subr.bf16.mxu1 (!%p112_p2), %v1098_v5  ;;  %v1106_v13 = vld [vmem:[%s1413_s1 + $0xd8] sm:$0xff] (!%p112_p2)   ;;  %v1110_v17 = vld [vmem:[%s1413_s1 + $0xe0] sm:$0xff] (!%p112_p2)   ;;  %v1114_v21 = vld [vmem:[%s1413_s1 + $0xe8] sm:$0xff] (!%p112_p2)   ;;  %v1302_v41 = vsub.s32 (!%p112_p2), %v271_v40, %v273_v33 }
   0xb   : > { %v1107_v14 = vld [vmem:[%s1413_s1 + $0x18] sm:$0xff] (!%p112_p2)   ;;  %v1111_v18 = vld [vmem:[%s1413_s1 + $0x20] sm:$0xff] (!%p112_p2)   ;;  %v1115_v22 = vld [vmem:[%s1413_s1 + $0x28] sm:$0xff] (!%p112_p2)  }
   0xc   : > { %999 = vmatpush3.bf16.msra.mxu0 (!%p112_p2), %v1099_v6  ;;  %v1108_v15 = vld [vmem:[%s1413_s1 + $0x98] sm:$0xff] (!%p112_p2)   ;;  %v1112_v19 = vld [vmem:[%s1413_s1 + $0xa0] sm:$0xff] (!%p112_p2)   ;;  %v1116_v23 = vld [vmem:[%s1413_s1 + $0xa8] sm:$0xff] (!%p112_p2)  }
   0xd   : > { %1021 = vmatpush3.bf16.msra.mxu1 %v1100_v7  ;;  %1000 = vmatprep.subr.bf16.mxu0 %v1101_v8  ;;  %s1416_s10 = smov (!%p130_p3, %s924_s10), 1  ;;  %v1117_v24 = vld [vmem:[%s1413_s1 + $0x70] sm:$0xff]   ;;  %v1121_v29 = vld [vmem:[%s1413_s1 + $0x78] sm:$0xff]   ;;  %v1126_v35 = vld [vmem:[%s1413_s1 + $0x140] sm:$0xff]  }
   0xe   : > { %1022 = vmatprep.subr.bf16.mxu1 %v1102_v9  ;;  %v1118_v25 = vld [vmem:[%s1413_s1 + $0xf0] sm:$0xff]   ;;  %s929_s13 = sshll.u32 %s1416_s10, 3  ;;  %v1122_v30 = vld [vmem:[%s1413_s1 + $0xf8] sm:$0xff]   ;;  %v1127_v38 = vld [vmem:[%s1413_s1 + $0x1c0] sm:$0xff]   ;;  %s136_s15 = scalar_lea.vmem %s1414_s2, %s1416_s10 }
   0xf   : > { %v1119_v26 = vld [vmem:[%s1413_s1 + $0x30] sm:$0xff]   ;;  %s133_s22 = scalar_lea.vmem %s1412_s0, %s929_s13  ;;  %v1123_v31 = vld [vmem:[%s1413_s1 + $0x38] sm:$0xff]   ;;  %v1128_v48 = vld [vmem:[%s1413_s1 + $0x100] sm:$0xff]  }
  0x10   : > { %1001 = vmatpush3.bf16.msra.mxu0 %v1103_v10  ;;  %v1120_v27 = vld [vmem:[%s1413_s1 + $0xb0] sm:$0xff]   ;;  %v1124_v32 = vld [vmem:[%s1413_s1 + $0xb8] sm:$0xff]   ;;  %v138_v34 = vld [vmem:[%s133_s22] sm:$0xff] }
  0x11   : > { %1023 = vmatpush3.bf16.msra.mxu1 %v1104_v11  ;;  %1002 = vmatprep.subr.bf16.mxu0 %v1105_v12  ;;  %v268_v39 = vcombine.high %v138_v34, %v138_v34  ;;  %v275_v42 = vrot.slane %v138_v34, %v1302_v41  ;;  %v1130_v51 = vld [vmem:[%s1413_s1 + $0x148] sm:$0xff]   ;;  %v1129_v53 = vld [vmem:[%s1413_s1 + $0x180] sm:$0xff]   ;;  %v1134_v57 = vld [vmem:[%s1413_s1 + $0x150] sm:$0xff]  }
  0x12   : > { %1024 = vmatprep.subr.bf16.mxu1 %v1106_v13  ;;  %v1131_v54 = vld [vmem:[%s1413_s1 + $0x1c8] sm:$0xff]   ;;  %v1135_v59 = vld [vmem:[%s1413_s1 + $0x1d0] sm:$0xff]   ;;  %v1138_v61 = vld [vmem:[%s1413_s1 + $0x158] sm:$0xff]  }
  0x13   : > { %v1306_v43 = vrot.slane %v268_v39, %v1302_v41  ;;  %v283_v44 = vcombine.high %v275_v42, %v275_v42  ;;  %v291_v45 = vrot.slane %v275_v42, %v1302_v41  ;;  %v1132_v56 = vld [vmem:[%s1413_s1 + $0x108] sm:$0xff]   ;;  %v1136_v60 = vld [vmem:[%s1413_s1 + $0x110] sm:$0xff]   ;;  %v1139_v63 = vld [vmem:[%s1413_s1 + $0x1d8] sm:$0xff]  }
  0x14   : > { %1003 = vmatpush3.bf16.msra.mxu0 %v1107_v14  ;;  %v1133_v58 = vld [vmem:[%s1413_s1 + $0x188] sm:$0xff]   ;;  %v1137_v62 = vld [vmem:[%s1413_s1 + $0x190] sm:$0xff]   ;;  %v1140_v0 = vld [vmem:[%s1413_s1 + $0x118] sm:$0xff]  }
  0x15   : > { %1025 = vmatpush3.bf16.msra.mxu1 %v1108_v15  ;;  %1004 = vmatprep.subr.bf16.mxu0 %v1109_v16  ;;  %v284_v46 = vcombine.high %v1306_v43, %v1306_v43  ;;  %v305_v47 = vrot.slane %v283_v44, %v1302_v41  ;;  %v313_v50 = vcombine.high %v291_v45, %v291_v45  ;;  %v1142_v1 = vld [vmem:[%s1413_s1 + $0x160] sm:$0xff]   ;;  %v1141_v2 = vld [vmem:[%s1413_s1 + $0x198] sm:$0xff]   ;;  %v1146_v5 = vld [vmem:[%s1413_s1 + $0x168] sm:$0xff]  }
  0x16   : > { %1026 = vmatprep.subr.bf16.mxu1 %v1110_v17  ;;  %v1143_v3 = vld [vmem:[%s1413_s1 + $0x1e0] sm:$0xff]   ;;  %v1147_v7 = vld [vmem:[%s1413_s1 + $0x1e8] sm:$0xff]   ;;  %v1150_v9 = vld [vmem:[%s1413_s1 + $0x170] sm:$0xff]   ;;  %v298_v17 = vrot.slane %v1306_v43, %v1302_v41 }
  0x17   : > { %v312_v49 = vrot.slane %v284_v46, %v1302_v41  ;;  %741 = vmatprep.mubr.bf16.mxu0 %v305_v47  ;;  %v315_v52 = vcombine.high %v305_v47, %v305_v47  ;;  %v1144_v4 = vld [vmem:[%s1413_s1 + $0x120] sm:$0xff]   ;;  %v1148_v8 = vld [vmem:[%s1413_s1 + $0x128] sm:$0xff]   ;;  %v1151_v11 = vld [vmem:[%s1413_s1 + $0x1f0] sm:$0xff]  }
  0x18   : > { %1005 = vmatpush3.bf16.msra.mxu0 %v1111_v18  ;;  %v1145_v6 = vld [vmem:[%s1413_s1 + $0x1a0] sm:$0xff]   ;;  %v1149_v10 = vld [vmem:[%s1413_s1 + $0x1a8] sm:$0xff]   ;;  %v1152_v12 = vld [vmem:[%s1413_s1 + $0x130] sm:$0xff]  }
  0x19   : > { %1027 = vmatpush3.bf16.msra.mxu1 %v1112_v19  ;;  %1006 = vmatprep.subr.bf16.mxu0 %v1113_v20  ;;  %v316_v55 = vcombine.high %v312_v49, %v312_v49  ;;  %v1154_v13 = vld [vmem:[%s1413_s1 + $0x178] sm:$0xff]   ;;  %v1153_v14 = vld [vmem:[%s1413_s1 + $0x1b0] sm:$0xff]   ;;  %v314_v19 = vcombine.high %v298_v17, %v298_v17  ;;  %vm873_vm2 = vmand %vm871_vm0, %vm872_vm1 }
  0x1a   : > { %1028 = vmatprep.subr.bf16.mxu1 %v1114_v21  ;;  %781 = vmatprep.mubr.bf16.mxu1 %v315_v52  ;;  %v1155_v15 = vld [vmem:[%s1413_s1 + $0x1f8] sm:$0xff]   ;;  %v874_v44 = vld [vmem:[%s136_s15] sm:$0x1] }
  0x1b   : > { %v1156_v16 = vld [vmem:[%s1413_s1 + $0x138] sm:$0xff]  }
  0x1c   : > { %1007 = vmatpush3.bf16.msra.mxu0 %v1115_v22  ;;  %v1157_v18 = vld [vmem:[%s1413_s1 + $0x1b8] sm:$0xff]  }
  0x1d   : > { %1029 = vmatpush3.bf16.msra.mxu1 %v1116_v23  ;;  %1008 = vmatprep.subr.bf16.mxu0 %v1117_v24 }
  0x1e   : > { %1030 = vmatprep.subr.bf16.mxu1 %v1118_v25 }
  0x20   : > { %1009 = vmatpush3.bf16.msra.mxu0 %v1119_v26 }
  0x21   : > { %1031 = vmatpush3.bf16.msra.mxu1 %v1120_v27  ;;  %1010 = vmatprep.subr.bf16.mxu0 %v1121_v29 }
  0x22   : > { %1032 = vmatprep.subr.bf16.mxu1 %v1122_v30 }
  0x24   : > { %1011 = vmatpush3.bf16.msra.mxu0 %v1123_v31 }
  0x25   : > { %1033 = vmatpush3.bf16.msra.mxu1 %v1124_v32  ;;  %1040 = vmatprep.subr.bf16.mxu0 %v1126_v35 }
  0x26   : > { %1062 = vmatprep.subr.bf16.mxu1 %v1127_v38 }
  0x27   : > { %742 = vmatmul.mubr.bf16.vlgmr.msra.gmra.mrb[0].mxu0 %v291_v45 }
  0x28   : > { %1041 = vmatpush3.bf16.msra.mxu0 %v1128_v48  ;;  %782 = vmatmul.mubr.bf16.vlgmr.msra.gmra.mrb[0].mxu1 %v313_v50 }
  0x29   : > { %1042 = vmatprep.subr.bf16.mxu0 %v1130_v51  ;;  %1063 = vmatpush3.bf16.msra.mxu1 %v1129_v53 }
  0x2a   : > { %821 = vmatprep.mubr.bf16.mxu0 %v312_v49  ;;  %1064 = vmatprep.subr.bf16.mxu1 %v1131_v54 }
  0x2b   : > { %861 = vmatprep.mubr.bf16.mxu1 %v316_v55 }
  0x2c   : > { %1043 = vmatpush3.bf16.msra.mxu0 %v1132_v56 }
  0x2d   : > { %1044 = vmatprep.subr.bf16.mxu0 %v1134_v57  ;;  %1065 = vmatpush3.bf16.msra.mxu1 %v1133_v58 }
  0x2e   : > { %1066 = vmatprep.subr.bf16.mxu1 %v1135_v59 }
  0x30   : > { %1045 = vmatpush3.bf16.msra.mxu0 %v1136_v60 }
  0x31   : > { %1046 = vmatprep.subr.bf16.mxu0 %v1138_v61  ;;  %1067 = vmatpush3.bf16.msra.mxu1 %v1137_v62 }
  0x32   : > { %1068 = vmatprep.subr.bf16.mxu1 %v1139_v63 }
  0x34   : > { %1047 = vmatpush3.bf16.msra.mxu0 %v1140_v0 }
  0x35   : > { %1048 = vmatprep.subr.bf16.mxu0 %v1142_v1  ;;  %1069 = vmatpush3.bf16.msra.mxu1 %v1141_v2 }
  0x36   : > { %1070 = vmatprep.subr.bf16.mxu1 %v1143_v3 }
  0x38   : > { %1049 = vmatpush3.bf16.msra.mxu0 %v1144_v4 }
  0x39   : > { %1050 = vmatprep.subr.bf16.mxu0 %v1146_v5  ;;  %1071 = vmatpush3.bf16.msra.mxu1 %v1145_v6 }
  0x3a   : > { %1072 = vmatprep.subr.bf16.mxu1 %v1147_v7 }
  0x3c   : > { %1051 = vmatpush3.bf16.msra.mxu0 %v1148_v8 }
  0x3d   : > { %1052 = vmatprep.subr.bf16.mxu0 %v1150_v9  ;;  %1073 = vmatpush3.bf16.msra.mxu1 %v1149_v10 }
  0x3e   : > { %1074 = vmatprep.subr.bf16.mxu1 %v1151_v11 }
  0x40   : > { %1053 = vmatpush3.bf16.msra.mxu0 %v1152_v12 }
  0x41   : > { %1054 = vmatprep.subr.bf16.mxu0 %v1154_v13  ;;  %1075 = vmatpush3.bf16.msra.mxu1 %v1153_v14 }
  0x42   : > { %1076 = vmatprep.subr.bf16.mxu1 %v1155_v15 }
  0x44   : > { %1055 = vmatpush3.bf16.msra.mxu0 %v1156_v16 }
  0x45   : > { %1077 = vmatpush3.bf16.msra.mxu1 %v1157_v18 }
  0x47   : > { %822 = vmatmul.mubr.bf16.vlgmr.msra.gmra.mrb[4].mxu0 %v298_v17 }
  0x48   : > { %862 = vmatmul.mubr.bf16.vlgmr.msra.gmra.mrb[4].mxu1 %v314_v19 }
  0xfa   : > { %v1012_v20 = vpop.f32.mrb[0].mxu0 }
  0xfb   : > { %v1013_v21 = vpop.f32.mrb[1].mxu0  ;;  %v1034_v22 = vpop.f32.mrb[0].mxu1 }
  0xfc   : > { %v1014_v23 = vadd.f32 %v1013_v21, %v1012_v20  ;;  %v1015_v24 = vpop.f32.mrb[2].mxu0  ;;  %v1035_v25 = vpop.f32.mrb[1].mxu1 }
  0xfd   : > { %v1016_v26 = vpop.f32.mrb[3].mxu0  ;;  %v1036_v27 = vadd.f32 %v1035_v25, %v1034_v22  ;;  %v1037_v28 = vpop.f32.mrb[2].mxu1 }
  0xfe   : > { %v1038_v29 = vpop.f32.mrb[3].mxu1 }
  0xff   : > { %v784_v30 = vadd.f32 %v1036_v27, %v1014_v23 }
 0x11a   : > { %v1056_v31 = vpop.f32.mrb[4].mxu0 }
 0x11b   : > { %v1057_v32 = vpop.f32.mrb[5].mxu0  ;;  %v1078_v33 = vpop.f32.mrb[4].mxu1 }
 0x11c   : > { %v1058_v34 = vadd.f32 %v1057_v32, %v1056_v31  ;;  %v1059_v35 = vpop.f32.mrb[6].mxu0  ;;  %v1079_v36 = vpop.f32.mrb[5].mxu1 }
 0x11d   : > { %v1060_v37 = vpop.f32.mrb[7].mxu0  ;;  %v1080_v39 = vadd.f32 %v1079_v36, %v1078_v33  ;;  %v1081_v40 = vpop.f32.mrb[6].mxu1 }
 0x11e   : > { %v824_v38 = vadd.f32 %v1058_v34, %v784_v30  ;;  %v1082_v41 = vpop.f32.mrb[7].mxu1 }
 0x120   : > { %v864_v42 = vadd.f32 %v1080_v39, %v824_v38 }
 0x122   : > { %v869_v43 = vmax.f32 %v864_v42, 0.0 }
 0x124   : > { %v870_v45 = vpack.c.bf16 %v869_v43, %v869_v43 }
 0x126   : > { %v875_v46 = vsel %vm873_vm2, %v870_v45, %v874_v44 }
 0x127   : > { %876 = vst [vmem:[%s136_s15] sm:$0x1] %v875_v46 }
 0x128 PF: > { %s12_s9 = sadd.s32 1, %s1164_s9  }
 0x129   : > { %p9_p4 = scmp.ge.s32.totalorder %s12_s9, 4  }
 0x12b   :  { %11 = sbr.rel (!%p9_p4) target bundleno = 1 (0x1), region = 58 }

// kernel: _lambda_.16
= control target key start
LH: loop header
LB: loop body
LE: loop exit
PB: predicated region body
PF: predicated region fallthrough
CT: control target
= control target key end

     0   :  { %s2281_s15 = smov 0   ;;  %s2717_s0 = inlined_call_operand.vmem [shape: bf16[2,4,4,256], index: 0, kind: input, shape index: {}]   ;;  %s2718_s1 = inlined_call_operand.vmem [shape: bf16[4,256,128], index: 1, kind: input, shape index: {}]   ;;  %s2719_s2 = inlined_call_operand.vmem [shape: bf16[2,4,4,256], index: 2, kind: input, shape index: {}]   ;;  %s2720_s3 = inlined_call_operand.vmem [shape: bf16[4,256,128], index: 3, kind: input, shape index: {}]   ;;  %s2721_s4 = inlined_call_operand.vmem [shape: bf16[2,4,4,128], index: 4, kind: output, shape index: {}]  }
   0x1 LB: > { %s1782_s16 = sadd.s32 4294967295, %s2254_s15   ;;  %p1786_p0 = scmp.ge.s32.totalorder %s2254_s15, 1  ;;  %s2254_s15 = sphi %s2281_s15, %s14_s15  }
   0x2   : > { %p172_p1 = scmp.lt.s32.totalorder %s2254_s15, 3 }
   0x4   : > { %p173_p2 = pnand %p1786_p0, %p172_p1 }
   0x5   : > { %v2118_v0 = vld [vmem:[%s2720_s3 + $0x40] sm:$0xff] (!%p173_p2)   ;;  %v2122_v4 = vld [vmem:[%s2720_s3 + $0x48] sm:$0xff] (!%p173_p2)   ;;  %v2126_v8 = vld [vmem:[%s2720_s3 + $0x50] sm:$0xff] (!%p173_p2)   ;;  %p203_p3 = scmp.lt.s32.totalorder (!%p173_p2), %s1782_s16, 1  ;;  %vm1659_vm0 = vcmask (!%p173_p2), 1043456  }
   0x6   : > { %176 = sbr.rel (%p173_p2) target bundleno = 417 (0x1a1), region = 36  ;;  %v2119_v1 = vld [vmem:[%s2720_s3 + $0xc0] sm:$0xff] (!%p173_p2)   ;;  %1934 = vmatprep.subr.bf16.mxu0 (!%p173_p2), %v2118_v0  ;;  %v2123_v5 = vld [vmem:[%s2720_s3 + $0xc8] sm:$0xff] (!%p173_p2)   ;;  %v2127_v9 = vld [vmem:[%s2720_s3 + $0xd0] sm:$0xff] (!%p173_p2)  }
   0x7   : > { %v2120_v2 = vld [vmem:[%s2720_s3] sm:$0xff] (!%p173_p2)   ;;  %1956 = vmatprep.subr.bf16.mxu1 (!%p173_p2), %v2119_v1  ;;  %v2124_v6 = vld [vmem:[%s2720_s3 + $0x8] sm:$0xff] (!%p173_p2)   ;;  %v2128_v10 = vld [vmem:[%s2720_s3 + $0x10] sm:$0xff] (!%p173_p2)  }
   0x8   : > { %v2121_v3 = vld [vmem:[%s2720_s3 + $0x80] sm:$0xff] (!%p173_p2)   ;;  %1935 = vmatpush3.bf16.msra.mxu0 (!%p173_p2), %v2120_v2  ;;  %v2125_v7 = vld [vmem:[%s2720_s3 + $0x88] sm:$0xff] (!%p173_p2)   ;;  %v2129_v11 = vld [vmem:[%s2720_s3 + $0x90] sm:$0xff] (!%p173_p2)  }
   0x9   : > { %1957 = vmatpush3.bf16.msra.mxu1 (!%p173_p2), %v2121_v3  ;;  %1936 = vmatprep.subr.bf16.mxu0 (!%p173_p2), %v2122_v4  ;;  %v2130_v12 = vld [vmem:[%s2720_s3 + $0x58] sm:$0xff] (!%p173_p2)   ;;  %v2134_v16 = vld [vmem:[%s2720_s3 + $0x60] sm:$0xff] (!%p173_p2)   ;;  %v2138_v20 = vld [vmem:[%s2720_s3 + $0x68] sm:$0xff] (!%p173_p2)  }
   0xa   : > { %1958 = vmatprep.subr.bf16.mxu1 (!%p173_p2), %v2123_v5  ;;  %v2131_v13 = vld [vmem:[%s2720_s3 + $0xd8] sm:$0xff] (!%p173_p2)   ;;  %v2135_v17 = vld [vmem:[%s2720_s3 + $0xe0] sm:$0xff] (!%p173_p2)   ;;  %v2139_v21 = vld [vmem:[%s2720_s3 + $0xe8] sm:$0xff] (!%p173_p2)  }
   0xb   : > { %v2132_v14 = vld [vmem:[%s2720_s3 + $0x18] sm:$0xff] (!%p173_p2)   ;;  %v2136_v18 = vld [vmem:[%s2720_s3 + $0x20] sm:$0xff] (!%p173_p2)   ;;  %v2140_v22 = vld [vmem:[%s2720_s3 + $0x28] sm:$0xff] (!%p173_p2)  }
   0xc   : > { %1937 = vmatpush3.bf16.msra.mxu0 (!%p173_p2), %v2124_v6  ;;  %v2133_v15 = vld [vmem:[%s2720_s3 + $0x98] sm:$0xff] (!%p173_p2)   ;;  %v2137_v19 = vld [vmem:[%s2720_s3 + $0xa0] sm:$0xff] (!%p173_p2)   ;;  %v2141_v23 = vld [vmem:[%s2720_s3 + $0xa8] sm:$0xff] (!%p173_p2)  }
   0xd   : > { %1959 = vmatpush3.bf16.msra.mxu1 %v2125_v7  ;;  %1938 = vmatprep.subr.bf16.mxu0 %v2126_v8  ;;  %s2723_s16 = smov (!%p203_p3, %s1782_s16), 1  ;;  %v2142_v24 = vld [vmem:[%s2720_s3 + $0x70] sm:$0xff]   ;;  %v2146_v28 = vld [vmem:[%s2720_s3 + $0x78] sm:$0xff]   ;;  %v2150_v36 = vld [vmem:[%s2720_s3 + $0x140] sm:$0xff]  }
   0xe   : > { %1960 = vmatprep.subr.bf16.mxu1 %v2127_v9  ;;  %v2143_v25 = vld [vmem:[%s2720_s3 + $0xf0] sm:$0xff]   ;;  %s1931_s23 = sshll.u32 %s2723_s16, 4  ;;  %v2147_v29 = vld [vmem:[%s2720_s3 + $0xf8] sm:$0xff]   ;;  %v2151_v37 = vld [vmem:[%s2720_s3 + $0x1c0] sm:$0xff]  }
   0xf   : > { %v2144_v26 = vld [vmem:[%s2720_s3 + $0x30] sm:$0xff]   ;;  %s2391_s6 = scalar_lea.vmem %s2719_s2, %s1931_s23  ;;  %v2148_v30 = vld [vmem:[%s2720_s3 + $0x38] sm:$0xff]   ;;  %v2152_v38 = vld [vmem:[%s2720_s3 + $0x100] sm:$0xff]   ;;  %s2588_s22 = scalar_lea.vmem %s2717_s0, %s1931_s23 }
  0x10   : > { %1939 = vmatpush3.bf16.msra.mxu0 %v2128_v10  ;;  %v2145_v27 = vld [vmem:[%s2720_s3 + $0xb0] sm:$0xff]   ;;  %v2149_v31 = vld [vmem:[%s2720_s3 + $0xb8] sm:$0xff]   ;;  %v1793_v32 = vld.sshfl [vmem:[%s2391_s6] sm:$0x33 pattern:$0x76325410] }
  0x11   : > { %1961 = vmatpush3.bf16.msra.mxu1 %v2129_v11  ;;  %1940 = vmatprep.subr.bf16.mxu0 %v2130_v12  ;;  %v491_v33 = vcombine.high %v1793_v32, %v1793_v32  ;;  %v1810_v34 = vld.sshfl [vmem:[%s2391_s6 + $0x4] sm:$0x33 pattern:$0x76325410]  ;;  %v2154_v40 = vld [vmem:[%s2720_s3 + $0x148] sm:$0xff]   ;;  %v2158_v44 = vld [vmem:[%s2720_s3 + $0x150] sm:$0xff]  }
  0x12   : > { %1962 = vmatprep.subr.bf16.mxu1 %v2131_v13  ;;  %v638_v35 = vcombine.high %v1810_v34, %v1810_v34  ;;  %v2153_v39 = vld [vmem:[%s2720_s3 + $0x180] sm:$0xff]   ;;  %v2155_v41 = vld [vmem:[%s2720_s3 + $0x1c8] sm:$0xff]   ;;  %v2159_v45 = vld [vmem:[%s2720_s3 + $0x1d0] sm:$0xff]  }
  0x13   : > { %622 = vmatprep.mubr.bf16.mxu0 %v491_v33  ;;  %v2156_v42 = vld [vmem:[%s2720_s3 + $0x108] sm:$0xff]   ;;  %v2160_v46 = vld [vmem:[%s2720_s3 + $0x110] sm:$0xff]   ;;  %v2162_v48 = vld [vmem:[%s2720_s3 + $0x158] sm:$0xff]  }
  0x14   : > { %1941 = vmatpush3.bf16.msra.mxu0 %v2132_v14  ;;  %769 = vmatprep.mubr.bf16.mxu1 %v638_v35  ;;  %v2157_v43 = vld [vmem:[%s2720_s3 + $0x188] sm:$0xff]   ;;  %v2161_v47 = vld [vmem:[%s2720_s3 + $0x190] sm:$0xff]   ;;  %v2163_v49 = vld [vmem:[%s2720_s3 + $0x1d8] sm:$0xff]  }
  0x15   : > { %1963 = vmatpush3.bf16.msra.mxu1 %v2133_v15  ;;  %1942 = vmatprep.subr.bf16.mxu0 %v2134_v16  ;;  %v2164_v50 = vld [vmem:[%s2720_s3 + $0x118] sm:$0xff]   ;;  %v2166_v52 = vld [vmem:[%s2720_s3 + $0x160] sm:$0xff]   ;;  %v2170_v56 = vld [vmem:[%s2720_s3 + $0x168] sm:$0xff]  }
  0x16   : > { %1964 = vmatprep.subr.bf16.mxu1 %v2135_v17  ;;  %v2165_v51 = vld [vmem:[%s2720_s3 + $0x198] sm:$0xff]   ;;  %v2167_v53 = vld [vmem:[%s2720_s3 + $0x1e0] sm:$0xff]   ;;  %v2171_v57 = vld [vmem:[%s2720_s3 + $0x1e8] sm:$0xff]  }
  0x17   : > { %v2168_v54 = vld [vmem:[%s2720_s3 + $0x120] sm:$0xff]   ;;  %v2172_v58 = vld [vmem:[%s2720_s3 + $0x128] sm:$0xff]   ;;  %v2174_v60 = vld [vmem:[%s2720_s3 + $0x170] sm:$0xff]  }
  0x18   : > { %1943 = vmatpush3.bf16.msra.mxu0 %v2136_v18  ;;  %v2169_v55 = vld [vmem:[%s2720_s3 + $0x1a0] sm:$0xff]   ;;  %v2173_v59 = vld [vmem:[%s2720_s3 + $0x1a8] sm:$0xff]   ;;  %v2175_v61 = vld [vmem:[%s2720_s3 + $0x1f0] sm:$0xff]  }
  0x19   : > { %1965 = vmatpush3.bf16.msra.mxu1 %v2137_v19  ;;  %1944 = vmatprep.subr.bf16.mxu0 %v2138_v20  ;;  %v2176_v62 = vld [vmem:[%s2720_s3 + $0x130] sm:$0xff]   ;;  %v2178_v0 = vld [vmem:[%s2720_s3 + $0x178] sm:$0xff]   ;;  %v1827_v4 = vld.sshfl [vmem:[%s2391_s6 + $0x8] sm:$0x33 pattern:$0x76325410] }
  0x1a   : > { %1966 = vmatprep.subr.bf16.mxu1 %v2139_v21  ;;  %v2177_v63 = vld [vmem:[%s2720_s3 + $0x1b0] sm:$0xff]   ;;  %v2179_v1 = vld [vmem:[%s2720_s3 + $0x1f8] sm:$0xff]   ;;  %v2182_v5 = vld [vmem:[%s2718_s1 + $0x40] sm:$0xff]   ;;  %v785_v6 = vcombine.high %v1827_v4, %v1827_v4 }
  0x1b   : > { %v2180_v2 = vld [vmem:[%s2720_s3 + $0x138] sm:$0xff]   ;;  %v1844_v7 = vld.sshfl [vmem:[%s2391_s6 + $0xc] sm:$0x33 pattern:$0x76325410]  ;;  %v2183_v9 = vld [vmem:[%s2718_s1 + $0xc0] sm:$0xff]  }
  0x1c   : > { %1945 = vmatpush3.bf16.msra.mxu0 %v2140_v22  ;;  %v2181_v3 = vld [vmem:[%s2720_s3 + $0x1b8] sm:$0xff]   ;;  %v932_v8 = vcombine.high %v1844_v7, %v1844_v7  ;;  %v2184_v10 = vld [vmem:[%s2718_s1] sm:$0xff]   ;;  %v2186_v12 = vld [vmem:[%s2718_s1 + $0x48] sm:$0xff]  }
  0x1d   : > { %1967 = vmatpush3.bf16.msra.mxu1 %v2141_v23  ;;  %1946 = vmatprep.subr.bf16.mxu0 %v2142_v24  ;;  %v2185_v11 = vld [vmem:[%s2718_s1 + $0x80] sm:$0xff]   ;;  %v2187_v13 = vld [vmem:[%s2718_s1 + $0xc8] sm:$0xff]   ;;  %v2190_v16 = vld [vmem:[%s2718_s1 + $0x50] sm:$0xff]  }
  0x1e   : > { %1968 = vmatprep.subr.bf16.mxu1 %v2143_v25  ;;  %v2188_v14 = vld [vmem:[%s2718_s1 + $0x8] sm:$0xff]   ;;  %v2191_v17 = vld [vmem:[%s2718_s1 + $0xd0] sm:$0xff]   ;;  %v2194_v20 = vld [vmem:[%s2718_s1 + $0x58] sm:$0xff]  }
  0x1f   : > { %v2189_v15 = vld [vmem:[%s2718_s1 + $0x88] sm:$0xff]   ;;  %v2192_v18 = vld [vmem:[%s2718_s1 + $0x10] sm:$0xff]   ;;  %v2195_v21 = vld [vmem:[%s2718_s1 + $0xd8] sm:$0xff]  }
  0x20   : > { %1947 = vmatpush3.bf16.msra.mxu0 %v2144_v26  ;;  %v2193_v19 = vld [vmem:[%s2718_s1 + $0x90] sm:$0xff]   ;;  %v2196_v22 = vld [vmem:[%s2718_s1 + $0x18] sm:$0xff]   ;;  %v2198_v24 = vld [vmem:[%s2718_s1 + $0x60] sm:$0xff]  }
  0x21   : > { %1969 = vmatpush3.bf16.msra.mxu1 %v2145_v27  ;;  %1948 = vmatprep.subr.bf16.mxu0 %v2146_v28  ;;  %v2197_v23 = vld [vmem:[%s2718_s1 + $0x98] sm:$0xff]   ;;  %v2199_v25 = vld [vmem:[%s2718_s1 + $0xe0] sm:$0xff]   ;;  %v2202_v28 = vld [vmem:[%s2718_s1 + $0x68] sm:$0xff]  }
  0x22   : > { %1970 = vmatprep.subr.bf16.mxu1 %v2147_v29  ;;  %v2200_v26 = vld [vmem:[%s2718_s1 + $0x20] sm:$0xff]   ;;  %v2203_v29 = vld [vmem:[%s2718_s1 + $0xe8] sm:$0xff]   ;;  %v2207_v33 = vld [vmem:[%s2718_s1 + $0xf0] sm:$0xff]  }
  0x23   : > { %v2201_v27 = vld [vmem:[%s2718_s1 + $0xa0] sm:$0xff]   ;;  %v2209_v35 = vld [vmem:[%s2718_s1 + $0xb0] sm:$0xff]  }
  0x24   : > { %1949 = vmatpush3.bf16.msra.mxu0 %v2148_v30  ;;  %v2204_v30 = vld [vmem:[%s2718_s1 + $0x28] sm:$0xff]  }
  0x25   : > { %1971 = vmatpush3.bf16.msra.mxu1 %v2149_v31  ;;  %1978 = vmatprep.subr.bf16.mxu0 %v2150_v36  ;;  %v2205_v31 = vld [vmem:[%s2718_s1 + $0xa8] sm:$0xff]   ;;  %v2210_v36 = vld [vmem:[%s2718_s1 + $0x78] sm:$0xff]  }
  0x26   : > { %2000 = vmatprep.subr.bf16.mxu1 %v2151_v37  ;;  %v2211_v37 = vld [vmem:[%s2718_s1 + $0xf8] sm:$0xff]  }
  0x27   : > { %623 = vmatmul.mubr.bf16.vlgmr.msra.gmra.mrb[0].mxu0 %v1793_v32  ;;  %v2206_v32 = vld [vmem:[%s2718_s1 + $0x70] sm:$0xff]  }
  0x28   : > { %770 = vmatmul.mubr.bf16.vlgmr.msra.gmra.mrb[0].mxu1 %v1810_v34  ;;  %1979 = vmatpush3.bf16.msra.mxu0 %v2152_v38  ;;  %v2208_v34 = vld [vmem:[%s2718_s1 + $0x30] sm:$0xff]   ;;  %v2212_v38 = vld [vmem:[%s2718_s1 + $0x38] sm:$0xff]  }
  0x29   : > { %2001 = vmatpush3.bf16.msra.mxu1 %v2153_v39  ;;  %1980 = vmatprep.subr.bf16.mxu0 %v2154_v40  ;;  %v2213_v39 = vld [vmem:[%s2718_s1 + $0xb8] sm:$0xff]   ;;  %v1861_v40 = vld.sshfl [vmem:[%s2588_s22] sm:$0x33 pattern:$0x76325410] }
  0x2a   : > { %2002 = vmatprep.subr.bf16.mxu1 %v2155_v41  ;;  %916 = vmatprep.mubr.bf16.mxu0 %v785_v6  ;;  %v2214_v41 = vld [vmem:[%s2718_s1 + $0x140] sm:$0xff]   ;;  %v2240_v6 = vld [vmem:[%s2718_s1 + $0x130] sm:$0xff]  }
  0x2b   : > { %1063 = vmatprep.mubr.bf16.mxu1 %v932_v8  ;;  %v2242_v8 = vld [vmem:[%s2718_s1 + $0x178] sm:$0xff]  }
  0x2c   : > { %1981 = vmatpush3.bf16.msra.mxu0 %v2156_v42  ;;  %v1079_v42 = vcombine.high %v1861_v40, %v1861_v40 }
  0x2d   : > { %2003 = vmatpush3.bf16.msra.mxu1 %v2157_v43  ;;  %1982 = vmatprep.subr.bf16.mxu0 %v2158_v44  ;;  %v1878_v43 = vld.sshfl [vmem:[%s2588_s22 + $0x4] sm:$0x33 pattern:$0x76325410] }
  0x2e   : > { %2004 = vmatprep.subr.bf16.mxu1 %v2159_v45  ;;  %v1226_v44 = vcombine.high %v1878_v43, %v1878_v43  ;;  %v2215_v45 = vld [vmem:[%s2718_s1 + $0x1c0] sm:$0xff]  }
  0x30   : > { %1983 = vmatpush3.bf16.msra.mxu0 %v2160_v46  ;;  %v2216_v46 = vld [vmem:[%s2718_s1 + $0x100] sm:$0xff]  }
  0x31   : > { %2005 = vmatpush3.bf16.msra.mxu1 %v2161_v47  ;;  %1984 = vmatprep.subr.bf16.mxu0 %v2162_v48  ;;  %v2217_v47 = vld [vmem:[%s2718_s1 + $0x180] sm:$0xff]   ;;  %v2218_v48 = vld [vmem:[%s2718_s1 + $0x148] sm:$0xff]  }
  0x32   : > { %2006 = vmatprep.subr.bf16.mxu1 %v2163_v49  ;;  %v2219_v49 = vld [vmem:[%s2718_s1 + $0x1c8] sm:$0xff]  }
  0x34   : > { %1985 = vmatpush3.bf16.msra.mxu0 %v2164_v50  ;;  %v2220_v50 = vld [vmem:[%s2718_s1 + $0x108] sm:$0xff]  }
  0x35   : > { %2007 = vmatpush3.bf16.msra.mxu1 %v2165_v51  ;;  %1986 = vmatprep.subr.bf16.mxu0 %v2166_v52  ;;  %v2221_v51 = vld [vmem:[%s2718_s1 + $0x188] sm:$0xff]   ;;  %v2222_v52 = vld [vmem:[%s2718_s1 + $0x150] sm:$0xff]  }
  0x36   : > { %2008 = vmatprep.subr.bf16.mxu1 %v2167_v53  ;;  %v2223_v53 = vld [vmem:[%s2718_s1 + $0x1d0] sm:$0xff]  }
  0x38   : > { %1987 = vmatpush3.bf16.msra.mxu0 %v2168_v54  ;;  %v2224_v54 = vld [vmem:[%s2718_s1 + $0x110] sm:$0xff]  }
  0x39   : > { %2009 = vmatpush3.bf16.msra.mxu1 %v2169_v55  ;;  %1988 = vmatprep.subr.bf16.mxu0 %v2170_v56  ;;  %v2225_v55 = vld [vmem:[%s2718_s1 + $0x190] sm:$0xff]   ;;  %v2226_v56 = vld [vmem:[%s2718_s1 + $0x158] sm:$0xff]  }
  0x3a   : > { %2010 = vmatprep.subr.bf16.mxu1 %v2171_v57  ;;  %v2227_v57 = vld [vmem:[%s2718_s1 + $0x1d8] sm:$0xff]  }
  0x3c   : > { %1989 = vmatpush3.bf16.msra.mxu0 %v2172_v58  ;;  %v2228_v58 = vld [vmem:[%s2718_s1 + $0x118] sm:$0xff]  }
  0x3d   : > { %2011 = vmatpush3.bf16.msra.mxu1 %v2173_v59  ;;  %1990 = vmatprep.subr.bf16.mxu0 %v2174_v60  ;;  %v2229_v59 = vld [vmem:[%s2718_s1 + $0x198] sm:$0xff]   ;;  %v2230_v60 = vld [vmem:[%s2718_s1 + $0x160] sm:$0xff]  }
  0x3e   : > { %2012 = vmatprep.subr.bf16.mxu1 %v2175_v61  ;;  %v2231_v61 = vld [vmem:[%s2718_s1 + $0x1e0] sm:$0xff]  }
  0x40   : > { %1991 = vmatpush3.bf16.msra.mxu0 %v2176_v62  ;;  %v2232_v62 = vld [vmem:[%s2718_s1 + $0x120] sm:$0xff]  }
  0x41   : > { %2013 = vmatpush3.bf16.msra.mxu1 %v2177_v63  ;;  %1992 = vmatprep.subr.bf16.mxu0 %v2178_v0  ;;  %v2233_v63 = vld [vmem:[%s2718_s1 + $0x1a0] sm:$0xff]   ;;  %v2234_v0 = vld [vmem:[%s2718_s1 + $0x168] sm:$0xff]  }
  0x42   : > { %2014 = vmatprep.subr.bf16.mxu1 %v2179_v1  ;;  %v2235_v1 = vld [vmem:[%s2718_s1 + $0x1e8] sm:$0xff]  }
  0x44   : > { %1993 = vmatpush3.bf16.msra.mxu0 %v2180_v2  ;;  %v2236_v2 = vld [vmem:[%s2718_s1 + $0x128] sm:$0xff]  }
  0x45   : > { %2015 = vmatpush3.bf16.msra.mxu1 %v2181_v3  ;;  %2022 = vmatprep.subr.bf16.mxu0 %v2182_v5  ;;  %v2237_v3 = vld [vmem:[%s2718_s1 + $0x1a8] sm:$0xff]   ;;  %v2239_v5 = vld [vmem:[%s2718_s1 + $0x1f0] sm:$0xff]  }
  0x46   : > { %2044 = vmatprep.subr.bf16.mxu1 %v2183_v9  ;;  %v2243_v9 = vld [vmem:[%s2718_s1 + $0x1f8] sm:$0xff]  }
  0x47   : > { %917 = vmatmul.mubr.bf16.vlgmr.msra.gmra.mrb[4].mxu0 %v1827_v4  ;;  %v2238_v4 = vld [vmem:[%s2718_s1 + $0x170] sm:$0xff]  }
  0x48   : > { %1064 = vmatmul.mubr.bf16.vlgmr.msra.gmra.mrb[4].mxu1 %v1844_v7  ;;  %2023 = vmatpush3.bf16.msra.mxu0 %v2184_v10  ;;  %v2241_v7 = vld [vmem:[%s2718_s1 + $0x1b0] sm:$0xff]   ;;  %v2244_v10 = vld [vmem:[%s2718_s1 + $0x138] sm:$0xff]  }
  0x49   : > { %2045 = vmatpush3.bf16.msra.mxu1 %v2185_v11  ;;  %2024 = vmatprep.subr.bf16.mxu0 %v2186_v12  ;;  %v2245_v11 = vld [vmem:[%s2718_s1 + $0x1b8] sm:$0xff]   ;;  %v1895_v12 = vld.sshfl [vmem:[%s2588_s22 + $0x8] sm:$0x33 pattern:$0x76325410] }
  0x4a   : > { %2046 = vmatprep.subr.bf16.mxu1 %v2187_v13  ;;  %1210 = vmatprep.mubr.bf16.mxu0 %v1079_v42  ;;  %v1373_v13 = vcombine.high %v1895_v12, %v1895_v12 }
  0x4b   : > { %1357 = vmatprep.mubr.bf16.mxu1 %v1226_v44 }
  0x4c   : > { %2025 = vmatpush3.bf16.msra.mxu0 %v2188_v14  ;;  %v1912_v14 = vld.sshfl [vmem:[%s2588_s22 + $0xc] sm:$0x33 pattern:$0x76325410]  ;;  %s1933_s22 = sshll.u32 %s2723_s16, 3 }
  0x4d   : > { %2047 = vmatpush3.bf16.msra.mxu1 %v2189_v15  ;;  %2026 = vmatprep.subr.bf16.mxu0 %v2190_v16  ;;  %v1520_v15 = vcombine.high %v1912_v14, %v1912_v14  ;;  %s217_s29 = scalar_lea.vmem %s2721_s4, %s1933_s22 }
  0x4e   : > { %2048 = vmatprep.subr.bf16.mxu1 %v2191_v17 }
  0x50   : > { %2027 = vmatpush3.bf16.msra.mxu0 %v2192_v18 }
  0x51   : > { %2049 = vmatpush3.bf16.msra.mxu1 %v2193_v19  ;;  %2028 = vmatprep.subr.bf16.mxu0 %v2194_v20 }
  0x52   : > { %2050 = vmatprep.subr.bf16.mxu1 %v2195_v21 }
  0x54   : > { %2029 = vmatpush3.bf16.msra.mxu0 %v2196_v22 }
  0x55   : > { %2051 = vmatpush3.bf16.msra.mxu1 %v2197_v23  ;;  %2030 = vmatprep.subr.bf16.mxu0 %v2198_v24 }
  0x56   : > { %2052 = vmatprep.subr.bf16.mxu1 %v2199_v25 }
  0x58   : > { %2031 = vmatpush3.bf16.msra.mxu0 %v2200_v26 }
  0x59   : > { %2053 = vmatpush3.bf16.msra.mxu1 %v2201_v27  ;;  %2032 = vmatprep.subr.bf16.mxu0 %v2202_v28 }
  0x5a   : > { %2054 = vmatprep.subr.bf16.mxu1 %v2203_v29 }
  0x5c   : > { %2033 = vmatpush3.bf16.msra.mxu0 %v2204_v30 }
  0x5d   : > { %2055 = vmatpush3.bf16.msra.mxu1 %v2205_v31  ;;  %2034 = vmatprep.subr.bf16.mxu0 %v2206_v32 }
  0x5e   : > { %2056 = vmatprep.subr.bf16.mxu1 %v2207_v33 }
  0x60   : > { %2035 = vmatpush3.bf16.msra.mxu0 %v2208_v34 }
  0x61   : > { %2057 = vmatpush3.bf16.msra.mxu1 %v2209_v35  ;;  %2036 = vmatprep.subr.bf16.mxu0 %v2210_v36 }
  0x62   : > { %2058 = vmatprep.subr.bf16.mxu1 %v2211_v37 }
  0x64   : > { %2037 = vmatpush3.bf16.msra.mxu0 %v2212_v38 }
  0x65   : > { %2059 = vmatpush3.bf16.msra.mxu1 %v2213_v39  ;;  %2066 = vmatprep.subr.bf16.mxu0 %v2214_v41 }
  0x66   : > { %2088 = vmatprep.subr.bf16.mxu1 %v2215_v45 }
  0x67   : > { %1211 = vmatmul.mubr.bf16.vlgmr.msra.gmra.mrb[8].mxu0 %v1861_v40 }
  0x68   : > { %1358 = vmatmul.mubr.bf16.vlgmr.msra.gmra.mrb[8].mxu1 %v1878_v43  ;;  %2067 = vmatpush3.bf16.msra.mxu0 %v2216_v46 }
  0x69   : > { %2089 = vmatpush3.bf16.msra.mxu1 %v2217_v47  ;;  %2068 = vmatprep.subr.bf16.mxu0 %v2218_v48 }
  0x6a   : > { %2090 = vmatprep.subr.bf16.mxu1 %v2219_v49  ;;  %1504 = vmatprep.mubr.bf16.mxu0 %v1373_v13 }
  0x6b   : > { %1651 = vmatprep.mubr.bf16.mxu1 %v1520_v15 }
  0x6c   : > { %2069 = vmatpush3.bf16.msra.mxu0 %v2220_v50 }
  0x6d   : > { %2091 = vmatpush3.bf16.msra.mxu1 %v2221_v51  ;;  %2070 = vmatprep.subr.bf16.mxu0 %v2222_v52 }
  0x6e   : > { %2092 = vmatprep.subr.bf16.mxu1 %v2223_v53 }
  0x70   : > { %2071 = vmatpush3.bf16.msra.mxu0 %v2224_v54 }
  0x71   : > { %2093 = vmatpush3.bf16.msra.mxu1 %v2225_v55  ;;  %2072 = vmatprep.subr.bf16.mxu0 %v2226_v56 }
  0x72   : > { %2094 = vmatprep.subr.bf16.mxu1 %v2227_v57 }
  0x74   : > { %2073 = vmatpush3.bf16.msra.mxu0 %v2228_v58 }
  0x75   : > { %2095 = vmatpush3.bf16.msra.mxu1 %v2229_v59  ;;  %2074 = vmatprep.subr.bf16.mxu0 %v2230_v60 }
  0x76   : > { %2096 = vmatprep.subr.bf16.mxu1 %v2231_v61 }
  0x78   : > { %2075 = vmatpush3.bf16.msra.mxu0 %v2232_v62 }
  0x79   : > { %2097 = vmatpush3.bf16.msra.mxu1 %v2233_v63  ;;  %2076 = vmatprep.subr.bf16.mxu0 %v2234_v0 }
  0x7a   : > { %2098 = vmatprep.subr.bf16.mxu1 %v2235_v1 }
  0x7c   : > { %2077 = vmatpush3.bf16.msra.mxu0 %v2236_v2 }
  0x7d   : > { %2099 = vmatpush3.bf16.msra.mxu1 %v2237_v3  ;;  %2078 = vmatprep.subr.bf16.mxu0 %v2238_v4 }
  0x7e   : > { %2100 = vmatprep.subr.bf16.mxu1 %v2239_v5 }
  0x80   : > { %2079 = vmatpush3.bf16.msra.mxu0 %v2240_v6 }
  0x81   : > { %2101 = vmatpush3.bf16.msra.mxu1 %v2241_v7  ;;  %2080 = vmatprep.subr.bf16.mxu0 %v2242_v8 }
  0x82   : > { %2102 = vmatprep.subr.bf16.mxu1 %v2243_v9 }
  0x84   : > { %2081 = vmatpush3.bf16.msra.mxu0 %v2244_v10 }
  0x85   : > { %2103 = vmatpush3.bf16.msra.mxu1 %v2245_v11 }
  0x87   : > { %1505 = vmatmul.mubr.bf16.vlgmr.msra.gmra.mrb[12].mxu0 %v1895_v12 }
  0x88   : > { %1652 = vmatmul.mubr.bf16.vlgmr.msra.gmra.mrb[12].mxu1 %v1912_v14 }
  0xfa   : > { %v1950_v16 = vpop.f32.mrb[0].mxu0 }
  0xfb   : > { %v1972_v17 = vpop.f32.mrb[0].mxu1  ;;  %v1951_v18 = vpop.f32.mrb[1].mxu0 }
  0xfc   : > { %v1952_v19 = vadd.f32 %v1951_v18, %v1950_v16  ;;  %v1973_v20 = vpop.f32.mrb[1].mxu1  ;;  %v1953_v21 = vpop.f32.mrb[2].mxu0 }
  0xfd   : > { %v1974_v22 = vadd.f32 %v1973_v20, %v1972_v17  ;;  %v1975_v23 = vpop.f32.mrb[2].mxu1  ;;  %v1954_v24 = vpop.f32.mrb[3].mxu0 }
  0xfe   : > { %v1976_v25 = vpop.f32.mrb[3].mxu1 }
 0x11a   : > { %v1994_v26 = vpop.f32.mrb[4].mxu0 }
 0x11b   : > { %v2016_v27 = vpop.f32.mrb[4].mxu1  ;;  %v1995_v28 = vpop.f32.mrb[5].mxu0 }
 0x11c   : > { %v1996_v29 = vadd.f32 %v1995_v28, %v1994_v26  ;;  %v2017_v30 = vpop.f32.mrb[5].mxu1  ;;  %v1997_v31 = vpop.f32.mrb[6].mxu0 }
 0x11d   : > { %v2018_v32 = vadd.f32 %v2017_v30, %v2016_v27  ;;  %v2019_v33 = vpop.f32.mrb[6].mxu1  ;;  %v1998_v34 = vpop.f32.mrb[7].mxu0 }
 0x11e   : > { %v2020_v35 = vpop.f32.mrb[7].mxu1 }
 0x13a   : > { %v2038_v36 = vpop.f32.mrb[8].mxu0 }
 0x13b   : > { %v2060_v37 = vpop.f32.mrb[8].mxu1  ;;  %v2039_v38 = vpop.f32.mrb[9].mxu0 }
 0x13c   : > { %v2040_v39 = vadd.f32 %v2039_v38, %v2038_v36  ;;  %v2061_v40 = vpop.f32.mrb[9].mxu1  ;;  %v2041_v41 = vpop.f32.mrb[10].mxu0 }
 0x13d   : > { %v2062_v42 = vadd.f32 %v2061_v40, %v2060_v37  ;;  %v2063_v43 = vpop.f32.mrb[10].mxu1  ;;  %v2042_v44 = vpop.f32.mrb[11].mxu0 }
 0x13e   : > { %v1213_v45 = vadd.f32 %v2040_v39, %v1952_v19  ;;  %v2064_v46 = vpop.f32.mrb[11].mxu1 }
 0x13f   : > { %v1360_v47 = vadd.f32 %v2062_v42, %v1974_v22 }
 0x140   : > { %v1660_v48 = vsel %vm1659_vm0, %v1213_v45, 0.0 }
 0x141   : > { %v1661_v49 = vsel %vm1659_vm0, %v1360_v47, 0.0 }
 0x142   : > { %v1662_v50 = vadd.f32 %v1661_v49, %v1660_v48 }
 0x15a   : > { %v2082_v51 = vpop.f32.mrb[12].mxu0 }
 0x15b   : > { %v2104_v52 = vpop.f32.mrb[12].mxu1  ;;  %v2083_v53 = vpop.f32.mrb[13].mxu0 }
 0x15c   : > { %v2084_v54 = vadd.f32 %v2083_v53, %v2082_v51  ;;  %v2105_v55 = vpop.f32.mrb[13].mxu1  ;;  %v2085_v56 = vpop.f32.mrb[14].mxu0 }
 0x15d   : > { %v2106_v57 = vadd.f32 %v2105_v55, %v2104_v52  ;;  %v2107_v58 = vpop.f32.mrb[14].mxu1  ;;  %v2086_v59 = vpop.f32.mrb[15].mxu0 }
 0x15e   : > { %v1507_v60 = vadd.f32 %v2084_v54, %v1996_v29  ;;  %v2108_v61 = vpop.f32.mrb[15].mxu1 }
 0x15f   : > { %v1654_v62 = vadd.f32 %v2106_v57, %v2018_v32 }
 0x160   : > { %v1663_v63 = vsel %vm1659_vm0, %v1507_v60, 0.0 }
 0x161   : > { %v1664_v0 = vadd.f32 %v1663_v63, %v1662_v50  ;;  %v1665_v1 = vsel %vm1659_vm0, %v1654_v62, 0.0 }
 0x163   : > { %v1666_v2 = vadd.f32 %v1665_v1, %v1664_v0 }
 0x165   : > { %v1667_v3 = vrot.slane %v1666_v2, 4 }
 0x167   : > { %v1668_v4 = vadd.f32 %v1667_v3, %v1666_v2 }
 0x169   : > { %v1669_v5 = vrot.slane %v1668_v4, 2 }
 0x16b   : > { %v1670_v6 = vadd.f32 %v1669_v5, %v1668_v4 }
 0x16d   : > { %v1671_v7 = vrot.slane %v1670_v6, 1 }
 0x16f   : > { %v1672_v8 = vadd.f32 %v1671_v7, %v1670_v6 }
 0x171   : > { %v1674_v9 = vmul.f32 0.0625, %v1672_v8 }
 0x173   : > { %v1675_v10 = vsub.f32 %v1213_v45, %v1674_v9  ;;  %v1676_v11 = vsub.f32 %v1360_v47, %v1674_v9  ;;  %v1677_v12 = vsub.f32 %v1507_v60, %v1674_v9  ;;  %v1678_v13 = vsub.f32 %v1654_v62, %v1674_v9 }
 0x175   : > { %v1679_v14 = vmul.f32 %v1675_v10, %v1675_v10  ;;  %v1680_v15 = vmul.f32 %v1676_v11, %v1676_v11  ;;  %v1681_v16 = vmul.f32 %v1677_v12, %v1677_v12  ;;  %v1682_v17 = vmul.f32 %v1678_v13, %v1678_v13 }
 0x177   : > { %v1683_v18 = vsel %vm1659_vm0, %v1679_v14, 0.0  ;;  %v1684_v19 = vsel %vm1659_vm0, %v1680_v15, 0.0  ;;  %v1686_v21 = vsel %vm1659_vm0, %v1681_v16, 0.0  ;;  %v1688_v23 = vsel %vm1659_vm0, %v1682_v17, 0.0 }
 0x178   : > { %v1685_v20 = vadd.f32 %v1684_v19, %v1683_v18 }
 0x17a   : > { %v1687_v22 = vadd.f32 %v1686_v21, %v1685_v20 }
 0x17c   : > { %v1689_v24 = vadd.f32 %v1688_v23, %v1687_v22 }
 0x17e   : > { %v1690_v25 = vrot.slane %v1689_v24, 4 }
 0x180   : > { %v1691_v26 = vadd.f32 %v1690_v25, %v1689_v24 }
 0x182   : > { %v1692_v27 = vrot.slane %v1691_v26, 2 }
 0x184   : > { %v1693_v28 = vadd.f32 %v1692_v27, %v1691_v26 }
 0x186   : > { %v1694_v29 = vrot.slane %v1693_v28, 1 }
 0x188   : > { %v1695_v30 = vadd.f32 %v1694_v29, %v1693_v28 }
 0x18a   : > { %v1696_v31 = vmul.f32 0.0625, %v1695_v30 }
 0x18c   : > { %v1697_v32 = vadd.f32 1e-05, %v1696_v31 }
 0x18e   : > { %2246 = vrsqrt.f32 %v1697_v32 }
 0x198   : > { %v2247_v33 = vpop.eup %2246 }
 0x199   : > { %v1699_v34 = vmul.f32 %v2247_v33, %v1675_v10  ;;  %v1700_v35 = vmul.f32 %v2247_v33, %v1676_v11  ;;  %v1701_v36 = vmul.f32 %v2247_v33, %v1677_v12  ;;  %v1702_v37 = vmul.f32 %v2247_v33, %v1678_v13 }
 0x19b   : > { %v1703_v38 = vmax.f32 %v1699_v34, 0.0  ;;  %v1704_v39 = vmax.f32 %v1700_v35, 0.0  ;;  %v1705_v40 = vmax.f32 %v1701_v36, 0.0  ;;  %v1706_v41 = vmax.f32 %v1702_v37, 0.0 }
 0x19d   : > { %v1707_v42 = vpack.c.bf16 %v1703_v38, %v1703_v38  ;;  %v1708_v43 = vpack.c.bf16 %v1704_v39, %v1704_v39  ;;  %v1709_v44 = vpack.c.bf16 %v1705_v40, %v1705_v40  ;;  %v1710_v45 = vpack.c.bf16 %v1706_v41, %v1706_v41 }
 0x19f   : > { %1711 = vst [vmem:[%s217_s29] sm:$0x3] %v1707_v42  ;;  %1712 = vst [vmem:[%s217_s29 + $0x2] sm:$0x3] %v1708_v43 }
 0x1a0   : > { %1713 = vst [vmem:[%s217_s29 + $0x4] sm:$0x3] %v1709_v44  ;;  %1714 = vst [vmem:[%s217_s29 + $0x6] sm:$0x3] %v1710_v45 }
 0x1a1 PF: > { %s14_s15 = sadd.s32 1, %s2254_s15  }
 0x1a2   : > { %p11_p4 = scmp.ge.s32.totalorder %s14_s15, 4  }
 0x1a4   :  { %13 = sbr.rel (!%p11_p4) target bundleno = 1 (0x1), region = 69 }

// kernel: _lambda_.17
= control target key start
LH: loop header
LB: loop body
LE: loop exit
PB: predicated region body
PF: predicated region fallthrough
CT: control target
= control target key end

     0   :  { %s1787_s15 = smov 0   ;;  %s2096_s0 = inlined_call_operand.vmem [shape: bf16[2,4,16,128], index: 0, kind: input, shape index: {}]   ;;  %s2097_s1 = inlined_call_operand.vmem [shape: bf16[4,128,128], index: 1, kind: input, shape index: {}]   ;;  %s2098_s2 = inlined_call_operand.vmem [shape: bf16[2,4,16,128], index: 2, kind: input, shape index: {}]   ;;  %s2099_s3 = inlined_call_operand.vmem [shape: bf16[4,128,128], index: 3, kind: input, shape index: {}]   ;;  %s2100_s4 = inlined_call_operand.vmem [shape: bf16[2,4,16,128], index: 4, kind: output, shape index: {}]  }
   0x1 LB: > { %s1293_s16 = sadd.s32 4294967295, %s1758_s15   ;;  %p1297_p0 = scmp.ge.s32.totalorder %s1758_s15, 1  ;;  %s1758_s15 = sphi %s1787_s15, %s14_s15  }
   0x2   : > { %p172_p1 = scmp.lt.s32.totalorder %s1758_s15, 3 }
   0x4   : > { %p173_p2 = pnand %p1297_p0, %p172_p1 }
   0x5   : > { %v1678_v0 = vld [vmem:[%s2099_s3] sm:$0xff] (!%p173_p2)   ;;  %v1760_v1 = vmov (!%p173_p2), 0.0   ;;  %v1680_v3 = vld [vmem:[%s2099_s3 + $0x8] sm:$0xff] (!%p173_p2)   ;;  %vm1761_vm0 = vmmov (!%p173_p2), 0   ;;  %p203_p3 = scmp.lt.s32.totalorder (!%p173_p2), %s1293_s16, 1  ;;  %v1682_v5 = vld [vmem:[%s2099_s3 + $0x10] sm:$0xff] (!%p173_p2)  }
   0x6   : > { %176 = sbr.rel (%p173_p2) target bundleno = 421 (0x1a5), region = 36  ;;  %1492 = vmatprep.subr.bf16.mxu0 (!%p173_p2), %v1760_v1  ;;  %1512 = vmatprep.subr.bf16.mxu1 (!%p173_p2), %v1760_v1  ;;  %v1679_v2 = vld [vmem:[%s2099_s3 + $0x40] sm:$0xff] (!%p173_p2)   ;;  %v1681_v4 = vld [vmem:[%s2099_s3 + $0x48] sm:$0xff] (!%p173_p2)   ;;  %v1683_v6 = vld [vmem:[%s2099_s3 + $0x50] sm:$0xff] (!%p173_p2)  }
   0x7   : > { %1493 = vmatpush3.bf16.msra.mxu0 (!%p173_p2), %v1678_v0  ;;  %1508 = vmatprep.mubr.msk.bf16.mxu0 (!%p173_p2), %vm1761_vm0, %v1760_v1  ;;  %v1684_v7 = vld [vmem:[%s2099_s3 + $0x18] sm:$0xff] (!%p173_p2)   ;;  %v1686_v9 = vld [vmem:[%s2099_s3 + $0x20] sm:$0xff] (!%p173_p2)   ;;  %v1688_v11 = vld [vmem:[%s2099_s3 + $0x28] sm:$0xff] (!%p173_p2)  }
   0x8   : > { %1513 = vmatpush3.bf16.msra.mxu1 (!%p173_p2), %v1679_v2  ;;  %1494 = vmatprep.subr.bf16.mxu0 (!%p173_p2), %v1760_v1  ;;  %v1685_v8 = vld [vmem:[%s2099_s3 + $0x58] sm:$0xff] (!%p173_p2)   ;;  %v1687_v10 = vld [vmem:[%s2099_s3 + $0x60] sm:$0xff] (!%p173_p2)   ;;  %v1689_v12 = vld [vmem:[%s2099_s3 + $0x68] sm:$0xff] (!%p173_p2)  }
   0x9   : > { %1514 = vmatprep.subr.bf16.mxu1 (!%p173_p2), %v1760_v1  ;;  %1528 = vmatprep.mubr.msk.bf16.mxu1 (!%p173_p2), %vm1761_vm0, %v1760_v1  ;;  %v1690_v13 = vld [vmem:[%s2099_s3 + $0x30] sm:$0xff] (!%p173_p2)   ;;  %v1692_v15 = vld [vmem:[%s2099_s3 + $0x38] sm:$0xff] (!%p173_p2)   ;;  %v1696_v19 = vld [vmem:[%s2099_s3 + $0x80] sm:$0xff] (!%p173_p2)  }
   0xa   : > { %v1691_v14 = vld [vmem:[%s2099_s3 + $0x70] sm:$0xff] (!%p173_p2)   ;;  %v1693_v16 = vld [vmem:[%s2099_s3 + $0x78] sm:$0xff] (!%p173_p2)   ;;  %v1697_v20 = vld [vmem:[%s2099_s3 + $0xc0] sm:$0xff] (!%p173_p2)  }
   0xb   : > { %1495 = vmatpush3.bf16.msra.mxu0 (!%p173_p2), %v1680_v3  ;;  %v1698_v21 = vld [vmem:[%s2099_s3 + $0x88] sm:$0xff] (!%p173_p2)   ;;  %v1700_v23 = vld [vmem:[%s2099_s3 + $0x90] sm:$0xff] (!%p173_p2)   ;;  %v1702_v25 = vld [vmem:[%s2099_s3 + $0x98] sm:$0xff] (!%p173_p2)  }
   0xc   : > { %1515 = vmatpush3.bf16.msra.mxu1 (!%p173_p2), %v1681_v4  ;;  %1496 = vmatprep.subr.bf16.mxu0 (!%p173_p2), %v1760_v1  ;;  %v1699_v22 = vld [vmem:[%s2099_s3 + $0xc8] sm:$0xff] (!%p173_p2)   ;;  %v1701_v24 = vld [vmem:[%s2099_s3 + $0xd0] sm:$0xff] (!%p173_p2)   ;;  %v1703_v26 = vld [vmem:[%s2099_s3 + $0xd8] sm:$0xff] (!%p173_p2)  }
   0xd   : > { %1516 = vmatprep.subr.bf16.mxu1 %v1760_v1  ;;  %s2102_s16 = smov (!%p203_p3, %s1293_s16), 1  ;;  %v1704_v27 = vld [vmem:[%s2099_s3 + $0xa0] sm:$0xff]   ;;  %v1706_v29 = vld [vmem:[%s2099_s3 + $0xa8] sm:$0xff]   ;;  %v1708_v31 = vld [vmem:[%s2099_s3 + $0xb0] sm:$0xff]  }
   0xe   : > { %s1831_s7 = sshll.u32 %s2102_s16, 5  ;;  %v1705_v28 = vld [vmem:[%s2099_s3 + $0xe0] sm:$0xff]   ;;  %v1707_v30 = vld [vmem:[%s2099_s3 + $0xe8] sm:$0xff]   ;;  %v1709_v32 = vld [vmem:[%s2099_s3 + $0xf0] sm:$0xff]  }
   0xf   : > { %1497 = vmatpush3.bf16.msra.mxu0 %v1682_v5  ;;  %s1844_s14 = scalar_lea.vmem %s2098_s2, %s1831_s7  ;;  %s1928_s5 = scalar_lea.vmem %s2096_s0, %s1831_s7  ;;  %v1710_v33 = vld [vmem:[%s2099_s3 + $0xb8] sm:$0xff]   ;;  %v1714_v37 = vld [vmem:[%s2097_s1] sm:$0xff]   ;;  %v1716_v39 = vld [vmem:[%s2097_s1 + $0x8] sm:$0xff]  }
  0x10   : > { %1517 = vmatpush3.bf16.msra.mxu1 %v1683_v6  ;;  %1498 = vmatprep.subr.bf16.mxu0 %v1760_v1  ;;  %v1694_v17 = vld [vmem:[%s1844_s14] sm:$0xff]   ;;  %v1695_v18 = vld [vmem:[%s1844_s14 + $0x8] sm:$0xff]   ;;  %v1711_v34 = vld [vmem:[%s2099_s3 + $0xf8] sm:$0xff]   ;;  %s217_s11 = scalar_lea.vmem %s2100_s4, %s1831_s7 }
  0x11   : > { %1518 = vmatprep.subr.bf16.mxu1 %v1760_v1  ;;  %v1712_v35 = vld [vmem:[%s1844_s14 + $0x10] sm:$0xff]   ;;  %v1713_v36 = vld [vmem:[%s1844_s14 + $0x18] sm:$0xff]   ;;  %v1715_v38 = vld [vmem:[%s2097_s1 + $0x40] sm:$0xff]  }
  0x12   : > { %v1717_v40 = vld [vmem:[%s2097_s1 + $0x48] sm:$0xff]   ;;  %v1718_v41 = vld [vmem:[%s2097_s1 + $0x10] sm:$0xff]   ;;  %v1720_v43 = vld [vmem:[%s2097_s1 + $0x18] sm:$0xff]  }
  0x13   : > { %1499 = vmatpush3.bf16.msra.mxu0 %v1684_v7  ;;  %v1719_v42 = vld [vmem:[%s2097_s1 + $0x50] sm:$0xff]   ;;  %v1721_v44 = vld [vmem:[%s2097_s1 + $0x58] sm:$0xff]   ;;  %v1722_v45 = vld [vmem:[%s2097_s1 + $0x20] sm:$0xff]  }
  0x14   : > { %1519 = vmatpush3.bf16.msra.mxu1 %v1685_v8  ;;  %1500 = vmatprep.subr.bf16.mxu0 %v1760_v1  ;;  %v1723_v46 = vld [vmem:[%s2097_s1 + $0x60] sm:$0xff]   ;;  %v1724_v47 = vld [vmem:[%s2097_s1 + $0x28] sm:$0xff]   ;;  %v1726_v49 = vld [vmem:[%s2097_s1 + $0x30] sm:$0xff]  }
  0x15   : > { %1520 = vmatprep.subr.bf16.mxu1 %v1760_v1  ;;  %v1725_v48 = vld [vmem:[%s2097_s1 + $0x68] sm:$0xff]   ;;  %v1727_v50 = vld [vmem:[%s2097_s1 + $0x70] sm:$0xff]   ;;  %v1728_v51 = vld [vmem:[%s2097_s1 + $0x38] sm:$0xff]  }
  0x16   : > { %v1729_v52 = vld [vmem:[%s2097_s1 + $0x78] sm:$0xff]   ;;  %v1730_v53 = vld [vmem:[%s1928_s5] sm:$0xff]   ;;  %v1731_v54 = vld [vmem:[%s1928_s5 + $0x8] sm:$0xff]  }
  0x17   : > { %1501 = vmatpush3.bf16.msra.mxu0 %v1686_v9  ;;  %v1732_v55 = vld [vmem:[%s2097_s1 + $0x80] sm:$0xff]   ;;  %v1734_v57 = vld [vmem:[%s2097_s1 + $0x88] sm:$0xff]   ;;  %v1736_v59 = vld [vmem:[%s2097_s1 + $0x90] sm:$0xff]  }
  0x18   : > { %1521 = vmatpush3.bf16.msra.mxu1 %v1687_v10  ;;  %1502 = vmatprep.subr.bf16.mxu0 %v1760_v1  ;;  %v1733_v56 = vld [vmem:[%s2097_s1 + $0xc0] sm:$0xff]   ;;  %v1735_v58 = vld [vmem:[%s2097_s1 + $0xc8] sm:$0xff]   ;;  %v1737_v60 = vld [vmem:[%s2097_s1 + $0xd0] sm:$0xff]  }
  0x19   : > { %1522 = vmatprep.subr.bf16.mxu1 %v1760_v1  ;;  %v1738_v61 = vld [vmem:[%s2097_s1 + $0x98] sm:$0xff]   ;;  %v1740_v63 = vld [vmem:[%s2097_s1 + $0xa0] sm:$0xff]   ;;  %v1742_v2 = vld [vmem:[%s2097_s1 + $0xa8] sm:$0xff]  }
  0x1a   : > { %v1739_v62 = vld [vmem:[%s2097_s1 + $0xd8] sm:$0xff]   ;;  %v1741_v0 = vld [vmem:[%s2097_s1 + $0xe0] sm:$0xff]   ;;  %v1743_v3 = vld [vmem:[%s2097_s1 + $0xe8] sm:$0xff]  }
  0x1b   : > { %1503 = vmatpush3.bf16.msra.mxu0 %v1688_v11  ;;  %v1744_v4 = vld [vmem:[%s2097_s1 + $0xb0] sm:$0xff]   ;;  %v1746_v6 = vld [vmem:[%s2097_s1 + $0xb8] sm:$0xff]  }
  0x1c   : > { %1523 = vmatpush3.bf16.msra.mxu1 %v1689_v12  ;;  %1504 = vmatprep.subr.bf16.mxu0 %v1760_v1  ;;  %v1745_v5 = vld [vmem:[%s2097_s1 + $0xf0] sm:$0xff]   ;;  %v1747_v7 = vld [vmem:[%s2097_s1 + $0xf8] sm:$0xff]  }
  0x1d   : > { %1524 = vmatprep.subr.bf16.mxu1 %v1760_v1  ;;  %v1748_v8 = vld [vmem:[%s1928_s5 + $0x10] sm:$0xff]   ;;  %v1749_v9 = vld [vmem:[%s1928_s5 + $0x18] sm:$0xff]  }
  0x1f   : > { %1505 = vmatpush3.bf16.msra.mxu0 %v1690_v13 }
  0x20   : > { %1525 = vmatpush3.bf16.msra.mxu1 %v1691_v14  ;;  %1506 = vmatprep.subr.bf16.mxu0 %v1760_v1 }
  0x21   : > { %1526 = vmatprep.subr.bf16.mxu1 %v1760_v1 }
  0x23   : > { %1507 = vmatpush3.bf16.msra.mxu0 %v1692_v15 }
  0x24   : > { %1527 = vmatpush3.bf16.msra.mxu1 %v1693_v16  ;;  %1532 = vmatprep.subr.bf16.mxu0 %v1760_v1 }
  0x25   : > { %1552 = vmatprep.subr.bf16.mxu1 %v1760_v1 }
  0x26   : > { %1509 = vmatmul.mubr.bf16.vlgmr.msra.gmra.mrb[0].mxu0 %v1694_v17 }
  0x27   : > { %1529 = vmatmul.mubr.bf16.vlgmr.msra.gmra.mrb[0].mxu1 %v1695_v18  ;;  %1533 = vmatpush3.bf16.msra.mxu0 %v1696_v19 }
  0x28   : > { %1553 = vmatpush3.bf16.msra.mxu1 %v1697_v20  ;;  %1534 = vmatprep.subr.bf16.mxu0 %v1760_v1 }
  0x29   : > { %1554 = vmatprep.subr.bf16.mxu1 %v1760_v1  ;;  %1548 = vmatprep.mubr.msk.bf16.mxu0 %vm1761_vm0, %v1760_v1 }
  0x2a   : > { %1568 = vmatprep.mubr.msk.bf16.mxu1 %vm1761_vm0, %v1760_v1 }
  0x2b   : > { %1535 = vmatpush3.bf16.msra.mxu0 %v1698_v21 }
  0x2c   : > { %1555 = vmatpush3.bf16.msra.mxu1 %v1699_v22  ;;  %1536 = vmatprep.subr.bf16.mxu0 %v1760_v1 }
  0x2d   : > { %1556 = vmatprep.subr.bf16.mxu1 %v1760_v1 }
  0x2f   : > { %1537 = vmatpush3.bf16.msra.mxu0 %v1700_v23 }
  0x30   : > { %1557 = vmatpush3.bf16.msra.mxu1 %v1701_v24  ;;  %1538 = vmatprep.subr.bf16.mxu0 %v1760_v1 }
  0x31   : > { %1558 = vmatprep.subr.bf16.mxu1 %v1760_v1 }
  0x33   : > { %1539 = vmatpush3.bf16.msra.mxu0 %v1702_v25 }
  0x34   : > { %1559 = vmatpush3.bf16.msra.mxu1 %v1703_v26  ;;  %1540 = vmatprep.subr.bf16.mxu0 %v1760_v1 }
  0x35   : > { %1560 = vmatprep.subr.bf16.mxu1 %v1760_v1 }
  0x37   : > { %1541 = vmatpush3.bf16.msra.mxu0 %v1704_v27 }
  0x38   : > { %1561 = vmatpush3.bf16.msra.mxu1 %v1705_v28  ;;  %1542 = vmatprep.subr.bf16.mxu0 %v1760_v1 }
  0x39   : > { %1562 = vmatprep.subr.bf16.mxu1 %v1760_v1 }
  0x3b   : > { %1543 = vmatpush3.bf16.msra.mxu0 %v1706_v29 }
  0x3c   : > { %1563 = vmatpush3.bf16.msra.mxu1 %v1707_v30  ;;  %1544 = vmatprep.subr.bf16.mxu0 %v1760_v1 }
  0x3d   : > { %1564 = vmatprep.subr.bf16.mxu1 %v1760_v1 }
  0x3f   : > { %1545 = vmatpush3.bf16.msra.mxu0 %v1708_v31 }
  0x40   : > { %1565 = vmatpush3.bf16.msra.mxu1 %v1709_v32  ;;  %1546 = vmatprep.subr.bf16.mxu0 %v1760_v1 }
  0x41   : > { %1566 = vmatprep.subr.bf16.mxu1 %v1760_v1 }
  0x43   : > { %1547 = vmatpush3.bf16.msra.mxu0 %v1710_v33 }
  0x44   : > { %1567 = vmatpush3.bf16.msra.mxu1 %v1711_v34  ;;  %1572 = vmatprep.subr.bf16.mxu0 %v1760_v1 }
  0x45   : > { %1592 = vmatprep.subr.bf16.mxu1 %v1760_v1 }
  0x46   : > { %1549 = vmatmul.mubr.bf16.vlgmr.msra.gmra.mrb[4].mxu0 %v1712_v35 }
  0x47   : > { %1569 = vmatmul.mubr.bf16.vlgmr.msra.gmra.mrb[4].mxu1 %v1713_v36  ;;  %1573 = vmatpush3.bf16.msra.mxu0 %v1714_v37 }
  0x48   : > { %1593 = vmatpush3.bf16.msra.mxu1 %v1715_v38  ;;  %1574 = vmatprep.subr.bf16.mxu0 %v1760_v1 }
  0x49   : > { %1594 = vmatprep.subr.bf16.mxu1 %v1760_v1  ;;  %1588 = vmatprep.mubr.msk.bf16.mxu0 %vm1761_vm0, %v1760_v1 }
  0x4a   : > { %1608 = vmatprep.mubr.msk.bf16.mxu1 %vm1761_vm0, %v1760_v1 }
  0x4b   : > { %1575 = vmatpush3.bf16.msra.mxu0 %v1716_v39 }
  0x4c   : > { %1595 = vmatpush3.bf16.msra.mxu1 %v1717_v40  ;;  %1576 = vmatprep.subr.bf16.mxu0 %v1760_v1 }
  0x4d   : > { %1596 = vmatprep.subr.bf16.mxu1 %v1760_v1 }
  0x4f   : > { %1577 = vmatpush3.bf16.msra.mxu0 %v1718_v41 }
  0x50   : > { %1597 = vmatpush3.bf16.msra.mxu1 %v1719_v42  ;;  %1578 = vmatprep.subr.bf16.mxu0 %v1760_v1 }
  0x51   : > { %1598 = vmatprep.subr.bf16.mxu1 %v1760_v1 }
  0x53   : > { %1579 = vmatpush3.bf16.msra.mxu0 %v1720_v43 }
  0x54   : > { %1599 = vmatpush3.bf16.msra.mxu1 %v1721_v44  ;;  %1580 = vmatprep.subr.bf16.mxu0 %v1760_v1 }
  0x55   : > { %1600 = vmatprep.subr.bf16.mxu1 %v1760_v1 }
  0x57   : > { %1581 = vmatpush3.bf16.msra.mxu0 %v1722_v45 }
  0x58   : > { %1601 = vmatpush3.bf16.msra.mxu1 %v1723_v46  ;;  %1582 = vmatprep.subr.bf16.mxu0 %v1760_v1 }
  0x59   : > { %1602 = vmatprep.subr.bf16.mxu1 %v1760_v1 }
  0x5b   : > { %1583 = vmatpush3.bf16.msra.mxu0 %v1724_v47 }
  0x5c   : > { %1603 = vmatpush3.bf16.msra.mxu1 %v1725_v48  ;;  %1584 = vmatprep.subr.bf16.mxu0 %v1760_v1 }
  0x5d   : > { %1604 = vmatprep.subr.bf16.mxu1 %v1760_v1 }
  0x5f   : > { %1585 = vmatpush3.bf16.msra.mxu0 %v1726_v49 }
  0x60   : > { %1605 = vmatpush3.bf16.msra.mxu1 %v1727_v50  ;;  %1586 = vmatprep.subr.bf16.mxu0 %v1760_v1 }
  0x61   : > { %1606 = vmatprep.subr.bf16.mxu1 %v1760_v1 }
  0x63   : > { %1587 = vmatpush3.bf16.msra.mxu0 %v1728_v51 }
  0x64   : > { %1607 = vmatpush3.bf16.msra.mxu1 %v1729_v52  ;;  %1612 = vmatprep.subr.bf16.mxu0 %v1760_v1 }
  0x65   : > { %1632 = vmatprep.subr.bf16.mxu1 %v1760_v1 }
  0x66   : > { %1589 = vmatmul.mubr.bf16.vlgmr.msra.gmra.mrb[0].mxu0 %v1730_v53 }
  0x67   : > { %1609 = vmatmul.mubr.bf16.vlgmr.msra.gmra.mrb[0].mxu1 %v1731_v54  ;;  %1613 = vmatpush3.bf16.msra.mxu0 %v1732_v55 }
  0x68   : > { %1633 = vmatpush3.bf16.msra.mxu1 %v1733_v56  ;;  %1614 = vmatprep.subr.bf16.mxu0 %v1760_v1 }
  0x69   : > { %1634 = vmatprep.subr.bf16.mxu1 %v1760_v1  ;;  %1628 = vmatprep.mubr.msk.bf16.mxu0 %vm1761_vm0, %v1760_v1 }
  0x6a   : > { %1648 = vmatprep.mubr.msk.bf16.mxu1 %vm1761_vm0, %v1760_v1 }
  0x6b   : > { %1615 = vmatpush3.bf16.msra.mxu0 %v1734_v57 }
  0x6c   : > { %1635 = vmatpush3.bf16.msra.mxu1 %v1735_v58  ;;  %1616 = vmatprep.subr.bf16.mxu0 %v1760_v1 }
  0x6d   : > { %1636 = vmatprep.subr.bf16.mxu1 %v1760_v1 }
  0x6f   : > { %1617 = vmatpush3.bf16.msra.mxu0 %v1736_v59 }
  0x70   : > { %1637 = vmatpush3.bf16.msra.mxu1 %v1737_v60  ;;  %1618 = vmatprep.subr.bf16.mxu0 %v1760_v1 }
  0x71   : > { %1638 = vmatprep.subr.bf16.mxu1 %v1760_v1 }
  0x73   : > { %1619 = vmatpush3.bf16.msra.mxu0 %v1738_v61 }
  0x74   : > { %1639 = vmatpush3.bf16.msra.mxu1 %v1739_v62  ;;  %1620 = vmatprep.subr.bf16.mxu0 %v1760_v1 }
  0x75   : > { %1640 = vmatprep.subr.bf16.mxu1 %v1760_v1 }
  0x77   : > { %1621 = vmatpush3.bf16.msra.mxu0 %v1740_v63 }
  0x78   : > { %1641 = vmatpush3.bf16.msra.mxu1 %v1741_v0  ;;  %1622 = vmatprep.subr.bf16.mxu0 %v1760_v1 }
  0x79   : > { %1642 = vmatprep.subr.bf16.mxu1 %v1760_v1 }
  0x7b   : > { %1623 = vmatpush3.bf16.msra.mxu0 %v1742_v2 }
  0x7c   : > { %1643 = vmatpush3.bf16.msra.mxu1 %v1743_v3  ;;  %1624 = vmatprep.subr.bf16.mxu0 %v1760_v1 }
  0x7d   : > { %1644 = vmatprep.subr.bf16.mxu1 %v1760_v1 }
  0x7f   : > { %1625 = vmatpush3.bf16.msra.mxu0 %v1744_v4 }
  0x80   : > { %1645 = vmatpush3.bf16.msra.mxu1 %v1745_v5  ;;  %1626 = vmatprep.subr.bf16.mxu0 %v1760_v1 }
  0x81   : > { %1646 = vmatprep.subr.bf16.mxu1 %v1760_v1 }
  0x83   : > { %1627 = vmatpush3.bf16.msra.mxu0 %v1746_v6 }
  0x84   : > { %1647 = vmatpush3.bf16.msra.mxu1 %v1747_v7 }
  0x86   : > { %1629 = vmatmul.mubr.bf16.vlgmr.msra.gmra.mrb[4].mxu0 %v1748_v8 }
  0x87   : > { %1649 = vmatmul.mubr.bf16.vlgmr.msra.gmra.mrb[4].mxu1 %v1749_v9 }
 0x139   : > { %v831_v10 = vpop.f32.mrb[0].mxu0 }
 0x13a   : > { %v926_v11 = vpop.f32.mrb[0].mxu1  ;;  %v1590_v12 = vpop.f32.mrb[1].mxu0 }
 0x13b   : > { %v1610_v13 = vpop.f32.mrb[1].mxu1  ;;  %v834_v14 = vpop.f32.mrb[2].mxu0 }
 0x13c   : > { %v1123_v15 = vadd.f32 %v834_v14, %v831_v10  ;;  %v929_v16 = vpop.f32.mrb[2].mxu1  ;;  %v1591_v17 = vpop.f32.mrb[3].mxu0 }
 0x13d   : > { %v1611_v18 = vpop.f32.mrb[3].mxu1 }
 0x13e   : > { %v1124_v19 = vadd.f32 %v1123_v15, %v926_v11 }
 0x140   : > { %v1125_v20 = vadd.f32 %v1124_v19, %v929_v16 }
 0x159   : > { %v1021_v21 = vpop.f32.mrb[4].mxu0 }
 0x15a   : > { %v1126_v22 = vadd.f32 %v1125_v20, %v1021_v21  ;;  %v1116_v1 = vpop.f32.mrb[4].mxu1  ;;  %v1630_v23 = vpop.f32.mrb[5].mxu0 }
 0x15b   : > { %v1650_v24 = vpop.f32.mrb[5].mxu1  ;;  %v1024_v25 = vpop.f32.mrb[6].mxu0 }
 0x15c   : > { %v1127_v26 = vadd.f32 %v1126_v22, %v1024_v25  ;;  %v1119_v27 = vpop.f32.mrb[6].mxu1  ;;  %v1631_v28 = vpop.f32.mrb[7].mxu0 }
 0x15d   : > { %v1651_v29 = vpop.f32.mrb[7].mxu1 }
 0x15e   : > { %v1128_v30 = vadd.f32 %v1127_v26, %v1116_v1 }
 0x160   : > { %v1129_v31 = vadd.f32 %v1128_v30, %v1119_v27 }
 0x162   : > { %v1130_v32 = vrot.slane %v1129_v31, 4 }
 0x164   : > { %v1131_v33 = vadd.f32 %v1130_v32, %v1129_v31 }
 0x166   : > { %v1132_v34 = vrot.slane %v1131_v33, 2 }
 0x168   : > { %v1133_v35 = vadd.f32 %v1132_v34, %v1131_v33 }
 0x16a   : > { %v1134_v36 = vrot.slane %v1133_v35, 1 }
 0x16c   : > { %v1135_v37 = vadd.f32 %v1134_v36, %v1133_v35 }
 0x16e   : > { %v1137_v38 = vmul.f32 0.015625, %v1135_v37 }
 0x170   : > { %v1138_v39 = vsub.f32 %v831_v10, %v1137_v38  ;;  %v1139_v40 = vsub.f32 %v834_v14, %v1137_v38  ;;  %v1140_v41 = vsub.f32 %v926_v11, %v1137_v38  ;;  %v1141_v42 = vsub.f32 %v929_v16, %v1137_v38 }
 0x171   : > { %v1142_v43 = vsub.f32 %v1021_v21, %v1137_v38  ;;  %v1143_v44 = vsub.f32 %v1024_v25, %v1137_v38  ;;  %v1144_v45 = vsub.f32 %v1116_v1, %v1137_v38  ;;  %v1145_v46 = vsub.f32 %v1119_v27, %v1137_v38 }
 0x172   : > { %v1146_v47 = vmul.f32 %v1138_v39, %v1138_v39  ;;  %v1147_v48 = vmul.f32 %v1139_v40, %v1139_v40  ;;  %v1148_v49 = vmul.f32 %v1140_v41, %v1140_v41  ;;  %v1149_v51 = vmul.f32 %v1141_v42, %v1141_v42 }
 0x173   : > { %v1150_v53 = vmul.f32 %v1142_v43, %v1142_v43  ;;  %v1151_v55 = vmul.f32 %v1143_v44, %v1143_v44  ;;  %v1152_v57 = vmul.f32 %v1144_v45, %v1144_v45  ;;  %v1153_v59 = vmul.f32 %v1145_v46, %v1145_v46 }
 0x174   : > { %v1154_v50 = vadd.f32 %v1147_v48, %v1146_v47 }
 0x176   : > { %v1155_v52 = vadd.f32 %v1154_v50, %v1148_v49 }
 0x178   : > { %v1156_v54 = vadd.f32 %v1155_v52, %v1149_v51 }
 0x17a   : > { %v1157_v56 = vadd.f32 %v1156_v54, %v1150_v53 }
 0x17c   : > { %v1158_v58 = vadd.f32 %v1157_v56, %v1151_v55 }
 0x17e   : > { %v1159_v60 = vadd.f32 %v1158_v58, %v1152_v57 }
 0x180   : > { %v1160_v61 = vadd.f32 %v1159_v60, %v1153_v59 }
 0x182   : > { %v1161_v62 = vrot.slane %v1160_v61, 4 }
 0x184   : > { %v1162_v63 = vadd.f32 %v1161_v62, %v1160_v61 }
 0x186   : > { %v1163_v0 = vrot.slane %v1162_v63, 2 }
 0x188   : > { %v1164_v2 = vadd.f32 %v1163_v0, %v1162_v63 }
 0x18a   : > { %v1165_v3 = vrot.slane %v1164_v2, 1 }
 0x18c   : > { %v1166_v4 = vadd.f32 %v1165_v3, %v1164_v2 }
 0x18e   : > { %v1167_v5 = vmul.f32 0.015625, %v1166_v4 }
 0x190   : > { %v1168_v6 = vadd.f32 1e-05, %v1167_v5 }
 0x192   : > { %1750 = vrsqrt.f32 %v1168_v6 }
 0x19c   : > { %v1751_v7 = vpop.eup %1750 }
 0x19d   : > { %v1170_v8 = vmul.f32 %v1751_v7, %v1138_v39  ;;  %v1171_v9 = vmul.f32 %v1751_v7, %v1139_v40  ;;  %v1172_v10 = vmul.f32 %v1751_v7, %v1140_v41  ;;  %v1173_v11 = vmul.f32 %v1751_v7, %v1141_v42 }
 0x19e   : > { %v1174_v12 = vmul.f32 %v1751_v7, %v1142_v43  ;;  %v1175_v13 = vmul.f32 %v1751_v7, %v1143_v44  ;;  %v1176_v14 = vmul.f32 %v1751_v7, %v1144_v45  ;;  %v1177_v15 = vmul.f32 %v1751_v7, %v1145_v46 }
 0x19f   : > { %v1178_v16 = vmax.f32 %v1170_v8, 0.0  ;;  %v1179_v17 = vmax.f32 %v1171_v9, 0.0  ;;  %v1180_v18 = vmax.f32 %v1172_v10, 0.0  ;;  %v1181_v19 = vmax.f32 %v1173_v11, 0.0 }
 0x1a0   : > { %v1182_v20 = vmax.f32 %v1174_v12, 0.0  ;;  %v1183_v21 = vmax.f32 %v1175_v13, 0.0  ;;  %v1184_v22 = vmax.f32 %v1176_v14, 0.0  ;;  %v1185_v1 = vmax.f32 %v1177_v15, 0.0 }
 0x1a1   : > { %v1400_v23 = vpack.c.bf16 %v1179_v17, %v1178_v16  ;;  %v1405_v24 = vpack.c.bf16 %v1181_v19, %v1180_v18 }
 0x1a2   : > { %v1410_v25 = vpack.c.bf16 %v1183_v21, %v1182_v20  ;;  %v1415_v26 = vpack.c.bf16 %v1185_v1, %v1184_v22 }
 0x1a3   : > { %1401 = vst [vmem:[%s217_s11] sm:$0xff] %v1400_v23   ;;  %1417 = vst [vmem:[%s217_s11 + $0x8] sm:$0xff] %v1405_v24  }
 0x1a4   : > { %1418 = vst [vmem:[%s217_s11 + $0x10] sm:$0xff] %v1410_v25   ;;  %1419 = vst [vmem:[%s217_s11 + $0x18] sm:$0xff] %v1415_v26  }
 0x1a5 PF: > { %s14_s15 = sadd.s32 1, %s1758_s15  }
 0x1a6   : > { %p11_p4 = scmp.ge.s32.totalorder %s14_s15, 4  }
 0x1a8   :  { %13 = sbr.rel (!%p11_p4) target bundleno = 1 (0x1), region = 69 }

// kernel: _lambda_.18
= control target key start
LH: loop header
LB: loop body
LE: loop exit
PB: predicated region body
PF: predicated region fallthrough
CT: control target
= control target key end

     0   :  { %s2352_s15 = smov 0   ;;  %s2816_s0 = inlined_call_operand.vmem [shape: bf16[2,4,64,64], index: 0, kind: input, shape index: {}]   ;;  %s2817_s1 = inlined_call_operand.vmem [shape: bf16[4,64,128], index: 1, kind: input, shape index: {}]   ;;  %s2818_s2 = inlined_call_operand.vmem [shape: bf16[2,4,64,64], index: 2, kind: input, shape index: {}]   ;;  %s2819_s3 = inlined_call_operand.vmem [shape: bf16[4,64,128], index: 3, kind: input, shape index: {}]   ;;  %s2820_s4 = inlined_call_operand.vmem [shape: bf16[2,4,64,128], index: 4, kind: output, shape index: {}]  }
   0x1 LB: > { %s1750_s16 = sadd.s32 4294967295, %s2325_s15   ;;  %p1754_p0 = scmp.ge.s32.totalorder %s2325_s15, 1  ;;  %s2325_s15 = sphi %s2352_s15, %s14_s15  }
   0x2   : > { %p172_p1 = scmp.lt.s32.totalorder %s2325_s15, 3 }
   0x4   : > { %p173_p2 = pnand %p1754_p0, %p172_p1 }
   0x5   : > { %v2253_v0 = vld [vmem:[%s2819_s3] sm:$0xff] (!%p173_p2)   ;;  %p203_p3 = scmp.lt.s32.totalorder (!%p173_p2), %s1750_s16, 1  ;;  %v2255_v2 = vld [vmem:[%s2819_s3 + $0x8] sm:$0xff] (!%p173_p2)   ;;  %v2257_v4 = vld [vmem:[%s2819_s3 + $0x10] sm:$0xff] (!%p173_p2)   ;;  %vm391_vm0 = vcmask (!%p173_p2), 523264  }
   0x6   : > { %176 = sbr.rel (%p173_p2) target bundleno = 470 (0x1d6), region = 36  ;;  %v2254_v1 = vld [vmem:[%s2819_s3 + $0x20] sm:$0xff] (!%p173_p2)   ;;  %2085 = vmatprep.subr.bf16.mxu0 (!%p173_p2), %v2253_v0  ;;  %v2256_v3 = vld [vmem:[%s2819_s3 + $0x28] sm:$0xff] (!%p173_p2)   ;;  %v2258_v5 = vld [vmem:[%s2819_s3 + $0x30] sm:$0xff] (!%p173_p2)  }
   0x7   : > { %2101 = vmatprep.subr.bf16.mxu1 (!%p173_p2), %v2254_v1  ;;  %2086 = vmatpush3.bf16.msra.mxu0 (!%p173_p2), %v2253_v0  ;;  %v2259_v6 = vld [vmem:[%s2819_s3 + $0x18] sm:$0xff] (!%p173_p2)   ;;  %v2265_v11 = vld [vmem:[%s2819_s3 + $0x40] sm:$0xff] (!%p173_p2)   ;;  %v2267_v14 = vld [vmem:[%s2819_s3 + $0x48] sm:$0xff] (!%p173_p2)  }
   0x8   : > { %2102 = vmatpush3.bf16.msra.mxu1 (!%p173_p2), %v2254_v1  ;;  %2087 = vmatprep.subr.bf16.mxu0 (!%p173_p2), %v2255_v2  ;;  %v2260_v7 = vld [vmem:[%s2819_s3 + $0x38] sm:$0xff] (!%p173_p2)   ;;  %v2266_v12 = vld [vmem:[%s2819_s3 + $0x60] sm:$0xff] (!%p173_p2)   ;;  %v2268_v15 = vld [vmem:[%s2819_s3 + $0x68] sm:$0xff] (!%p173_p2)  }
   0x9   : > { %2103 = vmatprep.subr.bf16.mxu1 (!%p173_p2), %v2256_v3  ;;  %v2273_v19 = vld [vmem:[%s2819_s3 + $0x50] sm:$0xff] (!%p173_p2)   ;;  %v2275_v22 = vld [vmem:[%s2819_s3 + $0x58] sm:$0xff] (!%p173_p2)   ;;  %v2281_v27 = vld [vmem:[%s2817_s1] sm:$0xff] (!%p173_p2)  }
   0xa   : > { %v2274_v20 = vld [vmem:[%s2819_s3 + $0x70] sm:$0xff] (!%p173_p2)   ;;  %v2276_v23 = vld [vmem:[%s2819_s3 + $0x78] sm:$0xff] (!%p173_p2)   ;;  %v2282_v28 = vld [vmem:[%s2817_s1 + $0x20] sm:$0xff] (!%p173_p2)  }
   0xb   : > { %2088 = vmatpush3.bf16.msra.mxu0 (!%p173_p2), %v2255_v2  ;;  %v2283_v30 = vld [vmem:[%s2817_s1 + $0x8] sm:$0xff] (!%p173_p2)   ;;  %v2289_v35 = vld [vmem:[%s2817_s1 + $0x10] sm:$0xff] (!%p173_p2)   ;;  %v2291_v38 = vld [vmem:[%s2817_s1 + $0x18] sm:$0xff] (!%p173_p2)  }
   0xc   : > { %2104 = vmatpush3.bf16.msra.mxu1 (!%p173_p2), %v2256_v3  ;;  %2089 = vmatprep.subr.bf16.mxu0 (!%p173_p2), %v2257_v4  ;;  %v2284_v31 = vld [vmem:[%s2817_s1 + $0x28] sm:$0xff] (!%p173_p2)   ;;  %v2290_v36 = vld [vmem:[%s2817_s1 + $0x30] sm:$0xff] (!%p173_p2)   ;;  %v2292_v39 = vld [vmem:[%s2817_s1 + $0x38] sm:$0xff] (!%p173_p2)  }
   0xd   : > { %s2822_s16 = smov (!%p203_p3, %s1750_s16), 1  ;;  %2105 = vmatprep.subr.bf16.mxu1 %v2258_v5  ;;  %v2297_v43 = vld [vmem:[%s2817_s1 + $0x40] sm:$0xff]   ;;  %v2299_v46 = vld [vmem:[%s2817_s1 + $0x48] sm:$0xff]   ;;  %v2305_v51 = vld [vmem:[%s2817_s1 + $0x50] sm:$0xff]  }
   0xe   : > { %s2375_s27 = sshll.u32 %s2822_s16, 7  ;;  %v2298_v44 = vld [vmem:[%s2817_s1 + $0x60] sm:$0xff]   ;;  %v2300_v47 = vld [vmem:[%s2817_s1 + $0x68] sm:$0xff]   ;;  %v2306_v52 = vld [vmem:[%s2817_s1 + $0x70] sm:$0xff]  }
   0xf   : > { %s2384_s6 = scalar_lea.vmem %s2818_s2, %s2375_s27  ;;  %2090 = vmatpush3.bf16.msra.mxu0 %v2257_v4  ;;  %s2466_s19 = scalar_lea.vmem %s2816_s0, %s2375_s27  ;;  %v2307_v54 = vld [vmem:[%s2817_s1 + $0x58] sm:$0xff]  }
  0x10   : > { %v2261_v8 = vld [vmem:[%s2384_s6] sm:$0xff]   ;;  %2106 = vmatpush3.bf16.msra.mxu1 %v2258_v5  ;;  %2091 = vmatprep.subr.bf16.mxu0 %v2259_v6  ;;  %v2263_v10 = vld [vmem:[%s2384_s6 + $0x8] sm:$0xff]   ;;  %v2269_v16 = vld [vmem:[%s2384_s6 + $0x10] sm:$0xff]   ;;  %s2795_s18 = scalar_lea.vmem %s2820_s4, %s2375_s27 }
  0x11   : > { %v2262_v9 = vld [vmem:[%s2384_s6 + $0x20] sm:$0xff]   ;;  %2093 = vmatprep.mubr.msk.bf16.mxu0 %vm391_vm0, %v2261_v8  ;;  %2107 = vmatprep.subr.bf16.mxu1 %v2260_v7  ;;  %v2264_v13 = vld [vmem:[%s2384_s6 + $0x28] sm:$0xff]   ;;  %v2270_v17 = vld [vmem:[%s2384_s6 + $0x30] sm:$0xff]  }
  0x12   : > { %2109 = vmatprep.mubr.msk.bf16.mxu1 %vm391_vm0, %v2262_v9  ;;  %v2271_v18 = vld [vmem:[%s2384_s6 + $0x18] sm:$0xff]   ;;  %v2277_v24 = vld [vmem:[%s2384_s6 + $0x40] sm:$0xff]   ;;  %v2279_v26 = vld [vmem:[%s2384_s6 + $0x48] sm:$0xff]  }
  0x13   : > { %2092 = vmatpush3.bf16.msra.mxu0 %v2259_v6  ;;  %v2272_v21 = vld [vmem:[%s2384_s6 + $0x38] sm:$0xff]   ;;  %v2278_v25 = vld [vmem:[%s2384_s6 + $0x60] sm:$0xff]   ;;  %v2280_v29 = vld [vmem:[%s2384_s6 + $0x68] sm:$0xff]  }
  0x14   : > { %2108 = vmatpush3.bf16.msra.mxu1 %v2260_v7  ;;  %2117 = vmatprep.subr.bf16.mxu0 %v2265_v11  ;;  %v2285_v32 = vld [vmem:[%s2384_s6 + $0x50] sm:$0xff]   ;;  %v2287_v34 = vld [vmem:[%s2384_s6 + $0x58] sm:$0xff]   ;;  %v2293_v40 = vld [vmem:[%s2466_s19] sm:$0xff]  }
  0x15   : > { %2133 = vmatprep.subr.bf16.mxu1 %v2266_v12  ;;  %v2286_v33 = vld [vmem:[%s2384_s6 + $0x70] sm:$0xff]   ;;  %v2288_v37 = vld [vmem:[%s2384_s6 + $0x78] sm:$0xff]   ;;  %v2294_v41 = vld [vmem:[%s2466_s19 + $0x20] sm:$0xff]  }
  0x16   : > { %2094 = vmatmul.mubr.msk.bf16.vlgmr.msra.gmra.mrb[0].mxu0 %vm391_vm0, %v2263_v10  ;;  %v2295_v42 = vld [vmem:[%s2466_s19 + $0x8] sm:$0xff]   ;;  %v2301_v48 = vld [vmem:[%s2466_s19 + $0x10] sm:$0xff]   ;;  %v2303_v50 = vld [vmem:[%s2466_s19 + $0x18] sm:$0xff]  }
  0x17   : > { %2110 = vmatmul.mubr.msk.bf16.vlgmr.msra.gmra.mrb[0].mxu1 %vm391_vm0, %v2264_v13  ;;  %2118 = vmatpush3.bf16.msra.mxu0 %v2265_v11  ;;  %v2296_v45 = vld [vmem:[%s2466_s19 + $0x28] sm:$0xff]   ;;  %v2302_v49 = vld [vmem:[%s2466_s19 + $0x30] sm:$0xff]   ;;  %v2304_v53 = vld [vmem:[%s2466_s19 + $0x38] sm:$0xff]  }
  0x18   : > { %2134 = vmatpush3.bf16.msra.mxu1 %v2266_v12  ;;  %2119 = vmatprep.subr.bf16.mxu0 %v2267_v14  ;;  %v2308_v55 = vld [vmem:[%s2817_s1 + $0x78] sm:$0xff]   ;;  %v2309_v56 = vld [vmem:[%s2466_s19 + $0x40] sm:$0xff]   ;;  %v2311_v58 = vld [vmem:[%s2466_s19 + $0x48] sm:$0xff]  }
  0x19   : > { %2135 = vmatprep.subr.bf16.mxu1 %v2268_v15  ;;  %2097 = vmatprep.mubr.msk.bf16.mxu0 %vm391_vm0, %v2269_v16  ;;  %v2310_v57 = vld [vmem:[%s2466_s19 + $0x60] sm:$0xff]   ;;  %v2312_v59 = vld [vmem:[%s2466_s19 + $0x68] sm:$0xff]   ;;  %v2313_v60 = vld [vmem:[%s2466_s19 + $0x50] sm:$0xff]  }
  0x1a   : > { %2113 = vmatprep.mubr.msk.bf16.mxu1 %vm391_vm0, %v2270_v17  ;;  %v2314_v61 = vld [vmem:[%s2466_s19 + $0x70] sm:$0xff]   ;;  %v2315_v62 = vld [vmem:[%s2466_s19 + $0x58] sm:$0xff]  }
  0x1b   : > { %2120 = vmatpush3.bf16.msra.mxu0 %v2267_v14  ;;  %v2316_v63 = vld [vmem:[%s2466_s19 + $0x78] sm:$0xff]  }
  0x1c   : > { %2136 = vmatpush3.bf16.msra.mxu1 %v2268_v15  ;;  %2121 = vmatprep.subr.bf16.mxu0 %v2273_v19 }
  0x1d   : > { %2137 = vmatprep.subr.bf16.mxu1 %v2274_v20 }
  0x1e   : > { %2098 = vmatmul.mubr.msk.bf16.gmra.mrb[4].mxu0 %vm391_vm0, %v2271_v18 }
  0x1f   : > { %2114 = vmatmul.mubr.msk.bf16.gmra.mrb[4].mxu1 %vm391_vm0, %v2272_v21  ;;  %2122 = vmatpush3.bf16.msra.mxu0 %v2273_v19 }
  0x20   : > { %2138 = vmatpush3.bf16.msra.mxu1 %v2274_v20  ;;  %2123 = vmatprep.subr.bf16.mxu0 %v2275_v22 }
  0x21   : > { %2139 = vmatprep.subr.bf16.mxu1 %v2276_v23  ;;  %2125 = vmatprep.mubr.msk.bf16.mxu0 %vm391_vm0, %v2277_v24 }
  0x22   : > { %2141 = vmatprep.mubr.msk.bf16.mxu1 %vm391_vm0, %v2278_v25 }
  0x23   : > { %2124 = vmatpush3.bf16.msra.mxu0 %v2275_v22 }
  0x24   : > { %2140 = vmatpush3.bf16.msra.mxu1 %v2276_v23  ;;  %2149 = vmatprep.subr.bf16.mxu0 %v2281_v27 }
  0x25   : > { %2165 = vmatprep.subr.bf16.mxu1 %v2282_v28 }
  0x26   : > { %2126 = vmatmul.mubr.msk.bf16.vlgmr.msra.gmra.mrb[8].mxu0 %vm391_vm0, %v2279_v26 }
  0x27   : > { %2142 = vmatmul.mubr.msk.bf16.vlgmr.msra.gmra.mrb[8].mxu1 %vm391_vm0, %v2280_v29  ;;  %2150 = vmatpush3.bf16.msra.mxu0 %v2281_v27 }
  0x28   : > { %2166 = vmatpush3.bf16.msra.mxu1 %v2282_v28  ;;  %2151 = vmatprep.subr.bf16.mxu0 %v2283_v30 }
  0x29   : > { %2167 = vmatprep.subr.bf16.mxu1 %v2284_v31  ;;  %2129 = vmatprep.mubr.msk.bf16.mxu0 %vm391_vm0, %v2285_v32 }
  0x2a   : > { %2145 = vmatprep.mubr.msk.bf16.mxu1 %vm391_vm0, %v2286_v33 }
  0x2b   : > { %2152 = vmatpush3.bf16.msra.mxu0 %v2283_v30 }
  0x2c   : > { %2168 = vmatpush3.bf16.msra.mxu1 %v2284_v31  ;;  %2153 = vmatprep.subr.bf16.mxu0 %v2289_v35 }
  0x2d   : > { %2169 = vmatprep.subr.bf16.mxu1 %v2290_v36 }
  0x2e   : > { %2130 = vmatmul.mubr.msk.bf16.gmra.mrb[12].mxu0 %vm391_vm0, %v2287_v34 }
  0x2f   : > { %2146 = vmatmul.mubr.msk.bf16.gmra.mrb[12].mxu1 %vm391_vm0, %v2288_v37  ;;  %2154 = vmatpush3.bf16.msra.mxu0 %v2289_v35 }
  0x30   : > { %2170 = vmatpush3.bf16.msra.mxu1 %v2290_v36  ;;  %2155 = vmatprep.subr.bf16.mxu0 %v2291_v38 }
  0x31   : > { %2171 = vmatprep.subr.bf16.mxu1 %v2292_v39  ;;  %2157 = vmatprep.mubr.msk.bf16.mxu0 %vm391_vm0, %v2293_v40 }
  0x32   : > { %2173 = vmatprep.mubr.msk.bf16.mxu1 %vm391_vm0, %v2294_v41 }
  0x33   : > { %2156 = vmatpush3.bf16.msra.mxu0 %v2291_v38 }
  0x34   : > { %2172 = vmatpush3.bf16.msra.mxu1 %v2292_v39  ;;  %2181 = vmatprep.subr.bf16.mxu0 %v2297_v43 }
  0x35   : > { %2197 = vmatprep.subr.bf16.mxu1 %v2298_v44 }
  0x36   : > { %2158 = vmatmul.mubr.msk.bf16.vlgmr.msra.gmra.mrb[0].mxu0 %vm391_vm0, %v2295_v42 }
  0x37   : > { %2174 = vmatmul.mubr.msk.bf16.vlgmr.msra.gmra.mrb[0].mxu1 %vm391_vm0, %v2296_v45  ;;  %2182 = vmatpush3.bf16.msra.mxu0 %v2297_v43 }
  0x38   : > { %2198 = vmatpush3.bf16.msra.mxu1 %v2298_v44  ;;  %2183 = vmatprep.subr.bf16.mxu0 %v2299_v46 }
  0x39   : > { %2199 = vmatprep.subr.bf16.mxu1 %v2300_v47  ;;  %2161 = vmatprep.mubr.msk.bf16.mxu0 %vm391_vm0, %v2301_v48 }
  0x3a   : > { %2177 = vmatprep.mubr.msk.bf16.mxu1 %vm391_vm0, %v2302_v49 }
  0x3b   : > { %2184 = vmatpush3.bf16.msra.mxu0 %v2299_v46 }
  0x3c   : > { %2200 = vmatpush3.bf16.msra.mxu1 %v2300_v47  ;;  %2185 = vmatprep.subr.bf16.mxu0 %v2305_v51 }
  0x3d   : > { %2201 = vmatprep.subr.bf16.mxu1 %v2306_v52 }
  0x3e   : > { %2162 = vmatmul.mubr.msk.bf16.gmra.mrb[4].mxu0 %vm391_vm0, %v2303_v50 }
  0x3f   : > { %2178 = vmatmul.mubr.msk.bf16.gmra.mrb[4].mxu1 %vm391_vm0, %v2304_v53  ;;  %2186 = vmatpush3.bf16.msra.mxu0 %v2305_v51 }
  0x40   : > { %2202 = vmatpush3.bf16.msra.mxu1 %v2306_v52  ;;  %2187 = vmatprep.subr.bf16.mxu0 %v2307_v54 }
  0x41   : > { %2203 = vmatprep.subr.bf16.mxu1 %v2308_v55  ;;  %2189 = vmatprep.mubr.msk.bf16.mxu0 %vm391_vm0, %v2309_v56 }
  0x42   : > { %2205 = vmatprep.mubr.msk.bf16.mxu1 %vm391_vm0, %v2310_v57 }
  0x43   : > { %2188 = vmatpush3.bf16.msra.mxu0 %v2307_v54 }
  0x44   : > { %2204 = vmatpush3.bf16.msra.mxu1 %v2308_v55 }
  0x46   : > { %2190 = vmatmul.mubr.msk.bf16.vlgmr.msra.gmra.mrb[8].mxu0 %vm391_vm0, %v2311_v58 }
  0x47   : > { %2206 = vmatmul.mubr.msk.bf16.vlgmr.msra.gmra.mrb[8].mxu1 %vm391_vm0, %v2312_v59  ;;  %2193 = vmatprep.mubr.msk.bf16.mxu0 %vm391_vm0, %v2313_v60 }
  0x48   : > { %2209 = vmatprep.mubr.msk.bf16.mxu1 %vm391_vm0, %v2314_v61 }
  0x4e   : > { %2194 = vmatmul.mubr.msk.bf16.gmra.mrb[12].mxu0 %vm391_vm0, %v2315_v62 }
  0x4f   : > { %2210 = vmatmul.mubr.msk.bf16.gmra.mrb[12].mxu1 %vm391_vm0, %v2316_v63 }
 0x109   : > { %v2534_v0 = vpop.f32.mrb[0].mxu0 }
 0x10a   : > { %v2536_v1 = vpop.f32.mrb[0].mxu1  ;;  %v2538_v2 = vpop.f32.mrb[1].mxu0 }
 0x10b   : > { %v2540_v3 = vpop.f32.mrb[1].mxu1  ;;  %v2542_v4 = vpop.f32.mrb[2].mxu0 }
 0x10c   : > { %v2544_v5 = vpop.f32.mrb[2].mxu1  ;;  %v2546_v6 = vpop.f32.mrb[3].mxu0 }
 0x10d   : > { %v1316_v7 = vadd.f32 %v2546_v6, %v2538_v2  ;;  %v2550_v8 = vpop.f32.mrb[3].mxu1 }
 0x10f   : > { %v1317_v9 = vadd.f32 %v2534_v0, %v1316_v7 }
 0x111   : > { %v2553_v10 = vpop.f32.mrb[4].mxu0  ;;  %v1318_v11 = vadd.f32 %v2542_v4, %v1317_v9 }
 0x112   : > { %v2556_v12 = vpop.f32.mrb[4].mxu1  ;;  %v938_v13 = vpop.f32.mrb[5].mxu0 }
 0x113   : > { %v1319_v14 = vadd.f32 %v1318_v11, %v938_v13  ;;  %v2558_v15 = vpop.f32.mrb[5].mxu1  ;;  %v2164_v16 = vpop.f32.mrb[6].mxu0 }
 0x114   : > { %v2560_v17 = vpop.f32.mrb[6].mxu1  ;;  %v941_v18 = vpop.f32.mrb[7].mxu0 }
 0x115   : > { %v1320_v19 = vadd.f32 %v1319_v14, %v941_v18  ;;  %v2562_v20 = vpop.f32.mrb[7].mxu1 }
 0x117   : > { %v1321_v21 = vadd.f32 %v2553_v10, %v1320_v19 }
 0x119   : > { %v1322_v22 = vadd.f32 %v2164_v16, %v1321_v21  ;;  %v2565_v23 = vpop.f32.mrb[8].mxu0 }
 0x11a   : > { %v2567_v24 = vpop.f32.mrb[8].mxu1  ;;  %v1164_v25 = vpop.f32.mrb[9].mxu0 }
 0x11b   : > { %v1323_v26 = vadd.f32 %v1322_v22, %v2540_v3  ;;  %v2570_v27 = vpop.f32.mrb[9].mxu1  ;;  %v2192_v28 = vpop.f32.mrb[10].mxu0 }
 0x11c   : > { %v2572_v29 = vpop.f32.mrb[10].mxu1  ;;  %v1167_v30 = vpop.f32.mrb[11].mxu0 }
 0x11d   : > { %v1324_v31 = vadd.f32 %v1323_v26, %v2550_v8  ;;  %v2575_v32 = vpop.f32.mrb[11].mxu1 }
 0x11f   : > { %v1325_v33 = vadd.f32 %v2536_v1, %v1324_v31 }
 0x121   : > { %v1326_v34 = vadd.f32 %v2544_v5, %v1325_v33  ;;  %v2195_v35 = vpop.f32.mrb[12].mxu0 }
 0x122   : > { %v2579_v36 = vpop.f32.mrb[12].mxu1  ;;  %v1180_v37 = vpop.f32.mrb[13].mxu0 }
 0x123   : > { %v1327_v38 = vadd.f32 %v1326_v34, %v2558_v15  ;;  %v1301_v39 = vpop.f32.mrb[13].mxu1  ;;  %v2196_v40 = vpop.f32.mrb[14].mxu0 }
 0x124   : > { %v2212_v41 = vpop.f32.mrb[14].mxu1  ;;  %v1183_v42 = vpop.f32.mrb[15].mxu0 }
 0x125   : > { %v1328_v43 = vadd.f32 %v1327_v38, %v2562_v20  ;;  %v1304_v44 = vpop.f32.mrb[15].mxu1 }
 0x127   : > { %v1329_v45 = vadd.f32 %v2556_v12, %v1328_v43 }
 0x129   : > { %v1330_v46 = vadd.f32 %v2560_v17, %v1329_v45 }
 0x12b   : > { %v1331_v47 = vadd.f32 %v1330_v46, %v1164_v25 }
 0x12d   : > { %v1332_v48 = vadd.f32 %v1331_v47, %v1167_v30 }
 0x12f   : > { %v1333_v49 = vadd.f32 %v2565_v23, %v1332_v48 }
 0x131   : > { %v1334_v50 = vadd.f32 %v2192_v28, %v1333_v49 }
 0x133   : > { %v1335_v51 = vadd.f32 %v1334_v50, %v1180_v37 }
 0x135   : > { %v1336_v52 = vadd.f32 %v1335_v51, %v1183_v42 }
 0x137   : > { %v1337_v53 = vadd.f32 %v2195_v35, %v1336_v52 }
 0x139   : > { %v1338_v54 = vadd.f32 %v2196_v40, %v1337_v53 }
 0x13b   : > { %v1339_v55 = vadd.f32 %v1338_v54, %v2570_v27 }
 0x13d   : > { %v1340_v56 = vadd.f32 %v1339_v55, %v2575_v32 }
 0x13f   : > { %v1341_v57 = vadd.f32 %v2567_v24, %v1340_v56 }
 0x141   : > { %v1342_v58 = vadd.f32 %v2572_v29, %v1341_v57 }
 0x143   : > { %v1343_v59 = vadd.f32 %v1342_v58, %v1301_v39 }
 0x145   : > { %v1344_v60 = vadd.f32 %v1343_v59, %v1304_v44 }
 0x147   : > { %v1345_v61 = vadd.f32 %v2579_v36, %v1344_v60 }
 0x149   : > { %v1346_v62 = vadd.f32 %v2212_v41, %v1345_v61 }
 0x14b   : > { %v1347_v63 = vrot.slane %v1346_v62, 4 }
 0x14d   : > { %v1348_v7 = vadd.f32 %v1347_v63, %v1346_v62 }
 0x14f   : > { %v1349_v9 = vrot.slane %v1348_v7, 2 }
 0x151   : > { %v1350_v11 = vadd.f32 %v1349_v9, %v1348_v7 }
 0x153   : > { %v1351_v14 = vrot.slane %v1350_v11, 1 }
 0x155   : > { %v1352_v19 = vadd.f32 %v1351_v14, %v1350_v11 }
 0x157   : > { %v1354_v21 = vmul.f32 0.00390625, %v1352_v19 }
 0x159   : > { %v2592_v22 = vsub.f32 %v2538_v2, %v1354_v21  ;;  %v2595_v26 = vsub.f32 %v2546_v6, %v1354_v21  ;;  %v2598_v31 = vsub.f32 %v2534_v0, %v1354_v21  ;;  %v2601_v33 = vsub.f32 %v2542_v4, %v1354_v21 }
 0x15a   : > { %v2603_v34 = vsub.f32 %v938_v13, %v1354_v21  ;;  %v2605_v38 = vsub.f32 %v941_v18, %v1354_v21  ;;  %v2608_v43 = vsub.f32 %v2553_v10, %v1354_v21  ;;  %v2610_v45 = vsub.f32 %v2164_v16, %v1354_v21 }
 0x15b   : > { %v2613_v2 = vsub.f32 %v2540_v3, %v1354_v21  ;;  %v2616_v6 = vsub.f32 %v2550_v8, %v1354_v21  ;;  %v2619_v0 = vsub.f32 %v2536_v1, %v1354_v21  ;;  %v2622_v4 = vsub.f32 %v2544_v5, %v1354_v21 }
 0x15c   : > { %v2625_v13 = vsub.f32 %v2558_v15, %v1354_v21  ;;  %v2628_v10 = vsub.f32 %v2562_v20, %v1354_v21  ;;  %v2631_v16 = vsub.f32 %v2556_v12, %v1354_v21  ;;  %v2634_v3 = vsub.f32 %v2560_v17, %v1354_v21 }
 0x15d   : > { %v2636_v8 = vsub.f32 %v1164_v25, %v1354_v21  ;;  %v2638_v18 = vsub.f32 %v1167_v30, %v1354_v21  ;;  %v2641_v1 = vsub.f32 %v2565_v23, %v1354_v21  ;;  %v2643_v5 = vsub.f32 %v2192_v28, %v1354_v21 }
 0x15e   : > { %v2645_v15 = vsub.f32 %v1180_v37, %v1354_v21  ;;  %v2647_v46 = vsub.f32 %v1183_v42, %v1354_v21  ;;  %v2649_v20 = vsub.f32 %v2195_v35, %v1354_v21  ;;  %v2651_v12 = vsub.f32 %v2196_v40, %v1354_v21 }
 0x15f   : > { %v2654_v17 = vsub.f32 %v2570_v27, %v1354_v21  ;;  %v2657_v25 = vsub.f32 %v2575_v32, %v1354_v21  ;;  %v2660_v30 = vsub.f32 %v2567_v24, %v1354_v21  ;;  %v2663_v23 = vsub.f32 %v2572_v29, %v1354_v21 }
 0x160   : > { %v2665_v28 = vsub.f32 %v1301_v39, %v1354_v21  ;;  %v2667_v37 = vsub.f32 %v1304_v44, %v1354_v21  ;;  %v2670_v35 = vsub.f32 %v2579_v36, %v1354_v21  ;;  %v2672_v40 = vsub.f32 %v2212_v41, %v1354_v21 }
 0x161   : > { %v1387_v27 = vmul.f32 %v2592_v22, %v2592_v22  ;;  %v1388_v32 = vmul.f32 %v2595_v26, %v2595_v26  ;;  %v1389_v24 = vmul.f32 %v2598_v31, %v2598_v31  ;;  %v1390_v39 = vmul.f32 %v2601_v33, %v2601_v33 }
 0x162   : > { %v1391_v36 = vmul.f32 %v2603_v34, %v2603_v34  ;;  %v1392_v41 = vmul.f32 %v2605_v38, %v2605_v38  ;;  %v1393_v48 = vmul.f32 %v2608_v43, %v2608_v43  ;;  %v1394_v50 = vmul.f32 %v2610_v45, %v2610_v45 }
 0x163   : > { %v1419_v29 = vadd.f32 %v1388_v32, %v1387_v27  ;;  %v1395_v52 = vmul.f32 %v2613_v2, %v2613_v2  ;;  %v1396_v54 = vmul.f32 %v2616_v6, %v2616_v6  ;;  %v1397_v56 = vmul.f32 %v2619_v0, %v2619_v0 }
 0x164   : > { %v1398_v58 = vmul.f32 %v2622_v4, %v2622_v4  ;;  %v1399_v60 = vmul.f32 %v2625_v13, %v2625_v13  ;;  %v1400_v62 = vmul.f32 %v2628_v10, %v2628_v10  ;;  %v1401_v7 = vmul.f32 %v2631_v16, %v2631_v16 }
 0x165   : > { %v1420_v42 = vadd.f32 %v1419_v29, %v1389_v24  ;;  %v1402_v11 = vmul.f32 %v2634_v3, %v2634_v3  ;;  %v1403_v19 = vmul.f32 %v2636_v8, %v2636_v8  ;;  %v1404_v27 = vmul.f32 %v2638_v18, %v2638_v18 }
 0x166   : > { %v1405_v24 = vmul.f32 %v2641_v1, %v2641_v1 }
 0x167   : > { %v1421_v44 = vadd.f32 %v1420_v42, %v1390_v39  ;;  %v1406_v39 = vmul.f32 %v2643_v5, %v2643_v5 }
 0x169   : > { %v1422_v47 = vadd.f32 %v1421_v44, %v1391_v36  ;;  %v1407_v36 = vmul.f32 %v2645_v15, %v2645_v15 }
 0x16b   : > { %v1423_v49 = vadd.f32 %v1422_v47, %v1392_v41  ;;  %v1408_v41 = vmul.f32 %v2647_v46, %v2647_v46 }
 0x16d   : > { %v1424_v51 = vadd.f32 %v1423_v49, %v1393_v48  ;;  %v1409_v48 = vmul.f32 %v2649_v20, %v2649_v20 }
 0x16f   : > { %v1425_v53 = vadd.f32 %v1424_v51, %v1394_v50  ;;  %v1410_v50 = vmul.f32 %v2651_v12, %v2651_v12 }
 0x171   : > { %v1426_v55 = vadd.f32 %v1425_v53, %v1395_v52  ;;  %v1411_v52 = vmul.f32 %v2654_v17, %v2654_v17 }
 0x173   : > { %v1427_v57 = vadd.f32 %v1426_v55, %v1396_v54  ;;  %v1412_v54 = vmul.f32 %v2657_v25, %v2657_v25 }
 0x175   : > { %v1428_v59 = vadd.f32 %v1427_v57, %v1397_v56  ;;  %v1413_v56 = vmul.f32 %v2660_v30, %v2660_v30 }
 0x177   : > { %v1429_v61 = vadd.f32 %v1428_v59, %v1398_v58  ;;  %v1414_v58 = vmul.f32 %v2663_v23, %v2663_v23 }
 0x179   : > { %v1430_v63 = vadd.f32 %v1429_v61, %v1399_v60  ;;  %v1415_v60 = vmul.f32 %v2665_v28, %v2665_v28 }
 0x17b   : > { %v1431_v9 = vadd.f32 %v1430_v63, %v1400_v62  ;;  %v1416_v62 = vmul.f32 %v2667_v37, %v2667_v37 }
 0x17d   : > { %v1432_v14 = vadd.f32 %v1431_v9, %v1401_v7  ;;  %v1417_v7 = vmul.f32 %v2670_v35, %v2670_v35 }
 0x17f   : > { %v1433_v21 = vadd.f32 %v1432_v14, %v1402_v11  ;;  %v1418_v11 = vmul.f32 %v2672_v40, %v2672_v40 }
 0x181   : > { %v1434_v32 = vadd.f32 %v1433_v21, %v1403_v19 }
 0x183   : > { %v1435_v29 = vadd.f32 %v1434_v32, %v1404_v27 }
 0x185   : > { %v1436_v42 = vadd.f32 %v1435_v29, %v1405_v24 }
 0x187   : > { %v1437_v44 = vadd.f32 %v1436_v42, %v1406_v39 }
 0x189   : > { %v1438_v47 = vadd.f32 %v1437_v44, %v1407_v36 }
 0x18b   : > { %v1439_v49 = vadd.f32 %v1438_v47, %v1408_v41 }
 0x18d   : > { %v1440_v51 = vadd.f32 %v1439_v49, %v1409_v48 }
 0x18f   : > { %v1441_v53 = vadd.f32 %v1440_v51, %v1410_v50 }
 0x191   : > { %v1442_v55 = vadd.f32 %v1441_v53, %v1411_v52 }
 0x193   : > { %v1443_v57 = vadd.f32 %v1442_v55, %v1412_v54 }
 0x195   : > { %v1444_v59 = vadd.f32 %v1443_v57, %v1413_v56 }
 0x197   : > { %v1445_v61 = vadd.f32 %v1444_v59, %v1414_v58 }
 0x199   : > { %v1446_v63 = vadd.f32 %v1445_v61, %v1415_v60 }
 0x19b   : > { %v1447_v9 = vadd.f32 %v1446_v63, %v1416_v62 }
 0x19d   : > { %v1448_v14 = vadd.f32 %v1447_v9, %v1417_v7 }
 0x19f   : > { %v1449_v19 = vadd.f32 %v1448_v14, %v1418_v11 }
 0x1a1   : > { %v1450_v21 = vrot.slane %v1449_v19, 4 }
 0x1a3   : > { %v1451_v27 = vadd.f32 %v1450_v21, %v1449_v19 }
 0x1a5   : > { %v1452_v32 = vrot.slane %v1451_v27, 2 }
 0x1a7   : > { %v1453_v24 = vadd.f32 %v1452_v32, %v1451_v27 }
 0x1a9   : > { %v1454_v29 = vrot.slane %v1453_v24, 1 }
 0x1ab   : > { %v1455_v39 = vadd.f32 %v1454_v29, %v1453_v24 }
 0x1ad   : > { %v1456_v42 = vmul.f32 0.00390625, %v1455_v39 }
 0x1af   : > { %v1457_v36 = vadd.f32 1e-05, %v1456_v42 }
 0x1b1   : > { %2317 = vrsqrt.f32 %v1457_v36 }
 0x1bb   : > { %v2318_v44 = vpop.eup %2317 }
 0x1bc   : > { %v2739_v41 = vmul.f32 %v2318_v44, %v2592_v22  ;;  %v2742_v47 = vmul.f32 %v2318_v44, %v2595_v26  ;;  %v2745_v48 = vmul.f32 %v2318_v44, %v2598_v31  ;;  %v2748_v49 = vmul.f32 %v2318_v44, %v2601_v33 }
 0x1bd   : > { %v2751_v50 = vmul.f32 %v2318_v44, %v2603_v34  ;;  %v2754_v51 = vmul.f32 %v2318_v44, %v2605_v38  ;;  %v2757_v52 = vmul.f32 %v2318_v44, %v2608_v43  ;;  %v1466_v22 = vmul.f32 %v2318_v44, %v2610_v45 }
 0x1be   : > { %v1467_v26 = vmul.f32 %v2318_v44, %v2613_v2  ;;  %v1468_v53 = vmul.f32 %v2318_v44, %v2616_v6  ;;  %v1469_v31 = vmul.f32 %v2318_v44, %v2619_v0  ;;  %v1470_v33 = vmul.f32 %v2318_v44, %v2622_v4 }
 0x1bf   : > { %v1471_v54 = vmul.f32 %v2318_v44, %v2625_v13  ;;  %v1472_v34 = vmul.f32 %v2318_v44, %v2628_v10  ;;  %v1473_v38 = vmul.f32 %v2318_v44, %v2631_v16  ;;  %v1474_v55 = vmul.f32 %v2318_v44, %v2634_v3 }
 0x1c0   : > { %v1475_v43 = vmul.f32 %v2318_v44, %v2636_v8  ;;  %v1476_v45 = vmul.f32 %v2318_v44, %v2638_v18  ;;  %v1477_v2 = vmul.f32 %v2318_v44, %v2641_v1  ;;  %v1478_v6 = vmul.f32 %v2318_v44, %v2643_v5 }
 0x1c1   : > { %v1479_v0 = vmul.f32 %v2318_v44, %v2645_v15  ;;  %v1480_v4 = vmul.f32 %v2318_v44, %v2647_v46  ;;  %v1481_v13 = vmul.f32 %v2318_v44, %v2649_v20  ;;  %v1482_v10 = vmul.f32 %v2318_v44, %v2651_v12 }
 0x1c2   : > { %v1483_v16 = vmul.f32 %v2318_v44, %v2654_v17  ;;  %v1484_v3 = vmul.f32 %v2318_v44, %v2657_v25  ;;  %v1485_v8 = vmul.f32 %v2318_v44, %v2660_v30  ;;  %v1486_v18 = vmul.f32 %v2318_v44, %v2663_v23 }
 0x1c3   : > { %v1487_v1 = vmul.f32 %v2318_v44, %v2665_v28  ;;  %v1488_v5 = vmul.f32 %v2318_v44, %v2667_v37  ;;  %v1489_v15 = vmul.f32 %v2318_v44, %v2670_v35  ;;  %v1490_v46 = vmul.f32 %v2318_v44, %v2672_v40 }
 0x1c4   : > { %v1491_v20 = vmax.f32 %v2739_v41, 0.0  ;;  %v1492_v12 = vmax.f32 %v2742_v47, 0.0  ;;  %v1493_v17 = vmax.f32 %v2745_v48, 0.0  ;;  %v1494_v25 = vmax.f32 %v2748_v49, 0.0 }
 0x1c5   : > { %v1495_v30 = vmax.f32 %v2751_v50, 0.0  ;;  %v1496_v23 = vmax.f32 %v2754_v51, 0.0  ;;  %v1497_v28 = vmax.f32 %v2757_v52, 0.0  ;;  %v1498_v56 = vmax.f32 %v1466_v22, 0.0 }
 0x1c6   : > { %v1499_v37 = vmax.f32 %v1467_v26, 0.0  ;;  %v1500_v57 = vmax.f32 %v1468_v53, 0.0  ;;  %v1501_v35 = vmax.f32 %v1469_v31, 0.0  ;;  %v1502_v58 = vmax.f32 %v1470_v33, 0.0 }
 0x1c7   : > { %v1503_v40 = vmax.f32 %v1471_v54, 0.0  ;;  %v1504_v59 = vmax.f32 %v1472_v34, 0.0  ;;  %v1505_v60 = vmax.f32 %v1473_v38, 0.0  ;;  %v1506_v61 = vmax.f32 %v1474_v55, 0.0 }
 0x1c8   : > { %v1507_v62 = vmax.f32 %v1475_v43, 0.0  ;;  %v1508_v63 = vmax.f32 %v1476_v45, 0.0  ;;  %v1509_v7 = vmax.f32 %v1477_v2, 0.0  ;;  %v1510_v9 = vmax.f32 %v1478_v6, 0.0 }
 0x1c9   : > { %v1511_v11 = vmax.f32 %v1479_v0, 0.0  ;;  %v1512_v14 = vmax.f32 %v1480_v4, 0.0  ;;  %v1513_v19 = vmax.f32 %v1481_v13, 0.0  ;;  %v1514_v21 = vmax.f32 %v1482_v10, 0.0 }
 0x1ca   : > { %v1515_v27 = vmax.f32 %v1483_v16, 0.0  ;;  %v1516_v32 = vmax.f32 %v1484_v3, 0.0  ;;  %v1517_v24 = vmax.f32 %v1485_v8, 0.0  ;;  %v1518_v29 = vmax.f32 %v1486_v18, 0.0 }
 0x1cb   : > { %v1519_v39 = vmax.f32 %v1487_v1, 0.0  ;;  %v1520_v42 = vmax.f32 %v1488_v5, 0.0  ;;  %v1521_v36 = vmax.f32 %v1489_v15, 0.0  ;;  %v1522_v44 = vmax.f32 %v1490_v46, 0.0 }
 0x1cc   : > { %v1929_v41 = vpack.c.bf16 %v1492_v12, %v1491_v20  ;;  %v1934_v47 = vpack.c.bf16 %v1494_v25, %v1493_v17  ;;  %v1939_v48 = vpack.c.bf16 %v1496_v23, %v1495_v30  ;;  %v1944_v49 = vpack.c.bf16 %v1498_v56, %v1497_v28 }
 0x1cd   : > { %v1949_v50 = vpack.c.bf16 %v1500_v57, %v1499_v37  ;;  %v1954_v51 = vpack.c.bf16 %v1502_v58, %v1501_v35  ;;  %v1959_v52 = vpack.c.bf16 %v1504_v59, %v1503_v40  ;;  %v1964_v22 = vpack.c.bf16 %v1506_v61, %v1505_v60 }
 0x1ce   : > { %1930 = vst [vmem:[%s2795_s18] sm:$0xff] %v1929_v41   ;;  %2006 = vst [vmem:[%s2795_s18 + $0x8] sm:$0xff] %v1934_v47   ;;  %v1969_v26 = vpack.c.bf16 %v1508_v63, %v1507_v62  ;;  %v1974_v53 = vpack.c.bf16 %v1510_v9, %v1509_v7  ;;  %v1979_v31 = vpack.c.bf16 %v1512_v14, %v1511_v11 }
 0x1cf   : > { %2007 = vst [vmem:[%s2795_s18 + $0x10] sm:$0xff] %v1939_v48   ;;  %2008 = vst [vmem:[%s2795_s18 + $0x18] sm:$0xff] %v1944_v49   ;;  %v1984_v33 = vpack.c.bf16 %v1514_v21, %v1513_v19  ;;  %v1989_v54 = vpack.c.bf16 %v1516_v32, %v1515_v27  ;;  %v1994_v34 = vpack.c.bf16 %v1518_v29, %v1517_v24 }
 0x1d0   : > { %2009 = vst [vmem:[%s2795_s18 + $0x20] sm:$0xff] %v1949_v50   ;;  %2010 = vst [vmem:[%s2795_s18 + $0x28] sm:$0xff] %v1954_v51   ;;  %v1999_v38 = vpack.c.bf16 %v1520_v42, %v1519_v39  ;;  %v2004_v55 = vpack.c.bf16 %v1522_v44, %v1521_v36 }
 0x1d1   : > { %2011 = vst [vmem:[%s2795_s18 + $0x30] sm:$0xff] %v1959_v52   ;;  %2012 = vst [vmem:[%s2795_s18 + $0x38] sm:$0xff] %v1964_v22  }
 0x1d2   : > { %2013 = vst [vmem:[%s2795_s18 + $0x40] sm:$0xff] %v1969_v26   ;;  %2014 = vst [vmem:[%s2795_s18 + $0x48] sm:$0xff] %v1974_v53  }
 0x1d3   : > { %2015 = vst [vmem:[%s2795_s18 + $0x50] sm:$0xff] %v1979_v31   ;;  %2016 = vst [vmem:[%s2795_s18 + $0x58] sm:$0xff] %v1984_v33  }
 0x1d4   : > { %2017 = vst [vmem:[%s2795_s18 + $0x60] sm:$0xff] %v1989_v54   ;;  %2018 = vst [vmem:[%s2795_s18 + $0x68] sm:$0xff] %v1994_v34  }
 0x1d5   : > { %2019 = vst [vmem:[%s2795_s18 + $0x70] sm:$0xff] %v1999_v38   ;;  %2020 = vst [vmem:[%s2795_s18 + $0x78] sm:$0xff] %v2004_v55  }
 0x1d6 PF: > { %s14_s15 = sadd.s32 1, %s2325_s15  }
 0x1d7   : > { %p11_p4 = scmp.ge.s32.totalorder %s14_s15, 4  }
 0x1d9   :  { %13 = sbr.rel (!%p11_p4) target bundleno = 1 (0x1), region = 69 }

// kernel: _lambda_.19
= control target key start
LH: loop header
LB: loop body
LE: loop exit
PB: predicated region body
PF: predicated region fallthrough
CT: control target
= control target key end

     0   :  { %s4697_s18 = smov 0   ;;  %s5305_s0 = inlined_call_operand.vmem [shape: bf16[2,4,256,32], index: 0, kind: input, shape index: {}]   ;;  %s5306_s1 = inlined_call_operand.vmem [shape: bf16[4,32,128], index: 1, kind: input, shape index: {}]   ;;  %s5307_s2 = inlined_call_operand.vmem [shape: bf16[2,4,256,32], index: 2, kind: input, shape index: {}]   ;;  %s5308_s3 = inlined_call_operand.vmem [shape: bf16[4,32,128], index: 3, kind: input, shape index: {}]   ;;  %s5309_s4 = inlined_call_operand.vmem [shape: f32[1,128], index: 4, kind: input, shape index: {}]   ;;  %s5310_s5 = inlined_call_operand.vmem [shape: f32[2,4,256,128], index: 5, kind: output, shape index: {}]  }
   0x1 LB: > { %s3401_s19 = sadd.s32 4294967295, %s4665_s18   ;;  %p3405_p0 = scmp.ge.s32.totalorder %s4665_s18, 1  ;;  %s4665_s18 = sphi %s4697_s18, %s15_s18  }
   0x2   : > { %p197_p1 = scmp.lt.s32.totalorder %s4665_s18, 3 }
   0x4   : > { %p198_p2 = pnand %p3405_p0, %p197_p1 }
   0x5   : > { %v4258_v0 = vld [vmem:[%s5308_s3] sm:$0xff] (!%p198_p2)   ;;  %p230_p3 = scmp.lt.s32.totalorder (!%p198_p2), %s3401_s19, 1  ;;  %v4259_v1 = vld [vmem:[%s5308_s3 + $0x10] sm:$0xff] (!%p198_p2)   ;;  %v4260_v2 = vld [vmem:[%s5308_s3 + $0x8] sm:$0xff] (!%p198_p2)   ;;  %vm626_vm0 = vcmask (!%p198_p2), 261120  }
   0x6   : > { %201 = sbr.rel (%p198_p2) target bundleno = 501 (0x1f5), region = 40  ;;  %3834 = vmatprep.subr.bf16.mxu0 (!%p198_p2), %v4258_v0  ;;  %3870 = vmatprep.subr.bf16.mxu1 (!%p198_p2), %v4259_v1  ;;  %v4261_v3 = vld [vmem:[%s5308_s3 + $0x18] sm:$0xff] (!%p198_p2)   ;;  %v4266_v4 = vld [vmem:[%s5308_s3 + $0x20] sm:$0xff] (!%p198_p2)   ;;  %v4267_v9 = vld [vmem:[%s5308_s3 + $0x30] sm:$0xff] (!%p198_p2)  }
   0x7   : > { %3835 = vmatpush3.bf16.msra.mxu0 (!%p198_p2), %v4258_v0  ;;  %3871 = vmatpush3.bf16.msra.mxu1 (!%p198_p2), %v4259_v1  ;;  %v4284_v20 = vld [vmem:[%s5308_s3 + $0x28] sm:$0xff] (!%p198_p2)   ;;  %v4285_v21 = vld [vmem:[%s5308_s3 + $0x38] sm:$0xff] (!%p198_p2)   ;;  %v4302_v32 = vld [vmem:[%s5306_s1] sm:$0xff] (!%p198_p2)  }
   0x8   : > { %3836 = vmatprep.subr.bf16.mxu0 (!%p198_p2), %v4260_v2  ;;  %3872 = vmatprep.subr.bf16.mxu1 (!%p198_p2), %v4261_v3  ;;  %v4303_v33 = vld [vmem:[%s5306_s1 + $0x10] sm:$0xff] (!%p198_p2)   ;;  %v4320_v48 = vld [vmem:[%s5306_s1 + $0x8] sm:$0xff] (!%p198_p2)   ;;  %v4321_v49 = vld [vmem:[%s5306_s1 + $0x18] sm:$0xff] (!%p198_p2)  }
   0x9   : > { %v4841_v54 = vld [vmem:[%s5306_s1 + $0x20] sm:$0xff] (!%p198_p2)   ;;  %v4339_v55 = vld [vmem:[%s5306_s1 + $0x30] sm:$0xff] (!%p198_p2)  }
   0xb   : > { %3837 = vmatpush3.bf16.msra.mxu0 (!%p198_p2), %v4260_v2  ;;  %3873 = vmatpush3.bf16.msra.mxu1 (!%p198_p2), %v4261_v3 }
   0xc   : > { %3906 = vmatprep.subr.bf16.mxu0 (!%p198_p2), %v4266_v4  ;;  %3942 = vmatprep.subr.bf16.mxu1 (!%p198_p2), %v4267_v9 }
   0xd   : > { %s5312_s19 = smov (!%p230_p3, %s3401_s19), 1 }
   0xe   : > { %s3687_s28 = sshll.u32 %s5312_s19, 9  ;;  %s3689_s13 = sshll.u32 %s5312_s19, 10 }
   0xf   : > { %s4725_s6 = scalar_lea.vmem %s5307_s2, %s3687_s28  ;;  %s4829_s27 = scalar_lea.vmem %s5305_s0, %s3687_s28 }
  0x10   : > { %v4262_v5 = vld [vmem:[%s4725_s6] sm:$0xff]   ;;  %v4264_v7 = vld [vmem:[%s4725_s6 + $0x8] sm:$0xff]   ;;  %v4268_v10 = vld [vmem:[%s4725_s6 + $0x10] sm:$0xff]   ;;  %s5050_s16 = scalar_lea.vmem %s5310_s5, %s3689_s13 }
  0x11   : > { %v4263_v6 = vld [vmem:[%s4725_s6 + $0x80] sm:$0xff]   ;;  %3838 = vmatprep.mubr.msk.bf16.mxu0 %vm626_vm0, %v4262_v5  ;;  %v4265_v8 = vld [vmem:[%s4725_s6 + $0x88] sm:$0xff]   ;;  %v4269_v11 = vld [vmem:[%s4725_s6 + $0x90] sm:$0xff]  }
  0x12   : > { %3874 = vmatprep.mubr.msk.bf16.mxu1 %vm626_vm0, %v4263_v6  ;;  %3839 = vmatmul.mubr.msk.bf16.vlgmr.msra.gmra.mrb[0].mxu0 %vm626_vm0, %v4264_v7  ;;  %v4270_v12 = vld [vmem:[%s4725_s6 + $0x18] sm:$0xff]   ;;  %v4272_v14 = vld [vmem:[%s4725_s6 + $0x20] sm:$0xff]   ;;  %v4274_v16 = vld [vmem:[%s4725_s6 + $0x28] sm:$0xff]  }
  0x13   : > { %3875 = vmatmul.mubr.msk.bf16.vlgmr.msra.gmra.mrb[0].mxu1 %vm626_vm0, %v4265_v8  ;;  %3907 = vmatpush3.bf16.msra.mxu0 %v4266_v4  ;;  %v4271_v13 = vld [vmem:[%s4725_s6 + $0x98] sm:$0xff]   ;;  %v4273_v15 = vld [vmem:[%s4725_s6 + $0xa0] sm:$0xff]   ;;  %v4275_v17 = vld [vmem:[%s4725_s6 + $0xa8] sm:$0xff]  }
  0x14   : > { %3943 = vmatpush3.bf16.msra.mxu1 %v4267_v9  ;;  %3842 = vmatprep.mubr.msk.bf16.mxu0 %vm626_vm0, %v4268_v10  ;;  %v4276_v18 = vld [vmem:[%s4725_s6 + $0x30] sm:$0xff]   ;;  %v4278_v22 = vld [vmem:[%s4725_s6 + $0x38] sm:$0xff]   ;;  %v4280_v24 = vld [vmem:[%s4725_s6 + $0x40] sm:$0xff]  }
  0x15   : > { %3878 = vmatprep.mubr.msk.bf16.mxu1 %vm626_vm0, %v4269_v11  ;;  %v4277_v19 = vld [vmem:[%s4725_s6 + $0xb0] sm:$0xff]   ;;  %3908 = vmatprep.subr.bf16.mxu0 %v4284_v20  ;;  %v4279_v23 = vld [vmem:[%s4725_s6 + $0xb8] sm:$0xff]   ;;  %v4281_v25 = vld [vmem:[%s4725_s6 + $0xc0] sm:$0xff]  }
  0x16   : > { %3944 = vmatprep.subr.bf16.mxu1 %v4285_v21  ;;  %v4282_v26 = vld [vmem:[%s4725_s6 + $0x48] sm:$0xff]   ;;  %v4286_v28 = vld [vmem:[%s4725_s6 + $0x50] sm:$0xff]   ;;  %v4288_v30 = vld [vmem:[%s4725_s6 + $0x58] sm:$0xff]  }
  0x17   : > { %3909 = vmatpush3.bf16.msra.mxu0 %v4284_v20  ;;  %v4283_v27 = vld [vmem:[%s4725_s6 + $0xc8] sm:$0xff]   ;;  %v4287_v29 = vld [vmem:[%s4725_s6 + $0xd0] sm:$0xff]   ;;  %v4289_v31 = vld [vmem:[%s4725_s6 + $0xd8] sm:$0xff]  }
  0x18   : > { %3945 = vmatpush3.bf16.msra.mxu1 %v4285_v21  ;;  %v4290_v34 = vld [vmem:[%s4725_s6 + $0x60] sm:$0xff]   ;;  %3978 = vmatprep.subr.bf16.mxu0 %v4302_v32  ;;  %v4292_v36 = vld [vmem:[%s4725_s6 + $0x68] sm:$0xff]   ;;  %v4294_v38 = vld [vmem:[%s4725_s6 + $0x70] sm:$0xff]  }
  0x19   : > { %v4291_v35 = vld [vmem:[%s4725_s6 + $0xe0] sm:$0xff]   ;;  %4014 = vmatprep.subr.bf16.mxu1 %v4303_v33  ;;  %v4293_v37 = vld [vmem:[%s4725_s6 + $0xe8] sm:$0xff]   ;;  %v4295_v39 = vld [vmem:[%s4725_s6 + $0xf0] sm:$0xff]  }
  0x1a   : > { %3843 = vmatmul.mubr.msk.bf16.gmra.mrb[4].mxu0 %vm626_vm0, %v4270_v12  ;;  %v4296_v40 = vld [vmem:[%s4725_s6 + $0x78] sm:$0xff]   ;;  %v4298_v42 = vld [vmem:[%s4725_s6 + $0x100] sm:$0xff]   ;;  %v4300_v44 = vld [vmem:[%s4725_s6 + $0x108] sm:$0xff]  }
  0x1b   : > { %3879 = vmatmul.mubr.msk.bf16.gmra.mrb[4].mxu1 %vm626_vm0, %v4271_v13  ;;  %3846 = vmatprep.mubr.msk.bf16.mxu0 %vm626_vm0, %v4272_v14  ;;  %v4297_v41 = vld [vmem:[%s4725_s6 + $0xf8] sm:$0xff]   ;;  %v4299_v43 = vld [vmem:[%s4725_s6 + $0x180] sm:$0xff]   ;;  %v4301_v45 = vld [vmem:[%s4725_s6 + $0x188] sm:$0xff]  }
  0x1c   : > { %3882 = vmatprep.mubr.msk.bf16.mxu1 %vm626_vm0, %v4273_v15  ;;  %v4304_v46 = vld [vmem:[%s4725_s6 + $0x110] sm:$0xff]   ;;  %v4306_v50 = vld [vmem:[%s4725_s6 + $0x118] sm:$0xff]   ;;  %v4308_v52 = vld [vmem:[%s4725_s6 + $0x120] sm:$0xff]  }
  0x1d   : > { %v4305_v47 = vld [vmem:[%s4725_s6 + $0x190] sm:$0xff]   ;;  %v4307_v51 = vld [vmem:[%s4725_s6 + $0x198] sm:$0xff]   ;;  %v4309_v53 = vld [vmem:[%s4725_s6 + $0x1a0] sm:$0xff]  }
  0x1e   : > { %v4310_v56 = vld [vmem:[%s4725_s6 + $0x128] sm:$0xff]   ;;  %v4312_v58 = vld [vmem:[%s4725_s6 + $0x130] sm:$0xff]   ;;  %v4314_v60 = vld [vmem:[%s4725_s6 + $0x138] sm:$0xff]  }
  0x1f   : > { %v4311_v57 = vld [vmem:[%s4725_s6 + $0x1a8] sm:$0xff]   ;;  %v4313_v59 = vld [vmem:[%s4725_s6 + $0x1b0] sm:$0xff]   ;;  %v4315_v61 = vld [vmem:[%s4725_s6 + $0x1b8] sm:$0xff]  }
  0x20   : > { %v4316_v62 = vld [vmem:[%s4725_s6 + $0x140] sm:$0xff]   ;;  %v4318_v0 = vld [vmem:[%s4725_s6 + $0x148] sm:$0xff]   ;;  %v4322_v2 = vld [vmem:[%s4725_s6 + $0x150] sm:$0xff]  }
  0x21   : > { %v4317_v63 = vld [vmem:[%s4725_s6 + $0x1c0] sm:$0xff]   ;;  %v4319_v1 = vld [vmem:[%s4725_s6 + $0x1c8] sm:$0xff]   ;;  %v4323_v3 = vld [vmem:[%s4725_s6 + $0x1d0] sm:$0xff]  }
  0x22   : > { %3847 = vmatmul.mubr.msk.bf16.gmra.mrb[8].mxu0 %vm626_vm0, %v4274_v16  ;;  %v4324_v4 = vld [vmem:[%s4725_s6 + $0x158] sm:$0xff]   ;;  %v4326_v6 = vld [vmem:[%s4725_s6 + $0x160] sm:$0xff]   ;;  %v4328_v8 = vld [vmem:[%s4725_s6 + $0x168] sm:$0xff]  }
  0x23   : > { %3883 = vmatmul.mubr.msk.bf16.gmra.mrb[8].mxu1 %vm626_vm0, %v4275_v17  ;;  %3850 = vmatprep.mubr.msk.bf16.mxu0 %vm626_vm0, %v4276_v18  ;;  %v4325_v5 = vld [vmem:[%s4725_s6 + $0x1d8] sm:$0xff]   ;;  %v4327_v7 = vld [vmem:[%s4725_s6 + $0x1e0] sm:$0xff]   ;;  %v4329_v9 = vld [vmem:[%s4725_s6 + $0x1e8] sm:$0xff]  }
  0x24   : > { %3886 = vmatprep.mubr.msk.bf16.mxu1 %vm626_vm0, %v4277_v19  ;;  %v4330_v10 = vld [vmem:[%s4725_s6 + $0x170] sm:$0xff]   ;;  %v4332_v12 = vld [vmem:[%s4725_s6 + $0x178] sm:$0xff]   ;;  %v4334_v14 = vld [vmem:[%s4829_s27] sm:$0xff]  }
  0x25   : > { %v4331_v11 = vld [vmem:[%s4725_s6 + $0x1f0] sm:$0xff]   ;;  %v4333_v13 = vld [vmem:[%s4725_s6 + $0x1f8] sm:$0xff]   ;;  %v4335_v15 = vld [vmem:[%s4829_s27 + $0x80] sm:$0xff]  }
  0x26   : > { %v4336_v16 = vld [vmem:[%s4829_s27 + $0x8] sm:$0xff]   ;;  %v4340_v18 = vld [vmem:[%s4829_s27 + $0x10] sm:$0xff]   ;;  %v4357_v21 = vld [vmem:[%s5306_s1 + $0x38] sm:$0xff]  }
  0x27   : > { %v4337_v17 = vld [vmem:[%s4829_s27 + $0x88] sm:$0xff]   ;;  %v4341_v19 = vld [vmem:[%s4829_s27 + $0x90] sm:$0xff]  }
  0x28   : > { %v4356_v20 = vld [vmem:[%s5306_s1 + $0x28] sm:$0xff]  }
  0x2a   : > { %3851 = vmatmul.mubr.msk.bf16.gmra.mrb[12].mxu0 %vm626_vm0, %v4278_v22  ;;  %v4342_v22 = vld [vmem:[%s4829_s27 + $0x18] sm:$0xff]  }
  0x2b   : > { %3887 = vmatmul.mubr.msk.bf16.gmra.mrb[12].mxu1 %vm626_vm0, %v4279_v23  ;;  %3854 = vmatprep.mubr.msk.bf16.mxu0 %vm626_vm0, %v4280_v24  ;;  %v4343_v23 = vld [vmem:[%s4829_s27 + $0x98] sm:$0xff]   ;;  %v4344_v24 = vld [vmem:[%s4829_s27 + $0x20] sm:$0xff]  }
  0x2c   : > { %3890 = vmatprep.mubr.msk.bf16.mxu1 %vm626_vm0, %v4281_v25  ;;  %v4345_v25 = vld [vmem:[%s4829_s27 + $0xa0] sm:$0xff]  }
  0x32   : > { %3855 = vmatmul.mubr.msk.bf16.gmra.mrb[16].mxu0 %vm626_vm0, %v4282_v26  ;;  %v4346_v26 = vld [vmem:[%s4829_s27 + $0x28] sm:$0xff]  }
  0x33   : > { %3891 = vmatmul.mubr.msk.bf16.gmra.mrb[16].mxu1 %vm626_vm0, %v4283_v27  ;;  %3858 = vmatprep.mubr.msk.bf16.mxu0 %vm626_vm0, %v4286_v28  ;;  %v4347_v27 = vld [vmem:[%s4829_s27 + $0xa8] sm:$0xff]   ;;  %v4348_v28 = vld [vmem:[%s4829_s27 + $0x30] sm:$0xff]  }
  0x34   : > { %3894 = vmatprep.mubr.msk.bf16.mxu1 %vm626_vm0, %v4287_v29  ;;  %v4349_v29 = vld [vmem:[%s4829_s27 + $0xb0] sm:$0xff]  }
  0x3a   : > { %3859 = vmatmul.mubr.msk.bf16.gmra.mrb[20].mxu0 %vm626_vm0, %v4288_v30  ;;  %v4350_v30 = vld [vmem:[%s4829_s27 + $0x38] sm:$0xff]  }
  0x3b   : > { %3895 = vmatmul.mubr.msk.bf16.gmra.mrb[20].mxu1 %vm626_vm0, %v4289_v31  ;;  %3862 = vmatprep.mubr.msk.bf16.mxu0 %vm626_vm0, %v4290_v34  ;;  %v4351_v31 = vld [vmem:[%s4829_s27 + $0xb8] sm:$0xff]   ;;  %v4354_v34 = vld [vmem:[%s4829_s27 + $0x48] sm:$0xff]  }
  0x3c   : > { %3898 = vmatprep.mubr.msk.bf16.mxu1 %vm626_vm0, %v4291_v35  ;;  %v4355_v35 = vld [vmem:[%s4829_s27 + $0xc8] sm:$0xff]  }
  0x42   : > { %3863 = vmatmul.mubr.msk.bf16.gmra.mrb[24].mxu0 %vm626_vm0, %v4292_v36  ;;  %v4358_v36 = vld [vmem:[%s4829_s27 + $0x50] sm:$0xff]  }
  0x43   : > { %3899 = vmatmul.mubr.msk.bf16.gmra.mrb[24].mxu1 %vm626_vm0, %v4293_v37  ;;  %3866 = vmatprep.mubr.msk.bf16.mxu0 %vm626_vm0, %v4294_v38  ;;  %v4359_v37 = vld [vmem:[%s4829_s27 + $0xd0] sm:$0xff]   ;;  %v4360_v38 = vld [vmem:[%s4829_s27 + $0x58] sm:$0xff]  }
  0x44   : > { %3902 = vmatprep.mubr.msk.bf16.mxu1 %vm626_vm0, %v4295_v39  ;;  %v4361_v39 = vld [vmem:[%s4829_s27 + $0xd8] sm:$0xff]  }
  0x4a   : > { %3867 = vmatmul.mubr.msk.bf16.gmra.mrb[28].mxu0 %vm626_vm0, %v4296_v40  ;;  %v4362_v40 = vld [vmem:[%s4829_s27 + $0x60] sm:$0xff]  }
  0x4b   : > { %3903 = vmatmul.mubr.msk.bf16.gmra.mrb[28].mxu1 %vm626_vm0, %v4297_v41  ;;  %3910 = vmatprep.mubr.msk.bf16.mxu0 %vm626_vm0, %v4298_v42  ;;  %v4363_v41 = vld [vmem:[%s4829_s27 + $0xe0] sm:$0xff]   ;;  %v4364_v42 = vld [vmem:[%s4829_s27 + $0x68] sm:$0xff]  }
  0x4c   : > { %3946 = vmatprep.mubr.msk.bf16.mxu1 %vm626_vm0, %v4299_v43  ;;  %v4365_v43 = vld [vmem:[%s4829_s27 + $0xe8] sm:$0xff]  }
  0x52   : > { %3911 = vmatmul.mubr.msk.bf16.vlgmr.msra.gmra.mrb[32].mxu0 %vm626_vm0, %v4300_v44  ;;  %v4366_v44 = vld [vmem:[%s4829_s27 + $0x70] sm:$0xff]  }
  0x53   : > { %3947 = vmatmul.mubr.msk.bf16.vlgmr.msra.gmra.mrb[32].mxu1 %vm626_vm0, %v4301_v45  ;;  %3979 = vmatpush3.bf16.msra.mxu0 %v4302_v32  ;;  %v4352_v32 = vld [vmem:[%s4829_s27 + $0x40] sm:$0xff]   ;;  %v4367_v45 = vld [vmem:[%s4829_s27 + $0xf0] sm:$0xff]  }
  0x54   : > { %4015 = vmatpush3.bf16.msra.mxu1 %v4303_v33  ;;  %3914 = vmatprep.mubr.msk.bf16.mxu0 %vm626_vm0, %v4304_v46  ;;  %v4353_v33 = vld [vmem:[%s4829_s27 + $0xc0] sm:$0xff]   ;;  %v4368_v46 = vld [vmem:[%s4829_s27 + $0x78] sm:$0xff]  }
  0x55   : > { %3950 = vmatprep.mubr.msk.bf16.mxu1 %vm626_vm0, %v4305_v47  ;;  %3980 = vmatprep.subr.bf16.mxu0 %v4320_v48  ;;  %v4369_v47 = vld [vmem:[%s4829_s27 + $0xf8] sm:$0xff]  }
  0x56   : > { %4016 = vmatprep.subr.bf16.mxu1 %v4321_v49 }
  0x57   : > { %3981 = vmatpush3.bf16.msra.mxu0 %v4320_v48  ;;  %v4370_v48 = vld [vmem:[%s4829_s27 + $0x100] sm:$0xff]  }
  0x58   : > { %4017 = vmatpush3.bf16.msra.mxu1 %v4321_v49  ;;  %4050 = vmatprep.subr.bf16.mxu0 %v4841_v54  ;;  %v4371_v49 = vld [vmem:[%s4829_s27 + $0x180] sm:$0xff]  }
  0x59   : > { %4086 = vmatprep.subr.bf16.mxu1 %v4339_v55 }
  0x5a   : > { %3915 = vmatmul.mubr.msk.bf16.gmra.mrb[36].mxu0 %vm626_vm0, %v4306_v50  ;;  %v4372_v50 = vld [vmem:[%s4829_s27 + $0x108] sm:$0xff]  }
  0x5b   : > { %3951 = vmatmul.mubr.msk.bf16.gmra.mrb[36].mxu1 %vm626_vm0, %v4307_v51  ;;  %3918 = vmatprep.mubr.msk.bf16.mxu0 %vm626_vm0, %v4308_v52  ;;  %v4373_v51 = vld [vmem:[%s4829_s27 + $0x188] sm:$0xff]   ;;  %v4374_v52 = vld [vmem:[%s4829_s27 + $0x110] sm:$0xff]  }
  0x5c   : > { %3954 = vmatprep.mubr.msk.bf16.mxu1 %vm626_vm0, %v4309_v53  ;;  %v4375_v53 = vld [vmem:[%s4829_s27 + $0x190] sm:$0xff]  }
  0x62   : > { %3919 = vmatmul.mubr.msk.bf16.gmra.mrb[40].mxu0 %vm626_vm0, %v4310_v56  ;;  %v4378_v56 = vld [vmem:[%s4829_s27 + $0x120] sm:$0xff]  }
  0x63   : > { %3955 = vmatmul.mubr.msk.bf16.gmra.mrb[40].mxu1 %vm626_vm0, %v4311_v57  ;;  %3922 = vmatprep.mubr.msk.bf16.mxu0 %vm626_vm0, %v4312_v58  ;;  %v4379_v57 = vld [vmem:[%s4829_s27 + $0x1a0] sm:$0xff]   ;;  %v4380_v58 = vld [vmem:[%s4829_s27 + $0x128] sm:$0xff]  }
  0x64   : > { %3958 = vmatprep.mubr.msk.bf16.mxu1 %vm626_vm0, %v4313_v59  ;;  %v4381_v59 = vld [vmem:[%s4829_s27 + $0x1a8] sm:$0xff]  }
  0x6a   : > { %3923 = vmatmul.mubr.msk.bf16.gmra.mrb[44].mxu0 %vm626_vm0, %v4314_v60  ;;  %v4382_v60 = vld [vmem:[%s4829_s27 + $0x130] sm:$0xff]  }
  0x6b   : > { %3959 = vmatmul.mubr.msk.bf16.gmra.mrb[44].mxu1 %vm626_vm0, %v4315_v61  ;;  %3926 = vmatprep.mubr.msk.bf16.mxu0 %vm626_vm0, %v4316_v62  ;;  %v4383_v61 = vld [vmem:[%s4829_s27 + $0x1b0] sm:$0xff]   ;;  %v4384_v62 = vld [vmem:[%s4829_s27 + $0x138] sm:$0xff]  }
  0x6c   : > { %3962 = vmatprep.mubr.msk.bf16.mxu1 %vm626_vm0, %v4317_v63  ;;  %v4385_v63 = vld [vmem:[%s4829_s27 + $0x1b8] sm:$0xff]  }
  0x72   : > { %3927 = vmatmul.mubr.msk.bf16.gmra.mrb[48].mxu0 %vm626_vm0, %v4318_v0  ;;  %v4386_v0 = vld [vmem:[%s4829_s27 + $0x140] sm:$0xff]  }
  0x73   : > { %3963 = vmatmul.mubr.msk.bf16.gmra.mrb[48].mxu1 %vm626_vm0, %v4319_v1  ;;  %3930 = vmatprep.mubr.msk.bf16.mxu0 %vm626_vm0, %v4322_v2  ;;  %v4387_v1 = vld [vmem:[%s4829_s27 + $0x1c0] sm:$0xff]   ;;  %v4388_v2 = vld [vmem:[%s4829_s27 + $0x148] sm:$0xff]  }
  0x74   : > { %3966 = vmatprep.mubr.msk.bf16.mxu1 %vm626_vm0, %v4323_v3  ;;  %v4389_v3 = vld [vmem:[%s4829_s27 + $0x1c8] sm:$0xff]  }
  0x7a   : > { %3931 = vmatmul.mubr.msk.bf16.gmra.mrb[52].mxu0 %vm626_vm0, %v4324_v4  ;;  %v4390_v4 = vld [vmem:[%s4829_s27 + $0x150] sm:$0xff]  }
  0x7b   : > { %3967 = vmatmul.mubr.msk.bf16.gmra.mrb[52].mxu1 %vm626_vm0, %v4325_v5  ;;  %3934 = vmatprep.mubr.msk.bf16.mxu0 %vm626_vm0, %v4326_v6  ;;  %v4391_v5 = vld [vmem:[%s4829_s27 + $0x1d0] sm:$0xff]   ;;  %v4392_v6 = vld [vmem:[%s4829_s27 + $0x158] sm:$0xff]  }
  0x7c   : > { %3970 = vmatprep.mubr.msk.bf16.mxu1 %vm626_vm0, %v4327_v7  ;;  %v4393_v7 = vld [vmem:[%s4829_s27 + $0x1d8] sm:$0xff]  }
  0x82   : > { %3935 = vmatmul.mubr.msk.bf16.gmra.mrb[56].mxu0 %vm626_vm0, %v4328_v8  ;;  %v4394_v8 = vld [vmem:[%s4829_s27 + $0x160] sm:$0xff]  }
  0x83   : > { %3971 = vmatmul.mubr.msk.bf16.gmra.mrb[56].mxu1 %vm626_vm0, %v4329_v9  ;;  %3938 = vmatprep.mubr.msk.bf16.mxu0 %vm626_vm0, %v4330_v10  ;;  %v4395_v9 = vld [vmem:[%s4829_s27 + $0x1e0] sm:$0xff]   ;;  %v4396_v10 = vld [vmem:[%s4829_s27 + $0x168] sm:$0xff]  }
  0x84   : > { %3974 = vmatprep.mubr.msk.bf16.mxu1 %vm626_vm0, %v4331_v11  ;;  %v4397_v11 = vld [vmem:[%s4829_s27 + $0x1e8] sm:$0xff]  }
  0x8a   : > { %3939 = vmatmul.mubr.msk.bf16.gmra.mrb[60].mxu0 %vm626_vm0, %v4332_v12  ;;  %v4398_v12 = vld [vmem:[%s4829_s27 + $0x170] sm:$0xff]  }
  0x8b   : > { %3975 = vmatmul.mubr.msk.bf16.gmra.mrb[60].mxu1 %vm626_vm0, %v4333_v13  ;;  %3982 = vmatprep.mubr.msk.bf16.mxu0 %vm626_vm0, %v4334_v14  ;;  %v4399_v13 = vld [vmem:[%s4829_s27 + $0x1f0] sm:$0xff]   ;;  %v4400_v14 = vld [vmem:[%s4829_s27 + $0x178] sm:$0xff]  }
  0x8c   : > { %4018 = vmatprep.mubr.msk.bf16.mxu1 %vm626_vm0, %v4335_v15  ;;  %v4401_v15 = vld [vmem:[%s4829_s27 + $0x1f8] sm:$0xff]  }
  0x92   : > { %3983 = vmatmul.mubr.msk.bf16.vlgmr.msra.gmra.mrb[0].mxu0 %vm626_vm0, %v4336_v16  ;;  %v5033_v16 = vld [vmem:[%s5309_s4] ss:$0 sm:$0xff] }
  0x93   : > { %4019 = vmatmul.mubr.msk.bf16.vlgmr.msra.gmra.mrb[0].mxu1 %vm626_vm0, %v4337_v17  ;;  %4051 = vmatpush3.bf16.msra.mxu0 %v4841_v54  ;;  %v4376_v54 = vld [vmem:[%s4829_s27 + $0x118] sm:$0xff]  }
  0x94   : > { %4087 = vmatpush3.bf16.msra.mxu1 %v4339_v55  ;;  %3986 = vmatprep.mubr.msk.bf16.mxu0 %vm626_vm0, %v4340_v18  ;;  %v4377_v55 = vld [vmem:[%s4829_s27 + $0x198] sm:$0xff]  }
  0x95   : > { %4022 = vmatprep.mubr.msk.bf16.mxu1 %vm626_vm0, %v4341_v19  ;;  %4052 = vmatprep.subr.bf16.mxu0 %v4356_v20 }
  0x96   : > { %4088 = vmatprep.subr.bf16.mxu1 %v4357_v21 }
  0x97   : > { %4053 = vmatpush3.bf16.msra.mxu0 %v4356_v20 }
  0x98   : > { %4089 = vmatpush3.bf16.msra.mxu1 %v4357_v21 }
  0x9a   : > { %3987 = vmatmul.mubr.msk.bf16.gmra.mrb[4].mxu0 %vm626_vm0, %v4342_v22 }
  0x9b   : > { %4023 = vmatmul.mubr.msk.bf16.gmra.mrb[4].mxu1 %vm626_vm0, %v4343_v23  ;;  %3990 = vmatprep.mubr.msk.bf16.mxu0 %vm626_vm0, %v4344_v24 }
  0x9c   : > { %4026 = vmatprep.mubr.msk.bf16.mxu1 %vm626_vm0, %v4345_v25 }
  0xa2   : > { %3991 = vmatmul.mubr.msk.bf16.gmra.mrb[8].mxu0 %vm626_vm0, %v4346_v26 }
  0xa3   : > { %4027 = vmatmul.mubr.msk.bf16.gmra.mrb[8].mxu1 %vm626_vm0, %v4347_v27  ;;  %3994 = vmatprep.mubr.msk.bf16.mxu0 %vm626_vm0, %v4348_v28 }
  0xa4   : > { %4030 = vmatprep.mubr.msk.bf16.mxu1 %vm626_vm0, %v4349_v29 }
  0xaa   : > { %3995 = vmatmul.mubr.msk.bf16.gmra.mrb[12].mxu0 %vm626_vm0, %v4350_v30 }
  0xab   : > { %4031 = vmatmul.mubr.msk.bf16.gmra.mrb[12].mxu1 %vm626_vm0, %v4351_v31  ;;  %3998 = vmatprep.mubr.msk.bf16.mxu0 %vm626_vm0, %v4352_v32 }
  0xac   : > { %4034 = vmatprep.mubr.msk.bf16.mxu1 %vm626_vm0, %v4353_v33 }
  0xb2   : > { %3999 = vmatmul.mubr.msk.bf16.gmra.mrb[16].mxu0 %vm626_vm0, %v4354_v34 }
  0xb3   : > { %4035 = vmatmul.mubr.msk.bf16.gmra.mrb[16].mxu1 %vm626_vm0, %v4355_v35  ;;  %4002 = vmatprep.mubr.msk.bf16.mxu0 %vm626_vm0, %v4358_v36 }
  0xb4   : > { %4038 = vmatprep.mubr.msk.bf16.mxu1 %vm626_vm0, %v4359_v37 }
  0xba   : > { %4003 = vmatmul.mubr.msk.bf16.gmra.mrb[20].mxu0 %vm626_vm0, %v4360_v38 }
  0xbb   : > { %4039 = vmatmul.mubr.msk.bf16.gmra.mrb[20].mxu1 %vm626_vm0, %v4361_v39  ;;  %4006 = vmatprep.mubr.msk.bf16.mxu0 %vm626_vm0, %v4362_v40 }
  0xbc   : > { %4042 = vmatprep.mubr.msk.bf16.mxu1 %vm626_vm0, %v4363_v41 }
  0xc2   : > { %4007 = vmatmul.mubr.msk.bf16.gmra.mrb[24].mxu0 %vm626_vm0, %v4364_v42 }
  0xc3   : > { %4043 = vmatmul.mubr.msk.bf16.gmra.mrb[24].mxu1 %vm626_vm0, %v4365_v43  ;;  %4010 = vmatprep.mubr.msk.bf16.mxu0 %vm626_vm0, %v4366_v44 }
  0xc4   : > { %4046 = vmatprep.mubr.msk.bf16.mxu1 %vm626_vm0, %v4367_v45 }
  0xca   : > { %4011 = vmatmul.mubr.msk.bf16.gmra.mrb[28].mxu0 %vm626_vm0, %v4368_v46 }
  0xcb   : > { %4047 = vmatmul.mubr.msk.bf16.gmra.mrb[28].mxu1 %vm626_vm0, %v4369_v47  ;;  %4054 = vmatprep.mubr.msk.bf16.mxu0 %vm626_vm0, %v4370_v48 }
  0xcc   : > { %4090 = vmatprep.mubr.msk.bf16.mxu1 %vm626_vm0, %v4371_v49 }
  0xd2   : > { %4055 = vmatmul.mubr.msk.bf16.vlgmr.msra.gmra.mrb[32].mxu0 %vm626_vm0, %v4372_v50 }
  0xd3   : > { %4091 = vmatmul.mubr.msk.bf16.vlgmr.msra.gmra.mrb[32].mxu1 %vm626_vm0, %v4373_v51  ;;  %4058 = vmatprep.mubr.msk.bf16.mxu0 %vm626_vm0, %v4374_v52 }
  0xd4   : > { %4094 = vmatprep.mubr.msk.bf16.mxu1 %vm626_vm0, %v4375_v53 }
  0xda   : > { %4059 = vmatmul.mubr.msk.bf16.gmra.mrb[36].mxu0 %vm626_vm0, %v4376_v54 }
  0xdb   : > { %4095 = vmatmul.mubr.msk.bf16.gmra.mrb[36].mxu1 %vm626_vm0, %v4377_v55  ;;  %4062 = vmatprep.mubr.msk.bf16.mxu0 %vm626_vm0, %v4378_v56 }
  0xdc   : > { %4098 = vmatprep.mubr.msk.bf16.mxu1 %vm626_vm0, %v4379_v57 }
  0xe2   : > { %4063 = vmatmul.mubr.msk.bf16.gmra.mrb[40].mxu0 %vm626_vm0, %v4380_v58 }
  0xe3   : > { %4099 = vmatmul.mubr.msk.bf16.gmra.mrb[40].mxu1 %vm626_vm0, %v4381_v59  ;;  %4066 = vmatprep.mubr.msk.bf16.mxu0 %vm626_vm0, %v4382_v60 }
  0xe4   : > { %4102 = vmatprep.mubr.msk.bf16.mxu1 %vm626_vm0, %v4383_v61 }
  0xea   : > { %4067 = vmatmul.mubr.msk.bf16.gmra.mrb[44].mxu0 %vm626_vm0, %v4384_v62 }
  0xeb   : > { %4103 = vmatmul.mubr.msk.bf16.gmra.mrb[44].mxu1 %vm626_vm0, %v4385_v63  ;;  %4070 = vmatprep.mubr.msk.bf16.mxu0 %vm626_vm0, %v4386_v0 }
  0xec   : > { %4106 = vmatprep.mubr.msk.bf16.mxu1 %vm626_vm0, %v4387_v1 }
  0xf2   : > { %4071 = vmatmul.mubr.msk.bf16.gmra.mrb[48].mxu0 %vm626_vm0, %v4388_v2 }
  0xf3   : > { %4107 = vmatmul.mubr.msk.bf16.gmra.mrb[48].mxu1 %vm626_vm0, %v4389_v3  ;;  %4074 = vmatprep.mubr.msk.bf16.mxu0 %vm626_vm0, %v4390_v4 }
  0xf4   : > { %4110 = vmatprep.mubr.msk.bf16.mxu1 %vm626_vm0, %v4391_v5 }
  0xfa   : > { %4075 = vmatmul.mubr.msk.bf16.gmra.mrb[52].mxu0 %vm626_vm0, %v4392_v6 }
  0xfb   : > { %4111 = vmatmul.mubr.msk.bf16.gmra.mrb[52].mxu1 %vm626_vm0, %v4393_v7  ;;  %4078 = vmatprep.mubr.msk.bf16.mxu0 %vm626_vm0, %v4394_v8 }
  0xfc   : > { %4114 = vmatprep.mubr.msk.bf16.mxu1 %vm626_vm0, %v4395_v9 }
 0x102   : > { %4079 = vmatmul.mubr.msk.bf16.gmra.mrb[56].mxu0 %vm626_vm0, %v4396_v10 }
 0x103   : > { %4115 = vmatmul.mubr.msk.bf16.gmra.mrb[56].mxu1 %vm626_vm0, %v4397_v11  ;;  %4082 = vmatprep.mubr.msk.bf16.mxu0 %vm626_vm0, %v4398_v12 }
 0x104   : > { %4118 = vmatprep.mubr.msk.bf16.mxu1 %vm626_vm0, %v4399_v13 }
 0x10a   : > { %4083 = vmatmul.mubr.msk.bf16.gmra.mrb[60].mxu0 %vm626_vm0, %v4400_v14 }
 0x10b   : > { %4119 = vmatmul.mubr.msk.bf16.gmra.mrb[60].mxu1 %vm626_vm0, %v4401_v15 }
 0x165   : > { %v3984_v17 = vpop.f32.mrb[0].mxu0 }
 0x166   : > { %v2952_v18 = vadd.f32 %v3984_v17, %v5033_v16  ;;  %v4020_v19 = vpop.f32.mrb[0].mxu1  ;;  %v1913_v20 = vpop.f32.mrb[1].mxu0 }
 0x167   : > { %v2984_v21 = vadd.f32 %v4020_v19, %v5033_v16  ;;  %v2950_v22 = vadd.f32 %v5033_v16, %v1913_v20  ;;  %v2214_v23 = vpop.f32.mrb[1].mxu1  ;;  %v3985_v24 = vpop.f32.mrb[2].mxu0 }
 0x168   : > { %4402 = vtanh.f32 %v2952_v18  ;;  %v2982_v25 = vadd.f32 %v5033_v16, %v2214_v23  ;;  %v2953_v26 = vadd.f32 %v3985_v24, %v5033_v16  ;;  %v4021_v27 = vpop.f32.mrb[2].mxu1  ;;  %v1916_v28 = vpop.f32.mrb[3].mxu0 }
 0x169   : > { %4404 = vtanh.f32 %v2984_v21  ;;  %v2985_v29 = vadd.f32 %v4021_v27, %v5033_v16  ;;  %v2217_v30 = vpop.f32.mrb[3].mxu1  ;;  %v2951_v31 = vadd.f32 %v5033_v16, %v1916_v28 }
 0x16a   : > { %4406 = vtanh.f32 %v2950_v22  ;;  %v2983_v32 = vadd.f32 %v5033_v16, %v2217_v30 }
 0x16b   : > { %4408 = vtanh.f32 %v2982_v25 }
 0x16c   : > { %4410 = vtanh.f32 %v2953_v26 }
 0x16d   : > { %4412 = vtanh.f32 %v2985_v29  ;;  %v3988_v33 = vpop.f32.mrb[4].mxu0 }
 0x16e   : > { %4414 = vtanh.f32 %v2951_v31  ;;  %v2956_v34 = vadd.f32 %v3988_v33, %v5033_v16  ;;  %v4024_v35 = vpop.f32.mrb[4].mxu1  ;;  %v1929_v36 = vpop.f32.mrb[5].mxu0 }
 0x16f   : > { %4416 = vtanh.f32 %v2983_v32  ;;  %v2988_v37 = vadd.f32 %v4024_v35, %v5033_v16  ;;  %v2954_v38 = vadd.f32 %v5033_v16, %v1929_v36  ;;  %v2230_v39 = vpop.f32.mrb[5].mxu1  ;;  %v3989_v40 = vpop.f32.mrb[6].mxu0 }
 0x170   : > { %4418 = vtanh.f32 %v2956_v34  ;;  %v2986_v41 = vadd.f32 %v5033_v16, %v2230_v39  ;;  %v2957_v42 = vadd.f32 %v3989_v40, %v5033_v16  ;;  %v4025_v43 = vpop.f32.mrb[6].mxu1  ;;  %v1932_v44 = vpop.f32.mrb[7].mxu0 }
 0x171   : > { %4420 = vtanh.f32 %v2988_v37  ;;  %v2989_v45 = vadd.f32 %v4025_v43, %v5033_v16  ;;  %v2233_v46 = vpop.f32.mrb[7].mxu1  ;;  %v2955_v48 = vadd.f32 %v5033_v16, %v1932_v44 }
 0x172   : > { %v4403_v47 = vpop.eup %4402  ;;  %4422 = vtanh.f32 %v2954_v38  ;;  %v2987_v50 = vadd.f32 %v5033_v16, %v2233_v46 }
 0x173   : > { %v4405_v49 = vpop.eup %4404  ;;  %3208 = vst [vmem:[%s5050_s16 + $0x10] sm:$0xff] %v4403_v47  ;;  %4424 = vtanh.f32 %v2986_v41 }
 0x174   : > { %v4407_v51 = vpop.eup %4406  ;;  %3240 = vst [vmem:[%s5050_s16 + $0x110] sm:$0xff] %v4405_v49  ;;  %4426 = vtanh.f32 %v2957_v42 }
 0x175   : > { %v4409_v52 = vpop.eup %4408  ;;  %3206 = vst [vmem:[%s5050_s16] sm:$0xff] %v4407_v51  ;;  %4428 = vtanh.f32 %v2989_v45  ;;  %v3992_v53 = vpop.f32.mrb[8].mxu0 }
 0x176   : > { %v4411_v54 = vpop.eup %4410  ;;  %3238 = vst [vmem:[%s5050_s16 + $0x100] sm:$0xff] %v4409_v52  ;;  %4430 = vtanh.f32 %v2955_v48  ;;  %v2960_v55 = vadd.f32 %v3992_v53, %v5033_v16  ;;  %v4028_v56 = vpop.f32.mrb[8].mxu1 }
 0x177   : > { %v1945_v57 = vpop.f32.mrb[9].mxu0  ;;  %v4413_v58 = vpop.eup %4412  ;;  %3209 = vst [vmem:[%s5050_s16 + $0x18] sm:$0xff] %v4411_v54  ;;  %4432 = vtanh.f32 %v2987_v50  ;;  %v2992_v59 = vadd.f32 %v4028_v56, %v5033_v16 }
 0x178   : > { %v2958_v60 = vadd.f32 %v5033_v16, %v1945_v57  ;;  %v2246_v61 = vpop.f32.mrb[9].mxu1  ;;  %v3993_v62 = vpop.f32.mrb[10].mxu0  ;;  %3241 = vst [vmem:[%s5050_s16 + $0x118] sm:$0xff] %v4413_v58  ;;  %4434 = vtanh.f32 %v2960_v55 }
 0x179   : > { %v4415_v63 = vpop.eup %4414  ;;  %v2990_v0 = vadd.f32 %v5033_v16, %v2246_v61  ;;  %v2961_v1 = vadd.f32 %v3993_v62, %v5033_v16  ;;  %v4029_v2 = vpop.f32.mrb[10].mxu1  ;;  %4436 = vtanh.f32 %v2992_v59 }
 0x17a   : > { %v1948_v3 = vpop.f32.mrb[11].mxu0  ;;  %v4417_v4 = vpop.eup %4416  ;;  %3207 = vst [vmem:[%s5050_s16 + $0x8] sm:$0xff] %v4415_v63  ;;  %v2993_v5 = vadd.f32 %v4029_v2, %v5033_v16  ;;  %4438 = vtanh.f32 %v2958_v60 }
 0x17b   : > { %v2249_v6 = vpop.f32.mrb[11].mxu1  ;;  %v4419_v7 = vpop.eup %4418  ;;  %3239 = vst [vmem:[%s5050_s16 + $0x108] sm:$0xff] %v4417_v4  ;;  %v2959_v8 = vadd.f32 %v5033_v16, %v1948_v3  ;;  %4440 = vtanh.f32 %v2990_v0 }
 0x17c   : > { %v4421_v9 = vpop.eup %4420  ;;  %3212 = vst [vmem:[%s5050_s16 + $0x30] sm:$0xff] %v4419_v7  ;;  %v2991_v10 = vadd.f32 %v5033_v16, %v2249_v6  ;;  %4442 = vtanh.f32 %v2961_v1 }
 0x17d   : > { %v4423_v11 = vpop.eup %4422  ;;  %3244 = vst [vmem:[%s5050_s16 + $0x130] sm:$0xff] %v4421_v9  ;;  %4444 = vtanh.f32 %v2993_v5  ;;  %v3996_v13 = vpop.f32.mrb[12].mxu0 }
 0x17e   : > { %v4425_v12 = vpop.eup %4424  ;;  %3210 = vst [vmem:[%s5050_s16 + $0x20] sm:$0xff] %v4423_v11  ;;  %4446 = vtanh.f32 %v2959_v8  ;;  %v2964_v15 = vadd.f32 %v3996_v13, %v5033_v16  ;;  %v4032_v17 = vpop.f32.mrb[12].mxu1 }
 0x17f   : > { %v4427_v14 = vpop.eup %4426  ;;  %3242 = vst [vmem:[%s5050_s16 + $0x120] sm:$0xff] %v4425_v12  ;;  %v1961_v18 = vpop.f32.mrb[13].mxu0  ;;  %4448 = vtanh.f32 %v2991_v10  ;;  %v2996_v20 = vadd.f32 %v4032_v17, %v5033_v16 }
 0x180   : > { %v4429_v19 = vpop.eup %4428  ;;  %3213 = vst [vmem:[%s5050_s16 + $0x38] sm:$0xff] %v4427_v14  ;;  %v2962_v21 = vadd.f32 %v5033_v16, %v1961_v18  ;;  %v2262_v22 = vpop.f32.mrb[13].mxu1  ;;  %4450 = vtanh.f32 %v2964_v15 }
 0x181   : > { %v3997_v23 = vpop.f32.mrb[14].mxu0  ;;  %v4431_v24 = vpop.eup %4430  ;;  %3245 = vst [vmem:[%s5050_s16 + $0x138] sm:$0xff] %v4429_v19  ;;  %v2994_v25 = vadd.f32 %v5033_v16, %v2262_v22  ;;  %4452 = vtanh.f32 %v2996_v20 }
 0x182   : > { %v2965_v26 = vadd.f32 %v3997_v23, %v5033_v16  ;;  %v4033_v27 = vpop.f32.mrb[14].mxu1  ;;  %v1964_v28 = vpop.f32.mrb[15].mxu0  ;;  %3211 = vst [vmem:[%s5050_s16 + $0x28] sm:$0xff] %v4431_v24  ;;  %4454 = vtanh.f32 %v2962_v21 }
 0x183   : > { %v4433_v29 = vpop.eup %4432  ;;  %v2997_v30 = vadd.f32 %v4033_v27, %v5033_v16  ;;  %v2265_v31 = vpop.f32.mrb[15].mxu1  ;;  %v2963_v33 = vadd.f32 %v5033_v16, %v1964_v28  ;;  %4456 = vtanh.f32 %v2994_v25 }
 0x184   : > { %v4435_v32 = vpop.eup %4434  ;;  %3243 = vst [vmem:[%s5050_s16 + $0x128] sm:$0xff] %v4433_v29  ;;  %v2995_v35 = vadd.f32 %v5033_v16, %v2265_v31  ;;  %4458 = vtanh.f32 %v2965_v26 }
 0x185   : > { %v4437_v34 = vpop.eup %4436  ;;  %3216 = vst [vmem:[%s5050_s16 + $0x50] sm:$0xff] %v4435_v32  ;;  %4460 = vtanh.f32 %v2997_v30  ;;  %v4000_v38 = vpop.f32.mrb[16].mxu0 }
 0x186   : > { %v4439_v36 = vpop.eup %4438  ;;  %3248 = vst [vmem:[%s5050_s16 + $0x150] sm:$0xff] %v4437_v34  ;;  %4462 = vtanh.f32 %v2963_v33  ;;  %v2968_v40 = vadd.f32 %v4000_v38, %v5033_v16  ;;  %v4036_v41 = vpop.f32.mrb[16].mxu1 }
 0x187   : > { %v4441_v37 = vpop.eup %4440  ;;  %3214 = vst [vmem:[%s5050_s16 + $0x40] sm:$0xff] %v4439_v36  ;;  %v1977_v42 = vpop.f32.mrb[17].mxu0  ;;  %4464 = vtanh.f32 %v2995_v35  ;;  %v3000_v44 = vadd.f32 %v4036_v41, %v5033_v16 }
 0x188   : > { %v4443_v39 = vpop.eup %4442  ;;  %3246 = vst [vmem:[%s5050_s16 + $0x140] sm:$0xff] %v4441_v37  ;;  %v2966_v45 = vadd.f32 %v5033_v16, %v1977_v42  ;;  %v2278_v46 = vpop.f32.mrb[17].mxu1  ;;  %4466 = vtanh.f32 %v2968_v40 }
 0x189   : > { %v4445_v43 = vpop.eup %4444  ;;  %3217 = vst [vmem:[%s5050_s16 + $0x58] sm:$0xff] %v4443_v39  ;;  %v4001_v47 = vpop.f32.mrb[18].mxu0  ;;  %v2998_v49 = vadd.f32 %v5033_v16, %v2278_v46  ;;  %4468 = vtanh.f32 %v3000_v44 }
 0x18a   : > { %v4447_v48 = vpop.eup %4446  ;;  %3249 = vst [vmem:[%s5050_s16 + $0x158] sm:$0xff] %v4445_v43  ;;  %v2969_v50 = vadd.f32 %v4001_v47, %v5033_v16  ;;  %v4037_v51 = vpop.f32.mrb[18].mxu1  ;;  %4470 = vtanh.f32 %v2966_v45 }
 0x18b   : > { %v1980_v52 = vpop.f32.mrb[19].mxu0  ;;  %v4449_v53 = vpop.eup %4448  ;;  %3215 = vst [vmem:[%s5050_s16 + $0x48] sm:$0xff] %v4447_v48  ;;  %v3001_v54 = vadd.f32 %v4037_v51, %v5033_v16  ;;  %4472 = vtanh.f32 %v2998_v49 }
 0x18c   : > { %v2281_v55 = vpop.f32.mrb[19].mxu1  ;;  %v4451_v56 = vpop.eup %4450  ;;  %3247 = vst [vmem:[%s5050_s16 + $0x148] sm:$0xff] %v4449_v53  ;;  %v2967_v57 = vadd.f32 %v5033_v16, %v1980_v52  ;;  %4474 = vtanh.f32 %v2969_v50 }
 0x18d   : > { %v4453_v58 = vpop.eup %4452  ;;  %3220 = vst [vmem:[%s5050_s16 + $0x70] sm:$0xff] %v4451_v56  ;;  %v2999_v59 = vadd.f32 %v5033_v16, %v2281_v55  ;;  %4476 = vtanh.f32 %v3001_v54  ;;  %v4004_v62 = vpop.f32.mrb[20].mxu0 }
 0x18e   : > { %v4455_v60 = vpop.eup %4454  ;;  %3252 = vst [vmem:[%s5050_s16 + $0x170] sm:$0xff] %v4453_v58  ;;  %4478 = vtanh.f32 %v2967_v57  ;;  %v2972_v0 = vadd.f32 %v4004_v62, %v5033_v16  ;;  %v4040_v1 = vpop.f32.mrb[20].mxu1 }
 0x18f   : > { %v4457_v61 = vpop.eup %4456  ;;  %3218 = vst [vmem:[%s5050_s16 + $0x60] sm:$0xff] %v4455_v60  ;;  %v1993_v2 = vpop.f32.mrb[21].mxu0  ;;  %4480 = vtanh.f32 %v2999_v59  ;;  %v3004_v4 = vadd.f32 %v4040_v1, %v5033_v16 }
 0x190   : > { %v4459_v63 = vpop.eup %4458  ;;  %3250 = vst [vmem:[%s5050_s16 + $0x160] sm:$0xff] %v4457_v61  ;;  %v2970_v5 = vadd.f32 %v5033_v16, %v1993_v2  ;;  %v2294_v6 = vpop.f32.mrb[21].mxu1  ;;  %4482 = vtanh.f32 %v2972_v0 }
 0x191   : > { %v4461_v3 = vpop.eup %4460  ;;  %3221 = vst [vmem:[%s5050_s16 + $0x78] sm:$0xff] %v4459_v63  ;;  %v4005_v7 = vpop.f32.mrb[22].mxu0  ;;  %v3002_v9 = vadd.f32 %v5033_v16, %v2294_v6  ;;  %4484 = vtanh.f32 %v3004_v4 }
 0x192   : > { %v4463_v8 = vpop.eup %4462  ;;  %3253 = vst [vmem:[%s5050_s16 + $0x178] sm:$0xff] %v4461_v3  ;;  %v2973_v10 = vadd.f32 %v4005_v7, %v5033_v16  ;;  %v4041_v11 = vpop.f32.mrb[22].mxu1  ;;  %4486 = vtanh.f32 %v2970_v5 }
 0x193   : > { %v1996_v12 = vpop.f32.mrb[23].mxu0  ;;  %v4465_v13 = vpop.eup %4464  ;;  %3219 = vst [vmem:[%s5050_s16 + $0x68] sm:$0xff] %v4463_v8  ;;  %v3005_v14 = vadd.f32 %v4041_v11, %v5033_v16  ;;  %4488 = vtanh.f32 %v3002_v9 }
 0x194   : > { %v2297_v15 = vpop.f32.mrb[23].mxu1  ;;  %v4467_v17 = vpop.eup %4466  ;;  %3251 = vst [vmem:[%s5050_s16 + $0x168] sm:$0xff] %v4465_v13  ;;  %v2971_v18 = vadd.f32 %v5033_v16, %v1996_v12  ;;  %4490 = vtanh.f32 %v2973_v10 }
 0x195   : > { %v4469_v19 = vpop.eup %4468  ;;  %3224 = vst [vmem:[%s5050_s16 + $0x90] sm:$0xff] %v4467_v17  ;;  %v3003_v20 = vadd.f32 %v5033_v16, %v2297_v15  ;;  %4492 = vtanh.f32 %v3005_v14  ;;  %v4008_v23 = vpop.f32.mrb[24].mxu0 }
 0x196   : > { %v4471_v21 = vpop.eup %4470  ;;  %3256 = vst [vmem:[%s5050_s16 + $0x190] sm:$0xff] %v4469_v19  ;;  %4494 = vtanh.f32 %v2971_v18  ;;  %v2976_v25 = vadd.f32 %v4008_v23, %v5033_v16  ;;  %v4044_v26 = vpop.f32.mrb[24].mxu1 }
 0x197   : > { %v4473_v22 = vpop.eup %4472  ;;  %3222 = vst [vmem:[%s5050_s16 + $0x80] sm:$0xff] %v4471_v21  ;;  %v2009_v27 = vpop.f32.mrb[25].mxu0  ;;  %4496 = vtanh.f32 %v3003_v20  ;;  %v3008_v29 = vadd.f32 %v4044_v26, %v5033_v16 }
 0x198   : > { %v4475_v24 = vpop.eup %4474  ;;  %3254 = vst [vmem:[%s5050_s16 + $0x180] sm:$0xff] %v4473_v22  ;;  %v2974_v30 = vadd.f32 %v5033_v16, %v2009_v27  ;;  %v2310_v31 = vpop.f32.mrb[25].mxu1  ;;  %4498 = vtanh.f32 %v2976_v25 }
 0x199   : > { %v4477_v28 = vpop.eup %4476  ;;  %3225 = vst [vmem:[%s5050_s16 + $0x98] sm:$0xff] %v4475_v24  ;;  %v4009_v32 = vpop.f32.mrb[26].mxu0  ;;  %v3006_v34 = vadd.f32 %v5033_v16, %v2310_v31  ;;  %4500 = vtanh.f32 %v3008_v29 }
 0x19a   : > { %v4479_v33 = vpop.eup %4478  ;;  %3257 = vst [vmem:[%s5050_s16 + $0x198] sm:$0xff] %v4477_v28  ;;  %v2977_v35 = vadd.f32 %v4009_v32, %v5033_v16  ;;  %v4045_v36 = vpop.f32.mrb[26].mxu1  ;;  %4502 = vtanh.f32 %v2974_v30 }
 0x19b   : > { %v2012_v37 = vpop.f32.mrb[27].mxu0  ;;  %v4481_v38 = vpop.eup %4480  ;;  %3223 = vst [vmem:[%s5050_s16 + $0x88] sm:$0xff] %v4479_v33  ;;  %v3009_v39 = vadd.f32 %v4045_v36, %v5033_v16  ;;  %4504 = vtanh.f32 %v3006_v34 }
 0x19c   : > { %v2313_v40 = vpop.f32.mrb[27].mxu1  ;;  %v4483_v41 = vpop.eup %4482  ;;  %3255 = vst [vmem:[%s5050_s16 + $0x188] sm:$0xff] %v4481_v38  ;;  %v2975_v42 = vadd.f32 %v5033_v16, %v2012_v37  ;;  %4506 = vtanh.f32 %v2977_v35 }
 0x19d   : > { %v4485_v43 = vpop.eup %4484  ;;  %3228 = vst [vmem:[%s5050_s16 + $0xb0] sm:$0xff] %v4483_v41  ;;  %v3007_v44 = vadd.f32 %v5033_v16, %v2313_v40  ;;  %4508 = vtanh.f32 %v3009_v39  ;;  %v4012_v47 = vpop.f32.mrb[28].mxu0 }
 0x19e   : > { %v4487_v45 = vpop.eup %4486  ;;  %3260 = vst [vmem:[%s5050_s16 + $0x1b0] sm:$0xff] %v4485_v43  ;;  %4510 = vtanh.f32 %v2975_v42  ;;  %v2980_v49 = vadd.f32 %v4012_v47, %v5033_v16  ;;  %v4048_v50 = vpop.f32.mrb[28].mxu1 }
 0x19f   : > { %v4489_v46 = vpop.eup %4488  ;;  %3226 = vst [vmem:[%s5050_s16 + $0xa0] sm:$0xff] %v4487_v45  ;;  %v2025_v51 = vpop.f32.mrb[29].mxu0  ;;  %4512 = vtanh.f32 %v3007_v44  ;;  %v3012_v53 = vadd.f32 %v4048_v50, %v5033_v16 }
 0x1a0   : > { %v4491_v48 = vpop.eup %4490  ;;  %3258 = vst [vmem:[%s5050_s16 + $0x1a0] sm:$0xff] %v4489_v46  ;;  %v2978_v54 = vadd.f32 %v5033_v16, %v2025_v51  ;;  %v2326_v55 = vpop.f32.mrb[29].mxu1  ;;  %4514 = vtanh.f32 %v2980_v49 }
 0x1a1   : > { %v4493_v52 = vpop.eup %4492  ;;  %3229 = vst [vmem:[%s5050_s16 + $0xb8] sm:$0xff] %v4491_v48  ;;  %v4013_v56 = vpop.f32.mrb[30].mxu0  ;;  %v3010_v58 = vadd.f32 %v5033_v16, %v2326_v55  ;;  %4516 = vtanh.f32 %v3012_v53 }
 0x1a2   : > { %v4495_v57 = vpop.eup %4494  ;;  %3261 = vst [vmem:[%s5050_s16 + $0x1b8] sm:$0xff] %v4493_v52  ;;  %v2981_v59 = vadd.f32 %v4013_v56, %v5033_v16  ;;  %v4049_v60 = vpop.f32.mrb[30].mxu1  ;;  %4518 = vtanh.f32 %v2978_v54 }
 0x1a3   : > { %v2028_v61 = vpop.f32.mrb[31].mxu0  ;;  %v4497_v62 = vpop.eup %4496  ;;  %3227 = vst [vmem:[%s5050_s16 + $0xa8] sm:$0xff] %v4495_v57  ;;  %v3013_v63 = vadd.f32 %v4049_v60, %v5033_v16  ;;  %4520 = vtanh.f32 %v3010_v58 }
 0x1a4   : > { %v2329_v0 = vpop.f32.mrb[31].mxu1  ;;  %v4499_v1 = vpop.eup %4498  ;;  %3259 = vst [vmem:[%s5050_s16 + $0x1a8] sm:$0xff] %v4497_v62  ;;  %v2979_v2 = vadd.f32 %v5033_v16, %v2028_v61  ;;  %4522 = vtanh.f32 %v2981_v59 }
 0x1a5   : > { %v4501_v3 = vpop.eup %4500  ;;  %3232 = vst [vmem:[%s5050_s16 + $0xd0] sm:$0xff] %v4499_v1  ;;  %v3011_v4 = vadd.f32 %v5033_v16, %v2329_v0  ;;  %4524 = vtanh.f32 %v3013_v63  ;;  %v4056_v7 = vpop.f32.mrb[32].mxu0 }
 0x1a6   : > { %v4503_v5 = vpop.eup %4502  ;;  %3264 = vst [vmem:[%s5050_s16 + $0x1d0] sm:$0xff] %v4501_v3  ;;  %4526 = vtanh.f32 %v2979_v2  ;;  %v3016_v9 = vadd.f32 %v4056_v7, %v5033_v16  ;;  %v4092_v10 = vpop.f32.mrb[32].mxu1 }
 0x1a7   : > { %v4505_v6 = vpop.eup %4504  ;;  %3230 = vst [vmem:[%s5050_s16 + $0xc0] sm:$0xff] %v4503_v5  ;;  %v2515_v11 = vpop.f32.mrb[33].mxu0  ;;  %4528 = vtanh.f32 %v3011_v4  ;;  %v3048_v13 = vadd.f32 %v4092_v10, %v5033_v16 }
 0x1a8   : > { %v4507_v8 = vpop.eup %4506  ;;  %3262 = vst [vmem:[%s5050_s16 + $0x1c0] sm:$0xff] %v4505_v6  ;;  %v3014_v14 = vadd.f32 %v5033_v16, %v2515_v11  ;;  %v2816_v15 = vpop.f32.mrb[33].mxu1  ;;  %4530 = vtanh.f32 %v3016_v9 }
 0x1a9   : > { %v4509_v12 = vpop.eup %4508  ;;  %3233 = vst [vmem:[%s5050_s16 + $0xd8] sm:$0xff] %v4507_v8  ;;  %v4057_v17 = vpop.f32.mrb[34].mxu0  ;;  %v3046_v19 = vadd.f32 %v5033_v16, %v2816_v15  ;;  %4532 = vtanh.f32 %v3048_v13 }
 0x1aa   : > { %v4511_v18 = vpop.eup %4510  ;;  %3265 = vst [vmem:[%s5050_s16 + $0x1d8] sm:$0xff] %v4509_v12  ;;  %v3017_v20 = vadd.f32 %v4057_v17, %v5033_v16  ;;  %v4093_v21 = vpop.f32.mrb[34].mxu1  ;;  %4534 = vtanh.f32 %v3014_v14 }
 0x1ab   : > { %v2518_v22 = vpop.f32.mrb[35].mxu0  ;;  %v4513_v23 = vpop.eup %4512  ;;  %3231 = vst [vmem:[%s5050_s16 + $0xc8] sm:$0xff] %v4511_v18  ;;  %v3049_v24 = vadd.f32 %v4093_v21, %v5033_v16  ;;  %4536 = vtanh.f32 %v3046_v19 }
 0x1ac   : > { %v2819_v25 = vpop.f32.mrb[35].mxu1  ;;  %v4515_v26 = vpop.eup %4514  ;;  %3263 = vst [vmem:[%s5050_s16 + $0x1c8] sm:$0xff] %v4513_v23  ;;  %v3015_v27 = vadd.f32 %v5033_v16, %v2518_v22  ;;  %4538 = vtanh.f32 %v3017_v20 }
 0x1ad   : > { %v4517_v28 = vpop.eup %4516  ;;  %3236 = vst [vmem:[%s5050_s16 + $0xf0] sm:$0xff] %v4515_v26  ;;  %v3047_v29 = vadd.f32 %v5033_v16, %v2819_v25  ;;  %4540 = vtanh.f32 %v3049_v24  ;;  %v4060_v32 = vpop.f32.mrb[36].mxu0 }
 0x1ae   : > { %v4519_v30 = vpop.eup %4518  ;;  %3268 = vst [vmem:[%s5050_s16 + $0x1f0] sm:$0xff] %v4517_v28  ;;  %4542 = vtanh.f32 %v3015_v27  ;;  %v3020_v34 = vadd.f32 %v4060_v32, %v5033_v16  ;;  %v4096_v35 = vpop.f32.mrb[36].mxu1 }
 0x1af   : > { %v4521_v31 = vpop.eup %4520  ;;  %3234 = vst [vmem:[%s5050_s16 + $0xe0] sm:$0xff] %v4519_v30  ;;  %v2531_v36 = vpop.f32.mrb[37].mxu0  ;;  %4544 = vtanh.f32 %v3047_v29  ;;  %v3052_v38 = vadd.f32 %v4096_v35, %v5033_v16 }
 0x1b0   : > { %v4523_v33 = vpop.eup %4522  ;;  %3266 = vst [vmem:[%s5050_s16 + $0x1e0] sm:$0xff] %v4521_v31  ;;  %v3018_v39 = vadd.f32 %v5033_v16, %v2531_v36  ;;  %v2832_v40 = vpop.f32.mrb[37].mxu1  ;;  %4546 = vtanh.f32 %v3020_v34 }
 0x1b1   : > { %v4525_v37 = vpop.eup %4524  ;;  %3237 = vst [vmem:[%s5050_s16 + $0xf8] sm:$0xff] %v4523_v33  ;;  %v4061_v41 = vpop.f32.mrb[38].mxu0  ;;  %v3050_v43 = vadd.f32 %v5033_v16, %v2832_v40  ;;  %4548 = vtanh.f32 %v3052_v38 }
 0x1b2   : > { %v4527_v42 = vpop.eup %4526  ;;  %3269 = vst [vmem:[%s5050_s16 + $0x1f8] sm:$0xff] %v4525_v37  ;;  %v3021_v44 = vadd.f32 %v4061_v41, %v5033_v16  ;;  %v4097_v45 = vpop.f32.mrb[38].mxu1  ;;  %4550 = vtanh.f32 %v3018_v39 }
 0x1b3   : > { %v2534_v46 = vpop.f32.mrb[39].mxu0  ;;  %v4529_v47 = vpop.eup %4528  ;;  %3235 = vst [vmem:[%s5050_s16 + $0xe8] sm:$0xff] %v4527_v42  ;;  %v3053_v48 = vadd.f32 %v4097_v45, %v5033_v16  ;;  %4552 = vtanh.f32 %v3050_v43 }
 0x1b4   : > { %v2835_v49 = vpop.f32.mrb[39].mxu1  ;;  %v4531_v50 = vpop.eup %4530  ;;  %3267 = vst [vmem:[%s5050_s16 + $0x1e8] sm:$0xff] %v4529_v47  ;;  %v3019_v51 = vadd.f32 %v5033_v16, %v2534_v46  ;;  %4554 = vtanh.f32 %v3021_v44 }
 0x1b5   : > { %v4533_v52 = vpop.eup %4532  ;;  %3272 = vst [vmem:[%s5050_s16 + $0x210] sm:$0xff] %v4531_v50  ;;  %v3051_v53 = vadd.f32 %v5033_v16, %v2835_v49  ;;  %4556 = vtanh.f32 %v3053_v48  ;;  %v4064_v56 = vpop.f32.mrb[40].mxu0 }
 0x1b6   : > { %v4535_v54 = vpop.eup %4534  ;;  %3304 = vst [vmem:[%s5050_s16 + $0x310] sm:$0xff] %v4533_v52  ;;  %4558 = vtanh.f32 %v3019_v51  ;;  %v3024_v58 = vadd.f32 %v4064_v56, %v5033_v16  ;;  %v4100_v59 = vpop.f32.mrb[40].mxu1 }
 0x1b7   : > { %v4537_v55 = vpop.eup %4536  ;;  %3270 = vst [vmem:[%s5050_s16 + $0x200] sm:$0xff] %v4535_v54  ;;  %v2547_v60 = vpop.f32.mrb[41].mxu0  ;;  %4560 = vtanh.f32 %v3051_v53  ;;  %v3056_v62 = vadd.f32 %v4100_v59, %v5033_v16 }
 0x1b8   : > { %v4539_v57 = vpop.eup %4538  ;;  %3302 = vst [vmem:[%s5050_s16 + $0x300] sm:$0xff] %v4537_v55  ;;  %v3022_v63 = vadd.f32 %v5033_v16, %v2547_v60  ;;  %v2848_v0 = vpop.f32.mrb[41].mxu1  ;;  %4562 = vtanh.f32 %v3024_v58 }
 0x1b9   : > { %v4541_v61 = vpop.eup %4540  ;;  %3273 = vst [vmem:[%s5050_s16 + $0x218] sm:$0xff] %v4539_v57  ;;  %v4065_v1 = vpop.f32.mrb[42].mxu0  ;;  %v3054_v3 = vadd.f32 %v5033_v16, %v2848_v0  ;;  %4564 = vtanh.f32 %v3056_v62 }
 0x1ba   : > { %v4543_v2 = vpop.eup %4542  ;;  %3305 = vst [vmem:[%s5050_s16 + $0x318] sm:$0xff] %v4541_v61  ;;  %v3025_v4 = vadd.f32 %v4065_v1, %v5033_v16  ;;  %v4101_v5 = vpop.f32.mrb[42].mxu1  ;;  %4566 = vtanh.f32 %v3022_v63 }
 0x1bb   : > { %v2550_v6 = vpop.f32.mrb[43].mxu0  ;;  %v4545_v7 = vpop.eup %4544  ;;  %3271 = vst [vmem:[%s5050_s16 + $0x208] sm:$0xff] %v4543_v2  ;;  %v3057_v8 = vadd.f32 %v4101_v5, %v5033_v16  ;;  %4568 = vtanh.f32 %v3054_v3 }
 0x1bc   : > { %v2851_v9 = vpop.f32.mrb[43].mxu1  ;;  %v4547_v10 = vpop.eup %4546  ;;  %3303 = vst [vmem:[%s5050_s16 + $0x308] sm:$0xff] %v4545_v7  ;;  %v3023_v11 = vadd.f32 %v5033_v16, %v2550_v6  ;;  %4570 = vtanh.f32 %v3025_v4 }
 0x1bd   : > { %v4549_v12 = vpop.eup %4548  ;;  %3276 = vst [vmem:[%s5050_s16 + $0x230] sm:$0xff] %v4547_v10  ;;  %v3055_v13 = vadd.f32 %v5033_v16, %v2851_v9  ;;  %4572 = vtanh.f32 %v3057_v8  ;;  %v4068_v17 = vpop.f32.mrb[44].mxu0 }
 0x1be   : > { %v4551_v14 = vpop.eup %4550  ;;  %3308 = vst [vmem:[%s5050_s16 + $0x330] sm:$0xff] %v4549_v12  ;;  %4574 = vtanh.f32 %v3023_v11  ;;  %v3028_v19 = vadd.f32 %v4068_v17, %v5033_v16  ;;  %v4104_v20 = vpop.f32.mrb[44].mxu1  ;;  %v5245_v12 = vld [vmem:[%s5309_s4] ss:$0 sm:$0xff] }
 0x1bf   : > { %v4553_v15 = vpop.eup %4552  ;;  %3274 = vst [vmem:[%s5050_s16 + $0x220] sm:$0xff] %v4551_v14  ;;  %v2563_v21 = vpop.f32.mrb[45].mxu0  ;;  %4576 = vtanh.f32 %v3055_v13  ;;  %v3060_v23 = vadd.f32 %v4104_v20, %v5033_v16 }
 0x1c0   : > { %v4555_v18 = vpop.eup %4554  ;;  %3306 = vst [vmem:[%s5050_s16 + $0x320] sm:$0xff] %v4553_v15  ;;  %v3026_v24 = vadd.f32 %v5033_v16, %v2563_v21  ;;  %v2864_v25 = vpop.f32.mrb[45].mxu1  ;;  %4578 = vtanh.f32 %v3028_v19 }
 0x1c1   : > { %v4557_v22 = vpop.eup %4556  ;;  %3277 = vst [vmem:[%s5050_s16 + $0x238] sm:$0xff] %v4555_v18  ;;  %v4069_v26 = vpop.f32.mrb[46].mxu0  ;;  %v3058_v28 = vadd.f32 %v5033_v16, %v2864_v25  ;;  %4580 = vtanh.f32 %v3060_v23 }
 0x1c2   : > { %v4559_v27 = vpop.eup %4558  ;;  %3309 = vst [vmem:[%s5050_s16 + $0x338] sm:$0xff] %v4557_v22  ;;  %v3029_v29 = vadd.f32 %v4069_v26, %v5033_v16  ;;  %v4105_v30 = vpop.f32.mrb[46].mxu1  ;;  %4582 = vtanh.f32 %v3026_v24 }
 0x1c3   : > { %v2566_v31 = vpop.f32.mrb[47].mxu0  ;;  %v4561_v32 = vpop.eup %4560  ;;  %3275 = vst [vmem:[%s5050_s16 + $0x228] sm:$0xff] %v4559_v27  ;;  %v3061_v33 = vadd.f32 %v4105_v30, %v5033_v16  ;;  %4584 = vtanh.f32 %v3058_v28 }
 0x1c4   : > { %v2867_v34 = vpop.f32.mrb[47].mxu1  ;;  %v4563_v35 = vpop.eup %4562  ;;  %3307 = vst [vmem:[%s5050_s16 + $0x328] sm:$0xff] %v4561_v32  ;;  %v3027_v36 = vadd.f32 %v5033_v16, %v2566_v31  ;;  %4586 = vtanh.f32 %v3029_v29 }
 0x1c5   : > { %v4565_v37 = vpop.eup %4564  ;;  %3280 = vst [vmem:[%s5050_s16 + $0x250] sm:$0xff] %v4563_v35  ;;  %v3059_v38 = vadd.f32 %v5033_v16, %v2867_v34  ;;  %4588 = vtanh.f32 %v3061_v33  ;;  %v4072_v41 = vpop.f32.mrb[48].mxu0 }
 0x1c6   : > { %v4567_v39 = vpop.eup %4566  ;;  %3312 = vst [vmem:[%s5050_s16 + $0x350] sm:$0xff] %v4565_v37  ;;  %4590 = vtanh.f32 %v3027_v36  ;;  %v3032_v43 = vadd.f32 %v4072_v41, %v5033_v16  ;;  %v4108_v44 = vpop.f32.mrb[48].mxu1 }
 0x1c7   : > { %v4569_v40 = vpop.eup %4568  ;;  %3278 = vst [vmem:[%s5050_s16 + $0x240] sm:$0xff] %v4567_v39  ;;  %v2579_v45 = vpop.f32.mrb[49].mxu0  ;;  %4592 = vtanh.f32 %v3059_v38  ;;  %v3064_v47 = vadd.f32 %v4108_v44, %v5033_v16 }
 0x1c8   : > { %v4571_v42 = vpop.eup %4570  ;;  %3310 = vst [vmem:[%s5050_s16 + $0x340] sm:$0xff] %v4569_v40  ;;  %v3030_v48 = vadd.f32 %v5033_v16, %v2579_v45  ;;  %v2880_v49 = vpop.f32.mrb[49].mxu1  ;;  %4594 = vtanh.f32 %v3032_v43 }
 0x1c9   : > { %v4573_v46 = vpop.eup %4572  ;;  %3281 = vst [vmem:[%s5050_s16 + $0x258] sm:$0xff] %v4571_v42  ;;  %v4073_v50 = vpop.f32.mrb[50].mxu0  ;;  %v3062_v52 = vadd.f32 %v5033_v16, %v2880_v49  ;;  %4596 = vtanh.f32 %v3064_v47 }
 0x1ca   : > { %v4575_v51 = vpop.eup %4574  ;;  %3313 = vst [vmem:[%s5050_s16 + $0x358] sm:$0xff] %v4573_v46  ;;  %v3033_v53 = vadd.f32 %v4073_v50, %v5033_v16  ;;  %v4109_v54 = vpop.f32.mrb[50].mxu1  ;;  %4598 = vtanh.f32 %v3030_v48 }
 0x1cb   : > { %v2582_v55 = vpop.f32.mrb[51].mxu0  ;;  %v4577_v56 = vpop.eup %4576  ;;  %3279 = vst [vmem:[%s5050_s16 + $0x248] sm:$0xff] %v4575_v51  ;;  %v3065_v57 = vadd.f32 %v4109_v54, %v5033_v16  ;;  %4600 = vtanh.f32 %v3062_v52 }
 0x1cc   : > { %v2883_v58 = vpop.f32.mrb[51].mxu1  ;;  %v4579_v59 = vpop.eup %4578  ;;  %3311 = vst [vmem:[%s5050_s16 + $0x348] sm:$0xff] %v4577_v56  ;;  %v3031_v60 = vadd.f32 %v5033_v16, %v2582_v55  ;;  %4602 = vtanh.f32 %v3033_v53 }
 0x1cd   : > { %v4581_v61 = vpop.eup %4580  ;;  %3284 = vst [vmem:[%s5050_s16 + $0x270] sm:$0xff] %v4579_v59  ;;  %v3063_v62 = vadd.f32 %v5033_v16, %v2883_v58  ;;  %4604 = vtanh.f32 %v3065_v57  ;;  %v4076_v1 = vpop.f32.mrb[52].mxu0 }
 0x1ce   : > { %v4583_v63 = vpop.eup %4582  ;;  %3316 = vst [vmem:[%s5050_s16 + $0x370] sm:$0xff] %v4581_v61  ;;  %4606 = vtanh.f32 %v3031_v60  ;;  %v3036_v3 = vadd.f32 %v4076_v1, %v5033_v16  ;;  %v4112_v4 = vpop.f32.mrb[52].mxu1 }
 0x1cf   : > { %v4585_v0 = vpop.eup %4584  ;;  %3282 = vst [vmem:[%s5050_s16 + $0x260] sm:$0xff] %v4583_v63  ;;  %v2595_v5 = vpop.f32.mrb[53].mxu0  ;;  %4608 = vtanh.f32 %v3063_v62  ;;  %v3068_v7 = vadd.f32 %v4112_v4, %v5033_v16 }
 0x1d0   : > { %v4587_v2 = vpop.eup %4586  ;;  %3314 = vst [vmem:[%s5050_s16 + $0x360] sm:$0xff] %v4585_v0  ;;  %v3034_v8 = vadd.f32 %v5033_v16, %v2595_v5  ;;  %v2896_v9 = vpop.f32.mrb[53].mxu1  ;;  %4610 = vtanh.f32 %v3036_v3 }
 0x1d1   : > { %v4589_v6 = vpop.eup %4588  ;;  %3285 = vst [vmem:[%s5050_s16 + $0x278] sm:$0xff] %v4587_v2  ;;  %v4077_v10 = vpop.f32.mrb[54].mxu0  ;;  %v3066_v13 = vadd.f32 %v5245_v12, %v2896_v9  ;;  %4612 = vtanh.f32 %v3068_v7 }
 0x1d2   : > { %v4591_v11 = vpop.eup %4590  ;;  %3317 = vst [vmem:[%s5050_s16 + $0x378] sm:$0xff] %v4589_v6  ;;  %v3037_v14 = vadd.f32 %v5245_v12, %v4077_v10  ;;  %v4113_v15 = vpop.f32.mrb[54].mxu1  ;;  %4614 = vtanh.f32 %v3034_v8 }
 0x1d3   : > { %v2598_v17 = vpop.f32.mrb[55].mxu0  ;;  %v4593_v16 = vpop.eup %4592  ;;  %3283 = vst [vmem:[%s5050_s16 + $0x268] sm:$0xff] %v4591_v11  ;;  %v3069_v18 = vadd.f32 %v5245_v12, %v4113_v15  ;;  %4616 = vtanh.f32 %v3066_v13 }
 0x1d4   : > { %v2899_v19 = vpop.f32.mrb[55].mxu1  ;;  %v4595_v20 = vpop.eup %4594  ;;  %3315 = vst [vmem:[%s5050_s16 + $0x368] sm:$0xff] %v4593_v16  ;;  %v3035_v21 = vadd.f32 %v5245_v12, %v2598_v17  ;;  %4618 = vtanh.f32 %v3037_v14 }
 0x1d5   : > { %v4597_v22 = vpop.eup %4596  ;;  %3288 = vst [vmem:[%s5050_s16 + $0x290] sm:$0xff] %v4595_v20  ;;  %v3067_v23 = vadd.f32 %v5245_v12, %v2899_v19  ;;  %4620 = vtanh.f32 %v3069_v18  ;;  %v4080_v26 = vpop.f32.mrb[56].mxu0 }
 0x1d6   : > { %v4599_v24 = vpop.eup %4598  ;;  %3320 = vst [vmem:[%s5050_s16 + $0x390] sm:$0xff] %v4597_v22  ;;  %4622 = vtanh.f32 %v3035_v21  ;;  %v3040_v28 = vadd.f32 %v5245_v12, %v4080_v26  ;;  %v4116_v29 = vpop.f32.mrb[56].mxu1 }
 0x1d7   : > { %v4601_v25 = vpop.eup %4600  ;;  %3286 = vst [vmem:[%s5050_s16 + $0x280] sm:$0xff] %v4599_v24  ;;  %v2611_v30 = vpop.f32.mrb[57].mxu0  ;;  %4624 = vtanh.f32 %v3067_v23  ;;  %v3072_v32 = vadd.f32 %v5245_v12, %v4116_v29 }
 0x1d8   : > { %v4603_v27 = vpop.eup %4602  ;;  %3318 = vst [vmem:[%s5050_s16 + $0x380] sm:$0xff] %v4601_v25  ;;  %v3038_v33 = vadd.f32 %v5245_v12, %v2611_v30  ;;  %v2912_v34 = vpop.f32.mrb[57].mxu1  ;;  %4626 = vtanh.f32 %v3040_v28 }
 0x1d9   : > { %v4605_v31 = vpop.eup %4604  ;;  %3289 = vst [vmem:[%s5050_s16 + $0x298] sm:$0xff] %v4603_v27  ;;  %v4081_v35 = vpop.f32.mrb[58].mxu0  ;;  %v3070_v37 = vadd.f32 %v5245_v12, %v2912_v34  ;;  %4628 = vtanh.f32 %v3072_v32 }
 0x1da   : > { %v4607_v36 = vpop.eup %4606  ;;  %3321 = vst [vmem:[%s5050_s16 + $0x398] sm:$0xff] %v4605_v31  ;;  %v3041_v38 = vadd.f32 %v5245_v12, %v4081_v35  ;;  %v4117_v39 = vpop.f32.mrb[58].mxu1  ;;  %4630 = vtanh.f32 %v3038_v33 }
 0x1db   : > { %v2614_v40 = vpop.f32.mrb[59].mxu0  ;;  %v4609_v41 = vpop.eup %4608  ;;  %3287 = vst [vmem:[%s5050_s16 + $0x288] sm:$0xff] %v4607_v36  ;;  %v3073_v42 = vadd.f32 %v5245_v12, %v4117_v39  ;;  %4632 = vtanh.f32 %v3070_v37 }
 0x1dc   : > { %v2915_v43 = vpop.f32.mrb[59].mxu1  ;;  %v4611_v44 = vpop.eup %4610  ;;  %3319 = vst [vmem:[%s5050_s16 + $0x388] sm:$0xff] %v4609_v41  ;;  %v3039_v45 = vadd.f32 %v5245_v12, %v2614_v40  ;;  %4634 = vtanh.f32 %v3041_v38 }
 0x1dd   : > { %v4613_v46 = vpop.eup %4612  ;;  %3292 = vst [vmem:[%s5050_s16 + $0x2b0] sm:$0xff] %v4611_v44  ;;  %v3071_v47 = vadd.f32 %v5245_v12, %v2915_v43  ;;  %4636 = vtanh.f32 %v3073_v42  ;;  %v4084_v50 = vpop.f32.mrb[60].mxu0 }
 0x1de   : > { %v4615_v48 = vpop.eup %4614  ;;  %3324 = vst [vmem:[%s5050_s16 + $0x3b0] sm:$0xff] %v4613_v46  ;;  %4638 = vtanh.f32 %v3039_v45  ;;  %v3044_v52 = vadd.f32 %v5245_v12, %v4084_v50  ;;  %v4120_v53 = vpop.f32.mrb[60].mxu1 }
 0x1df   : > { %v4617_v49 = vpop.eup %4616  ;;  %3290 = vst [vmem:[%s5050_s16 + $0x2a0] sm:$0xff] %v4615_v48  ;;  %v2627_v54 = vpop.f32.mrb[61].mxu0  ;;  %4640 = vtanh.f32 %v3071_v47  ;;  %v3076_v56 = vadd.f32 %v5245_v12, %v4120_v53 }
 0x1e0   : > { %v4619_v51 = vpop.eup %4618  ;;  %3322 = vst [vmem:[%s5050_s16 + $0x3a0] sm:$0xff] %v4617_v49  ;;  %v3042_v57 = vadd.f32 %v5245_v12, %v2627_v54  ;;  %v2928_v58 = vpop.f32.mrb[61].mxu1  ;;  %4642 = vtanh.f32 %v3044_v52 }
 0x1e1   : > { %v4621_v55 = vpop.eup %4620  ;;  %3293 = vst [vmem:[%s5050_s16 + $0x2b8] sm:$0xff] %v4619_v51  ;;  %v4085_v59 = vpop.f32.mrb[62].mxu0  ;;  %v3074_v61 = vadd.f32 %v5245_v12, %v2928_v58  ;;  %4644 = vtanh.f32 %v3076_v56 }
 0x1e2   : > { %v4623_v60 = vpop.eup %4622  ;;  %3325 = vst [vmem:[%s5050_s16 + $0x3b8] sm:$0xff] %v4621_v55  ;;  %v3045_v62 = vadd.f32 %v5245_v12, %v4085_v59  ;;  %v4121_v63 = vpop.f32.mrb[62].mxu1  ;;  %4646 = vtanh.f32 %v3042_v57 }
 0x1e3   : > { %v2630_v0 = vpop.f32.mrb[63].mxu0  ;;  %v4625_v1 = vpop.eup %4624  ;;  %3291 = vst [vmem:[%s5050_s16 + $0x2a8] sm:$0xff] %v4623_v60  ;;  %v3077_v2 = vadd.f32 %v5245_v12, %v4121_v63  ;;  %4648 = vtanh.f32 %v3074_v61 }
 0x1e4   : > { %v2931_v3 = vpop.f32.mrb[63].mxu1  ;;  %v4627_v4 = vpop.eup %4626  ;;  %3323 = vst [vmem:[%s5050_s16 + $0x3a8] sm:$0xff] %v4625_v1  ;;  %v3043_v5 = vadd.f32 %v5245_v12, %v2630_v0  ;;  %4650 = vtanh.f32 %v3045_v62 }
 0x1e5   : > { %v4629_v6 = vpop.eup %4628  ;;  %3296 = vst [vmem:[%s5050_s16 + $0x2d0] sm:$0xff] %v4627_v4  ;;  %v3075_v7 = vadd.f32 %v5245_v12, %v2931_v3  ;;  %4652 = vtanh.f32 %v3077_v2 }
 0x1e6   : > { %v4631_v8 = vpop.eup %4630  ;;  %3328 = vst [vmem:[%s5050_s16 + $0x3d0] sm:$0xff] %v4629_v6  ;;  %4654 = vtanh.f32 %v3043_v5 }
 0x1e7   : > { %v4633_v9 = vpop.eup %4632  ;;  %3294 = vst [vmem:[%s5050_s16 + $0x2c0] sm:$0xff] %v4631_v8  ;;  %4656 = vtanh.f32 %v3075_v7 }
 0x1e8   : > { %v4635_v10 = vpop.eup %4634  ;;  %3326 = vst [vmem:[%s5050_s16 + $0x3c0] sm:$0xff] %v4633_v9 }
 0x1e9   : > { %v4637_v11 = vpop.eup %4636  ;;  %3297 = vst [vmem:[%s5050_s16 + $0x2d8] sm:$0xff] %v4635_v10 }
 0x1ea   : > { %v4639_v12 = vpop.eup %4638  ;;  %3329 = vst [vmem:[%s5050_s16 + $0x3d8] sm:$0xff] %v4637_v11 }
 0x1eb   : > { %v4641_v13 = vpop.eup %4640  ;;  %3295 = vst [vmem:[%s5050_s16 + $0x2c8] sm:$0xff] %v4639_v12 }
 0x1ec   : > { %v4643_v14 = vpop.eup %4642  ;;  %3327 = vst [vmem:[%s5050_s16 + $0x3c8] sm:$0xff] %v4641_v13 }
 0x1ed   : > { %v4645_v15 = vpop.eup %4644  ;;  %3300 = vst [vmem:[%s5050_s16 + $0x2f0] sm:$0xff] %v4643_v14 }
 0x1ee   : > { %v4647_v17 = vpop.eup %4646  ;;  %3332 = vst [vmem:[%s5050_s16 + $0x3f0] sm:$0xff] %v4645_v15 }
 0x1ef   : > { %v4649_v16 = vpop.eup %4648  ;;  %3298 = vst [vmem:[%s5050_s16 + $0x2e0] sm:$0xff] %v4647_v17 }
 0x1f0   : > { %v4651_v18 = vpop.eup %4650  ;;  %3330 = vst [vmem:[%s5050_s16 + $0x3e0] sm:$0xff] %v4649_v16 }
 0x1f1   : > { %v4653_v19 = vpop.eup %4652  ;;  %3301 = vst [vmem:[%s5050_s16 + $0x2f8] sm:$0xff] %v4651_v18 }
 0x1f2   : > { %v4655_v20 = vpop.eup %4654  ;;  %3333 = vst [vmem:[%s5050_s16 + $0x3f8] sm:$0xff] %v4653_v19 }
 0x1f3   : > { %v4657_v21 = vpop.eup %4656  ;;  %3299 = vst [vmem:[%s5050_s16 + $0x2e8] sm:$0xff] %v4655_v20 }
 0x1f4   : > { %3331 = vst [vmem:[%s5050_s16 + $0x3e8] sm:$0xff] %v4657_v21 }
 0x1f5 PF: > { %s15_s18 = sadd.s32 1, %s4665_s18  }
 0x1f6   : > { %p12_p4 = scmp.ge.s32.totalorder %s15_s18, 4  }
 0x1f8   :  { %14 = sbr.rel (!%p12_p4) target bundleno = 1 (0x1), region = 73 }

</bundles_post_ra>
